<compile_context>
chip_gen: v6e
topology: v6e:2x2x1
jax: 0.10.0
libtpu: 0.0.40
codegen_flags: <defaults>
</compile_context>

<pallas_src>
import numpy as np
import jax
import jax.numpy as jnp
from jax import lax
from jax.experimental import pallas as pl
from jax.experimental.pallas import tpu as pltpu

KERNEL_SIZE = 7
PAD = KERNEL_SIZE // 2            # 3 -> 'same' padding
IN_CH = 3
CH = 6
SEQ_LEN = 496                     # fc1 = Linear(372,16) => 6 * (496/8) = 372
L1, L2, L3 = SEQ_LEN // 2, SEQ_LEN // 4, SEQ_LEN // 8   # 248, 124, 62
FLAT = CH * L3                    # 372
HALO = 8                          # aligned data offset inside scratch buffers


# ------------------ fused conv+ReLU+AvgPool tower (one kernel) ------------- #
def _tower_kernel(x_ref, w1_ref, b1_ref, w2_ref, b2_ref, w3_ref, b3_ref,
                  o_ref, s1_ref, s2_ref):
    def conv_relu_pool(in_ref, data_start, w_ref, b_ref, out_half):
        # in_ref rows [data_start, data_start + 2*out_half) hold the unpadded
        # input; rows [data_start-PAD, data_start) and
        # [data_start+2*out_half, data_start+2*out_half+PAD) are zero.
        w = w_ref[...]                                # (7, Cin, Cout), resident
        cout = w.shape[2]
        acc_e = jnp.zeros((out_half, cout), jnp.float32)
        acc_o = jnp.zeros((out_half, cout), jnp.float32)
        base = data_start - PAD
        for k in range(KERNEL_SIZE):                  # static unroll: 7 taps
            wk = w[k]                                 # (Cin, Cout)
            # even / odd output phases -> avg-pool fused into the epilogue
            xe = in_ref[pl.ds(base + k, out_half, stride=2), :]
            xo = in_ref[pl.ds(base + k + 1, out_half, stride=2), :]
            acc_e = acc_e + jnp.dot(xe, wk, preferred_element_type=jnp.float32)
            acc_o = acc_o + jnp.dot(xo, wk, preferred_element_type=jnp.float32)
        b = b_ref[...]                                # (1, Cout)
        return 0.5 * (jnp.maximum(acc_e + b, 0.0) + jnp.maximum(acc_o + b, 0.0))

    # zero the scratch buffers (padding halos must be 0 every grid iteration)
    s1_ref[...] = jnp.zeros_like(s1_ref)
    s2_ref[...] = jnp.zeros_like(s2_ref)

    p1 = conv_relu_pool(x_ref, PAD, w1_ref, b1_ref, L1)            # (248, 6)
    s1_ref[HALO:HALO + L1, :] = p1                                 # single store
    p2 = conv_relu_pool(s1_ref, HALO, w2_ref, b2_ref, L2)          # (124, 6)
    s2_ref[HALO:HALO + L2, :] = p2
    o_ref[...] = conv_relu_pool(s2_ref, HALO, w3_ref, b3_ref, L3)  # (62, 6)


def cnn_tower(x_nlc, w1, b1, w2, b2, w3, b3):
    n = x_nlc.shape[0]
    x_pad = jnp.pad(x_nlc, ((0, 0), (PAD, PAD), (0, 0)))           # (N, 502, 3)
    lp = SEQ_LEN + 2 * PAD
    wmap3 = lambda i: (0, 0, 0)
    bmap2 = lambda i: (0, 0)
    return pl.pallas_call(
        _tower_kernel,
        out_shape=jax.ShapeDtypeStruct((n, L3, CH), jnp.float32),
        grid=(n,),
        in_specs=[
            pl.BlockSpec((None, lp, IN_CH), lambda i: (i, 0, 0)),
            pl.BlockSpec((KERNEL_SIZE, IN_CH, CH), wmap3),
            pl.BlockSpec((1, CH), bmap2),
            pl.BlockSpec((KERNEL_SIZE, CH, CH), wmap3),
            pl.BlockSpec((1, CH), bmap2),
            pl.BlockSpec((KERNEL_SIZE, CH, CH), wmap3),
            pl.BlockSpec((1, CH), bmap2),
        ],
        out_specs=pl.BlockSpec((None, L3, CH), lambda i: (i, 0, 0)),
        scratch_shapes=[
            pltpu.VMEM((HALO + L1 + HALO, CH), jnp.float32),   # (264, 6)
            pltpu.VMEM((HALO + L2 + 2 * HALO, CH), jnp.float32),  # (148, 6)
        ],
        compiler_params=pltpu.CompilerParams(
            dimension_semantics=("parallel",)),                # v7x: 2 TCs
    )(x_pad, w1, b1.reshape(1, CH), w2, b2.reshape(1, CH),
      w3, b3.reshape(1, CH))


# ------------------------------- MLP head ---------------------------------- #
def _mlp_kernel(x_ref, w1_ref, b1_ref, w2_ref, b2_ref, w3_ref, b3_ref, o_ref):
    h = jnp.dot(x_ref[...], w1_ref[...], preferred_element_type=jnp.float32)
    h = jnp.maximum(h + b1_ref[...], 0.0)
    h = jnp.dot(h, w2_ref[...], preferred_element_type=jnp.float32)
    h = jnp.maximum(h + b2_ref[...], 0.0)
    o_ref[...] = jnp.dot(h, w3_ref[...],
                         preferred_element_type=jnp.float32) + b3_ref[...]


def mlp_head(x, w1, b1, w2, b2, w3, b3):
    n = x.shape[0]
    vmem = pl.BlockSpec(memory_space=pltpu.MemorySpace.VMEM)
    return pl.pallas_call(
        _mlp_kernel,
        out_shape=jax.ShapeDtypeStruct((n, 1), jnp.float32),
        in_specs=[vmem] * 7,
        out_specs=vmem,
    )(x, w1, b1.reshape(1, -1), w2, b2.reshape(1, -1), w3, b3.reshape(1, -1))


# ----------------------------- full forward -------------------------------- #
def cnnavg_forward(x_ncl, p):
    x = jnp.transpose(x_ncl, (0, 2, 1))                    # NCL -> NLC
    y = cnn_tower(x, p["conv1_w"], p["conv1_b"], p["conv2_w"], p["conv2_b"],
                  p["conv3_w"], p["conv3_b"])              # (N, 62, 6)
    # torch-order flatten: (N, C, L) row-major -> 6*62 = 372 features
    flat = jnp.transpose(y, (0, 2, 1)).reshape(y.shape[0], -1)
    return mlp_head(flat, p["fc1_w"], p["fc1_b"], p["fc2_w"], p["fc2_b"],
                    p["fc3_w"], p["fc3_b"])


# ----------------------- deterministic parameter init ---------------------- #
def init_params(key):
    conv_cfg = [("conv1", IN_CH, CH), ("conv2", CH, CH), ("conv3", CH, CH)]
    fc_cfg = [("fc1", FLAT, 16), ("fc2", 16, 64), ("fc3", 64, 1)]
    params = {}
    keys = jax.random.split(key, len(conv_cfg) + len(fc_cfg))
    idx = 0
    for name, cin, cout in conv_cfg:
        kw, kb = jax.random.split(keys[idx]); idx += 1
        bound = 1.0 / np.sqrt(cin * KERNEL_SIZE)
        params[name + "_w"] = jax.random.uniform(
            kw, (KERNEL_SIZE, cin, cout), jnp.float32, -bound, bound)
        params[name + "_b"] = jax.random.uniform(
            kb, (cout,), jnp.float32, -bound, bound)
    for name, fin, fout in fc_cfg:
        kw, kb = jax.random.split(keys[idx]); idx += 1
        bound = 1.0 / np.sqrt(fin)
        params[name + "_w"] = jax.random.uniform(
            kw, (fin, fout), jnp.float32, -bound, bound)
        params[name + "_b"] = jax.random.uniform(
            kb, (fout,), jnp.float32, -bound, bound)
    return params


# ----------------------------- pure-JAX reference -------------------------- #
def ref_forward(x_ncl, p):
    def conv(x, w, b):
        out = lax.conv_general_dilated(
            x, w, window_strides=(1,), padding=[(PAD, PAD)],
            dimension_numbers=("NWC", "WIO", "NWC"),
            precision=lax.Precision.HIGHEST)
        return jnp.maximum(out + b, 0.0)

    def pool(x):
        n, length, c = x.shape
        return x.reshape(n, length // 2, 2, c).mean(axis=2)

    x = jnp.transpose(x_ncl, (0, 2, 1))
    x = pool(conv(x, p["conv1_w"], p["conv1_b"]))
    x = pool(conv(x, p["conv2_w"], p["conv2_b"]))
    y = pool(conv(x, p["conv3_w"], p["conv3_b"]))
    flat = jnp.transpose(y, (0, 2, 1)).reshape(y.shape[0], -1)
    h = jnp.maximum(jnp.dot(flat, p["fc1_w"],
                            precision=lax.Precision.HIGHEST) + p["fc1_b"], 0.0)
    h = jnp.maximum(jnp.dot(h, p["fc2_w"],
                            precision=lax.Precision.HIGHEST) + p["fc2_b"], 0.0)
    return jnp.dot(h, p["fc3_w"], precision=lax.Precision.HIGHEST) + p["fc3_b"]


if __name__ == "__main__":
    key = jax.random.PRNGKey(0)
    k_in, k_par = jax.random.split(key)
    params = init_params(k_par)
    # fc1 = Linear(372, 16) implies input length 496 (6 ch * 496/8 = 372).
    x = jax.random.normal(k_in, (2, IN_CH, SEQ_LEN), dtype=jnp.float32)  # NCL

    fwd = jax.jit(lambda inp: cnnavg_forward(inp, params))
    out = jax.block_until_ready(fwd(x))
    assert out.shape == (2, 1) and out.dtype == jnp.float32

    ref = jax.block_until_ready(ref_forward(x, params))
    np.testing.assert_allclose(np.asarray(out), np.asarray(ref),
                               rtol=1e-2, atol=1e-2)
    print("KERNEL_OK")
</pallas_src>

<mosaic_0001>
module attributes {stable_mosaic.version = 11 : i64} {
  func.func @_tower_kernel(%arg0: i32, %arg1: memref<1x502x3xf32, #tpu.memory_space<vmem>>, %arg2: memref<7x3x6xf32, #tpu.memory_space<vmem>>, %arg3: memref<1x6xf32, #tpu.memory_space<vmem>>, %arg4: memref<7x6x6xf32, #tpu.memory_space<vmem>>, %arg5: memref<1x6xf32, #tpu.memory_space<vmem>>, %arg6: memref<7x6x6xf32, #tpu.memory_space<vmem>>, %arg7: memref<1x6xf32, #tpu.memory_space<vmem>>, %arg8: memref<1x62x6xf32, #tpu.memory_space<vmem>>, %arg9: memref<264x6xf32, #tpu.memory_space<vmem>>, %arg10: memref<148x6xf32, #tpu.memory_space<vmem>>) attributes {dimension_semantics = [#tpu.dimension_semantics<parallel>], iteration_bounds = array<i64: 2>, scalar_prefetch = 0 : i64, scratch_operands = 2 : i64, tpu.core_type = #tpu.core_type<tc>, window_params = [{transform_indices = @transform_0, window_bounds = array<i64: 1, 502, 3>}, {pipeline_mode = #tpu.pipeline_mode<synchronous>, transform_indices = @transform_1, window_bounds = array<i64: 7, 3, 6>}, {pipeline_mode = #tpu.pipeline_mode<synchronous>, transform_indices = @transform_2, window_bounds = array<i64: 1, 6>}, {pipeline_mode = #tpu.pipeline_mode<synchronous>, transform_indices = @transform_3, window_bounds = array<i64: 7, 6, 6>}, {pipeline_mode = #tpu.pipeline_mode<synchronous>, transform_indices = @transform_4, window_bounds = array<i64: 1, 6>}, {pipeline_mode = #tpu.pipeline_mode<synchronous>, transform_indices = @transform_5, window_bounds = array<i64: 7, 6, 6>}, {pipeline_mode = #tpu.pipeline_mode<synchronous>, transform_indices = @transform_6, window_bounds = array<i64: 1, 6>}, {transform_indices = @transform_7, window_bounds = array<i64: 1, 62, 6>}]} {
    %cst = arith.constant 0.000000e+00 : f32
    %0 = vector.broadcast %cst : f32 to vector<264x6xf32>
    %c0 = arith.constant 0 : index
    %c0_0 = arith.constant 0 : index
    %1 = vector.load %arg9[%c0, %c0_0] : memref<264x6xf32, #tpu.memory_space<vmem>>, vector<264x6xf32>
    tpu.vector_store %arg9[%c0, %c0_0], %0 {strides = array<i32>} : memref<264x6xf32, #tpu.memory_space<vmem>>, vector<264x6xf32>,
    %cst_1 = arith.constant 0.000000e+00 : f32
    %2 = vector.broadcast %cst_1 : f32 to vector<148x6xf32>
    %c0_2 = arith.constant 0 : index
    %c0_3 = arith.constant 0 : index
    %3 = vector.load %arg10[%c0_2, %c0_3] : memref<148x6xf32, #tpu.memory_space<vmem>>, vector<148x6xf32>
    tpu.vector_store %arg10[%c0_2, %c0_3], %2 {strides = array<i32>} : memref<148x6xf32, #tpu.memory_space<vmem>>, vector<148x6xf32>,
    %c0_4 = arith.constant 0 : index
    %c0_5 = arith.constant 0 : index
    %c0_6 = arith.constant 0 : index
    %4 = vector.load %arg2[%c0_4, %c0_5, %c0_6] : memref<7x3x6xf32, #tpu.memory_space<vmem>>, vector<7x3x6xf32>
    %cst_7 = arith.constant 0.000000e+00 : f32
    %5 = vector.broadcast %cst_7 : f32 to vector<248x6xf32>
    %cst_8 = arith.constant 0.000000e+00 : f32
    %6 = vector.broadcast %cst_8 : f32 to vector<248x6xf32>
    %7 = vector.extract_strided_slice %4 {offsets = [0, 0, 0], sizes = [1, 3, 6], strides = [1, 1, 1]} : vector<7x3x6xf32> to vector<1x3x6xf32>
    %8 = vector.shape_cast %7 : vector<1x3x6xf32> to vector<3x6xf32>
    %c0_9 = arith.constant 0 : index
    %c0_10 = arith.constant 0 : index
    %c0_11 = arith.constant 0 : index
    %9 = tpu.strided_load %arg1[%c0_9, %c0_10, %c0_11] {strides = array<i32: 1, 2, 1>} : memref<1x502x3xf32, #tpu.memory_space<vmem>>, vector<1x248x3xf32>
    %10 = vector.shape_cast %9 : vector<1x248x3xf32> to vector<248x3xf32>
    %c0_12 = arith.constant 0 : index
    %c1 = arith.constant 1 : index
    %c0_13 = arith.constant 0 : index
    %11 = tpu.strided_load %arg1[%c0_12, %c1, %c0_13] {strides = array<i32: 1, 2, 1>} : memref<1x502x3xf32, #tpu.memory_space<vmem>>, vector<1x248x3xf32>
    %12 = vector.shape_cast %11 : vector<1x248x3xf32> to vector<248x3xf32>
    %cst_14 = arith.constant dense<0.000000e+00> : vector<248x6xf32>
    %13 = tpu.matmul %10, %8, %cst_14 {dimension_numbers = #tpu.dot_dimension_numbers<[1], [0], [0], [1], [0, 0, 1, 1], [], []>} : vector<248x3xf32>, vector<3x6xf32>, vector<248x6xf32> -> vector<248x6xf32>
    %14 = arith.addf %5, %13 : vector<248x6xf32>
    %cst_15 = arith.constant dense<0.000000e+00> : vector<248x6xf32>
    %15 = tpu.matmul %12, %8, %cst_15 {dimension_numbers = #tpu.dot_dimension_numbers<[1], [0], [0], [1], [0, 0, 1, 1], [], []>} : vector<248x3xf32>, vector<3x6xf32>, vector<248x6xf32> -> vector<248x6xf32>
    %16 = arith.addf %6, %15 : vector<248x6xf32>
    %17 = vector.extract_strided_slice %4 {offsets = [1, 0, 0], sizes = [1, 3, 6], strides = [1, 1, 1]} : vector<7x3x6xf32> to vector<1x3x6xf32>
    %18 = vector.shape_cast %17 : vector<1x3x6xf32> to vector<3x6xf32>
    %c0_16 = arith.constant 0 : index
    %c1_17 = arith.constant 1 : index
    %c0_18 = arith.constant 0 : index
    %19 = tpu.strided_load %arg1[%c0_16, %c1_17, %c0_18] {strides = array<i32: 1, 2, 1>} : memref<1x502x3xf32, #tpu.memory_space<vmem>>, vector<1x248x3xf32>
    %20 = vector.shape_cast %19 : vector<1x248x3xf32> to vector<248x3xf32>
    %c0_19 = arith.constant 0 : index
    %c2 = arith.constant 2 : index
    %c0_20 = arith.constant 0 : index
    %21 = tpu.strided_load %arg1[%c0_19, %c2, %c0_20] {strides = array<i32: 1, 2, 1>} : memref<1x502x3xf32, #tpu.memory_space<vmem>>, vector<1x248x3xf32>
    %22 = vector.shape_cast %21 : vector<1x248x3xf32> to vector<248x3xf32>
    %cst_21 = arith.constant dense<0.000000e+00> : vector<248x6xf32>
    %23 = tpu.matmul %20, %18, %cst_21 {dimension_numbers = #tpu.dot_dimension_numbers<[1], [0], [0], [1], [0, 0, 1, 1], [], []>} : vector<248x3xf32>, vector<3x6xf32>, vector<248x6xf32> -> vector<248x6xf32>
    %24 = arith.addf %14, %23 : vector<248x6xf32>
    %cst_22 = arith.constant dense<0.000000e+00> : vector<248x6xf32>
    %25 = tpu.matmul %22, %18, %cst_22 {dimension_numbers = #tpu.dot_dimension_numbers<[1], [0], [0], [1], [0, 0, 1, 1], [], []>} : vector<248x3xf32>, vector<3x6xf32>, vector<248x6xf32> -> vector<248x6xf32>
    %26 = arith.addf %16, %25 : vector<248x6xf32>
    %27 = vector.extract_strided_slice %4 {offsets = [2, 0, 0], sizes = [1, 3, 6], strides = [1, 1, 1]} : vector<7x3x6xf32> to vector<1x3x6xf32>
    %28 = vector.shape_cast %27 : vector<1x3x6xf32> to vector<3x6xf32>
    %c0_23 = arith.constant 0 : index
    %c2_24 = arith.constant 2 : index
    %c0_25 = arith.constant 0 : index
    %29 = tpu.strided_load %arg1[%c0_23, %c2_24, %c0_25] {strides = array<i32: 1, 2, 1>} : memref<1x502x3xf32, #tpu.memory_space<vmem>>, vector<1x248x3xf32>
    %30 = vector.shape_cast %29 : vector<1x248x3xf32> to vector<248x3xf32>
    %c0_26 = arith.constant 0 : index
    %c3 = arith.constant 3 : index
    %c0_27 = arith.constant 0 : index
    %31 = tpu.strided_load %arg1[%c0_26, %c3, %c0_27] {strides = array<i32: 1, 2, 1>} : memref<1x502x3xf32, #tpu.memory_space<vmem>>, vector<1x248x3xf32>
    %32 = vector.shape_cast %31 : vector<1x248x3xf32> to vector<248x3xf32>
    %cst_28 = arith.constant dense<0.000000e+00> : vector<248x6xf32>
    %33 = tpu.matmul %30, %28, %cst_28 {dimension_numbers = #tpu.dot_dimension_numbers<[1], [0], [0], [1], [0, 0, 1, 1], [], []>} : vector<248x3xf32>, vector<3x6xf32>, vector<248x6xf32> -> vector<248x6xf32>
    %34 = arith.addf %24, %33 : vector<248x6xf32>
    %cst_29 = arith.constant dense<0.000000e+00> : vector<248x6xf32>
    %35 = tpu.matmul %32, %28, %cst_29 {dimension_numbers = #tpu.dot_dimension_numbers<[1], [0], [0], [1], [0, 0, 1, 1], [], []>} : vector<248x3xf32>, vector<3x6xf32>, vector<248x6xf32> -> vector<248x6xf32>
    %36 = arith.addf %26, %35 : vector<248x6xf32>
    %37 = vector.extract_strided_slice %4 {offsets = [3, 0, 0], sizes = [1, 3, 6], strides = [1, 1, 1]} : vector<7x3x6xf32> to vector<1x3x6xf32>
    %38 = vector.shape_cast %37 : vector<1x3x6xf32> to vector<3x6xf32>
    %c0_30 = arith.constant 0 : index
    %c3_31 = arith.constant 3 : index
    %c0_32 = arith.constant 0 : index
    %39 = tpu.strided_load %arg1[%c0_30, %c3_31, %c0_32] {strides = array<i32: 1, 2, 1>} : memref<1x502x3xf32, #tpu.memory_space<vmem>>, vector<1x248x3xf32>
    %40 = vector.shape_cast %39 : vector<1x248x3xf32> to vector<248x3xf32>
    %c0_33 = arith.constant 0 : index
    %c4 = arith.constant 4 : index
    %c0_34 = arith.constant 0 : index
    %41 = tpu.strided_load %arg1[%c0_33, %c4, %c0_34] {strides = array<i32: 1, 2, 1>} : memref<1x502x3xf32, #tpu.memory_space<vmem>>, vector<1x248x3xf32>
    %42 = vector.shape_cast %41 : vector<1x248x3xf32> to vector<248x3xf32>
    %cst_35 = arith.constant dense<0.000000e+00> : vector<248x6xf32>
    %43 = tpu.matmul %40, %38, %cst_35 {dimension_numbers = #tpu.dot_dimension_numbers<[1], [0], [0], [1], [0, 0, 1, 1], [], []>} : vector<248x3xf32>, vector<3x6xf32>, vector<248x6xf32> -> vector<248x6xf32>
    %44 = arith.addf %34, %43 : vector<248x6xf32>
    %cst_36 = arith.constant dense<0.000000e+00> : vector<248x6xf32>
    %45 = tpu.matmul %42, %38, %cst_36 {dimension_numbers = #tpu.dot_dimension_numbers<[1], [0], [0], [1], [0, 0, 1, 1], [], []>} : vector<248x3xf32>, vector<3x6xf32>, vector<248x6xf32> -> vector<248x6xf32>
    %46 = arith.addf %36, %45 : vector<248x6xf32>
    %47 = vector.extract_strided_slice %4 {offsets = [4, 0, 0], sizes = [1, 3, 6], strides = [1, 1, 1]} : vector<7x3x6xf32> to vector<1x3x6xf32>
    %48 = vector.shape_cast %47 : vector<1x3x6xf32> to vector<3x6xf32>
    %c0_37 = arith.constant 0 : index
    %c4_38 = arith.constant 4 : index
    %c0_39 = arith.constant 0 : index
    %49 = tpu.strided_load %arg1[%c0_37, %c4_38, %c0_39] {strides = array<i32: 1, 2, 1>} : memref<1x502x3xf32, #tpu.memory_space<vmem>>, vector<1x248x3xf32>
    %50 = vector.shape_cast %49 : vector<1x248x3xf32> to vector<248x3xf32>
    %c0_40 = arith.constant 0 : index
    %c5 = arith.constant 5 : index
    %c0_41 = arith.constant 0 : index
    %51 = tpu.strided_load %arg1[%c0_40, %c5, %c0_41] {strides = array<i32: 1, 2, 1>} : memref<1x502x3xf32, #tpu.memory_space<vmem>>, vector<1x248x3xf32>
    %52 = vector.shape_cast %51 : vector<1x248x3xf32> to vector<248x3xf32>
    %cst_42 = arith.constant dense<0.000000e+00> : vector<248x6xf32>
    %53 = tpu.matmul %50, %48, %cst_42 {dimension_numbers = #tpu.dot_dimension_numbers<[1], [0], [0], [1], [0, 0, 1, 1], [], []>} : vector<248x3xf32>, vector<3x6xf32>, vector<248x6xf32> -> vector<248x6xf32>
    %54 = arith.addf %44, %53 : vector<248x6xf32>
    %cst_43 = arith.constant dense<0.000000e+00> : vector<248x6xf32>
    %55 = tpu.matmul %52, %48, %cst_43 {dimension_numbers = #tpu.dot_dimension_numbers<[1], [0], [0], [1], [0, 0, 1, 1], [], []>} : vector<248x3xf32>, vector<3x6xf32>, vector<248x6xf32> -> vector<248x6xf32>
    %56 = arith.addf %46, %55 : vector<248x6xf32>
    %57 = vector.extract_strided_slice %4 {offsets = [5, 0, 0], sizes = [1, 3, 6], strides = [1, 1, 1]} : vector<7x3x6xf32> to vector<1x3x6xf32>
    %58 = vector.shape_cast %57 : vector<1x3x6xf32> to vector<3x6xf32>
    %c0_44 = arith.constant 0 : index
    %c5_45 = arith.constant 5 : index
    %c0_46 = arith.constant 0 : index
    %59 = tpu.strided_load %arg1[%c0_44, %c5_45, %c0_46] {strides = array<i32: 1, 2, 1>} : memref<1x502x3xf32, #tpu.memory_space<vmem>>, vector<1x248x3xf32>
    %60 = vector.shape_cast %59 : vector<1x248x3xf32> to vector<248x3xf32>
    %c0_47 = arith.constant 0 : index
    %c6 = arith.constant 6 : index
    %c0_48 = arith.constant 0 : index
    %61 = tpu.strided_load %arg1[%c0_47, %c6, %c0_48] {strides = array<i32: 1, 2, 1>} : memref<1x502x3xf32, #tpu.memory_space<vmem>>, vector<1x248x3xf32>
    %62 = vector.shape_cast %61 : vector<1x248x3xf32> to vector<248x3xf32>
    %cst_49 = arith.constant dense<0.000000e+00> : vector<248x6xf32>
    %63 = tpu.matmul %60, %58, %cst_49 {dimension_numbers = #tpu.dot_dimension_numbers<[1], [0], [0], [1], [0, 0, 1, 1], [], []>} : vector<248x3xf32>, vector<3x6xf32>, vector<248x6xf32> -> vector<248x6xf32>
    %64 = arith.addf %54, %63 : vector<248x6xf32>
    %cst_50 = arith.constant dense<0.000000e+00> : vector<248x6xf32>
    %65 = tpu.matmul %62, %58, %cst_50 {dimension_numbers = #tpu.dot_dimension_numbers<[1], [0], [0], [1], [0, 0, 1, 1], [], []>} : vector<248x3xf32>, vector<3x6xf32>, vector<248x6xf32> -> vector<248x6xf32>
    %66 = arith.addf %56, %65 : vector<248x6xf32>
    %67 = vector.extract_strided_slice %4 {offsets = [6, 0, 0], sizes = [1, 3, 6], strides = [1, 1, 1]} : vector<7x3x6xf32> to vector<1x3x6xf32>
    %68 = vector.shape_cast %67 : vector<1x3x6xf32> to vector<3x6xf32>
    %c0_51 = arith.constant 0 : index
    %c6_52 = arith.constant 6 : index
    %c0_53 = arith.constant 0 : index
    %69 = tpu.strided_load %arg1[%c0_51, %c6_52, %c0_53] {strides = array<i32: 1, 2, 1>} : memref<1x502x3xf32, #tpu.memory_space<vmem>>, vector<1x248x3xf32>
    %70 = vector.shape_cast %69 : vector<1x248x3xf32> to vector<248x3xf32>
    %c0_54 = arith.constant 0 : index
    %c7 = arith.constant 7 : index
    %c0_55 = arith.constant 0 : index
    %71 = tpu.strided_load %arg1[%c0_54, %c7, %c0_55] {strides = array<i32: 1, 2, 1>} : memref<1x502x3xf32, #tpu.memory_space<vmem>>, vector<1x248x3xf32>
    %72 = vector.shape_cast %71 : vector<1x248x3xf32> to vector<248x3xf32>
    %cst_56 = arith.constant dense<0.000000e+00> : vector<248x6xf32>
    %73 = tpu.matmul %70, %68, %cst_56 {dimension_numbers = #tpu.dot_dimension_numbers<[1], [0], [0], [1], [0, 0, 1, 1], [], []>} : vector<248x3xf32>, vector<3x6xf32>, vector<248x6xf32> -> vector<248x6xf32>
    %74 = arith.addf %64, %73 : vector<248x6xf32>
    %cst_57 = arith.constant dense<0.000000e+00> : vector<248x6xf32>
    %75 = tpu.matmul %72, %68, %cst_57 {dimension_numbers = #tpu.dot_dimension_numbers<[1], [0], [0], [1], [0, 0, 1, 1], [], []>} : vector<248x3xf32>, vector<3x6xf32>, vector<248x6xf32> -> vector<248x6xf32>
    %76 = arith.addf %66, %75 : vector<248x6xf32>
    %c0_58 = arith.constant 0 : index
    %c0_59 = arith.constant 0 : index
    %77 = vector.load %arg3[%c0_58, %c0_59] : memref<1x6xf32, #tpu.memory_space<vmem>>, vector<1x6xf32>
    %78 = vector.broadcast %77 : vector<1x6xf32> to vector<248x6xf32>
    %79 = arith.addf %74, %78 : vector<248x6xf32>
    %cst_60 = arith.constant 0.000000e+00 : f32
    %80 = vector.broadcast %cst_60 : f32 to vector<248x6xf32>
    %81 = arith.maximumf %79, %80 : vector<248x6xf32>
    %82 = vector.broadcast %77 : vector<1x6xf32> to vector<248x6xf32>
    %83 = arith.addf %76, %82 : vector<248x6xf32>
    %cst_61 = arith.constant 0.000000e+00 : f32
    %84 = vector.broadcast %cst_61 : f32 to vector<248x6xf32>
    %85 = arith.maximumf %83, %84 : vector<248x6xf32>
    %86 = arith.addf %81, %85 : vector<248x6xf32>
    %cst_62 = arith.constant 5.000000e-01 : f32
    %87 = vector.broadcast %cst_62 : f32 to vector<248x6xf32>
    %88 = arith.mulf %87, %86 : vector<248x6xf32>
    %c8 = arith.constant 8 : index
    %c0_63 = arith.constant 0 : index
    %89 = vector.load %arg9[%c8, %c0_63] : memref<264x6xf32, #tpu.memory_space<vmem>>, vector<248x6xf32>
    tpu.vector_store %arg9[%c8, %c0_63], %88 {strides = array<i32>} : memref<264x6xf32, #tpu.memory_space<vmem>>, vector<248x6xf32>,
    %c0_64 = arith.constant 0 : index
    %c0_65 = arith.constant 0 : index
    %c0_66 = arith.constant 0 : index
    %90 = vector.load %arg4[%c0_64, %c0_65, %c0_66] : memref<7x6x6xf32, #tpu.memory_space<vmem>>, vector<7x6x6xf32>
    %cst_67 = arith.constant 0.000000e+00 : f32
    %91 = vector.broadcast %cst_67 : f32 to vector<124x6xf32>
    %cst_68 = arith.constant 0.000000e+00 : f32
    %92 = vector.broadcast %cst_68 : f32 to vector<124x6xf32>
    %93 = vector.extract_strided_slice %90 {offsets = [0, 0, 0], sizes = [1, 6, 6], strides = [1, 1, 1]} : vector<7x6x6xf32> to vector<1x6x6xf32>
    %94 = vector.shape_cast %93 : vector<1x6x6xf32> to vector<6x6xf32>
    %c5_69 = arith.constant 5 : index
    %c0_70 = arith.constant 0 : index
    %95 = tpu.strided_load %arg9[%c5_69, %c0_70] {strides = array<i32: 2, 1>} : memref<264x6xf32, #tpu.memory_space<vmem>>, vector<124x6xf32>
    %c6_71 = arith.constant 6 : index
    %c0_72 = arith.constant 0 : index
    %96 = tpu.strided_load %arg9[%c6_71, %c0_72] {strides = array<i32: 2, 1>} : memref<264x6xf32, #tpu.memory_space<vmem>>, vector<124x6xf32>
    %cst_73 = arith.constant dense<0.000000e+00> : vector<124x6xf32>
    %97 = tpu.matmul %95, %94, %cst_73 {dimension_numbers = #tpu.dot_dimension_numbers<[1], [0], [0], [1], [0, 0, 1, 1], [], []>} : vector<124x6xf32>, vector<6x6xf32>, vector<124x6xf32> -> vector<124x6xf32>
    %98 = arith.addf %91, %97 : vector<124x6xf32>
    %cst_74 = arith.constant dense<0.000000e+00> : vector<124x6xf32>
    %99 = tpu.matmul %96, %94, %cst_74 {dimension_numbers = #tpu.dot_dimension_numbers<[1], [0], [0], [1], [0, 0, 1, 1], [], []>} : vector<124x6xf32>, vector<6x6xf32>, vector<124x6xf32> -> vector<124x6xf32>
    %100 = arith.addf %92, %99 : vector<124x6xf32>
    %101 = vector.extract_strided_slice %90 {offsets = [1, 0, 0], sizes = [1, 6, 6], strides = [1, 1, 1]} : vector<7x6x6xf32> to vector<1x6x6xf32>
    %102 = vector.shape_cast %101 : vector<1x6x6xf32> to vector<6x6xf32>
    %c6_75 = arith.constant 6 : index
    %c0_76 = arith.constant 0 : index
    %103 = tpu.strided_load %arg9[%c6_75, %c0_76] {strides = array<i32: 2, 1>} : memref<264x6xf32, #tpu.memory_space<vmem>>, vector<124x6xf32>
    %c7_77 = arith.constant 7 : index
    %c0_78 = arith.constant 0 : index
    %104 = tpu.strided_load %arg9[%c7_77, %c0_78] {strides = array<i32: 2, 1>} : memref<264x6xf32, #tpu.memory_space<vmem>>, vector<124x6xf32>
    %cst_79 = arith.constant dense<0.000000e+00> : vector<124x6xf32>
    %105 = tpu.matmul %103, %102, %cst_79 {dimension_numbers = #tpu.dot_dimension_numbers<[1], [0], [0], [1], [0, 0, 1, 1], [], []>} : vector<124x6xf32>, vector<6x6xf32>, vector<124x6xf32> -> vector<124x6xf32>
    %106 = arith.addf %98, %105 : vector<124x6xf32>
    %cst_80 = arith.constant dense<0.000000e+00> : vector<124x6xf32>
    %107 = tpu.matmul %104, %102, %cst_80 {dimension_numbers = #tpu.dot_dimension_numbers<[1], [0], [0], [1], [0, 0, 1, 1], [], []>} : vector<124x6xf32>, vector<6x6xf32>, vector<124x6xf32> -> vector<124x6xf32>
    %108 = arith.addf %100, %107 : vector<124x6xf32>
    %109 = vector.extract_strided_slice %90 {offsets = [2, 0, 0], sizes = [1, 6, 6], strides = [1, 1, 1]} : vector<7x6x6xf32> to vector<1x6x6xf32>
    %110 = vector.shape_cast %109 : vector<1x6x6xf32> to vector<6x6xf32>
    %c7_81 = arith.constant 7 : index
    %c0_82 = arith.constant 0 : index
    %111 = tpu.strided_load %arg9[%c7_81, %c0_82] {strides = array<i32: 2, 1>} : memref<264x6xf32, #tpu.memory_space<vmem>>, vector<124x6xf32>
    %c8_83 = arith.constant 8 : index
    %c0_84 = arith.constant 0 : index
    %112 = tpu.strided_load %arg9[%c8_83, %c0_84] {strides = array<i32: 2, 1>} : memref<264x6xf32, #tpu.memory_space<vmem>>, vector<124x6xf32>
    %cst_85 = arith.constant dense<0.000000e+00> : vector<124x6xf32>
    %113 = tpu.matmul %111, %110, %cst_85 {dimension_numbers = #tpu.dot_dimension_numbers<[1], [0], [0], [1], [0, 0, 1, 1], [], []>} : vector<124x6xf32>, vector<6x6xf32>, vector<124x6xf32> -> vector<124x6xf32>
    %114 = arith.addf %106, %113 : vector<124x6xf32>
    %cst_86 = arith.constant dense<0.000000e+00> : vector<124x6xf32>
    %115 = tpu.matmul %112, %110, %cst_86 {dimension_numbers = #tpu.dot_dimension_numbers<[1], [0], [0], [1], [0, 0, 1, 1], [], []>} : vector<124x6xf32>, vector<6x6xf32>, vector<124x6xf32> -> vector<124x6xf32>
    %116 = arith.addf %108, %115 : vector<124x6xf32>
    %117 = vector.extract_strided_slice %90 {offsets = [3, 0, 0], sizes = [1, 6, 6], strides = [1, 1, 1]} : vector<7x6x6xf32> to vector<1x6x6xf32>
    %118 = vector.shape_cast %117 : vector<1x6x6xf32> to vector<6x6xf32>
    %c8_87 = arith.constant 8 : index
    %c0_88 = arith.constant 0 : index
    %119 = tpu.strided_load %arg9[%c8_87, %c0_88] {strides = array<i32: 2, 1>} : memref<264x6xf32, #tpu.memory_space<vmem>>, vector<124x6xf32>
    %c9 = arith.constant 9 : index
    %c0_89 = arith.constant 0 : index
    %120 = tpu.strided_load %arg9[%c9, %c0_89] {strides = array<i32: 2, 1>} : memref<264x6xf32, #tpu.memory_space<vmem>>, vector<124x6xf32>
    %cst_90 = arith.constant dense<0.000000e+00> : vector<124x6xf32>
    %121 = tpu.matmul %119, %118, %cst_90 {dimension_numbers = #tpu.dot_dimension_numbers<[1], [0], [0], [1], [0, 0, 1, 1], [], []>} : vector<124x6xf32>, vector<6x6xf32>, vector<124x6xf32> -> vector<124x6xf32>
    %122 = arith.addf %114, %121 : vector<124x6xf32>
    %cst_91 = arith.constant dense<0.000000e+00> : vector<124x6xf32>
    %123 = tpu.matmul %120, %118, %cst_91 {dimension_numbers = #tpu.dot_dimension_numbers<[1], [0], [0], [1], [0, 0, 1, 1], [], []>} : vector<124x6xf32>, vector<6x6xf32>, vector<124x6xf32> -> vector<124x6xf32>
    %124 = arith.addf %116, %123 : vector<124x6xf32>
    %125 = vector.extract_strided_slice %90 {offsets = [4, 0, 0], sizes = [1, 6, 6], strides = [1, 1, 1]} : vector<7x6x6xf32> to vector<1x6x6xf32>
    %126 = vector.shape_cast %125 : vector<1x6x6xf32> to vector<6x6xf32>
    %c9_92 = arith.constant 9 : index
    %c0_93 = arith.constant 0 : index
    %127 = tpu.strided_load %arg9[%c9_92, %c0_93] {strides = array<i32: 2, 1>} : memref<264x6xf32, #tpu.memory_space<vmem>>, vector<124x6xf32>
    %c10 = arith.constant 10 : index
    %c0_94 = arith.constant 0 : index
    %128 = tpu.strided_load %arg9[%c10, %c0_94] {strides = array<i32: 2, 1>} : memref<264x6xf32, #tpu.memory_space<vmem>>, vector<124x6xf32>
    %cst_95 = arith.constant dense<0.000000e+00> : vector<124x6xf32>
    %129 = tpu.matmul %127, %126, %cst_95 {dimension_numbers = #tpu.dot_dimension_numbers<[1], [0], [0], [1], [0, 0, 1, 1], [], []>} : vector<124x6xf32>, vector<6x6xf32>, vector<124x6xf32> -> vector<124x6xf32>
    %130 = arith.addf %122, %129 : vector<124x6xf32>
    %cst_96 = arith.constant dense<0.000000e+00> : vector<124x6xf32>
    %131 = tpu.matmul %128, %126, %cst_96 {dimension_numbers = #tpu.dot_dimension_numbers<[1], [0], [0], [1], [0, 0, 1, 1], [], []>} : vector<124x6xf32>, vector<6x6xf32>, vector<124x6xf32> -> vector<124x6xf32>
    %132 = arith.addf %124, %131 : vector<124x6xf32>
    %133 = vector.extract_strided_slice %90 {offsets = [5, 0, 0], sizes = [1, 6, 6], strides = [1, 1, 1]} : vector<7x6x6xf32> to vector<1x6x6xf32>
    %134 = vector.shape_cast %133 : vector<1x6x6xf32> to vector<6x6xf32>
    %c10_97 = arith.constant 10 : index
    %c0_98 = arith.constant 0 : index
    %135 = tpu.strided_load %arg9[%c10_97, %c0_98] {strides = array<i32: 2, 1>} : memref<264x6xf32, #tpu.memory_space<vmem>>, vector<124x6xf32>
    %c11 = arith.constant 11 : index
    %c0_99 = arith.constant 0 : index
    %136 = tpu.strided_load %arg9[%c11, %c0_99] {strides = array<i32: 2, 1>} : memref<264x6xf32, #tpu.memory_space<vmem>>, vector<124x6xf32>
    %cst_100 = arith.constant dense<0.000000e+00> : vector<124x6xf32>
    %137 = tpu.matmul %135, %134, %cst_100 {dimension_numbers = #tpu.dot_dimension_numbers<[1], [0], [0], [1], [0, 0, 1, 1], [], []>} : vector<124x6xf32>, vector<6x6xf32>, vector<124x6xf32> -> vector<124x6xf32>
    %138 = arith.addf %130, %137 : vector<124x6xf32>
    %cst_101 = arith.constant dense<0.000000e+00> : vector<124x6xf32>
    %139 = tpu.matmul %136, %134, %cst_101 {dimension_numbers = #tpu.dot_dimension_numbers<[1], [0], [0], [1], [0, 0, 1, 1], [], []>} : vector<124x6xf32>, vector<6x6xf32>, vector<124x6xf32> -> vector<124x6xf32>
    %140 = arith.addf %132, %139 : vector<124x6xf32>
    %141 = vector.extract_strided_slice %90 {offsets = [6, 0, 0], sizes = [1, 6, 6], strides = [1, 1, 1]} : vector<7x6x6xf32> to vector<1x6x6xf32>
    %142 = vector.shape_cast %141 : vector<1x6x6xf32> to vector<6x6xf32>
    %c11_102 = arith.constant 11 : index
    %c0_103 = arith.constant 0 : index
    %143 = tpu.strided_load %arg9[%c11_102, %c0_103] {strides = array<i32: 2, 1>} : memref<264x6xf32, #tpu.memory_space<vmem>>, vector<124x6xf32>
    %c12 = arith.constant 12 : index
    %c0_104 = arith.constant 0 : index
    %144 = tpu.strided_load %arg9[%c12, %c0_104] {strides = array<i32: 2, 1>} : memref<264x6xf32, #tpu.memory_space<vmem>>, vector<124x6xf32>
    %cst_105 = arith.constant dense<0.000000e+00> : vector<124x6xf32>
    %145 = tpu.matmul %143, %142, %cst_105 {dimension_numbers = #tpu.dot_dimension_numbers<[1], [0], [0], [1], [0, 0, 1, 1], [], []>} : vector<124x6xf32>, vector<6x6xf32>, vector<124x6xf32> -> vector<124x6xf32>
    %146 = arith.addf %138, %145 : vector<124x6xf32>
    %cst_106 = arith.constant dense<0.000000e+00> : vector<124x6xf32>
    %147 = tpu.matmul %144, %142, %cst_106 {dimension_numbers = #tpu.dot_dimension_numbers<[1], [0], [0], [1], [0, 0, 1, 1], [], []>} : vector<124x6xf32>, vector<6x6xf32>, vector<124x6xf32> -> vector<124x6xf32>
    %148 = arith.addf %140, %147 : vector<124x6xf32>
    %c0_107 = arith.constant 0 : index
    %c0_108 = arith.constant 0 : index
    %149 = vector.load %arg5[%c0_107, %c0_108] : memref<1x6xf32, #tpu.memory_space<vmem>>, vector<1x6xf32>
    %150 = vector.broadcast %149 : vector<1x6xf32> to vector<124x6xf32>
    %151 = arith.addf %146, %150 : vector<124x6xf32>
    %cst_109 = arith.constant 0.000000e+00 : f32
    %152 = vector.broadcast %cst_109 : f32 to vector<124x6xf32>
    %153 = arith.maximumf %151, %152 : vector<124x6xf32>
    %154 = vector.broadcast %149 : vector<1x6xf32> to vector<124x6xf32>
    %155 = arith.addf %148, %154 : vector<124x6xf32>
    %cst_110 = arith.constant 0.000000e+00 : f32
    %156 = vector.broadcast %cst_110 : f32 to vector<124x6xf32>
    %157 = arith.maximumf %155, %156 : vector<124x6xf32>
    %158 = arith.addf %153, %157 : vector<124x6xf32>
    %cst_111 = arith.constant 5.000000e-01 : f32
    %159 = vector.broadcast %cst_111 : f32 to vector<124x6xf32>
    %160 = arith.mulf %159, %158 : vector<124x6xf32>
    %c8_112 = arith.constant 8 : index
    %c0_113 = arith.constant 0 : index
    %161 = vector.load %arg10[%c8_112, %c0_113] : memref<148x6xf32, #tpu.memory_space<vmem>>, vector<124x6xf32>
    tpu.vector_store %arg10[%c8_112, %c0_113], %160 {strides = array<i32>} : memref<148x6xf32, #tpu.memory_space<vmem>>, vector<124x6xf32>,
    %c0_114 = arith.constant 0 : index
    %c0_115 = arith.constant 0 : index
    %c0_116 = arith.constant 0 : index
    %162 = vector.load %arg6[%c0_114, %c0_115, %c0_116] : memref<7x6x6xf32, #tpu.memory_space<vmem>>, vector<7x6x6xf32>
    %cst_117 = arith.constant 0.000000e+00 : f32
    %163 = vector.broadcast %cst_117 : f32 to vector<62x6xf32>
    %cst_118 = arith.constant 0.000000e+00 : f32
    %164 = vector.broadcast %cst_118 : f32 to vector<62x6xf32>
    %165 = vector.extract_strided_slice %162 {offsets = [0, 0, 0], sizes = [1, 6, 6], strides = [1, 1, 1]} : vector<7x6x6xf32> to vector<1x6x6xf32>
    %166 = vector.shape_cast %165 : vector<1x6x6xf32> to vector<6x6xf32>
    %c5_119 = arith.constant 5 : index
    %c0_120 = arith.constant 0 : index
    %167 = tpu.strided_load %arg10[%c5_119, %c0_120] {strides = array<i32: 2, 1>} : memref<148x6xf32, #tpu.memory_space<vmem>>, vector<62x6xf32>
    %c6_121 = arith.constant 6 : index
    %c0_122 = arith.constant 0 : index
    %168 = tpu.strided_load %arg10[%c6_121, %c0_122] {strides = array<i32: 2, 1>} : memref<148x6xf32, #tpu.memory_space<vmem>>, vector<62x6xf32>
    %cst_123 = arith.constant dense<0.000000e+00> : vector<62x6xf32>
    %169 = tpu.matmul %167, %166, %cst_123 {dimension_numbers = #tpu.dot_dimension_numbers<[1], [0], [0], [1], [0, 0, 1, 1], [], []>} : vector<62x6xf32>, vector<6x6xf32>, vector<62x6xf32> -> vector<62x6xf32>
    %170 = arith.addf %163, %169 : vector<62x6xf32>
    %cst_124 = arith.constant dense<0.000000e+00> : vector<62x6xf32>
    %171 = tpu.matmul %168, %166, %cst_124 {dimension_numbers = #tpu.dot_dimension_numbers<[1], [0], [0], [1], [0, 0, 1, 1], [], []>} : vector<62x6xf32>, vector<6x6xf32>, vector<62x6xf32> -> vector<62x6xf32>
    %172 = arith.addf %164, %171 : vector<62x6xf32>
    %173 = vector.extract_strided_slice %162 {offsets = [1, 0, 0], sizes = [1, 6, 6], strides = [1, 1, 1]} : vector<7x6x6xf32> to vector<1x6x6xf32>
    %174 = vector.shape_cast %173 : vector<1x6x6xf32> to vector<6x6xf32>
    %c6_125 = arith.constant 6 : index
    %c0_126 = arith.constant 0 : index
    %175 = tpu.strided_load %arg10[%c6_125, %c0_126] {strides = array<i32: 2, 1>} : memref<148x6xf32, #tpu.memory_space<vmem>>, vector<62x6xf32>
    %c7_127 = arith.constant 7 : index
    %c0_128 = arith.constant 0 : index
    %176 = tpu.strided_load %arg10[%c7_127, %c0_128] {strides = array<i32: 2, 1>} : memref<148x6xf32, #tpu.memory_space<vmem>>, vector<62x6xf32>
    %cst_129 = arith.constant dense<0.000000e+00> : vector<62x6xf32>
    %177 = tpu.matmul %175, %174, %cst_129 {dimension_numbers = #tpu.dot_dimension_numbers<[1], [0], [0], [1], [0, 0, 1, 1], [], []>} : vector<62x6xf32>, vector<6x6xf32>, vector<62x6xf32> -> vector<62x6xf32>
    %178 = arith.addf %170, %177 : vector<62x6xf32>
    %cst_130 = arith.constant dense<0.000000e+00> : vector<62x6xf32>
    %179 = tpu.matmul %176, %174, %cst_130 {dimension_numbers = #tpu.dot_dimension_numbers<[1], [0], [0], [1], [0, 0, 1, 1], [], []>} : vector<62x6xf32>, vector<6x6xf32>, vector<62x6xf32> -> vector<62x6xf32>
    %180 = arith.addf %172, %179 : vector<62x6xf32>
    %181 = vector.extract_strided_slice %162 {offsets = [2, 0, 0], sizes = [1, 6, 6], strides = [1, 1, 1]} : vector<7x6x6xf32> to vector<1x6x6xf32>
    %182 = vector.shape_cast %181 : vector<1x6x6xf32> to vector<6x6xf32>
    %c7_131 = arith.constant 7 : index
    %c0_132 = arith.constant 0 : index
    %183 = tpu.strided_load %arg10[%c7_131, %c0_132] {strides = array<i32: 2, 1>} : memref<148x6xf32, #tpu.memory_space<vmem>>, vector<62x6xf32>
    %c8_133 = arith.constant 8 : index
    %c0_134 = arith.constant 0 : index
    %184 = tpu.strided_load %arg10[%c8_133, %c0_134] {strides = array<i32: 2, 1>} : memref<148x6xf32, #tpu.memory_space<vmem>>, vector<62x6xf32>
    %cst_135 = arith.constant dense<0.000000e+00> : vector<62x6xf32>
    %185 = tpu.matmul %183, %182, %cst_135 {dimension_numbers = #tpu.dot_dimension_numbers<[1], [0], [0], [1], [0, 0, 1, 1], [], []>} : vector<62x6xf32>, vector<6x6xf32>, vector<62x6xf32> -> vector<62x6xf32>
    %186 = arith.addf %178, %185 : vector<62x6xf32>
    %cst_136 = arith.constant dense<0.000000e+00> : vector<62x6xf32>
    %187 = tpu.matmul %184, %182, %cst_136 {dimension_numbers = #tpu.dot_dimension_numbers<[1], [0], [0], [1], [0, 0, 1, 1], [], []>} : vector<62x6xf32>, vector<6x6xf32>, vector<62x6xf32> -> vector<62x6xf32>
    %188 = arith.addf %180, %187 : vector<62x6xf32>
    %189 = vector.extract_strided_slice %162 {offsets = [3, 0, 0], sizes = [1, 6, 6], strides = [1, 1, 1]} : vector<7x6x6xf32> to vector<1x6x6xf32>
    %190 = vector.shape_cast %189 : vector<1x6x6xf32> to vector<6x6xf32>
    %c8_137 = arith.constant 8 : index
    %c0_138 = arith.constant 0 : index
    %191 = tpu.strided_load %arg10[%c8_137, %c0_138] {strides = array<i32: 2, 1>} : memref<148x6xf32, #tpu.memory_space<vmem>>, vector<62x6xf32>
    %c9_139 = arith.constant 9 : index
    %c0_140 = arith.constant 0 : index
    %192 = tpu.strided_load %arg10[%c9_139, %c0_140] {strides = array<i32: 2, 1>} : memref<148x6xf32, #tpu.memory_space<vmem>>, vector<62x6xf32>
    %cst_141 = arith.constant dense<0.000000e+00> : vector<62x6xf32>
    %193 = tpu.matmul %191, %190, %cst_141 {dimension_numbers = #tpu.dot_dimension_numbers<[1], [0], [0], [1], [0, 0, 1, 1], [], []>} : vector<62x6xf32>, vector<6x6xf32>, vector<62x6xf32> -> vector<62x6xf32>
    %194 = arith.addf %186, %193 : vector<62x6xf32>
    %cst_142 = arith.constant dense<0.000000e+00> : vector<62x6xf32>
    %195 = tpu.matmul %192, %190, %cst_142 {dimension_numbers = #tpu.dot_dimension_numbers<[1], [0], [0], [1], [0, 0, 1, 1], [], []>} : vector<62x6xf32>, vector<6x6xf32>, vector<62x6xf32> -> vector<62x6xf32>
    %196 = arith.addf %188, %195 : vector<62x6xf32>
    %197 = vector.extract_strided_slice %162 {offsets = [4, 0, 0], sizes = [1, 6, 6], strides = [1, 1, 1]} : vector<7x6x6xf32> to vector<1x6x6xf32>
    %198 = vector.shape_cast %197 : vector<1x6x6xf32> to vector<6x6xf32>
    %c9_143 = arith.constant 9 : index
    %c0_144 = arith.constant 0 : index
    %199 = tpu.strided_load %arg10[%c9_143, %c0_144] {strides = array<i32: 2, 1>} : memref<148x6xf32, #tpu.memory_space<vmem>>, vector<62x6xf32>
    %c10_145 = arith.constant 10 : index
    %c0_146 = arith.constant 0 : index
    %200 = tpu.strided_load %arg10[%c10_145, %c0_146] {strides = array<i32: 2, 1>} : memref<148x6xf32, #tpu.memory_space<vmem>>, vector<62x6xf32>
    %cst_147 = arith.constant dense<0.000000e+00> : vector<62x6xf32>
    %201 = tpu.matmul %199, %198, %cst_147 {dimension_numbers = #tpu.dot_dimension_numbers<[1], [0], [0], [1], [0, 0, 1, 1], [], []>} : vector<62x6xf32>, vector<6x6xf32>, vector<62x6xf32> -> vector<62x6xf32>
    %202 = arith.addf %194, %201 : vector<62x6xf32>
    %cst_148 = arith.constant dense<0.000000e+00> : vector<62x6xf32>
    %203 = tpu.matmul %200, %198, %cst_148 {dimension_numbers = #tpu.dot_dimension_numbers<[1], [0], [0], [1], [0, 0, 1, 1], [], []>} : vector<62x6xf32>, vector<6x6xf32>, vector<62x6xf32> -> vector<62x6xf32>
    %204 = arith.addf %196, %203 : vector<62x6xf32>
    %205 = vector.extract_strided_slice %162 {offsets = [5, 0, 0], sizes = [1, 6, 6], strides = [1, 1, 1]} : vector<7x6x6xf32> to vector<1x6x6xf32>
    %206 = vector.shape_cast %205 : vector<1x6x6xf32> to vector<6x6xf32>
    %c10_149 = arith.constant 10 : index
    %c0_150 = arith.constant 0 : index
    %207 = tpu.strided_load %arg10[%c10_149, %c0_150] {strides = array<i32: 2, 1>} : memref<148x6xf32, #tpu.memory_space<vmem>>, vector<62x6xf32>
    %c11_151 = arith.constant 11 : index
    %c0_152 = arith.constant 0 : index
    %208 = tpu.strided_load %arg10[%c11_151, %c0_152] {strides = array<i32: 2, 1>} : memref<148x6xf32, #tpu.memory_space<vmem>>, vector<62x6xf32>
    %cst_153 = arith.constant dense<0.000000e+00> : vector<62x6xf32>
    %209 = tpu.matmul %207, %206, %cst_153 {dimension_numbers = #tpu.dot_dimension_numbers<[1], [0], [0], [1], [0, 0, 1, 1], [], []>} : vector<62x6xf32>, vector<6x6xf32>, vector<62x6xf32> -> vector<62x6xf32>
    %210 = arith.addf %202, %209 : vector<62x6xf32>
    %cst_154 = arith.constant dense<0.000000e+00> : vector<62x6xf32>
    %211 = tpu.matmul %208, %206, %cst_154 {dimension_numbers = #tpu.dot_dimension_numbers<[1], [0], [0], [1], [0, 0, 1, 1], [], []>} : vector<62x6xf32>, vector<6x6xf32>, vector<62x6xf32> -> vector<62x6xf32>
    %212 = arith.addf %204, %211 : vector<62x6xf32>
    %213 = vector.extract_strided_slice %162 {offsets = [6, 0, 0], sizes = [1, 6, 6], strides = [1, 1, 1]} : vector<7x6x6xf32> to vector<1x6x6xf32>
    %214 = vector.shape_cast %213 : vector<1x6x6xf32> to vector<6x6xf32>
    %c11_155 = arith.constant 11 : index
    %c0_156 = arith.constant 0 : index
    %215 = tpu.strided_load %arg10[%c11_155, %c0_156] {strides = array<i32: 2, 1>} : memref<148x6xf32, #tpu.memory_space<vmem>>, vector<62x6xf32>
    %c12_157 = arith.constant 12 : index
    %c0_158 = arith.constant 0 : index
    %216 = tpu.strided_load %arg10[%c12_157, %c0_158] {strides = array<i32: 2, 1>} : memref<148x6xf32, #tpu.memory_space<vmem>>, vector<62x6xf32>
    %cst_159 = arith.constant dense<0.000000e+00> : vector<62x6xf32>
    %217 = tpu.matmul %215, %214, %cst_159 {dimension_numbers = #tpu.dot_dimension_numbers<[1], [0], [0], [1], [0, 0, 1, 1], [], []>} : vector<62x6xf32>, vector<6x6xf32>, vector<62x6xf32> -> vector<62x6xf32>
    %218 = arith.addf %210, %217 : vector<62x6xf32>
    %cst_160 = arith.constant dense<0.000000e+00> : vector<62x6xf32>
    %219 = tpu.matmul %216, %214, %cst_160 {dimension_numbers = #tpu.dot_dimension_numbers<[1], [0], [0], [1], [0, 0, 1, 1], [], []>} : vector<62x6xf32>, vector<6x6xf32>, vector<62x6xf32> -> vector<62x6xf32>
    %220 = arith.addf %212, %219 : vector<62x6xf32>
    %c0_161 = arith.constant 0 : index
    %c0_162 = arith.constant 0 : index
    %221 = vector.load %arg7[%c0_161, %c0_162] : memref<1x6xf32, #tpu.memory_space<vmem>>, vector<1x6xf32>
    %222 = vector.broadcast %221 : vector<1x6xf32> to vector<62x6xf32>
    %223 = arith.addf %218, %222 : vector<62x6xf32>
    %cst_163 = arith.constant 0.000000e+00 : f32
    %224 = vector.broadcast %cst_163 : f32 to vector<62x6xf32>
    %225 = arith.maximumf %223, %224 : vector<62x6xf32>
    %226 = vector.broadcast %221 : vector<1x6xf32> to vector<62x6xf32>
    %227 = arith.addf %220, %226 : vector<62x6xf32>
    %cst_164 = arith.constant 0.000000e+00 : f32
    %228 = vector.broadcast %cst_164 : f32 to vector<62x6xf32>
    %229 = arith.maximumf %227, %228 : vector<62x6xf32>
    %230 = arith.addf %225, %229 : vector<62x6xf32>
    %cst_165 = arith.constant 5.000000e-01 : f32
    %231 = vector.broadcast %cst_165 : f32 to vector<62x6xf32>
    %232 = arith.mulf %231, %230 : vector<62x6xf32>
    %c0_166 = arith.constant 0 : index
    %c0_167 = arith.constant 0 : index
    %c0_168 = arith.constant 0 : index
    %233 = vector.load %arg8[%c0_166, %c0_167, %c0_168] : memref<1x62x6xf32, #tpu.memory_space<vmem>>, vector<1x62x6xf32>
    %234 = vector.shape_cast %233 : vector<1x62x6xf32> to vector<62x6xf32>
    %235 = vector.shape_cast %232 : vector<62x6xf32> to vector<1x62x6xf32>
    tpu.vector_store %arg8[%c0_166, %c0_167, %c0_168], %235 {strides = array<i32>} : memref<1x62x6xf32, #tpu.memory_space<vmem>>, vector<1x62x6xf32>,
    return
  }
  func.func @transform_0(%arg0: i32) -> (i32, i32, i32) {
    %c0_i32 = arith.constant 0 : i32
    %c0_i32_0 = arith.constant 0 : i32
    %c0_i32_1 = arith.constant 0 : i32
    return %arg0, %c0_i32, %c0_i32_0 : i32, i32, i32
  }
  func.func @transform_1(%arg0: i32) -> (i32, i32, i32) {
    %c0_i32 = arith.constant 0 : i32
    %c0_i32_0 = arith.constant 0 : i32
    %c0_i32_1 = arith.constant 0 : i32
    %c0_i32_2 = arith.constant 0 : i32
    return %c0_i32, %c0_i32_0, %c0_i32_1 : i32, i32, i32
  }
  func.func @transform_2(%arg0: i32) -> (i32, i32) {
    %c0_i32 = arith.constant 0 : i32
    %c0_i32_0 = arith.constant 0 : i32
    %c0_i32_1 = arith.constant 0 : i32
    return %c0_i32, %c0_i32_0 : i32, i32
  }
  func.func @transform_3(%arg0: i32) -> (i32, i32, i32) {
    %c0_i32 = arith.constant 0 : i32
    %c0_i32_0 = arith.constant 0 : i32
    %c0_i32_1 = arith.constant 0 : i32
    %c0_i32_2 = arith.constant 0 : i32
    return %c0_i32, %c0_i32_0, %c0_i32_1 : i32, i32, i32
  }
  func.func @transform_4(%arg0: i32) -> (i32, i32) {
    %c0_i32 = arith.constant 0 : i32
    %c0_i32_0 = arith.constant 0 : i32
    %c0_i32_1 = arith.constant 0 : i32
    return %c0_i32, %c0_i32_0 : i32, i32
  }
  func.func @transform_5(%arg0: i32) -> (i32, i32, i32) {
    %c0_i32 = arith.constant 0 : i32
    %c0_i32_0 = arith.constant 0 : i32
    %c0_i32_1 = arith.constant 0 : i32
    %c0_i32_2 = arith.constant 0 : i32
    return %c0_i32, %c0_i32_0, %c0_i32_1 : i32, i32, i32
  }
  func.func @transform_6(%arg0: i32) -> (i32, i32) {
    %c0_i32 = arith.constant 0 : i32
    %c0_i32_0 = arith.constant 0 : i32
    %c0_i32_1 = arith.constant 0 : i32
    return %c0_i32, %c0_i32_0 : i32, i32
  }
  func.func @transform_7(%arg0: i32) -> (i32, i32, i32) {
    %c0_i32 = arith.constant 0 : i32
    %c0_i32_0 = arith.constant 0 : i32
    %c0_i32_1 = arith.constant 0 : i32
    return %arg0, %c0_i32, %c0_i32_0 : i32, i32, i32
  }
}

module attributes {stable_mosaic.version = 11 : i64} {
  func.func @_mlp_kernel(%arg0: memref<2x372xf32, #tpu.memory_space<vmem>>, %arg1: memref<372x16xf32, #tpu.memory_space<vmem>>, %arg2: memref<1x16xf32, #tpu.memory_space<vmem>>, %arg3: memref<16x64xf32, #tpu.memory_space<vmem>>, %arg4: memref<1x64xf32, #tpu.memory_space<vmem>>, %arg5: memref<64x1xf32, #tpu.memory_space<vmem>>, %arg6: memref<1x1xf32, #tpu.memory_space<vmem>>, %arg7: memref<2x1xf32, #tpu.memory_space<vmem>>) attributes {dimension_semantics = [], scalar_prefetch = 0 : i64, scratch_operands = 0 : i64, tpu.core_type = #tpu.core_type<tc>} {
    %c0 = arith.constant 0 : index
    %c0_0 = arith.constant 0 : index
    %0 = vector.load %arg0[%c0, %c0_0] : memref<2x372xf32, #tpu.memory_space<vmem>>, vector<2x372xf32>
    %c0_1 = arith.constant 0 : index
    %c0_2 = arith.constant 0 : index
    %1 = vector.load %arg1[%c0_1, %c0_2] : memref<372x16xf32, #tpu.memory_space<vmem>>, vector<372x16xf32>
    %cst = arith.constant dense<0.000000e+00> : vector<2x16xf32>
    %2 = tpu.matmul %0, %1, %cst {dimension_numbers = #tpu.dot_dimension_numbers<[1], [0], [0], [1], [0, 0, 1, 1], [], []>} : vector<2x372xf32>, vector<372x16xf32>, vector<2x16xf32> -> vector<2x16xf32>
    %c0_3 = arith.constant 0 : index
    %c0_4 = arith.constant 0 : index
    %3 = vector.load %arg2[%c0_3, %c0_4] : memref<1x16xf32, #tpu.memory_space<vmem>>, vector<1x16xf32>
    %4 = vector.broadcast %3 : vector<1x16xf32> to vector<2x16xf32>
    %5 = arith.addf %2, %4 : vector<2x16xf32>
    %cst_5 = arith.constant 0.000000e+00 : f32
    %6 = vector.broadcast %cst_5 : f32 to vector<2x16xf32>
    %7 = arith.maximumf %5, %6 : vector<2x16xf32>
    %c0_6 = arith.constant 0 : index
    %c0_7 = arith.constant 0 : index
    %8 = vector.load %arg3[%c0_6, %c0_7] : memref<16x64xf32, #tpu.memory_space<vmem>>, vector<16x64xf32>
    %cst_8 = arith.constant dense<0.000000e+00> : vector<2x64xf32>
    %9 = tpu.matmul %7, %8, %cst_8 {dimension_numbers = #tpu.dot_dimension_numbers<[1], [0], [0], [1], [0, 0, 1, 1], [], []>} : vector<2x16xf32>, vector<16x64xf32>, vector<2x64xf32> -> vector<2x64xf32>
    %c0_9 = arith.constant 0 : index
    %c0_10 = arith.constant 0 : index
    %10 = vector.load %arg4[%c0_9, %c0_10] : memref<1x64xf32, #tpu.memory_space<vmem>>, vector<1x64xf32>
    %11 = vector.broadcast %10 : vector<1x64xf32> to vector<2x64xf32>
    %12 = arith.addf %9, %11 : vector<2x64xf32>
    %cst_11 = arith.constant 0.000000e+00 : f32
    %13 = vector.broadcast %cst_11 : f32 to vector<2x64xf32>
    %14 = arith.maximumf %12, %13 : vector<2x64xf32>
    %c0_12 = arith.constant 0 : index
    %c0_13 = arith.constant 0 : index
    %15 = vector.load %arg5[%c0_12, %c0_13] : memref<64x1xf32, #tpu.memory_space<vmem>>, vector<64x1xf32>
    %cst_14 = arith.constant dense<0.000000e+00> : vector<2x1xf32>
    %16 = tpu.matmul %14, %15, %cst_14 {dimension_numbers = #tpu.dot_dimension_numbers<[1], [0], [0], [1], [0, 0, 1, 1], [], []>} : vector<2x64xf32>, vector<64x1xf32>, vector<2x1xf32> -> vector<2x1xf32>
    %c0_15 = arith.constant 0 : index
    %c0_16 = arith.constant 0 : index
    %17 = vector.load %arg6[%c0_15, %c0_16] : memref<1x1xf32, #tpu.memory_space<vmem>>, vector<1x1xf32>
    %18 = vector.broadcast %17 : vector<1x1xf32> to vector<2x1xf32>
    %19 = arith.addf %16, %18 : vector<2x1xf32>
    %c0_17 = arith.constant 0 : index
    %c0_18 = arith.constant 0 : index
    %20 = vector.load %arg7[%c0_17, %c0_18] : memref<2x1xf32, #tpu.memory_space<vmem>>, vector<2x1xf32>
    tpu.vector_store %arg7[%c0_17, %c0_18], %19 {strides = array<i32>} : memref<2x1xf32, #tpu.memory_space<vmem>>, vector<2x1xf32>,
    return
  }
}

</mosaic_0001>

<bundles_post_ra>
// kernel: _lambda_.3
= control target key start
LH: loop header
LB: loop body
LE: loop exit
PB: predicated region body
PF: predicated region fallthrough
CT: control target
= control target key end

     0   :  { %v562_v3 = vmov 0.0   ;;  %vm105_vm0 = vcmask 1043456   ;;  %vm563_vm1 = vmmov 0   ;;  %v564_v15 = vmov 1983009808   ;;  %s822_s1 = inlined_call_operand.vmem [shape: f32[372,16], index: 1, kind: input, shape index: {}]   ;;  %s823_s0 = inlined_call_operand.vmem [shape: f32[2,372], index: 0, kind: input, shape index: {}]   ;;  %s824_s3 = inlined_call_operand.vmem [shape: f32[16,64], index: 3, kind: input, shape index: {}]   ;;  %s825_s5 = inlined_call_operand.vmem [shape: f32[64,1], index: 5, kind: input, shape index: {}]   ;;  %s826_s2 = inlined_call_operand.vmem [shape: f32[1,16], index: 2, kind: input, shape index: {}]   ;;  %s827_s6 = inlined_call_operand.<no memory space> [shape: f32[1,1], index: 6, kind: input, shape index: {}]   ;;  %s828_s4 = inlined_call_operand.vmem [shape: f32[1,64], index: 4, kind: input, shape index: {}]   ;;  %s829_s7 = inlined_call_operand.vmem [shape: f32[2,1], index: 7, kind: output, shape index: {}]  }
   0x1   :  { %v60_v0 = vld [vmem:[%s822_s1 + $0xf8] sm:$0xff]  ;;  %v59_v2 = vld [vmem:[%s822_s1 + $0xf0] sm:$0xff]  ;;  %499 = vmatprep.subr.mxu1 %v562_v3  ;;  %529 = vmatprep.mubr.msk.f32.mxu1 %vm563_vm1, %v562_v3  ;;  %v58_v5 = vld [vmem:[%s822_s1 + $0xe8] sm:$0xff]  ;;  %v86_v16 = vunpack.c.l.s4 %v564_v15  ;;  %v88_v17 = vlaneseq  ;;  %vm102_vm2 = vcmask 949248   ;;  %vm259_vm3 = vcmask 130048  }
   0x2   :  { %v44_v1 = vld [vmem:[%s822_s1 + $0x78] sm:$0xff]  ;;  %436 = vmatprep.subr.mxu0 %v60_v0  ;;  %v43_v4 = vld [vmem:[%s822_s1 + $0x70] sm:$0xff]  ;;  %v42_v7 = vld [vmem:[%s822_s1 + $0x68] sm:$0xff]  ;;  %v12_v15 = vstv %s827_s6  ;;  %vm349_vm4 = vcmask 523264   ;;  %vm423_vm5 = vcmask 1024  }
   0x3   :  { %437 = vmatpush3.msra.mxu0 %v44_v1  ;;  %v75_v6 = vld [vmem:[%s822_s1 + $0x170] sm:$0xf]  ;;  %v74_v8 = vld [vmem:[%s822_s1 + $0x168] sm:$0xff]  ;;  %v57_v9 = vld [vmem:[%s822_s1 + $0xe0] sm:$0xff]  ;;  %v87_v24 = vunpack.c.0.s8 %v86_v16  ;;  %v89_v25 = vshrl.u32 %v88_v17, 7 }
   0x4   :  { %438 = vmatprep.subr.mxu0 %v59_v2  ;;  %500 = vmatpush3.msk.msra.mxu1 %vm105_vm0, %v75_v6  ;;  %v73_v10 = vld [vmem:[%s822_s1 + $0x160] sm:$0xff]  ;;  %v56_v12 = vld [vmem:[%s822_s1 + $0xd8] sm:$0xff]  ;;  %v55_v18 = vld [vmem:[%s822_s1 + $0xd0] sm:$0xff]  ;;  %13 = vst [vmem:[#allocation2] sm:$0x1] %v12_v15 }
   0x5   :  { %439 = vmatpush3.msra.mxu0 %v43_v4  ;;  %501 = vmatprep.subr.mxu1 %v562_v3  ;;  %v41_v11 = vld [vmem:[%s822_s1 + $0x60] sm:$0xff]  ;;  %v72_v13 = vld [vmem:[%s822_s1 + $0x158] sm:$0xff]  ;;  %v71_v19 = vld [vmem:[%s822_s1 + $0x150] sm:$0xff]  ;;  %v90_v32 = vsub.s32 %v87_v24, %v89_v25 }
   0x6   :  { %440 = vmatprep.subr.mxu0 %v58_v5  ;;  %502 = vmatpush3.msra.mxu1 %v74_v8  ;;  %v40_v14 = vld [vmem:[%s822_s1 + $0x58] sm:$0xff]  ;;  %v39_v20 = vld [vmem:[%s822_s1 + $0x50] sm:$0xff]  ;;  %v54_v21 = vld [vmem:[%s822_s1 + $0xc8] sm:$0xff] }
   0x7   :  { %441 = vmatpush3.msra.mxu0 %v42_v7  ;;  %503 = vmatprep.subr.mxu1 %v562_v3  ;;  %v70_v22 = vld [vmem:[%s822_s1 + $0x148] sm:$0xff]  ;;  %v53_v26 = vld [vmem:[%s822_s1 + $0xc0] sm:$0xff]  ;;  %v52_v29 = vld [vmem:[%s822_s1 + $0xb8] sm:$0xff] }
   0x8   :  { %442 = vmatprep.subr.mxu0 %v57_v9  ;;  %504 = vmatpush3.msra.mxu1 %v73_v10  ;;  %v38_v23 = vld [vmem:[%s822_s1 + $0x48] sm:$0xff]  ;;  %v69_v27 = vld [vmem:[%s822_s1 + $0x140] sm:$0xff]  ;;  %v68_v30 = vld [vmem:[%s822_s1 + $0x138] sm:$0xff] }
   0x9   :  { %443 = vmatpush3.msra.mxu0 %v41_v11  ;;  %505 = vmatprep.subr.mxu1 %v562_v3  ;;  %v37_v28 = vld [vmem:[%s822_s1 + $0x40] sm:$0xff]  ;;  %v36_v31 = vld [vmem:[%s822_s1 + $0x38] sm:$0xff]  ;;  %v51_v33 = vld [vmem:[%s822_s1 + $0xb0] sm:$0xff] }
   0xa   :  { %444 = vmatprep.subr.mxu0 %v56_v12  ;;  %506 = vmatpush3.msra.mxu1 %v72_v13  ;;  %v67_v34 = vld [vmem:[%s822_s1 + $0x130] sm:$0xff]  ;;  %v28_v35 = vld [vmem:[%s823_s0] sm:$0x3f]  ;;  %v50_v37 = vld [vmem:[%s822_s1 + $0xa8] sm:$0xff] }
   0xb   :  { %445 = vmatpush3.msra.mxu0 %v40_v14  ;;  %507 = vmatprep.subr.mxu1 %v562_v3  ;;  %v35_v36 = vld [vmem:[%s822_s1 + $0x30] sm:$0xff]  ;;  %v66_v38 = vld [vmem:[%s822_s1 + $0x128] sm:$0xff]  ;;  %v91_v40 = vrot.slane %v28_v35, %v90_v32  ;;  %v49_v41 = vld [vmem:[%s822_s1 + $0xa0] sm:$0xff]  ;;  %v84_v50 = vcombine.high %v28_v35, %v28_v35 }
   0xc   :  { %446 = vmatprep.subr.mxu0 %v55_v18  ;;  %508 = vmatpush3.msra.mxu1 %v71_v19  ;;  %v34_v39 = vld [vmem:[%s822_s1 + $0x28] sm:$0xff]  ;;  %v65_v42 = vld [vmem:[%s822_s1 + $0x120] sm:$0xff]  ;;  %v48_v44 = vld [vmem:[%s822_s1 + $0x98] sm:$0xff] }
   0xd   :  { %447 = vmatpush3.msra.mxu0 %v39_v20  ;;  %509 = vmatprep.subr.mxu1 %v562_v3  ;;  %v33_v43 = vld [vmem:[%s822_s1 + $0x20] sm:$0xff]  ;;  %v64_v45 = vld [vmem:[%s822_s1 + $0x118] sm:$0xff]  ;;  %v99_v47 = vcombine.high %v91_v40, %v91_v40  ;;  %v47_v48 = vld [vmem:[%s822_s1 + $0x90] sm:$0xff]  ;;  %v98_v57 = vrot.slane %v84_v50, %v90_v32 }
   0xe   :  { %448 = vmatprep.subr.mxu0 %v54_v21  ;;  %510 = vmatpush3.msra.mxu1 %v70_v22  ;;  %v32_v46 = vld [vmem:[%s822_s1 + $0x18] sm:$0xff]  ;;  %v31_v49 = vld [vmem:[%s822_s1 + $0x10] sm:$0xff]  ;;  %v46_v52 = vld [vmem:[%s822_s1 + $0x88] sm:$0xff] }
   0xf   :  { %449 = vmatpush3.msra.mxu0 %v38_v23  ;;  %511 = vmatprep.subr.mxu1 %v562_v3  ;;  %v63_v51 = vld [vmem:[%s822_s1 + $0x110] sm:$0xff]  ;;  %v30_v53 = vld [vmem:[%s822_s1 + $0x8] sm:$0xff]  ;;  %v45_v55 = vld [vmem:[%s822_s1 + $0x80] sm:$0xff] }
  0x10   :  { %450 = vmatprep.subr.mxu0 %v53_v26  ;;  %512 = vmatpush3.msra.mxu1 %v69_v27  ;;  %v62_v54 = vld [vmem:[%s822_s1 + $0x108] sm:$0xff]  ;;  %v29_v56 = vld [vmem:[%s822_s1] sm:$0xff]  ;;  %v341_v61 = vld [vmem:[%s825_s5 + $0x38] sm:$0xff] }
  0x11   :  { %451 = vmatpush3.msra.mxu0 %v37_v28  ;;  %513 = vmatprep.subr.mxu1 %v562_v3  ;;  %v61_v58 = vld [vmem:[%s822_s1 + $0x100] sm:$0xff]  ;;  %v251_v59 = vld [vmem:[%s824_s3 + $0x8] sm:$0xff]  ;;  %v340_v62 = vld [vmem:[%s825_s5 + $0x30] sm:$0xff] }
  0x12   :  { %452 = vmatprep.subr.mxu0 %v52_v29  ;;  %514 = vmatpush3.msra.mxu1 %v68_v30  ;;  %v250_v60 = vld [vmem:[%s824_s3] sm:$0xff]  ;;  %v339_v63 = vld [vmem:[%s825_s5 + $0x28] sm:$0xff]  ;;  %v337_v1 = vld [vmem:[%s825_s5 + $0x18] sm:$0xff] }
  0x13   :  { %453 = vmatpush3.msra.mxu0 %v36_v31  ;;  %515 = vmatprep.subr.mxu1 %v562_v3  ;;  %v338_v0 = vld [vmem:[%s825_s5 + $0x20] sm:$0xff]  ;;  %v336_v12 = vld [vmem:[%s825_s5 + $0x10] sm:$0xff]  ;;  %v335_v13 = vld [vmem:[%s825_s5 + $0x8] sm:$0xff] }
  0x14   :  { %454 = vmatprep.subr.mxu0 %v51_v33  ;;  %516 = vmatpush3.msra.mxu1 %v67_v34  ;;  %v429_v6 = vld [vmem:[%s826_s2] ss:$0 sm:$0xff] }
  0x15   :  { %455 = vmatpush3.msra.mxu0 %v35_v36  ;;  %517 = vmatprep.subr.mxu1 %v562_v3  ;;  %v334_v14 = vld [vmem:[%s825_s5] sm:$0xff] }
  0x16   :  { %456 = vmatprep.subr.mxu0 %v50_v37  ;;  %518 = vmatpush3.msra.mxu1 %v66_v38  ;;  %v432_v16 = vld [vmem:[%s828_s4] ss:$0 sm:$0xff] }
  0x17   :  { %457 = vmatpush3.msra.mxu0 %v34_v39  ;;  %519 = vmatprep.subr.mxu1 %v562_v3 }
  0x18   :  { %458 = vmatprep.subr.mxu0 %v49_v41  ;;  %520 = vmatpush3.msra.mxu1 %v65_v42 }
  0x19   :  { %459 = vmatpush3.msra.mxu0 %v33_v43  ;;  %521 = vmatprep.subr.mxu1 %v562_v3 }
  0x1a   :  { %460 = vmatprep.subr.mxu0 %v48_v44  ;;  %522 = vmatpush3.msra.mxu1 %v64_v45 }
  0x1b   :  { %461 = vmatpush3.msra.mxu0 %v32_v46  ;;  %523 = vmatprep.subr.mxu1 %v562_v3 }
  0x1c   :  { %462 = vmatprep.subr.mxu0 %v47_v48  ;;  %173 = vmatprep.mubr.f32.mxu0 %v99_v47 }
  0x1d   :  { %463 = vmatpush3.msra.mxu0 %v31_v49  ;;  %524 = vmatpush3.msra.mxu1 %v63_v51 }
  0x1e   :  { %464 = vmatprep.subr.mxu0 %v46_v52  ;;  %525 = vmatprep.subr.mxu1 %v562_v3 }
  0x1f   :  { %465 = vmatpush3.msra.mxu0 %v30_v53  ;;  %526 = vmatpush3.msra.mxu1 %v62_v54 }
  0x20   :  { %466 = vmatprep.subr.mxu0 %v45_v55  ;;  %527 = vmatprep.subr.mxu1 %v562_v3 }
  0x21   :  { %467 = vmatpush3.msra.mxu0 %v29_v56  ;;  %528 = vmatpush3.msra.mxu1 %v61_v58 }
  0x22   :  { %174 = vmatmul.mubr.f32.vlgmr.msra.gmra.mxu0 %v91_v40  ;;  %530 = vmatmul.mubr.msk.f32.vlgmr.msra.gmra.mxu1 %vm102_vm2, %v98_v57 }
  0x23   :  { %532 = vmatprep.subr.mxu1 %v562_v3  ;;  %536 = vmatprep.mubr.msk.f32.mxu1 %vm563_vm1, %v562_v3 }
  0x24   :  { %539 = vmatprep.subr.mxu0 %v562_v3  ;;  %555 = vmatprep.mubr.msk.f32.mxu0 %vm563_vm1, %v562_v3 }
  0x25   :  { %533 = vmatpush3.msra.mxu1 %v251_v59  ;;  %540 = vmatpush3.msra.mxu0 %v341_v61 }
  0x26   :  { %534 = vmatprep.subr.mxu1 %v562_v3  ;;  %541 = vmatprep.subr.mxu0 %v562_v3 }
  0x27   :  { %535 = vmatpush3.msra.mxu1 %v250_v60  ;;  %542 = vmatpush3.msra.mxu0 %v340_v62 }
  0x28   :  { %543 = vmatprep.subr.mxu0 %v562_v3 }
  0x29   :  { %544 = vmatpush3.msra.mxu0 %v339_v63 }
  0x2a   :  { %545 = vmatprep.subr.mxu0 %v562_v3 }
  0x2b   :  { %546 = vmatpush3.msra.mxu0 %v338_v0 }
  0x2c   :  { %547 = vmatprep.subr.mxu0 %v562_v3 }
  0x2d   :  { %548 = vmatpush3.msra.mxu0 %v337_v1 }
  0x2e   :  { %549 = vmatprep.subr.mxu0 %v562_v3 }
  0x2f   :  { %550 = vmatpush3.msra.mxu0 %v336_v12 }
  0x30   :  { %551 = vmatprep.subr.mxu0 %v562_v3 }
  0x31   :  { %552 = vmatpush3.msra.mxu0 %v335_v13 }
  0x32   :  { %553 = vmatprep.subr.mxu0 %v562_v3  ;;  %v434_v3 = vld [vmem:[#allocation2] ss:$0 sm:$0xff] }
  0x33   :  { %554 = vmatpush3.msra.mxu0 %v334_v14 }
  0xe2   :  { %v468_v2 = vpop.f32.mrf.mxu0  ;;  %v245_v4 = vpop.f32.mrf.mxu1 }
  0xe4   :  { %v469_v5 = vpop.f32.mrf.mxu0  ;;  %v531_v7 = vpop.f32.mrf.mxu1 }
  0xe5   :  { %v470_v8 = vadd.f32 %v469_v5, %v468_v2 }
  0xe7   :  { %v176_v9 = vadd.f32 %v470_v8, %v429_v6 }
  0xe9   :  { %v246_v10 = vadd.f32 %v245_v4, %v176_v9 }
  0xeb   :  { %v249_v11 = vmax.f32 %v246_v10, 0.0 }
  0xed   :  { %537 = vmatmul.mubr.msk.f32.vlgmr.msra.gmra.mxu1 %vm259_vm3, %v249_v11 }
 0x1ad   :  { %v329_v17 = vpop.f32.mrf.mxu1 }
 0x1ae   :  { %v330_v18 = vadd.f32 %v432_v16, %v329_v17 }
 0x1af   :  { %v538_v19 = vpop.f32.mrf.mxu1 }
 0x1b0   :  { %v333_v20 = vmax.f32 %v330_v18, 0.0 }
 0x1b2   :  { %556 = vmatmul.mubr.msk.f32.vlgmr.msra.gmra.mxu0 %vm349_vm4, %v333_v20 }
 0x272   :  { %v419_v21 = vpop.f32.mrf.mxu0 }
 0x273   :  { %v420_v22 = vadd.f32 %v434_v3, %v419_v21 }
 0x274   :  { %v557_v23 = vpop.f32.mrf.mxu0 }
 0x275   :  { %424 = vst.msk [vmem:[%s829_s7] sm:$0x3] %vm423_vm5, %v420_v22 }

// kernel: _lambda_.2
= control target key start
LH: loop header
LB: loop body
LE: loop exit
PB: predicated region body
PF: predicated region fallthrough
CT: control target
= control target key end

     0   :  { %s14047_s24 = smov 0   ;;  %s18805_s0 = inlined_call_operand.vmem [shape: f32[2,502,3], index: 0, kind: input, shape index: {}]   ;;  %s18806_s1 = inlined_call_operand.vmem [shape: f32[7,3,6], index: 1, kind: input, shape index: {}]   ;;  %s18807_s2 = inlined_call_operand.vmem [shape: f32[1,6], index: 2, kind: input, shape index: {}]   ;;  %s18808_s3 = inlined_call_operand.vmem [shape: f32[7,6,6], index: 3, kind: input, shape index: {}]   ;;  %s18809_s4 = inlined_call_operand.vmem [shape: f32[1,6], index: 4, kind: input, shape index: {}]   ;;  %s18810_s5 = inlined_call_operand.vmem [shape: f32[7,6,6], index: 5, kind: input, shape index: {}]   ;;  %s18811_s6 = inlined_call_operand.vmem [shape: f32[1,6], index: 6, kind: input, shape index: {}]   ;;  %s18812_s7 = inlined_call_operand.vmem [shape: f32[2,62,6], index: 7, kind: output, shape index: {}]  }
   0x1 LB: > { %s10211_s25 = sadd.s32 4294967295, %s14003_s24   ;;  %p10215_p0 = scmp.ge.s32.totalorder %s14003_s24, 1  ;;  %s14003_s24 = sphi %s14047_s24, %s17_s24  }
   0x2   : > { %p237_p1 = scmp.lt.s32.totalorder %s14003_s24, 3 }
   0x4   : > { %p238_p2 = pnand %p10215_p0, %p237_p1 }
   0x6   : > { %241 = sbr.rel (%p238_p2) target bundleno = 1803 (0x70b), region = 48 }
   0xb   : > { %v334_v0 = vld [vmem:[%s18806_s1 + $0x4] sm:$0x7]  ;;  %vm619_vm0 = vcmask 1042432   ;;  %v333_v1 = vld [vmem:[%s18806_s1] sm:$0x7]  ;;  %v18814_v2 = vmov 0.0  }
   0xc   : > { %12096 = vmatprep.subr.mxu0 %v18814_v2  ;;  %12191 = vmatprep.subr.mxu1 %v18814_v2  ;;  %p269_p3 = scmp.lt.s32.totalorder %s10211_s25, 1  ;;  %vm14006_vm1 = vmmov 0   ;;  %vm525_vm2 = vcmask 23552   ;;  %vm5367_vm3 = vcmask 1045504   ;;  %vm279_vm4 = vcmask 48128  }
   0xd   : > { %12097 = vmatpush3.msk.msra.mxu0 %vm619_vm0, %v334_v0  ;;  %12192 = vmatpush3.msk.msra.mxu1 %vm619_vm0, %v333_v1  ;;  %vm331_vm5 = vcmask 44032   ;;  %vm10154_vm6 = vcmask 46080  }
   0xe   : > { %12098 = vmatprep.mubr.msk.f32.mxu0 %vm14006_vm1, %v18814_v2  ;;  %12193 = vmatprep.mubr.msk.f32.mxu1 %vm14006_vm1, %v18814_v2  ;;  %s19329_s25 = smov (!%p269_p3, %s10211_s25), 1 }
   0xf   : > { %12286 = vmatprep.subr.mxu0 %v18814_v2  ;;  %12381 = vmatprep.subr.mxu1 %v18814_v2  ;;  %s13986_s30 = smul.u32 504, %s19329_s25  ;;  %s11283_s13 = sshll.u32 %s19329_s25, 6 }
  0x10   : > { %s18773_s25 = scalar_lea.vmem %s18812_s7, %s11283_s13 }
  0x11   : > { %s14077_s10 = scalar_lea.vmem %s18805_s0, %s13986_s30 }
  0x12   : > { %v14080_v3 = vld [vmem:[%s14077_s10 + $0x1] ss:$2 sm:$0xff]  ;;  %v340_v4 = vld [vmem:[%s14077_s10] ss:$2 sm:$0xff]  ;;  %v14089_v5 = vld [vmem:[%s14077_s10 + $0x11] ss:$2 sm:$0xff] }
  0x13   : > { %12099 = vmatmul.mubr.msk.f32.vlgmr.msra.gmra.mxu0 %vm525_vm2, %v14080_v3  ;;  %12194 = vmatmul.mubr.msk.f32.vlgmr.msra.gmra.mxu1 %vm525_vm2, %v340_v4  ;;  %v10219_v6 = vld [vmem:[%s14077_s10 + $0x10] ss:$2 sm:$0xff]  ;;  %v14106_v7 = vld [vmem:[%s14077_s10 + $0x21] ss:$2 sm:$0xff]  ;;  %v10220_v8 = vld [vmem:[%s14077_s10 + $0x20] ss:$2 sm:$0xff] }
  0x14   : > { %12287 = vmatpush3.msk.msra.mxu0 %vm619_vm0, %v334_v0  ;;  %12382 = vmatpush3.msk.msra.mxu1 %vm619_vm0, %v333_v1  ;;  %v14117_v9 = vld [vmem:[%s14077_s10 + $0x31] ss:$2 sm:$0xff]  ;;  %v10221_v10 = vld [vmem:[%s14077_s10 + $0x30] ss:$2 sm:$0xff]  ;;  %v14128_v11 = vld [vmem:[%s14077_s10 + $0x41] ss:$2 sm:$0xff] }
  0x15   : > { %12101 = vmatprep.mubr.msk.f32.mxu0 %vm14006_vm1, %v18814_v2  ;;  %12196 = vmatprep.mubr.msk.f32.mxu1 %vm14006_vm1, %v18814_v2  ;;  %v10222_v12 = vld [vmem:[%s14077_s10 + $0x40] ss:$2 sm:$0xff]  ;;  %v14139_v13 = vld [vmem:[%s14077_s10 + $0x51] ss:$2 sm:$0xff]  ;;  %v10223_v14 = vld [vmem:[%s14077_s10 + $0x50] ss:$2 sm:$0xff] }
  0x16   : > { %12476 = vmatprep.subr.mxu0 %v18814_v2  ;;  %12571 = vmatprep.subr.mxu1 %v18814_v2  ;;  %v14150_v15 = vld [vmem:[%s14077_s10 + $0x61] ss:$2 sm:$0xff]  ;;  %v10224_v16 = vld [vmem:[%s14077_s10 + $0x60] ss:$2 sm:$0xff]  ;;  %v14161_v17 = vld [vmem:[%s14077_s10 + $0x71] ss:$2 sm:$0xff] }
  0x17   : > { %12102 = vmatmul.mubr.msk.f32.gmra.mxu0 %vm525_vm2, %v14089_v5  ;;  %12197 = vmatmul.mubr.msk.f32.gmra.mxu1 %vm525_vm2, %v10219_v6  ;;  %v10225_v18 = vld [vmem:[%s14077_s10 + $0x70] ss:$2 sm:$0xff]  ;;  %v14172_v19 = vld [vmem:[%s14077_s10 + $0x81] ss:$2 sm:$0xff]  ;;  %v10226_v20 = vld [vmem:[%s14077_s10 + $0x80] ss:$2 sm:$0xff] }
  0x18   : > { %12104 = vmatprep.mubr.msk.f32.mxu0 %vm14006_vm1, %v18814_v2  ;;  %12199 = vmatprep.mubr.msk.f32.mxu1 %vm14006_vm1, %v18814_v2  ;;  %v14183_v21 = vld [vmem:[%s14077_s10 + $0x91] ss:$2 sm:$0xff]  ;;  %v10227_v22 = vld [vmem:[%s14077_s10 + $0x90] ss:$2 sm:$0xff]  ;;  %v14194_v23 = vld [vmem:[%s14077_s10 + $0xa1] ss:$2 sm:$0xff] }
  0x19   : > { %v10228_v24 = vld [vmem:[%s14077_s10 + $0xa0] ss:$2 sm:$0xff]  ;;  %v14205_v25 = vld [vmem:[%s14077_s10 + $0xb1] ss:$2 sm:$0xff]  ;;  %v10229_v26 = vld [vmem:[%s14077_s10 + $0xb0] ss:$2 sm:$0xff] }
  0x1a   : > { %v14216_v27 = vld [vmem:[%s14077_s10 + $0xc1] ss:$2 sm:$0xff]  ;;  %v10230_v28 = vld [vmem:[%s14077_s10 + $0xc0] ss:$2 sm:$0xff]  ;;  %v14227_v29 = vld [vmem:[%s14077_s10 + $0xd1] ss:$2 sm:$0xff] }
  0x1b   : > { %12105 = vmatmul.mubr.msk.f32.gmra.mxu0 %vm525_vm2, %v14106_v7  ;;  %12200 = vmatmul.mubr.msk.f32.gmra.mxu1 %vm525_vm2, %v10220_v8  ;;  %v10231_v30 = vld [vmem:[%s14077_s10 + $0xd0] ss:$2 sm:$0xff]  ;;  %v14238_v31 = vld [vmem:[%s14077_s10 + $0xe1] ss:$2 sm:$0xff]  ;;  %v10232_v32 = vld [vmem:[%s14077_s10 + $0xe0] ss:$2 sm:$0xff] }
  0x1c   : > { %12107 = vmatprep.mubr.msk.f32.mxu0 %vm14006_vm1, %v18814_v2  ;;  %12202 = vmatprep.mubr.msk.f32.mxu1 %vm14006_vm1, %v18814_v2  ;;  %v14249_v33 = vld [vmem:[%s14077_s10 + $0xf1] ss:$2 sm:$0xff]  ;;  %v10233_v34 = vld [vmem:[%s14077_s10 + $0xf0] ss:$2 sm:$0xff]  ;;  %v14260_v35 = vld [vmem:[%s14077_s10 + $0x101] ss:$2 sm:$0xff] }
  0x1d   : > { %v10234_v36 = vld [vmem:[%s14077_s10 + $0x100] ss:$2 sm:$0xff]  ;;  %v14271_v37 = vld [vmem:[%s14077_s10 + $0x111] ss:$2 sm:$0xff]  ;;  %v10235_v38 = vld [vmem:[%s14077_s10 + $0x110] ss:$2 sm:$0xff] }
  0x1e   : > { %v14282_v39 = vld [vmem:[%s14077_s10 + $0x121] ss:$2 sm:$0xff]  ;;  %v10236_v40 = vld [vmem:[%s14077_s10 + $0x120] ss:$2 sm:$0xff]  ;;  %v14293_v41 = vld [vmem:[%s14077_s10 + $0x131] ss:$2 sm:$0xff] }
  0x1f   : > { %12108 = vmatmul.mubr.msk.f32.gmra.mxu0 %vm525_vm2, %v14117_v9  ;;  %12203 = vmatmul.mubr.msk.f32.gmra.mxu1 %vm525_vm2, %v10221_v10  ;;  %v10237_v42 = vld [vmem:[%s14077_s10 + $0x130] ss:$2 sm:$0xff]  ;;  %v14304_v43 = vld [vmem:[%s14077_s10 + $0x141] ss:$2 sm:$0xff]  ;;  %v10238_v44 = vld [vmem:[%s14077_s10 + $0x140] ss:$2 sm:$0xff] }
  0x20   : > { %12110 = vmatprep.mubr.msk.f32.mxu0 %vm14006_vm1, %v18814_v2  ;;  %12205 = vmatprep.mubr.msk.f32.mxu1 %vm14006_vm1, %v18814_v2  ;;  %v14315_v45 = vld [vmem:[%s14077_s10 + $0x151] ss:$2 sm:$0xff]  ;;  %v10239_v46 = vld [vmem:[%s14077_s10 + $0x150] ss:$2 sm:$0xff]  ;;  %v14326_v47 = vld [vmem:[%s14077_s10 + $0x161] ss:$2 sm:$0xff] }
  0x21   : > { %v10240_v48 = vld [vmem:[%s14077_s10 + $0x160] ss:$2 sm:$0xff]  ;;  %v14337_v49 = vld [vmem:[%s14077_s10 + $0x171] ss:$2 sm:$0xff]  ;;  %v10241_v50 = vld [vmem:[%s14077_s10 + $0x170] ss:$2 sm:$0xff] }
  0x22   : > { %v14348_v51 = vld [vmem:[%s14077_s10 + $0x181] ss:$2 sm:$0xff]  ;;  %v10242_v52 = vld [vmem:[%s14077_s10 + $0x180] ss:$2 sm:$0xff]  ;;  %v14359_v53 = vld [vmem:[%s14077_s10 + $0x191] ss:$2 sm:$0xff] }
  0x23   : > { %12111 = vmatmul.mubr.msk.f32.gmra.mxu0 %vm525_vm2, %v14128_v11  ;;  %12206 = vmatmul.mubr.msk.f32.gmra.mxu1 %vm525_vm2, %v10222_v12  ;;  %v10243_v54 = vld [vmem:[%s14077_s10 + $0x190] ss:$2 sm:$0xff]  ;;  %v14370_v55 = vld [vmem:[%s14077_s10 + $0x1a1] ss:$2 sm:$0xff]  ;;  %v10244_v56 = vld [vmem:[%s14077_s10 + $0x1a0] ss:$2 sm:$0xff] }
  0x24   : > { %12113 = vmatprep.mubr.msk.f32.mxu0 %vm14006_vm1, %v18814_v2  ;;  %12208 = vmatprep.mubr.msk.f32.mxu1 %vm14006_vm1, %v18814_v2  ;;  %v14381_v57 = vld [vmem:[%s14077_s10 + $0x1b1] ss:$2 sm:$0xff]  ;;  %v10245_v58 = vld [vmem:[%s14077_s10 + $0x1b0] ss:$2 sm:$0xff]  ;;  %v14392_v59 = vld [vmem:[%s14077_s10 + $0x1c1] ss:$2 sm:$0xff] }
  0x25   : > { %v10246_v60 = vld [vmem:[%s14077_s10 + $0x1c0] ss:$2 sm:$0xff]  ;;  %v14403_v61 = vld [vmem:[%s14077_s10 + $0x1d1] ss:$2 sm:$0xff]  ;;  %v10247_v62 = vld [vmem:[%s14077_s10 + $0x1d0] ss:$2 sm:$0xff] }
  0x26   : > { %v14414_v63 = vld [vmem:[%s14077_s10 + $0x1e1] ss:$2 sm:$0xff]  ;;  %v10248_v0 = vld [vmem:[%s14077_s10 + $0x1e0] ss:$2 sm:$0xff] }
  0x27   : > { %12114 = vmatmul.mubr.msk.f32.gmra.mxu0 %vm525_vm2, %v14139_v13  ;;  %12209 = vmatmul.mubr.msk.f32.gmra.mxu1 %vm525_vm2, %v10223_v14  ;;  %v14425_v1 = vld [vmem:[%s14077_s10 + $0x2] ss:$2 sm:$0xff]  ;;  %v14437_v6 = vld [vmem:[%s14077_s10 + $0x12] ss:$2 sm:$0xff] }
  0x28   : > { %12116 = vmatprep.mubr.msk.f32.mxu0 %vm14006_vm1, %v18814_v2  ;;  %12211 = vmatprep.mubr.msk.f32.mxu1 %vm14006_vm1, %v18814_v2  ;;  %v335_v4 = vld [vmem:[%s18806_s1 + $0x8] sm:$0x7]  ;;  %v14487_v8 = vld [vmem:[%s14077_s10 + $0x52] ss:$2 sm:$0xff] }
  0x29   : > { %v14509_v10 = vld [vmem:[%s14077_s10 + $0x72] ss:$2 sm:$0xff] }
  0x2a   : > { %v14531_v12 = vld [vmem:[%s14077_s10 + $0x92] ss:$2 sm:$0xff] }
  0x2b   : > { %12117 = vmatmul.mubr.msk.f32.gmra.mxu0 %vm525_vm2, %v14150_v15  ;;  %12212 = vmatmul.mubr.msk.f32.gmra.mxu1 %vm525_vm2, %v10224_v16  ;;  %v14553_v14 = vld [vmem:[%s14077_s10 + $0xb2] ss:$2 sm:$0xff] }
  0x2c   : > { %12119 = vmatprep.mubr.msk.f32.mxu0 %vm14006_vm1, %v18814_v2  ;;  %12214 = vmatprep.mubr.msk.f32.mxu1 %vm14006_vm1, %v18814_v2  ;;  %v14575_v16 = vld [vmem:[%s14077_s10 + $0xd2] ss:$2 sm:$0xff] }
  0x2f   : > { %12120 = vmatmul.mubr.msk.f32.gmra.mxu0 %vm525_vm2, %v14161_v17  ;;  %12215 = vmatmul.mubr.msk.f32.gmra.mxu1 %vm525_vm2, %v10225_v18  ;;  %v14597_v18 = vld [vmem:[%s14077_s10 + $0xf2] ss:$2 sm:$0xff] }
  0x30   : > { %12122 = vmatprep.mubr.msk.f32.mxu0 %vm14006_vm1, %v18814_v2  ;;  %12217 = vmatprep.mubr.msk.f32.mxu1 %vm14006_vm1, %v18814_v2 }
  0x33   : > { %12123 = vmatmul.mubr.msk.f32.gmra.mxu0 %vm525_vm2, %v14172_v19  ;;  %12218 = vmatmul.mubr.msk.f32.gmra.mxu1 %vm525_vm2, %v10226_v20  ;;  %v14619_v20 = vld [vmem:[%s14077_s10 + $0x112] ss:$2 sm:$0xff] }
  0x34   : > { %12125 = vmatprep.mubr.msk.f32.mxu0 %vm14006_vm1, %v18814_v2  ;;  %12220 = vmatprep.mubr.msk.f32.mxu1 %vm14006_vm1, %v18814_v2 }
  0x37   : > { %12126 = vmatmul.mubr.msk.f32.gmra.mxu0 %vm525_vm2, %v14183_v21  ;;  %12221 = vmatmul.mubr.msk.f32.gmra.mxu1 %vm525_vm2, %v10227_v22 }
  0x38   : > { %12128 = vmatprep.mubr.msk.f32.mxu0 %vm14006_vm1, %v18814_v2  ;;  %12223 = vmatprep.mubr.msk.f32.mxu1 %vm14006_vm1, %v18814_v2 }
  0x3b   : > { %12129 = vmatmul.mubr.msk.f32.gmra.mxu0 %vm525_vm2, %v14194_v23  ;;  %12224 = vmatmul.mubr.msk.f32.gmra.mxu1 %vm525_vm2, %v10228_v24  ;;  %v14632_v24 = vld [vmem:[%s14077_s10 + $0x122] ss:$2 sm:$0xff] }
  0x3c   : > { %12131 = vmatprep.mubr.msk.f32.mxu0 %vm14006_vm1, %v18814_v2  ;;  %12226 = vmatprep.mubr.msk.f32.mxu1 %vm14006_vm1, %v18814_v2 }
  0x3f   : > { %12132 = vmatmul.mubr.msk.f32.gmra.mxu0 %vm525_vm2, %v14205_v25  ;;  %12227 = vmatmul.mubr.msk.f32.gmra.mxu1 %vm525_vm2, %v10229_v26 }
  0x40   : > { %12134 = vmatprep.mubr.msk.f32.mxu0 %vm14006_vm1, %v18814_v2  ;;  %12229 = vmatprep.mubr.msk.f32.mxu1 %vm14006_vm1, %v18814_v2 }
  0x43   : > { %12135 = vmatmul.mubr.msk.f32.gmra.mxu0 %vm525_vm2, %v14216_v27  ;;  %12230 = vmatmul.mubr.msk.f32.gmra.mxu1 %vm525_vm2, %v10230_v28 }
  0x44   : > { %12137 = vmatprep.mubr.msk.f32.mxu0 %vm14006_vm1, %v18814_v2  ;;  %12232 = vmatprep.mubr.msk.f32.mxu1 %vm14006_vm1, %v18814_v2 }
  0x47   : > { %12138 = vmatmul.mubr.msk.f32.gmra.mxu0 %vm525_vm2, %v14227_v29  ;;  %12233 = vmatmul.mubr.msk.f32.gmra.mxu1 %vm525_vm2, %v10231_v30  ;;  %v14645_v30 = vld [vmem:[%s14077_s10 + $0x132] ss:$2 sm:$0xff] }
  0x48   : > { %12140 = vmatprep.mubr.msk.f32.mxu0 %vm14006_vm1, %v18814_v2  ;;  %12235 = vmatprep.mubr.msk.f32.mxu1 %vm14006_vm1, %v18814_v2 }
  0x4b   : > { %12141 = vmatmul.mubr.msk.f32.gmra.mxu0 %vm525_vm2, %v14238_v31  ;;  %12236 = vmatmul.mubr.msk.f32.gmra.mxu1 %vm525_vm2, %v10232_v32 }
  0x4c   : > { %12143 = vmatprep.mubr.msk.f32.mxu0 %vm14006_vm1, %v18814_v2  ;;  %12238 = vmatprep.mubr.msk.f32.mxu1 %vm14006_vm1, %v18814_v2 }
  0x4f   : > { %12144 = vmatmul.mubr.msk.f32.gmra.mxu0 %vm525_vm2, %v14249_v33  ;;  %12239 = vmatmul.mubr.msk.f32.gmra.mxu1 %vm525_vm2, %v10233_v34 }
  0x50   : > { %12146 = vmatprep.mubr.msk.f32.mxu0 %vm14006_vm1, %v18814_v2  ;;  %12241 = vmatprep.mubr.msk.f32.mxu1 %vm14006_vm1, %v18814_v2 }
  0x53   : > { %12147 = vmatmul.mubr.msk.f32.gmra.mxu0 %vm525_vm2, %v14260_v35  ;;  %12242 = vmatmul.mubr.msk.f32.gmra.mxu1 %vm525_vm2, %v10234_v36  ;;  %v14658_v36 = vld [vmem:[%s14077_s10 + $0x142] ss:$2 sm:$0xff] }
  0x54   : > { %12149 = vmatprep.mubr.msk.f32.mxu0 %vm14006_vm1, %v18814_v2  ;;  %12244 = vmatprep.mubr.msk.f32.mxu1 %vm14006_vm1, %v18814_v2 }
  0x57   : > { %12150 = vmatmul.mubr.msk.f32.gmra.mxu0 %vm525_vm2, %v14271_v37  ;;  %12245 = vmatmul.mubr.msk.f32.gmra.mxu1 %vm525_vm2, %v10235_v38 }
  0x58   : > { %12152 = vmatprep.mubr.msk.f32.mxu0 %vm14006_vm1, %v18814_v2  ;;  %12247 = vmatprep.mubr.msk.f32.mxu1 %vm14006_vm1, %v18814_v2 }
  0x5b   : > { %12153 = vmatmul.mubr.msk.f32.gmra.mxu0 %vm525_vm2, %v14282_v39  ;;  %12248 = vmatmul.mubr.msk.f32.gmra.mxu1 %vm525_vm2, %v10236_v40 }
  0x5c   : > { %12155 = vmatprep.mubr.msk.f32.mxu0 %vm14006_vm1, %v18814_v2  ;;  %12250 = vmatprep.mubr.msk.f32.mxu1 %vm14006_vm1, %v18814_v2 }
  0x5f   : > { %12156 = vmatmul.mubr.msk.f32.gmra.mxu0 %vm525_vm2, %v14293_v41  ;;  %12251 = vmatmul.mubr.msk.f32.gmra.mxu1 %vm525_vm2, %v10237_v42  ;;  %v14671_v42 = vld [vmem:[%s14077_s10 + $0x152] ss:$2 sm:$0xff] }
  0x60   : > { %12158 = vmatprep.mubr.msk.f32.mxu0 %vm14006_vm1, %v18814_v2  ;;  %12253 = vmatprep.mubr.msk.f32.mxu1 %vm14006_vm1, %v18814_v2 }
  0x63   : > { %12159 = vmatmul.mubr.msk.f32.gmra.mxu0 %vm525_vm2, %v14304_v43  ;;  %12254 = vmatmul.mubr.msk.f32.gmra.mxu1 %vm525_vm2, %v10238_v44 }
  0x64   : > { %12161 = vmatprep.mubr.msk.f32.mxu0 %vm14006_vm1, %v18814_v2  ;;  %12256 = vmatprep.mubr.msk.f32.mxu1 %vm14006_vm1, %v18814_v2 }
  0x67   : > { %12162 = vmatmul.mubr.msk.f32.gmra.mxu0 %vm525_vm2, %v14315_v45  ;;  %12257 = vmatmul.mubr.msk.f32.gmra.mxu1 %vm525_vm2, %v10239_v46 }
  0x68   : > { %12164 = vmatprep.mubr.msk.f32.mxu0 %vm14006_vm1, %v18814_v2  ;;  %12259 = vmatprep.mubr.msk.f32.mxu1 %vm14006_vm1, %v18814_v2 }
  0x6b   : > { %12165 = vmatmul.mubr.msk.f32.gmra.mxu0 %vm525_vm2, %v14326_v47  ;;  %12260 = vmatmul.mubr.msk.f32.gmra.mxu1 %vm525_vm2, %v10240_v48 }
  0x6c   : > { %12167 = vmatprep.mubr.msk.f32.mxu0 %vm14006_vm1, %v18814_v2  ;;  %12262 = vmatprep.mubr.msk.f32.mxu1 %vm14006_vm1, %v18814_v2 }
  0x6f   : > { %12168 = vmatmul.mubr.msk.f32.gmra.mxu0 %vm525_vm2, %v14337_v49  ;;  %12263 = vmatmul.mubr.msk.f32.gmra.mxu1 %vm525_vm2, %v10241_v50 }
  0x70   : > { %12170 = vmatprep.mubr.msk.f32.mxu0 %vm14006_vm1, %v18814_v2  ;;  %12265 = vmatprep.mubr.msk.f32.mxu1 %vm14006_vm1, %v18814_v2 }
  0x73   : > { %12171 = vmatmul.mubr.msk.f32.gmra.mxu0 %vm525_vm2, %v14348_v51  ;;  %12266 = vmatmul.mubr.msk.f32.gmra.mxu1 %vm525_vm2, %v10242_v52  ;;  %v14684_v52 = vld [vmem:[%s14077_s10 + $0x162] ss:$2 sm:$0xff] }
  0x74   : > { %12173 = vmatprep.mubr.msk.f32.mxu0 %vm14006_vm1, %v18814_v2  ;;  %12268 = vmatprep.mubr.msk.f32.mxu1 %vm14006_vm1, %v18814_v2 }
  0x77   : > { %12174 = vmatmul.mubr.msk.f32.gmra.mxu0 %vm525_vm2, %v14359_v53  ;;  %12269 = vmatmul.mubr.msk.f32.gmra.mxu1 %vm525_vm2, %v10243_v54 }
  0x78   : > { %12176 = vmatprep.mubr.msk.f32.mxu0 %vm14006_vm1, %v18814_v2  ;;  %12271 = vmatprep.mubr.msk.f32.mxu1 %vm14006_vm1, %v18814_v2 }
  0x7b   : > { %12177 = vmatmul.mubr.msk.f32.gmra.mxu0 %vm525_vm2, %v14370_v55  ;;  %12272 = vmatmul.mubr.msk.f32.gmra.mxu1 %vm525_vm2, %v10244_v56 }
  0x7c   : > { %12179 = vmatprep.mubr.msk.f32.mxu0 %vm14006_vm1, %v18814_v2  ;;  %12274 = vmatprep.mubr.msk.f32.mxu1 %vm14006_vm1, %v18814_v2 }
  0x7f   : > { %12180 = vmatmul.mubr.msk.f32.gmra.mxu0 %vm525_vm2, %v14381_v57  ;;  %12275 = vmatmul.mubr.msk.f32.gmra.mxu1 %vm525_vm2, %v10245_v58 }
  0x80   : > { %12182 = vmatprep.mubr.msk.f32.mxu0 %vm14006_vm1, %v18814_v2  ;;  %12277 = vmatprep.mubr.msk.f32.mxu1 %vm14006_vm1, %v18814_v2 }
  0x83   : > { %12183 = vmatmul.mubr.msk.f32.gmra.mxu0 %vm525_vm2, %v14392_v59  ;;  %12278 = vmatmul.mubr.msk.f32.gmra.mxu1 %vm525_vm2, %v10246_v60 }
  0x84   : > { %12185 = vmatprep.mubr.msk.f32.mxu0 %vm14006_vm1, %v18814_v2  ;;  %12280 = vmatprep.mubr.msk.f32.mxu1 %vm14006_vm1, %v18814_v2 }
  0x87   : > { %12186 = vmatmul.mubr.msk.f32.gmra.mxu0 %vm525_vm2, %v14403_v61  ;;  %12281 = vmatmul.mubr.msk.f32.gmra.mxu1 %vm525_vm2, %v10247_v62  ;;  %v14697_v62 = vld [vmem:[%s14077_s10 + $0x172] ss:$2 sm:$0xff] }
  0x88   : > { %12188 = vmatprep.mubr.msk.f32.mxu0 %vm14006_vm1, %v18814_v2  ;;  %12283 = vmatprep.mubr.msk.f32.mxu1 %vm14006_vm1, %v18814_v2 }
  0x8b   : > { %12189 = vmatmul.mubr.msk.f32.gmra.mxu0 %vm525_vm2, %v14414_v63  ;;  %12284 = vmatmul.mubr.msk.f32.gmra.mxu1 %vm525_vm2, %v10248_v0 }
  0x8c   : > { %12288 = vmatprep.mubr.msk.f32.mxu0 %vm14006_vm1, %v18814_v2  ;;  %12383 = vmatprep.mubr.msk.f32.mxu1 %vm14006_vm1, %v18814_v2 }
  0x8f   : > { %12289 = vmatmul.mubr.msk.f32.vlgmr.msra.gmra.mxu0 %vm525_vm2, %v14425_v1  ;;  %12384 = vmatmul.mubr.msk.f32.vlgmr.msra.gmra.mxu1 %vm525_vm2, %v14080_v3  ;;  %v14454_v3 = vld [vmem:[%s14077_s10 + $0x22] ss:$2 sm:$0xff] }
  0x90   : > { %12477 = vmatpush3.msk.msra.mxu0 %vm619_vm0, %v335_v4  ;;  %12572 = vmatpush3.msk.msra.mxu1 %vm619_vm0, %v335_v4 }
  0x91   : > { %12291 = vmatprep.mubr.msk.f32.mxu0 %vm14006_vm1, %v18814_v2  ;;  %12386 = vmatprep.mubr.msk.f32.mxu1 %vm14006_vm1, %v18814_v2 }
  0x92   : > { %12666 = vmatprep.subr.mxu0 %v18814_v2  ;;  %12761 = vmatprep.subr.mxu1 %v18814_v2 }
  0x93   : > { %12292 = vmatmul.mubr.msk.f32.gmra.mxu0 %vm525_vm2, %v14437_v6  ;;  %12387 = vmatmul.mubr.msk.f32.gmra.mxu1 %vm525_vm2, %v14089_v5  ;;  %v14465_v5 = vld [vmem:[%s14077_s10 + $0x32] ss:$2 sm:$0xff] }
  0x94   : > { %12294 = vmatprep.mubr.msk.f32.mxu0 %vm14006_vm1, %v18814_v2  ;;  %12389 = vmatprep.mubr.msk.f32.mxu1 %vm14006_vm1, %v18814_v2 }
  0x97   : > { %12295 = vmatmul.mubr.msk.f32.gmra.mxu0 %vm525_vm2, %v14454_v3  ;;  %12390 = vmatmul.mubr.msk.f32.gmra.mxu1 %vm525_vm2, %v14106_v7  ;;  %v14476_v7 = vld [vmem:[%s14077_s10 + $0x42] ss:$2 sm:$0xff] }
  0x98   : > { %12297 = vmatprep.mubr.msk.f32.mxu0 %vm14006_vm1, %v18814_v2  ;;  %12392 = vmatprep.mubr.msk.f32.mxu1 %vm14006_vm1, %v18814_v2 }
  0x9b   : > { %12298 = vmatmul.mubr.msk.f32.gmra.mxu0 %vm525_vm2, %v14465_v5  ;;  %12393 = vmatmul.mubr.msk.f32.gmra.mxu1 %vm525_vm2, %v14117_v9  ;;  %v14498_v9 = vld [vmem:[%s14077_s10 + $0x62] ss:$2 sm:$0xff] }
  0x9c   : > { %12300 = vmatprep.mubr.msk.f32.mxu0 %vm14006_vm1, %v18814_v2  ;;  %12395 = vmatprep.mubr.msk.f32.mxu1 %vm14006_vm1, %v18814_v2 }
  0x9f   : > { %12301 = vmatmul.mubr.msk.f32.gmra.mxu0 %vm525_vm2, %v14476_v7  ;;  %12396 = vmatmul.mubr.msk.f32.gmra.mxu1 %vm525_vm2, %v14128_v11  ;;  %v14520_v11 = vld [vmem:[%s14077_s10 + $0x82] ss:$2 sm:$0xff] }
  0xa0   : > { %12303 = vmatprep.mubr.msk.f32.mxu0 %vm14006_vm1, %v18814_v2  ;;  %12398 = vmatprep.mubr.msk.f32.mxu1 %vm14006_vm1, %v18814_v2 }
  0xa3   : > { %12304 = vmatmul.mubr.msk.f32.gmra.mxu0 %vm525_vm2, %v14487_v8  ;;  %12399 = vmatmul.mubr.msk.f32.gmra.mxu1 %vm525_vm2, %v14139_v13  ;;  %v14542_v13 = vld [vmem:[%s14077_s10 + $0xa2] ss:$2 sm:$0xff] }
  0xa4   : > { %12306 = vmatprep.mubr.msk.f32.mxu0 %vm14006_vm1, %v18814_v2  ;;  %12401 = vmatprep.mubr.msk.f32.mxu1 %vm14006_vm1, %v18814_v2 }
  0xa7   : > { %12307 = vmatmul.mubr.msk.f32.gmra.mxu0 %vm525_vm2, %v14498_v9  ;;  %12402 = vmatmul.mubr.msk.f32.gmra.mxu1 %vm525_vm2, %v14150_v15  ;;  %v14564_v15 = vld [vmem:[%s14077_s10 + $0xc2] ss:$2 sm:$0xff] }
  0xa8   : > { %12309 = vmatprep.mubr.msk.f32.mxu0 %vm14006_vm1, %v18814_v2  ;;  %12404 = vmatprep.mubr.msk.f32.mxu1 %vm14006_vm1, %v18814_v2 }
  0xab   : > { %12310 = vmatmul.mubr.msk.f32.gmra.mxu0 %vm525_vm2, %v14509_v10  ;;  %12405 = vmatmul.mubr.msk.f32.gmra.mxu1 %vm525_vm2, %v14161_v17  ;;  %v14586_v17 = vld [vmem:[%s14077_s10 + $0xe2] ss:$2 sm:$0xff] }
  0xac   : > { %12312 = vmatprep.mubr.msk.f32.mxu0 %vm14006_vm1, %v18814_v2  ;;  %12407 = vmatprep.mubr.msk.f32.mxu1 %vm14006_vm1, %v18814_v2 }
  0xaf   : > { %12313 = vmatmul.mubr.msk.f32.gmra.mxu0 %vm525_vm2, %v14520_v11  ;;  %12408 = vmatmul.mubr.msk.f32.gmra.mxu1 %vm525_vm2, %v14172_v19  ;;  %v14608_v19 = vld [vmem:[%s14077_s10 + $0x102] ss:$2 sm:$0xff] }
  0xb0   : > { %12315 = vmatprep.mubr.msk.f32.mxu0 %vm14006_vm1, %v18814_v2  ;;  %12410 = vmatprep.mubr.msk.f32.mxu1 %vm14006_vm1, %v18814_v2 }
  0xb3   : > { %12316 = vmatmul.mubr.msk.f32.gmra.mxu0 %vm525_vm2, %v14531_v12  ;;  %12411 = vmatmul.mubr.msk.f32.gmra.mxu1 %vm525_vm2, %v14183_v21 }
  0xb4   : > { %12318 = vmatprep.mubr.msk.f32.mxu0 %vm14006_vm1, %v18814_v2  ;;  %12413 = vmatprep.mubr.msk.f32.mxu1 %vm14006_vm1, %v18814_v2 }
  0xb7   : > { %12319 = vmatmul.mubr.msk.f32.gmra.mxu0 %vm525_vm2, %v14542_v13  ;;  %12414 = vmatmul.mubr.msk.f32.gmra.mxu1 %vm525_vm2, %v14194_v23 }
  0xb8   : > { %12321 = vmatprep.mubr.msk.f32.mxu0 %vm14006_vm1, %v18814_v2  ;;  %12416 = vmatprep.mubr.msk.f32.mxu1 %vm14006_vm1, %v18814_v2 }
  0xbb   : > { %12322 = vmatmul.mubr.msk.f32.gmra.mxu0 %vm525_vm2, %v14553_v14  ;;  %12417 = vmatmul.mubr.msk.f32.gmra.mxu1 %vm525_vm2, %v14205_v25 }
  0xbc   : > { %12324 = vmatprep.mubr.msk.f32.mxu0 %vm14006_vm1, %v18814_v2  ;;  %12419 = vmatprep.mubr.msk.f32.mxu1 %vm14006_vm1, %v18814_v2 }
  0xbf   : > { %12325 = vmatmul.mubr.msk.f32.gmra.mxu0 %vm525_vm2, %v14564_v15  ;;  %12420 = vmatmul.mubr.msk.f32.gmra.mxu1 %vm525_vm2, %v14216_v27 }
  0xc0   : > { %12327 = vmatprep.mubr.msk.f32.mxu0 %vm14006_vm1, %v18814_v2  ;;  %12422 = vmatprep.mubr.msk.f32.mxu1 %vm14006_vm1, %v18814_v2 }
  0xc3   : > { %12328 = vmatmul.mubr.msk.f32.gmra.mxu0 %vm525_vm2, %v14575_v16  ;;  %12423 = vmatmul.mubr.msk.f32.gmra.mxu1 %vm525_vm2, %v14227_v29 }
  0xc4   : > { %12330 = vmatprep.mubr.msk.f32.mxu0 %vm14006_vm1, %v18814_v2  ;;  %12425 = vmatprep.mubr.msk.f32.mxu1 %vm14006_vm1, %v18814_v2 }
  0xc7   : > { %12331 = vmatmul.mubr.msk.f32.gmra.mxu0 %vm525_vm2, %v14586_v17  ;;  %12426 = vmatmul.mubr.msk.f32.gmra.mxu1 %vm525_vm2, %v14238_v31 }
  0xc8   : > { %12333 = vmatprep.mubr.msk.f32.mxu0 %vm14006_vm1, %v18814_v2  ;;  %12428 = vmatprep.mubr.msk.f32.mxu1 %vm14006_vm1, %v18814_v2 }
  0xcb   : > { %12334 = vmatmul.mubr.msk.f32.gmra.mxu0 %vm525_vm2, %v14597_v18  ;;  %12429 = vmatmul.mubr.msk.f32.gmra.mxu1 %vm525_vm2, %v14249_v33 }
  0xcc   : > { %12336 = vmatprep.mubr.msk.f32.mxu0 %vm14006_vm1, %v18814_v2  ;;  %12431 = vmatprep.mubr.msk.f32.mxu1 %vm14006_vm1, %v18814_v2 }
  0xcf   : > { %12337 = vmatmul.mubr.msk.f32.gmra.mxu0 %vm525_vm2, %v14608_v19  ;;  %12432 = vmatmul.mubr.msk.f32.gmra.mxu1 %vm525_vm2, %v14260_v35 }
  0xd0   : > { %12339 = vmatprep.mubr.msk.f32.mxu0 %vm14006_vm1, %v18814_v2  ;;  %12434 = vmatprep.mubr.msk.f32.mxu1 %vm14006_vm1, %v18814_v2 }
  0xd3   : > { %v689_v21 = vpop.f32.mrf.mxu0  ;;  %v1005_v22 = vpop.f32.mrf.mxu1  ;;  %12340 = vmatmul.mubr.msk.f32.gmra.mxu0 %vm525_vm2, %v14619_v20  ;;  %12435 = vmatmul.mubr.msk.f32.gmra.mxu1 %vm525_vm2, %v14271_v37 }
  0xd4   : > { %v14625_v23 = vadd.f32 %v1005_v22, %v689_v21  ;;  %12342 = vmatprep.mubr.msk.f32.mxu0 %vm14006_vm1, %v18814_v2  ;;  %12437 = vmatprep.mubr.msk.f32.mxu1 %vm14006_vm1, %v18814_v2 }
  0xd5   : > { %v12100_v25 = vpop.f32.mrf.mxu0  ;;  %v12195_v26 = vpop.f32.mrf.mxu1 }
  0xd6   : > { %v14710_v25 = vld [vmem:[%s14077_s10 + $0x182] ss:$2 sm:$0xff] }
  0xd7   : > { %v694_v27 = vpop.f32.mrf.mxu0  ;;  %v1010_v28 = vpop.f32.mrf.mxu1  ;;  %12343 = vmatmul.mubr.msk.f32.gmra.mxu0 %vm525_vm2, %v14632_v24  ;;  %12438 = vmatmul.mubr.msk.f32.gmra.mxu1 %vm525_vm2, %v14282_v39 }
  0xd8   : > { %v14638_v29 = vadd.f32 %v1010_v28, %v694_v27  ;;  %12345 = vmatprep.mubr.msk.f32.mxu0 %vm14006_vm1, %v18814_v2  ;;  %12440 = vmatprep.mubr.msk.f32.mxu1 %vm14006_vm1, %v18814_v2 }
  0xd9   : > { %v12103_v31 = vpop.f32.mrf.mxu0  ;;  %v12198_v32 = vpop.f32.mrf.mxu1 }
  0xda   : > { %v14723_v32 = vld [vmem:[%s14077_s10 + $0x192] ss:$2 sm:$0xff] }
  0xdb   : > { %v699_v33 = vpop.f32.mrf.mxu0  ;;  %v1015_v34 = vpop.f32.mrf.mxu1  ;;  %12346 = vmatmul.mubr.msk.f32.gmra.mxu0 %vm525_vm2, %v14645_v30  ;;  %12441 = vmatmul.mubr.msk.f32.gmra.mxu1 %vm525_vm2, %v14293_v41 }
  0xdc   : > { %v14651_v35 = vadd.f32 %v1015_v34, %v699_v33  ;;  %12348 = vmatprep.mubr.msk.f32.mxu0 %vm14006_vm1, %v18814_v2  ;;  %12443 = vmatprep.mubr.msk.f32.mxu1 %vm14006_vm1, %v18814_v2 }
  0xdd   : > { %v12106_v37 = vpop.f32.mrf.mxu0  ;;  %v12201_v38 = vpop.f32.mrf.mxu1 }
  0xdf   : > { %v704_v39 = vpop.f32.mrf.mxu0  ;;  %v1020_v40 = vpop.f32.mrf.mxu1  ;;  %12349 = vmatmul.mubr.msk.f32.gmra.mxu0 %vm525_vm2, %v14658_v36  ;;  %12444 = vmatmul.mubr.msk.f32.gmra.mxu1 %vm525_vm2, %v14304_v43 }
  0xe0   : > { %v14664_v41 = vadd.f32 %v1020_v40, %v704_v39  ;;  %12351 = vmatprep.mubr.msk.f32.mxu0 %vm14006_vm1, %v18814_v2  ;;  %12446 = vmatprep.mubr.msk.f32.mxu1 %vm14006_vm1, %v18814_v2  ;;  %v14736_v39 = vld [vmem:[%s14077_s10 + $0x1a2] ss:$2 sm:$0xff] }
  0xe1   : > { %v12109_v44 = vpop.f32.mrf.mxu0  ;;  %v12204_v46 = vpop.f32.mrf.mxu1 }
  0xe3   : > { %v709_v48 = vpop.f32.mrf.mxu0  ;;  %v1025_v50 = vpop.f32.mrf.mxu1  ;;  %12352 = vmatmul.mubr.msk.f32.gmra.mxu0 %vm525_vm2, %v14671_v42  ;;  %12447 = vmatmul.mubr.msk.f32.gmra.mxu1 %vm525_vm2, %v14315_v45 }
  0xe4   : > { %v14677_v43 = vadd.f32 %v1025_v50, %v709_v48  ;;  %12354 = vmatprep.mubr.msk.f32.mxu0 %vm14006_vm1, %v18814_v2  ;;  %12449 = vmatprep.mubr.msk.f32.mxu1 %vm14006_vm1, %v18814_v2  ;;  %v14749_v50 = vld [vmem:[%s14077_s10 + $0x1b2] ss:$2 sm:$0xff] }
  0xe5   : > { %v12112_v54 = vpop.f32.mrf.mxu0  ;;  %v12207_v56 = vpop.f32.mrf.mxu1 }
  0xe7   : > { %v714_v58 = vpop.f32.mrf.mxu0  ;;  %v1030_v60 = vpop.f32.mrf.mxu1  ;;  %12355 = vmatmul.mubr.msk.f32.gmra.mxu0 %vm525_vm2, %v14684_v52  ;;  %12450 = vmatmul.mubr.msk.f32.gmra.mxu1 %vm525_vm2, %v14326_v47 }
  0xe8   : > { %v14690_v45 = vadd.f32 %v1030_v60, %v714_v58  ;;  %12357 = vmatprep.mubr.msk.f32.mxu0 %vm14006_vm1, %v18814_v2  ;;  %12452 = vmatprep.mubr.msk.f32.mxu1 %vm14006_vm1, %v18814_v2 }
  0xe9   : > { %v12115_v0 = vpop.f32.mrf.mxu0  ;;  %v12210_v4 = vpop.f32.mrf.mxu1 }
  0xea   : > { %v14762_v0 = vld [vmem:[%s14077_s10 + $0x1c2] ss:$2 sm:$0xff] }
  0xeb   : > { %v719_v21 = vpop.f32.mrf.mxu0  ;;  %v1035_v22 = vpop.f32.mrf.mxu1  ;;  %12358 = vmatmul.mubr.msk.f32.gmra.mxu0 %vm525_vm2, %v14697_v62  ;;  %12453 = vmatmul.mubr.msk.f32.gmra.mxu1 %vm525_vm2, %v14337_v49 }
  0xec   : > { %v14703_v47 = vadd.f32 %v1035_v22, %v719_v21  ;;  %12360 = vmatprep.mubr.msk.f32.mxu0 %vm14006_vm1, %v18814_v2  ;;  %12455 = vmatprep.mubr.msk.f32.mxu1 %vm14006_vm1, %v18814_v2 }
  0xed   : > { %v12118_v26 = vpop.f32.mrf.mxu0  ;;  %v12213_v27 = vpop.f32.mrf.mxu1 }
  0xee   : > { %v14775_v27 = vld [vmem:[%s14077_s10 + $0x1d2] ss:$2 sm:$0xff] }
  0xef   : > { %v724_v28 = vpop.f32.mrf.mxu0  ;;  %v1040_v31 = vpop.f32.mrf.mxu1  ;;  %12361 = vmatmul.mubr.msk.f32.gmra.mxu0 %vm525_vm2, %v14710_v25  ;;  %12456 = vmatmul.mubr.msk.f32.gmra.mxu1 %vm525_vm2, %v14348_v51 }
  0xf0   : > { %v14716_v49 = vadd.f32 %v1040_v31, %v724_v28  ;;  %12363 = vmatprep.mubr.msk.f32.mxu0 %vm14006_vm1, %v18814_v2  ;;  %12458 = vmatprep.mubr.msk.f32.mxu1 %vm14006_vm1, %v18814_v2 }
  0xf1   : > { %v12121_v33 = vpop.f32.mrf.mxu0  ;;  %v12216_v34 = vpop.f32.mrf.mxu1 }
  0xf3   : > { %v729_v37 = vpop.f32.mrf.mxu0  ;;  %v1045_v38 = vpop.f32.mrf.mxu1  ;;  %12364 = vmatmul.mubr.msk.f32.gmra.mxu0 %vm525_vm2, %v14723_v32  ;;  %12459 = vmatmul.mubr.msk.f32.gmra.mxu1 %vm525_vm2, %v14359_v53 }
  0xf4   : > { %v14729_v51 = vadd.f32 %v1045_v38, %v729_v37  ;;  %12366 = vmatprep.mubr.msk.f32.mxu0 %vm14006_vm1, %v18814_v2  ;;  %12461 = vmatprep.mubr.msk.f32.mxu1 %vm14006_vm1, %v18814_v2  ;;  %v14788_v37 = vld [vmem:[%s14077_s10 + $0x1e2] ss:$2 sm:$0xff] }
  0xf5   : > { %v12124_v40 = vpop.f32.mrf.mxu0  ;;  %v12219_v44 = vpop.f32.mrf.mxu1 }
  0xf7   : > { %v734_v46 = vpop.f32.mrf.mxu0  ;;  %v1050_v48 = vpop.f32.mrf.mxu1  ;;  %12367 = vmatmul.mubr.msk.f32.gmra.mxu0 %vm525_vm2, %v14736_v39  ;;  %12462 = vmatmul.mubr.msk.f32.gmra.mxu1 %vm525_vm2, %v14370_v55 }
  0xf8   : > { %v14742_v53 = vadd.f32 %v1050_v48, %v734_v46  ;;  %12369 = vmatprep.mubr.msk.f32.mxu0 %vm14006_vm1, %v18814_v2  ;;  %12464 = vmatprep.mubr.msk.f32.mxu1 %vm14006_vm1, %v18814_v2  ;;  %v14801_v48 = vld [vmem:[%s14077_s10 + $0x3] ss:$2 sm:$0xff] }
  0xf9   : > { %v12127_v54 = vpop.f32.mrf.mxu0  ;;  %v12222_v56 = vpop.f32.mrf.mxu1 }
  0xfb   : > { %v739_v58 = vpop.f32.mrf.mxu0  ;;  %v1055_v60 = vpop.f32.mrf.mxu1  ;;  %12370 = vmatmul.mubr.msk.f32.gmra.mxu0 %vm525_vm2, %v14749_v50  ;;  %12465 = vmatmul.mubr.msk.f32.gmra.mxu1 %vm525_vm2, %v14381_v57 }
  0xfc   : > { %v14755_v55 = vadd.f32 %v1055_v60, %v739_v58  ;;  %12372 = vmatprep.mubr.msk.f32.mxu0 %vm14006_vm1, %v18814_v2  ;;  %12467 = vmatprep.mubr.msk.f32.mxu1 %vm14006_vm1, %v18814_v2  ;;  %v336_v58 = vld [vmem:[%s18806_s1 + $0xc] sm:$0x7] }
  0xfd   : > { %v12130_v4 = vpop.f32.mrf.mxu0  ;;  %v12225_v21 = vpop.f32.mrf.mxu1 }
  0xfe   : > { %v14815_v21 = vld [vmem:[%s14077_s10 + $0x13] ss:$2 sm:$0xff] }
  0xff   : > { %v744_v22 = vpop.f32.mrf.mxu0  ;;  %v1060_v26 = vpop.f32.mrf.mxu1  ;;  %12373 = vmatmul.mubr.msk.f32.gmra.mxu0 %vm525_vm2, %v14762_v0  ;;  %12468 = vmatmul.mubr.msk.f32.gmra.mxu1 %vm525_vm2, %v14392_v59 }
 0x100   : > { %v14768_v57 = vadd.f32 %v1060_v26, %v744_v22  ;;  %12375 = vmatprep.mubr.msk.f32.mxu0 %vm14006_vm1, %v18814_v2  ;;  %12470 = vmatprep.mubr.msk.f32.mxu1 %vm14006_vm1, %v18814_v2 }
 0x101   : > { %v12133_v28 = vpop.f32.mrf.mxu0  ;;  %v12228_v31 = vpop.f32.mrf.mxu1 }
 0x103   : > { %v749_v33 = vpop.f32.mrf.mxu0  ;;  %v1065_v34 = vpop.f32.mrf.mxu1  ;;  %12376 = vmatmul.mubr.msk.f32.gmra.mxu0 %vm525_vm2, %v14775_v27  ;;  %12471 = vmatmul.mubr.msk.f32.gmra.mxu1 %vm525_vm2, %v14403_v61 }
 0x104   : > { %v14781_v59 = vadd.f32 %v1065_v34, %v749_v33  ;;  %12378 = vmatprep.mubr.msk.f32.mxu0 %vm14006_vm1, %v18814_v2  ;;  %12473 = vmatprep.mubr.msk.f32.mxu1 %vm14006_vm1, %v18814_v2  ;;  %v14834_v33 = vld [vmem:[%s14077_s10 + $0x23] ss:$2 sm:$0xff] }
 0x105   : > { %v12136_v38 = vpop.f32.mrf.mxu0  ;;  %v12231_v40 = vpop.f32.mrf.mxu1 }
 0x106   : > { %18825 = vst [vmem:[#allocation4_spill] sm:$0xff] %v14781_v59 }
 0x107   : > { %v754_v44 = vpop.f32.mrf.mxu0  ;;  %v1070_v46 = vpop.f32.mrf.mxu1  ;;  %12379 = vmatmul.mubr.msk.f32.gmra.mxu0 %vm525_vm2, %v14788_v37  ;;  %12474 = vmatmul.mubr.msk.f32.gmra.mxu1 %vm525_vm2, %v14414_v63 }
 0x108   : > { %v14794_v61 = vadd.f32 %v1070_v46, %v754_v44  ;;  %12478 = vmatprep.mubr.msk.f32.mxu0 %vm14006_vm1, %v18814_v2  ;;  %12573 = vmatprep.mubr.msk.f32.mxu1 %vm14006_vm1, %v18814_v2  ;;  %v14847_v46 = vld [vmem:[%s14077_s10 + $0x33] ss:$2 sm:$0xff] }
 0x109   : > { %v12139_v54 = vpop.f32.mrf.mxu0  ;;  %v12234_v56 = vpop.f32.mrf.mxu1 }
 0x10a   : > { %18826 = vst [vmem:[#allocation5_spill] sm:$0xff] %v14794_v61 }
 0x10b   : > { %v759_v60 = vpop.f32.mrf.mxu0  ;;  %v1075_v4 = vpop.f32.mrf.mxu1  ;;  %12479 = vmatmul.mubr.msk.f32.vlgmr.msra.gmra.mxu0 %vm525_vm2, %v14425_v1  ;;  %12574 = vmatmul.mubr.msk.f32.vlgmr.msra.gmra.mxu1 %vm525_vm2, %v14801_v48 }
 0x10c   : > { %v14810_v63 = vadd.f32 %v1075_v4, %v759_v60  ;;  %12667 = vmatpush3.msk.msra.mxu0 %vm619_vm0, %v336_v58  ;;  %12762 = vmatpush3.msk.msra.mxu1 %vm619_vm0, %v336_v58  ;;  %v14860_v4 = vld [vmem:[%s14077_s10 + $0x43] ss:$2 sm:$0xff] }
 0x10d   : > { %v12142_v22 = vpop.f32.mrf.mxu0  ;;  %v12237_v26 = vpop.f32.mrf.mxu1  ;;  %12481 = vmatprep.mubr.msk.f32.mxu0 %vm14006_vm1, %v18814_v2  ;;  %12576 = vmatprep.mubr.msk.f32.mxu1 %vm14006_vm1, %v18814_v2 }
 0x10e   : > { %18827 = vst [vmem:[#allocation6_spill] sm:$0xff] %v14810_v63  ;;  %12856 = vmatprep.subr.mxu0 %v18814_v2  ;;  %12951 = vmatprep.subr.mxu1 %v18814_v2 }
 0x10f   : > { %v764_v1 = vpop.f32.mrf.mxu0  ;;  %v1080_v28 = vpop.f32.mrf.mxu1  ;;  %12482 = vmatmul.mubr.msk.f32.gmra.mxu0 %vm525_vm2, %v14437_v6  ;;  %12577 = vmatmul.mubr.msk.f32.gmra.mxu1 %vm525_vm2, %v14815_v21 }
 0x110   : > { %v14827_v31 = vadd.f32 %v1080_v28, %v764_v1  ;;  %12484 = vmatprep.mubr.msk.f32.mxu0 %vm14006_vm1, %v18814_v2  ;;  %12579 = vmatprep.mubr.msk.f32.mxu1 %vm14006_vm1, %v18814_v2 }
 0x111   : > { %v12145_v34 = vpop.f32.mrf.mxu0  ;;  %v12240_v38 = vpop.f32.mrf.mxu1 }
 0x112   : > { %18828 = vst [vmem:[#allocation7_spill] sm:$0xff] %v14827_v31  ;;  %v14873_v34 = vld [vmem:[%s14077_s10 + $0x53] ss:$2 sm:$0xff] }
 0x113   : > { %v769_v40 = vpop.f32.mrf.mxu0  ;;  %v1085_v44 = vpop.f32.mrf.mxu1  ;;  %12485 = vmatmul.mubr.msk.f32.gmra.mxu0 %vm525_vm2, %v14454_v3  ;;  %12580 = vmatmul.mubr.msk.f32.gmra.mxu1 %vm525_vm2, %v14834_v33 }
 0x114   : > { %v14840_v6 = vadd.f32 %v1085_v44, %v769_v40  ;;  %12487 = vmatprep.mubr.msk.f32.mxu0 %vm14006_vm1, %v18814_v2  ;;  %12582 = vmatprep.mubr.msk.f32.mxu1 %vm14006_vm1, %v18814_v2 }
 0x115   : > { %v12148_v54 = vpop.f32.mrf.mxu0  ;;  %v12243_v56 = vpop.f32.mrf.mxu1 }
 0x116   : > { %18829 = vst [vmem:[#allocation8_spill] sm:$0xff] %v14840_v6  ;;  %v14886_v56 = vld [vmem:[%s14077_s10 + $0x63] ss:$2 sm:$0xff] }
 0x117   : > { %v774_v58 = vpop.f32.mrf.mxu0  ;;  %v1090_v60 = vpop.f32.mrf.mxu1  ;;  %12488 = vmatmul.mubr.msk.f32.gmra.mxu0 %vm525_vm2, %v14465_v5  ;;  %12583 = vmatmul.mubr.msk.f32.gmra.mxu1 %vm525_vm2, %v14847_v46 }
 0x118   : > { %v14853_v3 = vadd.f32 %v1090_v60, %v774_v58  ;;  %12490 = vmatprep.mubr.msk.f32.mxu0 %vm14006_vm1, %v18814_v2  ;;  %12585 = vmatprep.mubr.msk.f32.mxu1 %vm14006_vm1, %v18814_v2 }
 0x119   : > { %v12151_v22 = vpop.f32.mrf.mxu0  ;;  %v12246_v26 = vpop.f32.mrf.mxu1 }
 0x11a   : > { %18830 = vst [vmem:[#allocation9_spill] sm:$0xff] %v14853_v3 }
 0x11b   : > { %v779_v1 = vpop.f32.mrf.mxu0  ;;  %v1095_v28 = vpop.f32.mrf.mxu1  ;;  %12491 = vmatmul.mubr.msk.f32.gmra.mxu0 %vm525_vm2, %v14476_v7  ;;  %12586 = vmatmul.mubr.msk.f32.gmra.mxu1 %vm525_vm2, %v14860_v4 }
 0x11c   : > { %v14866_v5 = vadd.f32 %v1095_v28, %v779_v1  ;;  %12493 = vmatprep.mubr.msk.f32.mxu0 %vm14006_vm1, %v18814_v2  ;;  %12588 = vmatprep.mubr.msk.f32.mxu1 %vm14006_vm1, %v18814_v2  ;;  %v14899_v1 = vld [vmem:[%s14077_s10 + $0x73] ss:$2 sm:$0xff] }
 0x11d   : > { %v12154_v38 = vpop.f32.mrf.mxu0  ;;  %v12249_v40 = vpop.f32.mrf.mxu1 }
 0x11e   : > { %18831 = vst [vmem:[#allocation10_spill] sm:$0xff] %v14866_v5 }
 0x11f   : > { %v784_v44 = vpop.f32.mrf.mxu0  ;;  %v1100_v54 = vpop.f32.mrf.mxu1  ;;  %12494 = vmatmul.mubr.msk.f32.gmra.mxu0 %vm525_vm2, %v14487_v8  ;;  %12589 = vmatmul.mubr.msk.f32.gmra.mxu1 %vm525_vm2, %v14873_v34 }
 0x120   : > { %v14879_v7 = vadd.f32 %v1100_v54, %v784_v44  ;;  %12496 = vmatprep.mubr.msk.f32.mxu0 %vm14006_vm1, %v18814_v2  ;;  %12591 = vmatprep.mubr.msk.f32.mxu1 %vm14006_vm1, %v18814_v2  ;;  %v14912_v54 = vld [vmem:[%s14077_s10 + $0x83] ss:$2 sm:$0xff] }
 0x121   : > { %v12157_v58 = vpop.f32.mrf.mxu0  ;;  %v12252_v60 = vpop.f32.mrf.mxu1 }
 0x122   : > { %18832 = vst [vmem:[#allocation11_spill] sm:$0xff] %v14879_v7 }
 0x123   : > { %v789_v22 = vpop.f32.mrf.mxu0  ;;  %v1105_v26 = vpop.f32.mrf.mxu1  ;;  %12497 = vmatmul.mubr.msk.f32.gmra.mxu0 %vm525_vm2, %v14498_v9  ;;  %12592 = vmatmul.mubr.msk.f32.gmra.mxu1 %vm525_vm2, %v14886_v56 }
 0x124   : > { %v14892_v8 = vadd.f32 %v1105_v26, %v789_v22  ;;  %12499 = vmatprep.mubr.msk.f32.mxu0 %vm14006_vm1, %v18814_v2  ;;  %12594 = vmatprep.mubr.msk.f32.mxu1 %vm14006_vm1, %v18814_v2 }
 0x125   : > { %v12160_v28 = vpop.f32.mrf.mxu0  ;;  %v12255_v38 = vpop.f32.mrf.mxu1 }
 0x126   : > { %18833 = vst [vmem:[#allocation12_spill] sm:$0xff] %v14892_v8  ;;  %v14925_v28 = vld [vmem:[%s14077_s10 + $0x93] ss:$2 sm:$0xff] }
 0x127   : > { %v794_v40 = vpop.f32.mrf.mxu0  ;;  %v1110_v44 = vpop.f32.mrf.mxu1  ;;  %12500 = vmatmul.mubr.msk.f32.gmra.mxu0 %vm525_vm2, %v14509_v10  ;;  %12595 = vmatmul.mubr.msk.f32.gmra.mxu1 %vm525_vm2, %v14899_v1 }
 0x128   : > { %v14905_v9 = vadd.f32 %v1110_v44, %v794_v40  ;;  %12502 = vmatprep.mubr.msk.f32.mxu0 %vm14006_vm1, %v18814_v2  ;;  %12597 = vmatprep.mubr.msk.f32.mxu1 %vm14006_vm1, %v18814_v2 }
 0x129   : > { %v12163_v58 = vpop.f32.mrf.mxu0  ;;  %v12258_v60 = vpop.f32.mrf.mxu1 }
 0x12a   : > { %18834 = vst [vmem:[#allocation13_spill] sm:$0xff] %v14905_v9  ;;  %v14938_v60 = vld [vmem:[%s14077_s10 + $0xa3] ss:$2 sm:$0xff] }
 0x12b   : > { %v799_v22 = vpop.f32.mrf.mxu0  ;;  %v1115_v26 = vpop.f32.mrf.mxu1  ;;  %12503 = vmatmul.mubr.msk.f32.gmra.mxu0 %vm525_vm2, %v14520_v11  ;;  %12598 = vmatmul.mubr.msk.f32.gmra.mxu1 %vm525_vm2, %v14912_v54 }
 0x12c   : > { %v14918_v10 = vadd.f32 %v1115_v26, %v799_v22  ;;  %12505 = vmatprep.mubr.msk.f32.mxu0 %vm14006_vm1, %v18814_v2  ;;  %12600 = vmatprep.mubr.msk.f32.mxu1 %vm14006_vm1, %v18814_v2 }
 0x12d   : > { %v12166_v38 = vpop.f32.mrf.mxu0  ;;  %v12261_v40 = vpop.f32.mrf.mxu1 }
 0x12e   : > { %18835 = vst [vmem:[#allocation14_spill] sm:$0xff] %v14918_v10 }
 0x12f   : > { %v804_v44 = vpop.f32.mrf.mxu0  ;;  %v1120_v58 = vpop.f32.mrf.mxu1  ;;  %12506 = vmatmul.mubr.msk.f32.gmra.mxu0 %vm525_vm2, %v14531_v12  ;;  %12601 = vmatmul.mubr.msk.f32.gmra.mxu1 %vm525_vm2, %v14925_v28 }
 0x130   : > { %v14931_v11 = vadd.f32 %v1120_v58, %v804_v44  ;;  %12508 = vmatprep.mubr.msk.f32.mxu0 %vm14006_vm1, %v18814_v2  ;;  %12603 = vmatprep.mubr.msk.f32.mxu1 %vm14006_vm1, %v18814_v2  ;;  %v14951_v44 = vld [vmem:[%s14077_s10 + $0xb3] ss:$2 sm:$0xff] }
 0x131   : > { %v12169_v22 = vpop.f32.mrf.mxu0  ;;  %v12264_v26 = vpop.f32.mrf.mxu1 }
 0x132   : > { %18836 = vst [vmem:[#allocation15_spill] sm:$0xff] %v14931_v11 }
 0x133   : > { %v809_v38 = vpop.f32.mrf.mxu0  ;;  %v1125_v40 = vpop.f32.mrf.mxu1  ;;  %12509 = vmatmul.mubr.msk.f32.gmra.mxu0 %vm525_vm2, %v14542_v13  ;;  %12604 = vmatmul.mubr.msk.f32.gmra.mxu1 %vm525_vm2, %v14938_v60 }
 0x134   : > { %v14944_v12 = vadd.f32 %v1125_v40, %v809_v38  ;;  %12511 = vmatprep.mubr.msk.f32.mxu0 %vm14006_vm1, %v18814_v2  ;;  %12606 = vmatprep.mubr.msk.f32.mxu1 %vm14006_vm1, %v18814_v2  ;;  %v14964_v38 = vld [vmem:[%s14077_s10 + $0xc3] ss:$2 sm:$0xff] }
 0x135   : > { %v12172_v58 = vpop.f32.mrf.mxu0  ;;  %v12267_v22 = vpop.f32.mrf.mxu1 }
 0x136   : > { %18837 = vst [vmem:[#allocation16_spill] sm:$0xff] %v14944_v12 }
 0x137   : > { %v814_v26 = vpop.f32.mrf.mxu0  ;;  %v1130_v11 = vpop.f32.mrf.mxu1  ;;  %12512 = vmatmul.mubr.msk.f32.gmra.mxu0 %vm525_vm2, %v14553_v14  ;;  %12607 = vmatmul.mubr.msk.f32.gmra.mxu1 %vm525_vm2, %v14951_v44 }
 0x138   : > { %v14957_v13 = vadd.f32 %v1130_v11, %v814_v26  ;;  %12514 = vmatprep.mubr.msk.f32.mxu0 %vm14006_vm1, %v18814_v2  ;;  %12609 = vmatprep.mubr.msk.f32.mxu1 %vm14006_vm1, %v18814_v2  ;;  %v14977_v11 = vld [vmem:[%s14077_s10 + $0xd3] ss:$2 sm:$0xff] }
 0x139   : > { %v12175_v40 = vpop.f32.mrf.mxu0  ;;  %v12270_v58 = vpop.f32.mrf.mxu1 }
 0x13a   : > { %18838 = vst [vmem:[#allocation17_spill] sm:$0xff] %v14957_v13 }
 0x13b   : > { %v819_v22 = vpop.f32.mrf.mxu0  ;;  %v1135_v12 = vpop.f32.mrf.mxu1  ;;  %12515 = vmatmul.mubr.msk.f32.gmra.mxu0 %vm525_vm2, %v14564_v15  ;;  %12610 = vmatmul.mubr.msk.f32.gmra.mxu1 %vm525_vm2, %v14964_v38 }
 0x13c   : > { %v14970_v14 = vadd.f32 %v1135_v12, %v819_v22  ;;  %12517 = vmatprep.mubr.msk.f32.mxu0 %vm14006_vm1, %v18814_v2  ;;  %12612 = vmatprep.mubr.msk.f32.mxu1 %vm14006_vm1, %v18814_v2  ;;  %v14990_v12 = vld [vmem:[%s14077_s10 + $0xe3] ss:$2 sm:$0xff] }
 0x13d   : > { %v12178_v26 = vpop.f32.mrf.mxu0  ;;  %v12273_v40 = vpop.f32.mrf.mxu1 }
 0x13e   : > { %18839 = vst [vmem:[#allocation18_spill] sm:$0xff] %v14970_v14 }
 0x13f   : > { %v824_v58 = vpop.f32.mrf.mxu0  ;;  %v1140_v13 = vpop.f32.mrf.mxu1  ;;  %12518 = vmatmul.mubr.msk.f32.gmra.mxu0 %vm525_vm2, %v14575_v16  ;;  %12613 = vmatmul.mubr.msk.f32.gmra.mxu1 %vm525_vm2, %v14977_v11 }
 0x140   : > { %v14983_v15 = vadd.f32 %v1140_v13, %v824_v58  ;;  %12520 = vmatprep.mubr.msk.f32.mxu0 %vm14006_vm1, %v18814_v2  ;;  %12615 = vmatprep.mubr.msk.f32.mxu1 %vm14006_vm1, %v18814_v2  ;;  %v15003_v13 = vld [vmem:[%s14077_s10 + $0xf3] ss:$2 sm:$0xff] }
 0x141   : > { %v12181_v22 = vpop.f32.mrf.mxu0  ;;  %v12276_v26 = vpop.f32.mrf.mxu1 }
 0x142   : > { %18840 = vst [vmem:[#allocation19_spill] sm:$0xff] %v14983_v15 }
 0x143   : > { %v829_v40 = vpop.f32.mrf.mxu0  ;;  %v1145_v14 = vpop.f32.mrf.mxu1  ;;  %12521 = vmatmul.mubr.msk.f32.gmra.mxu0 %vm525_vm2, %v14586_v17  ;;  %12616 = vmatmul.mubr.msk.f32.gmra.mxu1 %vm525_vm2, %v14990_v12 }
 0x144   : > { %v14996_v16 = vadd.f32 %v1145_v14, %v829_v40  ;;  %12523 = vmatprep.mubr.msk.f32.mxu0 %vm14006_vm1, %v18814_v2  ;;  %12618 = vmatprep.mubr.msk.f32.mxu1 %vm14006_vm1, %v18814_v2  ;;  %v15016_v14 = vld [vmem:[%s14077_s10 + $0x103] ss:$2 sm:$0xff] }
 0x145   : > { %v12184_v58 = vpop.f32.mrf.mxu0  ;;  %v12279_v22 = vpop.f32.mrf.mxu1 }
 0x146   : > { %18841 = vst [vmem:[#allocation20_spill] sm:$0xff] %v14996_v16 }
 0x147   : > { %v834_v26 = vpop.f32.mrf.mxu0  ;;  %v1150_v15 = vpop.f32.mrf.mxu1  ;;  %12524 = vmatmul.mubr.msk.f32.gmra.mxu0 %vm525_vm2, %v14597_v18  ;;  %12619 = vmatmul.mubr.msk.f32.gmra.mxu1 %vm525_vm2, %v15003_v13 }
 0x148   : > { %v15009_v17 = vadd.f32 %v1150_v15, %v834_v26  ;;  %12526 = vmatprep.mubr.msk.f32.mxu0 %vm14006_vm1, %v18814_v2  ;;  %12621 = vmatprep.mubr.msk.f32.mxu1 %vm14006_vm1, %v18814_v2  ;;  %v15029_v15 = vld [vmem:[%s14077_s10 + $0x113] ss:$2 sm:$0xff] }
 0x149   : > { %v12187_v40 = vpop.f32.mrf.mxu0  ;;  %v12282_v58 = vpop.f32.mrf.mxu1 }
 0x14a   : > { %18842 = vst [vmem:[#allocation21_spill] sm:$0xff] %v15009_v17 }
 0x14b   : > { %v839_v22 = vpop.f32.mrf.mxu0  ;;  %v1155_v16 = vpop.f32.mrf.mxu1  ;;  %12527 = vmatmul.mubr.msk.f32.gmra.mxu0 %vm525_vm2, %v14608_v19  ;;  %12622 = vmatmul.mubr.msk.f32.gmra.mxu1 %vm525_vm2, %v15016_v14 }
 0x14c   : > { %v15022_v18 = vadd.f32 %v1155_v16, %v839_v22  ;;  %12529 = vmatprep.mubr.msk.f32.mxu0 %vm14006_vm1, %v18814_v2  ;;  %12624 = vmatprep.mubr.msk.f32.mxu1 %vm14006_vm1, %v18814_v2  ;;  %v15042_v16 = vld [vmem:[%s14077_s10 + $0x123] ss:$2 sm:$0xff] }
 0x14d   : > { %v12190_v26 = vpop.f32.mrf.mxu0  ;;  %v12285_v40 = vpop.f32.mrf.mxu1 }
 0x14e   : > { %18843 = vst [vmem:[#allocation22_spill] sm:$0xff] %v15022_v18 }
 0x14f   : > { %v1318_v58 = vpop.f32.mrf.mxu0  ;;  %v1538_v17 = vpop.f32.mrf.mxu1  ;;  %12530 = vmatmul.mubr.msk.f32.gmra.mxu0 %vm525_vm2, %v14619_v20  ;;  %12625 = vmatmul.mubr.msk.f32.gmra.mxu1 %vm525_vm2, %v15029_v15 }
 0x150   : > { %v15035_v19 = vadd.f32 %v1538_v17, %v1318_v58  ;;  %12532 = vmatprep.mubr.msk.f32.mxu0 %vm14006_vm1, %v18814_v2  ;;  %12627 = vmatprep.mubr.msk.f32.mxu1 %vm14006_vm1, %v18814_v2  ;;  %v15055_v17 = vld [vmem:[%s14077_s10 + $0x133] ss:$2 sm:$0xff] }
 0x151   : > { %v12290_v22 = vpop.f32.mrf.mxu0  ;;  %v12385_v26 = vpop.f32.mrf.mxu1 }
 0x153   : > { %v1323_v40 = vpop.f32.mrf.mxu0  ;;  %v1543_v18 = vpop.f32.mrf.mxu1  ;;  %12533 = vmatmul.mubr.msk.f32.gmra.mxu0 %vm525_vm2, %v14632_v24  ;;  %12628 = vmatmul.mubr.msk.f32.gmra.mxu1 %vm525_vm2, %v15042_v16 }
 0x154   : > { %v15048_v20 = vadd.f32 %v1543_v18, %v1323_v40  ;;  %12535 = vmatprep.mubr.msk.f32.mxu0 %vm14006_vm1, %v18814_v2  ;;  %12630 = vmatprep.mubr.msk.f32.mxu1 %vm14006_vm1, %v18814_v2  ;;  %v15068_v18 = vld [vmem:[%s14077_s10 + $0x143] ss:$2 sm:$0xff] }
 0x155   : > { %v12293_v58 = vpop.f32.mrf.mxu0  ;;  %v12388_v22 = vpop.f32.mrf.mxu1 }
 0x157   : > { %v1328_v26 = vpop.f32.mrf.mxu0  ;;  %v1548_v10 = vpop.f32.mrf.mxu1  ;;  %12536 = vmatmul.mubr.msk.f32.gmra.mxu0 %vm525_vm2, %v14645_v30  ;;  %12631 = vmatmul.mubr.msk.f32.gmra.mxu1 %vm525_vm2, %v15055_v17 }
 0x158   : > { %v15061_v24 = vadd.f32 %v1548_v10, %v1328_v26  ;;  %12538 = vmatprep.mubr.msk.f32.mxu0 %vm14006_vm1, %v18814_v2  ;;  %12633 = vmatprep.mubr.msk.f32.mxu1 %vm14006_vm1, %v18814_v2  ;;  %v15081_v10 = vld [vmem:[%s14077_s10 + $0x153] ss:$2 sm:$0xff] }
 0x159   : > { %v12296_v40 = vpop.f32.mrf.mxu0  ;;  %v12391_v58 = vpop.f32.mrf.mxu1 }
 0x15b   : > { %v1333_v22 = vpop.f32.mrf.mxu0  ;;  %v1553_v9 = vpop.f32.mrf.mxu1  ;;  %12539 = vmatmul.mubr.msk.f32.gmra.mxu0 %vm525_vm2, %v14658_v36  ;;  %12634 = vmatmul.mubr.msk.f32.gmra.mxu1 %vm525_vm2, %v15068_v18 }
 0x15c   : > { %v15074_v30 = vadd.f32 %v1553_v9, %v1333_v22  ;;  %12541 = vmatprep.mubr.msk.f32.mxu0 %vm14006_vm1, %v18814_v2  ;;  %12636 = vmatprep.mubr.msk.f32.mxu1 %vm14006_vm1, %v18814_v2  ;;  %v15094_v9 = vld [vmem:[%s14077_s10 + $0x163] ss:$2 sm:$0xff] }
 0x15d   : > { %v12299_v26 = vpop.f32.mrf.mxu0  ;;  %v12394_v40 = vpop.f32.mrf.mxu1 }
 0x15f   : > { %v1338_v58 = vpop.f32.mrf.mxu0  ;;  %v1558_v8 = vpop.f32.mrf.mxu1  ;;  %12542 = vmatmul.mubr.msk.f32.gmra.mxu0 %vm525_vm2, %v14671_v42  ;;  %12637 = vmatmul.mubr.msk.f32.gmra.mxu1 %vm525_vm2, %v15081_v10 }
 0x160   : > { %v15087_v36 = vadd.f32 %v1558_v8, %v1338_v58  ;;  %12544 = vmatprep.mubr.msk.f32.mxu0 %vm14006_vm1, %v18814_v2  ;;  %12639 = vmatprep.mubr.msk.f32.mxu1 %vm14006_vm1, %v18814_v2  ;;  %v15107_v8 = vld [vmem:[%s14077_s10 + $0x173] ss:$2 sm:$0xff] }
 0x161   : > { %v12302_v22 = vpop.f32.mrf.mxu0  ;;  %v12397_v26 = vpop.f32.mrf.mxu1 }
 0x163   : > { %v1343_v40 = vpop.f32.mrf.mxu0  ;;  %v1563_v7 = vpop.f32.mrf.mxu1  ;;  %12545 = vmatmul.mubr.msk.f32.gmra.mxu0 %vm525_vm2, %v14684_v52  ;;  %12640 = vmatmul.mubr.msk.f32.gmra.mxu1 %vm525_vm2, %v15094_v9 }
 0x164   : > { %v15100_v42 = vadd.f32 %v1563_v7, %v1343_v40  ;;  %12547 = vmatprep.mubr.msk.f32.mxu0 %vm14006_vm1, %v18814_v2  ;;  %12642 = vmatprep.mubr.msk.f32.mxu1 %vm14006_vm1, %v18814_v2  ;;  %v15120_v7 = vld [vmem:[%s14077_s10 + $0x183] ss:$2 sm:$0xff] }
 0x165   : > { %v12305_v58 = vpop.f32.mrf.mxu0  ;;  %v12400_v22 = vpop.f32.mrf.mxu1 }
 0x167   : > { %v1348_v26 = vpop.f32.mrf.mxu0  ;;  %v1568_v5 = vpop.f32.mrf.mxu1  ;;  %12548 = vmatmul.mubr.msk.f32.gmra.mxu0 %vm525_vm2, %v14697_v62  ;;  %12643 = vmatmul.mubr.msk.f32.gmra.mxu1 %vm525_vm2, %v15107_v8 }
 0x168   : > { %v15113_v52 = vadd.f32 %v1568_v5, %v1348_v26  ;;  %12550 = vmatprep.mubr.msk.f32.mxu0 %vm14006_vm1, %v18814_v2  ;;  %12645 = vmatprep.mubr.msk.f32.mxu1 %vm14006_vm1, %v18814_v2  ;;  %v15133_v5 = vld [vmem:[%s14077_s10 + $0x193] ss:$2 sm:$0xff] }
 0x169   : > { %v12308_v40 = vpop.f32.mrf.mxu0  ;;  %v12403_v58 = vpop.f32.mrf.mxu1 }
 0x16b   : > { %v1353_v22 = vpop.f32.mrf.mxu0  ;;  %v1573_v3 = vpop.f32.mrf.mxu1  ;;  %12551 = vmatmul.mubr.msk.f32.gmra.mxu0 %vm525_vm2, %v14710_v25  ;;  %12646 = vmatmul.mubr.msk.f32.gmra.mxu1 %vm525_vm2, %v15120_v7 }
 0x16c   : > { %v15126_v62 = vadd.f32 %v1573_v3, %v1353_v22  ;;  %12553 = vmatprep.mubr.msk.f32.mxu0 %vm14006_vm1, %v18814_v2  ;;  %12648 = vmatprep.mubr.msk.f32.mxu1 %vm14006_vm1, %v18814_v2  ;;  %v15146_v3 = vld [vmem:[%s14077_s10 + $0x1a3] ss:$2 sm:$0xff] }
 0x16d   : > { %v12311_v26 = vpop.f32.mrf.mxu0  ;;  %v12406_v40 = vpop.f32.mrf.mxu1 }
 0x16f   : > { %v1358_v58 = vpop.f32.mrf.mxu0  ;;  %v1578_v6 = vpop.f32.mrf.mxu1  ;;  %12554 = vmatmul.mubr.msk.f32.gmra.mxu0 %vm525_vm2, %v14723_v32  ;;  %12649 = vmatmul.mubr.msk.f32.gmra.mxu1 %vm525_vm2, %v15133_v5 }
 0x170   : > { %v15139_v25 = vadd.f32 %v1578_v6, %v1358_v58  ;;  %12556 = vmatprep.mubr.msk.f32.mxu0 %vm14006_vm1, %v18814_v2  ;;  %12651 = vmatprep.mubr.msk.f32.mxu1 %vm14006_vm1, %v18814_v2  ;;  %v15159_v6 = vld [vmem:[%s14077_s10 + $0x1b3] ss:$2 sm:$0xff] }
 0x171   : > { %v12314_v22 = vpop.f32.mrf.mxu0  ;;  %v12409_v26 = vpop.f32.mrf.mxu1 }
 0x173   : > { %v1363_v40 = vpop.f32.mrf.mxu0  ;;  %v1583_v31 = vpop.f32.mrf.mxu1  ;;  %12557 = vmatmul.mubr.msk.f32.gmra.mxu0 %vm525_vm2, %v14736_v39  ;;  %12652 = vmatmul.mubr.msk.f32.gmra.mxu1 %vm525_vm2, %v15146_v3 }
 0x174   : > { %v15152_v32 = vadd.f32 %v1583_v31, %v1363_v40  ;;  %12559 = vmatprep.mubr.msk.f32.mxu0 %vm14006_vm1, %v18814_v2  ;;  %12654 = vmatprep.mubr.msk.f32.mxu1 %vm14006_vm1, %v18814_v2  ;;  %v15172_v31 = vld [vmem:[%s14077_s10 + $0x1c3] ss:$2 sm:$0xff] }
 0x175   : > { %v12317_v58 = vpop.f32.mrf.mxu0  ;;  %v12412_v22 = vpop.f32.mrf.mxu1 }
 0x177   : > { %v1368_v26 = vpop.f32.mrf.mxu0  ;;  %v1588_v63 = vpop.f32.mrf.mxu1  ;;  %12560 = vmatmul.mubr.msk.f32.gmra.mxu0 %vm525_vm2, %v14749_v50  ;;  %12655 = vmatmul.mubr.msk.f32.gmra.mxu1 %vm525_vm2, %v15159_v6 }
 0x178   : > { %v15165_v39 = vadd.f32 %v1588_v63, %v1368_v26  ;;  %12562 = vmatprep.mubr.msk.f32.mxu0 %vm14006_vm1, %v18814_v2  ;;  %12657 = vmatprep.mubr.msk.f32.mxu1 %vm14006_vm1, %v18814_v2  ;;  %v15185_v63 = vld [vmem:[%s14077_s10 + $0x1d3] ss:$2 sm:$0xff] }
 0x179   : > { %v12320_v40 = vpop.f32.mrf.mxu0  ;;  %v12415_v58 = vpop.f32.mrf.mxu1 }
 0x17b   : > { %v1373_v22 = vpop.f32.mrf.mxu0  ;;  %v1593_v61 = vpop.f32.mrf.mxu1  ;;  %12563 = vmatmul.mubr.msk.f32.gmra.mxu0 %vm525_vm2, %v14762_v0  ;;  %12658 = vmatmul.mubr.msk.f32.gmra.mxu1 %vm525_vm2, %v15172_v31 }
 0x17c   : > { %v15178_v50 = vadd.f32 %v1593_v61, %v1373_v22  ;;  %12565 = vmatprep.mubr.msk.f32.mxu0 %vm14006_vm1, %v18814_v2  ;;  %12660 = vmatprep.mubr.msk.f32.mxu1 %vm14006_vm1, %v18814_v2  ;;  %v15198_v61 = vld [vmem:[%s14077_s10 + $0x1e3] ss:$2 sm:$0xff] }
 0x17d   : > { %v12323_v26 = vpop.f32.mrf.mxu0  ;;  %v12418_v40 = vpop.f32.mrf.mxu1 }
 0x17e   : > { %18844 = vst [vmem:[#allocation23_spill] sm:$0xff] %v15178_v50 }
 0x17f   : > { %v1378_v58 = vpop.f32.mrf.mxu0  ;;  %v1598_v59 = vpop.f32.mrf.mxu1  ;;  %12566 = vmatmul.mubr.msk.f32.gmra.mxu0 %vm525_vm2, %v14775_v27  ;;  %12661 = vmatmul.mubr.msk.f32.gmra.mxu1 %vm525_vm2, %v15185_v63 }
 0x180   : > { %v15191_v0 = vadd.f32 %v1598_v59, %v1378_v58  ;;  %12568 = vmatprep.mubr.msk.f32.mxu0 %vm14006_vm1, %v18814_v2  ;;  %12663 = vmatprep.mubr.msk.f32.mxu1 %vm14006_vm1, %v18814_v2  ;;  %v15211_v59 = vld [vmem:[%s14077_s10 + $0x4] ss:$2 sm:$0xff] }
 0x181   : > { %v12326_v22 = vpop.f32.mrf.mxu0  ;;  %v12421_v26 = vpop.f32.mrf.mxu1  ;;  %18846 = vst [vmem:[#allocation25_spill] sm:$0xff] %v15211_v59 }
 0x182   : > { %18845 = vst [vmem:[#allocation24_spill] sm:$0xff] %v15191_v0 }
 0x183   : > { %v1383_v40 = vpop.f32.mrf.mxu0  ;;  %v1603_v50 = vpop.f32.mrf.mxu1  ;;  %12569 = vmatmul.mubr.msk.f32.gmra.mxu0 %vm525_vm2, %v14788_v37  ;;  %12664 = vmatmul.mubr.msk.f32.gmra.mxu1 %vm525_vm2, %v15198_v61  ;;  %v337_v37 = vld [vmem:[%s18806_s1 + $0x10] sm:$0x7] }
 0x184   : > { %v15204_v27 = vadd.f32 %v1603_v50, %v1383_v40  ;;  %12668 = vmatprep.mubr.msk.f32.mxu0 %vm14006_vm1, %v18814_v2  ;;  %12763 = vmatprep.mubr.msk.f32.mxu1 %vm14006_vm1, %v18814_v2  ;;  %v15225_v40 = vld [vmem:[%s14077_s10 + $0x14] ss:$2 sm:$0xff] }
 0x185   : > { %v12329_v58 = vpop.f32.mrf.mxu0  ;;  %v12424_v22 = vpop.f32.mrf.mxu1 }
 0x187   : > { %v1388_v26 = vpop.f32.mrf.mxu0  ;;  %v1608_v0 = vpop.f32.mrf.mxu1  ;;  %12669 = vmatmul.mubr.msk.f32.vlgmr.msra.gmra.mxu0 %vm525_vm2, %v14801_v48  ;;  %12764 = vmatmul.mubr.msk.f32.vlgmr.msra.gmra.mxu1 %vm525_vm2, %v15211_v59 }
 0x188   : > { %v15220_v50 = vadd.f32 %v1608_v0, %v1388_v26  ;;  %12857 = vmatpush3.msk.msra.mxu0 %vm619_vm0, %v337_v37  ;;  %12952 = vmatpush3.msk.msra.mxu1 %vm619_vm0, %v337_v37  ;;  %v15244_v26 = vld [vmem:[%s14077_s10 + $0x24] ss:$2 sm:$0xff] }
 0x189   : > { %v12332_v58 = vpop.f32.mrf.mxu0  ;;  %v12427_v22 = vpop.f32.mrf.mxu1  ;;  %12671 = vmatprep.mubr.msk.f32.mxu0 %vm14006_vm1, %v18814_v2  ;;  %12766 = vmatprep.mubr.msk.f32.mxu1 %vm14006_vm1, %v18814_v2 }
 0x18a   : > { %18847 = vst [vmem:[#allocation26_spill] sm:$0xff] %v15220_v50  ;;  %13046 = vmatprep.subr.mxu0 %v18814_v2  ;;  %13141 = vmatprep.subr.mxu1 %v18814_v2 }
 0x18b   : > { %v1393_v48 = vpop.f32.mrf.mxu0  ;;  %v1613_v0 = vpop.f32.mrf.mxu1  ;;  %12672 = vmatmul.mubr.msk.f32.gmra.mxu0 %vm525_vm2, %v14815_v21  ;;  %12767 = vmatmul.mubr.msk.f32.gmra.mxu1 %vm525_vm2, %v15225_v40 }
 0x18c   : > { %v15237_v37 = vadd.f32 %v1613_v0, %v1393_v48  ;;  %12674 = vmatprep.mubr.msk.f32.mxu0 %vm14006_vm1, %v18814_v2  ;;  %12769 = vmatprep.mubr.msk.f32.mxu1 %vm14006_vm1, %v18814_v2  ;;  %v15257_v48 = vld [vmem:[%s14077_s10 + $0x34] ss:$2 sm:$0xff] }
 0x18d   : > { %v12335_v58 = vpop.f32.mrf.mxu0  ;;  %v12430_v22 = vpop.f32.mrf.mxu1 }
 0x18e   : > { %18848 = vst [vmem:[#allocation27_spill] sm:$0xff] %v15237_v37 }
 0x18f   : > { %v1398_v50 = vpop.f32.mrf.mxu0  ;;  %v1618_v59 = vpop.f32.mrf.mxu1  ;;  %12675 = vmatmul.mubr.msk.f32.gmra.mxu0 %vm525_vm2, %v14834_v33  ;;  %12770 = vmatmul.mubr.msk.f32.gmra.mxu1 %vm525_vm2, %v15244_v26 }
 0x190   : > { %v15250_v21 = vadd.f32 %v1618_v59, %v1398_v50  ;;  %12677 = vmatprep.mubr.msk.f32.mxu0 %vm14006_vm1, %v18814_v2  ;;  %12772 = vmatprep.mubr.msk.f32.mxu1 %vm14006_vm1, %v18814_v2  ;;  %v15270_v59 = vld [vmem:[%s14077_s10 + $0x44] ss:$2 sm:$0xff] }
 0x191   : > { %v12338_v0 = vpop.f32.mrf.mxu0  ;;  %v12433_v58 = vpop.f32.mrf.mxu1 }
 0x192   : > { %18849 = vst [vmem:[#allocation28_spill] sm:$0xff] %v15250_v21 }
 0x193   : > { %v1403_v22 = vpop.f32.mrf.mxu0  ;;  %v1623_v37 = vpop.f32.mrf.mxu1  ;;  %12678 = vmatmul.mubr.msk.f32.gmra.mxu0 %vm525_vm2, %v14847_v46  ;;  %12773 = vmatmul.mubr.msk.f32.gmra.mxu1 %vm525_vm2, %v15257_v48 }
 0x194   : > { %v15263_v33 = vadd.f32 %v1623_v37, %v1403_v22  ;;  %12680 = vmatprep.mubr.msk.f32.mxu0 %vm14006_vm1, %v18814_v2  ;;  %12775 = vmatprep.mubr.msk.f32.mxu1 %vm14006_vm1, %v18814_v2  ;;  %v15283_v37 = vld [vmem:[%s14077_s10 + $0x54] ss:$2 sm:$0xff] }
 0x195   : > { %v12341_v50 = vpop.f32.mrf.mxu0  ;;  %v12436_v0 = vpop.f32.mrf.mxu1 }
 0x196   : > { %18850 = vst [vmem:[#allocation29_spill] sm:$0xff] %v15263_v33 }
 0x197   : > { %v1408_v58 = vpop.f32.mrf.mxu0  ;;  %v1628_v21 = vpop.f32.mrf.mxu1  ;;  %12681 = vmatmul.mubr.msk.f32.gmra.mxu0 %vm525_vm2, %v14860_v4  ;;  %12776 = vmatmul.mubr.msk.f32.gmra.mxu1 %vm525_vm2, %v15270_v59 }
 0x198   : > { %v15276_v46 = vadd.f32 %v1628_v21, %v1408_v58  ;;  %12683 = vmatprep.mubr.msk.f32.mxu0 %vm14006_vm1, %v18814_v2  ;;  %12778 = vmatprep.mubr.msk.f32.mxu1 %vm14006_vm1, %v18814_v2  ;;  %v15296_v21 = vld [vmem:[%s14077_s10 + $0x64] ss:$2 sm:$0xff] }
 0x199   : > { %v12344_v22 = vpop.f32.mrf.mxu0  ;;  %v12439_v50 = vpop.f32.mrf.mxu1 }
 0x19a   : > { %18851 = vst [vmem:[#allocation30_spill] sm:$0xff] %v15276_v46 }
 0x19b   : > { %v1413_v0 = vpop.f32.mrf.mxu0  ;;  %v1633_v33 = vpop.f32.mrf.mxu1  ;;  %12684 = vmatmul.mubr.msk.f32.gmra.mxu0 %vm525_vm2, %v14873_v34  ;;  %12779 = vmatmul.mubr.msk.f32.gmra.mxu1 %vm525_vm2, %v15283_v37 }
 0x19c   : > { %v15289_v4 = vadd.f32 %v1633_v33, %v1413_v0  ;;  %12686 = vmatprep.mubr.msk.f32.mxu0 %vm14006_vm1, %v18814_v2  ;;  %12781 = vmatprep.mubr.msk.f32.mxu1 %vm14006_vm1, %v18814_v2  ;;  %v15309_v33 = vld [vmem:[%s14077_s10 + $0x74] ss:$2 sm:$0xff] }
 0x19d   : > { %v12347_v58 = vpop.f32.mrf.mxu0  ;;  %v12442_v22 = vpop.f32.mrf.mxu1 }
 0x19e   : > { %18852 = vst [vmem:[#allocation31_spill] sm:$0xff] %v15289_v4 }
 0x19f   : > { %v1418_v50 = vpop.f32.mrf.mxu0  ;;  %v1638_v46 = vpop.f32.mrf.mxu1  ;;  %12687 = vmatmul.mubr.msk.f32.gmra.mxu0 %vm525_vm2, %v14886_v56  ;;  %12782 = vmatmul.mubr.msk.f32.gmra.mxu1 %vm525_vm2, %v15296_v21 }
 0x1a0   : > { %v15302_v34 = vadd.f32 %v1638_v46, %v1418_v50  ;;  %12689 = vmatprep.mubr.msk.f32.mxu0 %vm14006_vm1, %v18814_v2  ;;  %12784 = vmatprep.mubr.msk.f32.mxu1 %vm14006_vm1, %v18814_v2  ;;  %v15322_v46 = vld [vmem:[%s14077_s10 + $0x84] ss:$2 sm:$0xff] }
 0x1a1   : > { %v12350_v0 = vpop.f32.mrf.mxu0  ;;  %v12445_v58 = vpop.f32.mrf.mxu1 }
 0x1a2   : > { %18853 = vst [vmem:[#allocation32_spill] sm:$0xff] %v15302_v34 }
 0x1a3   : > { %v1423_v22 = vpop.f32.mrf.mxu0  ;;  %v1643_v4 = vpop.f32.mrf.mxu1  ;;  %12690 = vmatmul.mubr.msk.f32.gmra.mxu0 %vm525_vm2, %v14899_v1  ;;  %12785 = vmatmul.mubr.msk.f32.gmra.mxu1 %vm525_vm2, %v15309_v33 }
 0x1a4   : > { %v15315_v56 = vadd.f32 %v1643_v4, %v1423_v22  ;;  %12692 = vmatprep.mubr.msk.f32.mxu0 %vm14006_vm1, %v18814_v2  ;;  %12787 = vmatprep.mubr.msk.f32.mxu1 %vm14006_vm1, %v18814_v2  ;;  %v15335_v4 = vld [vmem:[%s14077_s10 + $0x94] ss:$2 sm:$0xff] }
 0x1a5   : > { %v12353_v50 = vpop.f32.mrf.mxu0  ;;  %v12448_v0 = vpop.f32.mrf.mxu1 }
 0x1a6   : > { %18854 = vst [vmem:[#allocation33_spill] sm:$0xff] %v15315_v56 }
 0x1a7   : > { %v1428_v58 = vpop.f32.mrf.mxu0  ;;  %v1648_v34 = vpop.f32.mrf.mxu1  ;;  %12693 = vmatmul.mubr.msk.f32.gmra.mxu0 %vm525_vm2, %v14912_v54  ;;  %12788 = vmatmul.mubr.msk.f32.gmra.mxu1 %vm525_vm2, %v15322_v46 }
 0x1a8   : > { %v15328_v1 = vadd.f32 %v1648_v34, %v1428_v58  ;;  %12695 = vmatprep.mubr.msk.f32.mxu0 %vm14006_vm1, %v18814_v2  ;;  %12790 = vmatprep.mubr.msk.f32.mxu1 %vm14006_vm1, %v18814_v2  ;;  %v15348_v34 = vld [vmem:[%s14077_s10 + $0xa4] ss:$2 sm:$0xff] }
 0x1a9   : > { %v12356_v22 = vpop.f32.mrf.mxu0  ;;  %v12451_v50 = vpop.f32.mrf.mxu1 }
 0x1aa   : > { %18855 = vst [vmem:[#allocation34_spill] sm:$0xff] %v15328_v1 }
 0x1ab   : > { %v1433_v0 = vpop.f32.mrf.mxu0  ;;  %v1653_v56 = vpop.f32.mrf.mxu1  ;;  %12696 = vmatmul.mubr.msk.f32.gmra.mxu0 %vm525_vm2, %v14925_v28  ;;  %12791 = vmatmul.mubr.msk.f32.gmra.mxu1 %vm525_vm2, %v15335_v4 }
 0x1ac   : > { %v15341_v54 = vadd.f32 %v1653_v56, %v1433_v0  ;;  %12698 = vmatprep.mubr.msk.f32.mxu0 %vm14006_vm1, %v18814_v2  ;;  %12793 = vmatprep.mubr.msk.f32.mxu1 %vm14006_vm1, %v18814_v2  ;;  %v15361_v56 = vld [vmem:[%s14077_s10 + $0xb4] ss:$2 sm:$0xff] }
 0x1ad   : > { %v12359_v58 = vpop.f32.mrf.mxu0  ;;  %v12454_v22 = vpop.f32.mrf.mxu1 }
 0x1ae   : > { %18856 = vst [vmem:[#allocation35_spill] sm:$0xff] %v15341_v54 }
 0x1af   : > { %v1438_v50 = vpop.f32.mrf.mxu0  ;;  %v1658_v1 = vpop.f32.mrf.mxu1  ;;  %12699 = vmatmul.mubr.msk.f32.gmra.mxu0 %vm525_vm2, %v14938_v60  ;;  %12794 = vmatmul.mubr.msk.f32.gmra.mxu1 %vm525_vm2, %v15348_v34 }
 0x1b0   : > { %v15354_v28 = vadd.f32 %v1658_v1, %v1438_v50  ;;  %12701 = vmatprep.mubr.msk.f32.mxu0 %vm14006_vm1, %v18814_v2  ;;  %12796 = vmatprep.mubr.msk.f32.mxu1 %vm14006_vm1, %v18814_v2  ;;  %v15374_v1 = vld [vmem:[%s14077_s10 + $0xc4] ss:$2 sm:$0xff] }
 0x1b1   : > { %v12362_v0 = vpop.f32.mrf.mxu0  ;;  %v12457_v58 = vpop.f32.mrf.mxu1 }
 0x1b2   : > { %18857 = vst [vmem:[#allocation36_spill] sm:$0xff] %v15354_v28 }
 0x1b3   : > { %v1443_v22 = vpop.f32.mrf.mxu0  ;;  %v1663_v54 = vpop.f32.mrf.mxu1  ;;  %12702 = vmatmul.mubr.msk.f32.gmra.mxu0 %vm525_vm2, %v14951_v44  ;;  %12797 = vmatmul.mubr.msk.f32.gmra.mxu1 %vm525_vm2, %v15361_v56 }
 0x1b4   : > { %v15367_v60 = vadd.f32 %v1663_v54, %v1443_v22  ;;  %12704 = vmatprep.mubr.msk.f32.mxu0 %vm14006_vm1, %v18814_v2  ;;  %12799 = vmatprep.mubr.msk.f32.mxu1 %vm14006_vm1, %v18814_v2  ;;  %v15387_v54 = vld [vmem:[%s14077_s10 + $0xd4] ss:$2 sm:$0xff] }
 0x1b5   : > { %v12365_v50 = vpop.f32.mrf.mxu0  ;;  %v12460_v0 = vpop.f32.mrf.mxu1 }
 0x1b6   : > { %18858 = vst [vmem:[#allocation37_spill] sm:$0xff] %v15367_v60 }
 0x1b7   : > { %v1448_v58 = vpop.f32.mrf.mxu0  ;;  %v1668_v28 = vpop.f32.mrf.mxu1  ;;  %12705 = vmatmul.mubr.msk.f32.gmra.mxu0 %vm525_vm2, %v14964_v38  ;;  %12800 = vmatmul.mubr.msk.f32.gmra.mxu1 %vm525_vm2, %v15374_v1 }
 0x1b8   : > { %v15380_v44 = vadd.f32 %v1668_v28, %v1448_v58  ;;  %12707 = vmatprep.mubr.msk.f32.mxu0 %vm14006_vm1, %v18814_v2  ;;  %12802 = vmatprep.mubr.msk.f32.mxu1 %vm14006_vm1, %v18814_v2  ;;  %v15400_v28 = vld [vmem:[%s14077_s10 + $0xe4] ss:$2 sm:$0xff] }
 0x1b9   : > { %v12368_v22 = vpop.f32.mrf.mxu0  ;;  %v12463_v50 = vpop.f32.mrf.mxu1 }
 0x1ba   : > { %18859 = vst [vmem:[#allocation38_spill] sm:$0xff] %v15380_v44 }
 0x1bb   : > { %v1453_v0 = vpop.f32.mrf.mxu0  ;;  %v1673_v60 = vpop.f32.mrf.mxu1  ;;  %12708 = vmatmul.mubr.msk.f32.gmra.mxu0 %vm525_vm2, %v14977_v11  ;;  %12803 = vmatmul.mubr.msk.f32.gmra.mxu1 %vm525_vm2, %v15387_v54 }
 0x1bc   : > { %v15393_v38 = vadd.f32 %v1673_v60, %v1453_v0  ;;  %12710 = vmatprep.mubr.msk.f32.mxu0 %vm14006_vm1, %v18814_v2  ;;  %12805 = vmatprep.mubr.msk.f32.mxu1 %vm14006_vm1, %v18814_v2  ;;  %v15413_v60 = vld [vmem:[%s14077_s10 + $0xf4] ss:$2 sm:$0xff] }
 0x1bd   : > { %v12371_v58 = vpop.f32.mrf.mxu0  ;;  %v12466_v22 = vpop.f32.mrf.mxu1 }
 0x1be   : > { %18860 = vst [vmem:[#allocation39_spill] sm:$0xff] %v15393_v38 }
 0x1bf   : > { %v1458_v50 = vpop.f32.mrf.mxu0  ;;  %v1678_v44 = vpop.f32.mrf.mxu1  ;;  %12711 = vmatmul.mubr.msk.f32.gmra.mxu0 %vm525_vm2, %v14990_v12  ;;  %12806 = vmatmul.mubr.msk.f32.gmra.mxu1 %vm525_vm2, %v15400_v28 }
 0x1c0   : > { %v15406_v11 = vadd.f32 %v1678_v44, %v1458_v50  ;;  %12713 = vmatprep.mubr.msk.f32.mxu0 %vm14006_vm1, %v18814_v2  ;;  %12808 = vmatprep.mubr.msk.f32.mxu1 %vm14006_vm1, %v18814_v2  ;;  %v15426_v44 = vld [vmem:[%s14077_s10 + $0x104] ss:$2 sm:$0xff] }
 0x1c1   : > { %v12374_v0 = vpop.f32.mrf.mxu0  ;;  %v12469_v58 = vpop.f32.mrf.mxu1 }
 0x1c2   : > { %18861 = vst [vmem:[#allocation40_spill] sm:$0xff] %v15406_v11 }
 0x1c3   : > { %v1463_v22 = vpop.f32.mrf.mxu0  ;;  %v1683_v38 = vpop.f32.mrf.mxu1  ;;  %12714 = vmatmul.mubr.msk.f32.gmra.mxu0 %vm525_vm2, %v15003_v13  ;;  %12809 = vmatmul.mubr.msk.f32.gmra.mxu1 %vm525_vm2, %v15413_v60 }
 0x1c4   : > { %v15419_v12 = vadd.f32 %v1683_v38, %v1463_v22  ;;  %12716 = vmatprep.mubr.msk.f32.mxu0 %vm14006_vm1, %v18814_v2  ;;  %12811 = vmatprep.mubr.msk.f32.mxu1 %vm14006_vm1, %v18814_v2  ;;  %v15439_v38 = vld [vmem:[%s14077_s10 + $0x114] ss:$2 sm:$0xff] }
 0x1c5   : > { %v12377_v50 = vpop.f32.mrf.mxu0  ;;  %v12472_v0 = vpop.f32.mrf.mxu1 }
 0x1c6   : > { %18862 = vst [vmem:[#allocation41_spill] sm:$0xff] %v15419_v12 }
 0x1c7   : > { %v1468_v58 = vpop.f32.mrf.mxu0  ;;  %v1688_v11 = vpop.f32.mrf.mxu1  ;;  %12717 = vmatmul.mubr.msk.f32.gmra.mxu0 %vm525_vm2, %v15016_v14  ;;  %12812 = vmatmul.mubr.msk.f32.gmra.mxu1 %vm525_vm2, %v15426_v44 }
 0x1c8   : > { %v15432_v13 = vadd.f32 %v1688_v11, %v1468_v58  ;;  %12719 = vmatprep.mubr.msk.f32.mxu0 %vm14006_vm1, %v18814_v2  ;;  %12814 = vmatprep.mubr.msk.f32.mxu1 %vm14006_vm1, %v18814_v2  ;;  %v15456_v58 = vld [vmem:[%s14077_s10 + $0x124] ss:$2 sm:$0xff] }
 0x1c9   : > { %v12380_v22 = vpop.f32.mrf.mxu0  ;;  %v12475_v50 = vpop.f32.mrf.mxu1 }
 0x1ca   : > { %18863 = vst [vmem:[#allocation42_spill] sm:$0xff] %v15432_v13 }
 0x1cb   : > { %v1823_v0 = vpop.f32.mrf.mxu0  ;;  %v2167_v12 = vpop.f32.mrf.mxu1  ;;  %12720 = vmatmul.mubr.msk.f32.gmra.mxu0 %vm525_vm2, %v15029_v15  ;;  %12815 = vmatmul.mubr.msk.f32.gmra.mxu1 %vm525_vm2, %v15439_v38 }
 0x1cc   : > { %v15446_v14 = vadd.f32 %v1823_v0, %v14625_v23  ;;  %v15449_v11 = vadd.f32 %v2167_v12, %v15035_v19  ;;  %12722 = vmatprep.mubr.msk.f32.mxu0 %vm14006_vm1, %v18814_v2  ;;  %12817 = vmatprep.mubr.msk.f32.mxu1 %vm14006_vm1, %v18814_v2  ;;  %v15473_v12 = vld [vmem:[%s14077_s10 + $0x134] ss:$2 sm:$0xff] }
 0x1cd   : > { %v12480_v22 = vpop.f32.mrf.mxu0  ;;  %v12575_v15 = vpop.f32.mrf.mxu1 }
 0x1cf   : > { %v1828_v50 = vpop.f32.mrf.mxu0  ;;  %v2172_v13 = vpop.f32.mrf.mxu1  ;;  %12723 = vmatmul.mubr.msk.f32.gmra.mxu0 %vm525_vm2, %v15042_v16  ;;  %12818 = vmatmul.mubr.msk.f32.gmra.mxu1 %vm525_vm2, %v15456_v58 }
 0x1d0   : > { %v15463_v23 = vadd.f32 %v1828_v50, %v14638_v29  ;;  %v15466_v19 = vadd.f32 %v2172_v13, %v15048_v20  ;;  %12725 = vmatprep.mubr.msk.f32.mxu0 %vm14006_vm1, %v18814_v2  ;;  %12820 = vmatprep.mubr.msk.f32.mxu1 %vm14006_vm1, %v18814_v2  ;;  %v15490_v13 = vld [vmem:[%s14077_s10 + $0x144] ss:$2 sm:$0xff] }
 0x1d1   : > { %v12483_v0 = vpop.f32.mrf.mxu0  ;;  %v12578_v16 = vpop.f32.mrf.mxu1 }
 0x1d3   : > { %v1833_v22 = vpop.f32.mrf.mxu0  ;;  %v2177_v15 = vpop.f32.mrf.mxu1  ;;  %12726 = vmatmul.mubr.msk.f32.gmra.mxu0 %vm525_vm2, %v15055_v17  ;;  %12821 = vmatmul.mubr.msk.f32.gmra.mxu1 %vm525_vm2, %v15473_v12 }
 0x1d4   : > { %v15480_v29 = vadd.f32 %v1833_v22, %v14651_v35  ;;  %v15483_v20 = vadd.f32 %v2177_v15, %v15061_v24  ;;  %12728 = vmatprep.mubr.msk.f32.mxu0 %vm14006_vm1, %v18814_v2  ;;  %12823 = vmatprep.mubr.msk.f32.mxu1 %vm14006_vm1, %v18814_v2  ;;  %v15507_v22 = vld [vmem:[%s14077_s10 + $0x154] ss:$2 sm:$0xff] }
 0x1d5   : > { %v12486_v50 = vpop.f32.mrf.mxu0  ;;  %v12581_v17 = vpop.f32.mrf.mxu1 }
 0x1d7   : > { %v1838_v0 = vpop.f32.mrf.mxu0  ;;  %v2182_v16 = vpop.f32.mrf.mxu1  ;;  %12729 = vmatmul.mubr.msk.f32.gmra.mxu0 %vm525_vm2, %v15068_v18  ;;  %12824 = vmatmul.mubr.msk.f32.gmra.mxu1 %vm525_vm2, %v15490_v13 }
 0x1d8   : > { %v15497_v35 = vadd.f32 %v1838_v0, %v14664_v41  ;;  %v15500_v24 = vadd.f32 %v2182_v16, %v15074_v30  ;;  %12731 = vmatprep.mubr.msk.f32.mxu0 %vm14006_vm1, %v18814_v2  ;;  %12826 = vmatprep.mubr.msk.f32.mxu1 %vm14006_vm1, %v18814_v2  ;;  %v15524_v0 = vld [vmem:[%s14077_s10 + $0x164] ss:$2 sm:$0xff] }
 0x1d9   : > { %v12489_v15 = vpop.f32.mrf.mxu0  ;;  %v12584_v18 = vpop.f32.mrf.mxu1 }
 0x1db   : > { %v1843_v50 = vpop.f32.mrf.mxu0  ;;  %v2187_v17 = vpop.f32.mrf.mxu1  ;;  %12732 = vmatmul.mubr.msk.f32.gmra.mxu0 %vm525_vm2, %v15081_v10  ;;  %12827 = vmatmul.mubr.msk.f32.gmra.mxu1 %vm525_vm2, %v15507_v22 }
 0x1dc   : > { %v15514_v41 = vadd.f32 %v1843_v50, %v14677_v43  ;;  %v15517_v30 = vadd.f32 %v2187_v17, %v15087_v36  ;;  %12734 = vmatprep.mubr.msk.f32.mxu0 %vm14006_vm1, %v18814_v2  ;;  %12829 = vmatprep.mubr.msk.f32.mxu1 %vm14006_vm1, %v18814_v2  ;;  %v15541_v50 = vld [vmem:[%s14077_s10 + $0x174] ss:$2 sm:$0xff] }
 0x1dd   : > { %v12492_v16 = vpop.f32.mrf.mxu0  ;;  %v12587_v10 = vpop.f32.mrf.mxu1 }
 0x1df   : > { %v1848_v15 = vpop.f32.mrf.mxu0  ;;  %v2192_v18 = vpop.f32.mrf.mxu1  ;;  %12735 = vmatmul.mubr.msk.f32.gmra.mxu0 %vm525_vm2, %v15094_v9  ;;  %12830 = vmatmul.mubr.msk.f32.gmra.mxu1 %vm525_vm2, %v15524_v0 }
 0x1e0   : > { %v15531_v43 = vadd.f32 %v1848_v15, %v14690_v45  ;;  %v15534_v36 = vadd.f32 %v2192_v18, %v15100_v42  ;;  %12737 = vmatprep.mubr.msk.f32.mxu0 %vm14006_vm1, %v18814_v2  ;;  %12832 = vmatprep.mubr.msk.f32.mxu1 %vm14006_vm1, %v18814_v2  ;;  %v15558_v15 = vld [vmem:[%s14077_s10 + $0x184] ss:$2 sm:$0xff] }
 0x1e1   : > { %v12495_v17 = vpop.f32.mrf.mxu0  ;;  %v12590_v9 = vpop.f32.mrf.mxu1 }
 0x1e3   : > { %v1853_v16 = vpop.f32.mrf.mxu0  ;;  %v2197_v10 = vpop.f32.mrf.mxu1  ;;  %12738 = vmatmul.mubr.msk.f32.gmra.mxu0 %vm525_vm2, %v15107_v8  ;;  %12833 = vmatmul.mubr.msk.f32.gmra.mxu1 %vm525_vm2, %v15541_v50 }
 0x1e4   : > { %v15548_v45 = vadd.f32 %v1853_v16, %v14703_v47  ;;  %v15551_v42 = vadd.f32 %v2197_v10, %v15113_v52  ;;  %12740 = vmatprep.mubr.msk.f32.mxu0 %vm14006_vm1, %v18814_v2  ;;  %12835 = vmatprep.mubr.msk.f32.mxu1 %vm14006_vm1, %v18814_v2  ;;  %v15575_v16 = vld [vmem:[%s14077_s10 + $0x194] ss:$2 sm:$0xff] }
 0x1e5   : > { %v12498_v18 = vpop.f32.mrf.mxu0  ;;  %v12593_v8 = vpop.f32.mrf.mxu1 }
 0x1e7   : > { %v1858_v17 = vpop.f32.mrf.mxu0  ;;  %v2202_v9 = vpop.f32.mrf.mxu1  ;;  %12741 = vmatmul.mubr.msk.f32.gmra.mxu0 %vm525_vm2, %v15120_v7  ;;  %12836 = vmatmul.mubr.msk.f32.gmra.mxu1 %vm525_vm2, %v15558_v15 }
 0x1e8   : > { %v15565_v47 = vadd.f32 %v1858_v17, %v14716_v49  ;;  %v15568_v52 = vadd.f32 %v2202_v9, %v15126_v62  ;;  %12743 = vmatprep.mubr.msk.f32.mxu0 %vm14006_vm1, %v18814_v2  ;;  %12838 = vmatprep.mubr.msk.f32.mxu1 %vm14006_vm1, %v18814_v2  ;;  %v15592_v17 = vld [vmem:[%s14077_s10 + $0x1a4] ss:$2 sm:$0xff] }
 0x1e9   : > { %v12501_v10 = vpop.f32.mrf.mxu0  ;;  %v12596_v7 = vpop.f32.mrf.mxu1 }
 0x1eb   : > { %v1863_v18 = vpop.f32.mrf.mxu0  ;;  %v2207_v8 = vpop.f32.mrf.mxu1  ;;  %12744 = vmatmul.mubr.msk.f32.gmra.mxu0 %vm525_vm2, %v15133_v5  ;;  %12839 = vmatmul.mubr.msk.f32.gmra.mxu1 %vm525_vm2, %v15575_v16 }
 0x1ec   : > { %v15582_v49 = vadd.f32 %v1863_v18, %v14729_v51  ;;  %v15585_v62 = vadd.f32 %v2207_v8, %v15139_v25  ;;  %12746 = vmatprep.mubr.msk.f32.mxu0 %vm14006_vm1, %v18814_v2  ;;  %12841 = vmatprep.mubr.msk.f32.mxu1 %vm14006_vm1, %v18814_v2  ;;  %v15609_v18 = vld [vmem:[%s14077_s10 + $0x1b4] ss:$2 sm:$0xff] }
 0x1ed   : > { %v12504_v9 = vpop.f32.mrf.mxu0  ;;  %v12599_v5 = vpop.f32.mrf.mxu1 }
 0x1ef   : > { %v1868_v10 = vpop.f32.mrf.mxu0  ;;  %v2212_v7 = vpop.f32.mrf.mxu1  ;;  %12747 = vmatmul.mubr.msk.f32.gmra.mxu0 %vm525_vm2, %v15146_v3  ;;  %12842 = vmatmul.mubr.msk.f32.gmra.mxu1 %vm525_vm2, %v15592_v17 }
 0x1f0   : > { %v15599_v51 = vadd.f32 %v1868_v10, %v14742_v53  ;;  %v15602_v25 = vadd.f32 %v2212_v7, %v15152_v32  ;;  %12749 = vmatprep.mubr.msk.f32.mxu0 %vm14006_vm1, %v18814_v2  ;;  %12844 = vmatprep.mubr.msk.f32.mxu1 %vm14006_vm1, %v18814_v2  ;;  %v15626_v10 = vld [vmem:[%s14077_s10 + $0x1c4] ss:$2 sm:$0xff] }
 0x1f1   : > { %v12507_v8 = vpop.f32.mrf.mxu0  ;;  %v12602_v3 = vpop.f32.mrf.mxu1 }
 0x1f3   : > { %v1873_v9 = vpop.f32.mrf.mxu0  ;;  %v2217_v5 = vpop.f32.mrf.mxu1  ;;  %12750 = vmatmul.mubr.msk.f32.gmra.mxu0 %vm525_vm2, %v15159_v6  ;;  %12845 = vmatmul.mubr.msk.f32.gmra.mxu1 %vm525_vm2, %v15609_v18 }
 0x1f4   : > { %v15616_v53 = vadd.f32 %v1873_v9, %v14755_v55  ;;  %v15619_v32 = vadd.f32 %v2217_v5, %v15165_v39  ;;  %12752 = vmatprep.mubr.msk.f32.mxu0 %vm14006_vm1, %v18814_v2  ;;  %12847 = vmatprep.mubr.msk.f32.mxu1 %vm14006_vm1, %v18814_v2  ;;  %v18866_v39 = vld [vmem:[#allocation23_spill] sm:$0xff] }
 0x1f5   : > { %v12510_v7 = vpop.f32.mrf.mxu0  ;;  %v12605_v6 = vpop.f32.mrf.mxu1  ;;  %v15643_v5 = vld [vmem:[%s14077_s10 + $0x1d4] ss:$2 sm:$0xff] }
 0x1f6   : > { %18864 = vst [vmem:[#allocation43_spill] sm:$0xff] %v15619_v32 }
 0x1f7   : > { %v1878_v8 = vpop.f32.mrf.mxu0  ;;  %v2222_v3 = vpop.f32.mrf.mxu1  ;;  %12753 = vmatmul.mubr.msk.f32.gmra.mxu0 %vm525_vm2, %v15172_v31  ;;  %12848 = vmatmul.mubr.msk.f32.gmra.mxu1 %vm525_vm2, %v15626_v10 }
 0x1f8   : > { %v15633_v55 = vadd.f32 %v1878_v8, %v14768_v57  ;;  %v15636_v9 = vadd.f32 %v2222_v3, %v18866_v39  ;;  %12755 = vmatprep.mubr.msk.f32.mxu0 %vm14006_vm1, %v18814_v2  ;;  %12850 = vmatprep.mubr.msk.f32.mxu1 %vm14006_vm1, %v18814_v2  ;;  %v18868_v57 = vld [vmem:[#allocation4_spill] sm:$0xff] }
 0x1f9   : > { %v12513_v7 = vpop.f32.mrf.mxu0  ;;  %v12608_v31 = vpop.f32.mrf.mxu1  ;;  %v18869_v3 = vld [vmem:[#allocation24_spill] sm:$0xff] }
 0x1fa   : > { %18865 = vst [vmem:[#allocation44_spill] sm:$0xff] %v15633_v55  ;;  %18867 = vst [vmem:[#allocation23_spill] sm:$0xff] %v15636_v9  ;;  %v15660_v7 = vld [vmem:[%s14077_s10 + $0x1e4] ss:$2 sm:$0xff] }
 0x1fb   : > { %v1883_v6 = vpop.f32.mrf.mxu0  ;;  %v2227_v32 = vpop.f32.mrf.mxu1  ;;  %12756 = vmatmul.mubr.msk.f32.gmra.mxu0 %vm525_vm2, %v15185_v63  ;;  %12851 = vmatmul.mubr.msk.f32.gmra.mxu1 %vm525_vm2, %v15643_v5  ;;  %18871 = vst [vmem:[#allocation24_spill] sm:$0xff] %v15660_v7 }
 0x1fc   : > { %v15650_v8 = vadd.f32 %v1883_v6, %v18868_v57  ;;  %v15653_v39 = vadd.f32 %v2227_v32, %v18869_v3  ;;  %12758 = vmatprep.mubr.msk.f32.mxu0 %vm14006_vm1, %v18814_v2  ;;  %12853 = vmatprep.mubr.msk.f32.mxu1 %vm14006_vm1, %v18814_v2  ;;  %v18872_v32 = vld [vmem:[#allocation5_spill] sm:$0xff] }
 0x1fd   : > { %v12516_v31 = vpop.f32.mrf.mxu0  ;;  %v12611_v63 = vpop.f32.mrf.mxu1  ;;  %v15677_v3 = vld [vmem:[%s14077_s10 + $0x5] ss:$2 sm:$0xff] }
 0x1fe   : > { %18870 = vst [vmem:[#allocation4_spill] sm:$0xff] %v15653_v39  ;;  %v338_v63 = vld [vmem:[%s18806_s1 + $0x14] sm:$0x7]  ;;  %v18880_v39 = vmov 0.0  }
 0x1ff   : > { %v1888_v9 = vpop.f32.mrf.mxu0  ;;  %v2232_v55 = vpop.f32.mrf.mxu1  ;;  %12759 = vmatmul.mubr.msk.f32.gmra.mxu0 %vm525_vm2, %v15198_v61  ;;  %12854 = vmatmul.mubr.msk.f32.gmra.mxu1 %vm525_vm2, %v15660_v7  ;;  %281 = vst.msk [vmem:[#allocation2 + $0x8] sm:$0xff] %vm279_vm4, %v18880_v39  ;;  %280 = vst.msk [vmem:[#allocation2] sm:$0xff] %vm279_vm4, %v18880_v39 }
 0x200   : > { %v15667_v6 = vadd.f32 %v1888_v9, %v18872_v32  ;;  %v15670_v57 = vadd.f32 %v2232_v55, %v15204_v27  ;;  %12858 = vmatprep.mubr.msk.f32.mxu0 %vm14006_vm1, %v18814_v2  ;;  %12953 = vmatprep.mubr.msk.f32.mxu1 %vm14006_vm1, %v18814_v2  ;;  %v18876_v27 = vld [vmem:[#allocation6_spill] sm:$0xff]  ;;  %282 = vst.msk [vmem:[#allocation2 + $0x10] sm:$0xff] %vm279_vm4, %v18880_v39  ;;  %283 = vst.msk [vmem:[#allocation2 + $0x18] sm:$0xff] %vm279_vm4, %v18880_v39 }
 0x201   : > { %v12519_v31 = vpop.f32.mrf.mxu0  ;;  %v12614_v61 = vpop.f32.mrf.mxu1  ;;  %v18878_v2 = vld [vmem:[#allocation26_spill] sm:$0xff]  ;;  %284 = vst.msk [vmem:[#allocation2 + $0x20] sm:$0xff] %vm279_vm4, %v18880_v39  ;;  %285 = vst.msk [vmem:[#allocation2 + $0x28] sm:$0xff] %vm279_vm4, %v18880_v39 }
 0x202   : > { %18873 = vst [vmem:[#allocation5_spill] sm:$0xff] %v15667_v6  ;;  %18874 = vst [vmem:[#allocation45_spill] sm:$0xff] %v15670_v57  ;;  %v18875_v6 = vld [vmem:[#allocation25_spill] sm:$0xff]  ;;  %v15695_v31 = vld [vmem:[%s14077_s10 + $0x15] ss:$2 sm:$0xff] }
 0x203   : > { %v1893_v9 = vpop.f32.mrf.mxu0  ;;  %v2237_v32 = vpop.f32.mrf.mxu1  ;;  %12859 = vmatmul.mubr.msk.f32.vlgmr.msra.gmra.mxu0 %vm525_vm2, %v18875_v6  ;;  %12954 = vmatmul.mubr.msk.f32.vlgmr.msra.gmra.mxu1 %vm525_vm2, %v15677_v3  ;;  %286 = vst.msk [vmem:[#allocation2 + $0x30] sm:$0xff] %vm279_vm4, %v18880_v39  ;;  %287 = vst.msk [vmem:[#allocation2 + $0x38] sm:$0xff] %vm279_vm4, %v18880_v39 }
 0x204   : > { %v15687_v55 = vadd.f32 %v1893_v9, %v18876_v27  ;;  %v15690_v57 = vadd.f32 %v2237_v32, %v18878_v2  ;;  %13047 = vmatpush3.msk.msra.mxu0 %vm619_vm0, %v338_v63  ;;  %13142 = vmatpush3.msk.msra.mxu1 %vm619_vm0, %v338_v63  ;;  %v18881_v63 = vld [vmem:[#allocation7_spill] sm:$0xff]  ;;  %v15718_v27 = vld [vmem:[%s14077_s10 + $0x25] ss:$2 sm:$0xff]  ;;  %288 = vst.msk [vmem:[#allocation2 + $0x40] sm:$0xff] %vm279_vm4, %v18880_v39  ;;  %289 = vst.msk [vmem:[#allocation2 + $0x48] sm:$0xff] %vm279_vm4, %v18880_v39 }
 0x205   : > { %v12522_v61 = vpop.f32.mrf.mxu0  ;;  %v12617_v7 = vpop.f32.mrf.mxu1  ;;  %12861 = vmatprep.mubr.msk.f32.mxu0 %vm14006_vm1, %v18880_v39  ;;  %12956 = vmatprep.mubr.msk.f32.mxu1 %vm14006_vm1, %v18880_v39  ;;  %v18883_v9 = vld [vmem:[#allocation27_spill] sm:$0xff]  ;;  %290 = vst.msk [vmem:[#allocation2 + $0x50] sm:$0xff] %vm279_vm4, %v18880_v39  ;;  %291 = vst.msk [vmem:[#allocation2 + $0x58] sm:$0xff] %vm279_vm4, %v18880_v39 }
 0x206   : > { %18877 = vst [vmem:[#allocation25_spill] sm:$0xff] %v15687_v55  ;;  %18879 = vst [vmem:[#allocation6_spill] sm:$0xff] %v15690_v57  ;;  %13236 = vmatprep.subr.mxu0 %v18880_v39  ;;  %13331 = vmatprep.subr.mxu1 %v18880_v39 }
 0x207   : > { %v1898_v2 = vpop.f32.mrf.mxu0  ;;  %v2242_v6 = vpop.f32.mrf.mxu1  ;;  %12862 = vmatmul.mubr.msk.f32.gmra.mxu0 %vm525_vm2, %v15225_v40  ;;  %12957 = vmatmul.mubr.msk.f32.gmra.mxu1 %vm525_vm2, %v15695_v31  ;;  %292 = vst.msk [vmem:[#allocation2 + $0x60] sm:$0xff] %vm279_vm4, %v18880_v39  ;;  %293 = vst.msk [vmem:[#allocation2 + $0x68] sm:$0xff] %vm279_vm4, %v18880_v39 }
 0x208   : > { %v15708_v7 = vadd.f32 %v1898_v2, %v18881_v63  ;;  %v15711_v32 = vadd.f32 %v2242_v6, %v18883_v9  ;;  %12864 = vmatprep.mubr.msk.f32.mxu0 %vm14006_vm1, %v18880_v39  ;;  %12959 = vmatprep.mubr.msk.f32.mxu1 %vm14006_vm1, %v18880_v39  ;;  %v18885_v2 = vld [vmem:[#allocation8_spill] sm:$0xff]  ;;  %294 = vst.msk [vmem:[#allocation2 + $0x70] sm:$0xff] %vm279_vm4, %v18880_v39  ;;  %295 = vst.msk [vmem:[#allocation2 + $0x78] sm:$0xff] %vm279_vm4, %v18880_v39 }
 0x209   : > { %v12525_v61 = vpop.f32.mrf.mxu0  ;;  %v12620_v40 = vpop.f32.mrf.mxu1  ;;  %v18887_v63 = vld [vmem:[#allocation28_spill] sm:$0xff]  ;;  %296 = vst.msk [vmem:[#allocation2 + $0x80] sm:$0xff] %vm279_vm4, %v18880_v39  ;;  %297 = vst.msk [vmem:[#allocation2 + $0x88] sm:$0xff] %vm279_vm4, %v18880_v39 }
 0x20a   : > { %18882 = vst [vmem:[#allocation26_spill] sm:$0xff] %v15708_v7  ;;  %18884 = vst [vmem:[#allocation7_spill] sm:$0xff] %v15711_v32  ;;  %v15735_v61 = vld [vmem:[%s14077_s10 + $0x35] ss:$2 sm:$0xff] }
 0x20b   : > { %v1903_v57 = vpop.f32.mrf.mxu0  ;;  %v2247_v55 = vpop.f32.mrf.mxu1  ;;  %12865 = vmatmul.mubr.msk.f32.gmra.mxu0 %vm525_vm2, %v15244_v26  ;;  %12960 = vmatmul.mubr.msk.f32.gmra.mxu1 %vm525_vm2, %v15718_v27  ;;  %298 = vst.msk [vmem:[#allocation2 + $0x90] sm:$0xff] %vm279_vm4, %v18880_v39  ;;  %299 = vst.msk [vmem:[#allocation2 + $0x98] sm:$0xff] %vm279_vm4, %v18880_v39 }
 0x20c   : > { %v15725_v6 = vadd.f32 %v1903_v57, %v18885_v2  ;;  %v15728_v9 = vadd.f32 %v2247_v55, %v18887_v63  ;;  %12867 = vmatprep.mubr.msk.f32.mxu0 %vm14006_vm1, %v18880_v39  ;;  %12962 = vmatprep.mubr.msk.f32.mxu1 %vm14006_vm1, %v18880_v39  ;;  %v18889_v57 = vld [vmem:[#allocation9_spill] sm:$0xff]  ;;  %300 = vst.msk [vmem:[#allocation2 + $0xa0] sm:$0xff] %vm279_vm4, %v18880_v39  ;;  %301 = vst.msk [vmem:[#allocation2 + $0xa8] sm:$0xff] %vm279_vm4, %v18880_v39 }
 0x20d   : > { %v12528_v40 = vpop.f32.mrf.mxu0  ;;  %v12623_v26 = vpop.f32.mrf.mxu1  ;;  %v18891_v2 = vld [vmem:[#allocation29_spill] sm:$0xff]  ;;  %302 = vst.msk [vmem:[#allocation2 + $0xb0] sm:$0xff] %vm279_vm4, %v18880_v39  ;;  %303 = vst.msk [vmem:[#allocation2 + $0xb8] sm:$0xff] %vm279_vm4, %v18880_v39 }
 0x20e   : > { %18886 = vst [vmem:[#allocation27_spill] sm:$0xff] %v15725_v6  ;;  %18888 = vst [vmem:[#allocation8_spill] sm:$0xff] %v15728_v9  ;;  %v15752_v40 = vld [vmem:[%s14077_s10 + $0x45] ss:$2 sm:$0xff] }
 0x20f   : > { %v1908_v32 = vpop.f32.mrf.mxu0  ;;  %v2252_v7 = vpop.f32.mrf.mxu1  ;;  %12868 = vmatmul.mubr.msk.f32.gmra.mxu0 %vm525_vm2, %v15257_v48  ;;  %12963 = vmatmul.mubr.msk.f32.gmra.mxu1 %vm525_vm2, %v15735_v61  ;;  %304 = vst.msk [vmem:[#allocation2 + $0xc0] sm:$0xff] %vm279_vm4, %v18880_v39  ;;  %305 = vst.msk [vmem:[#allocation2 + $0xc8] sm:$0xff] %vm279_vm4, %v18880_v39 }
 0x210   : > { %v15742_v55 = vadd.f32 %v1908_v32, %v18889_v57  ;;  %v15745_v63 = vadd.f32 %v2252_v7, %v18891_v2  ;;  %12870 = vmatprep.mubr.msk.f32.mxu0 %vm14006_vm1, %v18880_v39  ;;  %12965 = vmatprep.mubr.msk.f32.mxu1 %vm14006_vm1, %v18880_v39  ;;  %v18893_v7 = vld [vmem:[#allocation10_spill] sm:$0xff]  ;;  %306 = vst.msk [vmem:[#allocation2 + $0xd0] sm:$0xff] %vm279_vm4, %v18880_v39  ;;  %307 = vst.msk [vmem:[#allocation2 + $0xd8] sm:$0xff] %vm279_vm4, %v18880_v39 }
 0x211   : > { %v12531_v26 = vpop.f32.mrf.mxu0  ;;  %v12626_v48 = vpop.f32.mrf.mxu1  ;;  %v18895_v57 = vld [vmem:[#allocation30_spill] sm:$0xff]  ;;  %308 = vst.msk [vmem:[#allocation2 + $0xe0] sm:$0xff] %vm279_vm4, %v18880_v39  ;;  %309 = vst.msk [vmem:[#allocation2 + $0xe8] sm:$0xff] %vm279_vm4, %v18880_v39 }
 0x212   : > { %18890 = vst [vmem:[#allocation28_spill] sm:$0xff] %v15742_v55  ;;  %18892 = vst [vmem:[#allocation9_spill] sm:$0xff] %v15745_v63  ;;  %v15769_v26 = vld [vmem:[%s14077_s10 + $0x55] ss:$2 sm:$0xff] }
 0x213   : > { %v1913_v9 = vpop.f32.mrf.mxu0  ;;  %v2257_v6 = vpop.f32.mrf.mxu1  ;;  %12871 = vmatmul.mubr.msk.f32.gmra.mxu0 %vm525_vm2, %v15270_v59  ;;  %12966 = vmatmul.mubr.msk.f32.gmra.mxu1 %vm525_vm2, %v15752_v40  ;;  %310 = vst.msk [vmem:[#allocation2 + $0xf0] sm:$0xff] %vm279_vm4, %v18880_v39  ;;  %311 = vst.msk [vmem:[#allocation2 + $0xf8] sm:$0xff] %vm279_vm4, %v18880_v39 }
 0x214   : > { %v15759_v32 = vadd.f32 %v1913_v9, %v18893_v7  ;;  %v15762_v2 = vadd.f32 %v2257_v6, %v18895_v57  ;;  %12873 = vmatprep.mubr.msk.f32.mxu0 %vm14006_vm1, %v18880_v39  ;;  %12968 = vmatprep.mubr.msk.f32.mxu1 %vm14006_vm1, %v18880_v39  ;;  %v18897_v6 = vld [vmem:[#allocation11_spill] sm:$0xff]  ;;  %312 = vst.msk [vmem:[#allocation2 + $0x100] sm:$0xff] %vm279_vm4, %v18880_v39  ;;  %313 = vst.msk [vmem:[#allocation3] sm:$0xff] %vm279_vm4, %v18880_v39 }
 0x215   : > { %v12534_v48 = vpop.f32.mrf.mxu0  ;;  %v12629_v59 = vpop.f32.mrf.mxu1  ;;  %v18899_v7 = vld [vmem:[#allocation31_spill] sm:$0xff]  ;;  %314 = vst.msk [vmem:[#allocation3 + $0x8] sm:$0xff] %vm279_vm4, %v18880_v39  ;;  %315 = vst.msk [vmem:[#allocation3 + $0x10] sm:$0xff] %vm279_vm4, %v18880_v39 }
 0x216   : > { %18894 = vst [vmem:[#allocation29_spill] sm:$0xff] %v15759_v32  ;;  %18896 = vst [vmem:[#allocation10_spill] sm:$0xff] %v15762_v2  ;;  %v15786_v48 = vld [vmem:[%s14077_s10 + $0x65] ss:$2 sm:$0xff] }
 0x217   : > { %v1918_v63 = vpop.f32.mrf.mxu0  ;;  %v2262_v55 = vpop.f32.mrf.mxu1  ;;  %12874 = vmatmul.mubr.msk.f32.gmra.mxu0 %vm525_vm2, %v15283_v37  ;;  %12969 = vmatmul.mubr.msk.f32.gmra.mxu1 %vm525_vm2, %v15769_v26  ;;  %316 = vst.msk [vmem:[#allocation3 + $0x18] sm:$0xff] %vm279_vm4, %v18880_v39  ;;  %317 = vst.msk [vmem:[#allocation3 + $0x20] sm:$0xff] %vm279_vm4, %v18880_v39 }
 0x218   : > { %v15776_v9 = vadd.f32 %v1918_v63, %v18897_v6  ;;  %v15779_v57 = vadd.f32 %v2262_v55, %v18899_v7  ;;  %12876 = vmatprep.mubr.msk.f32.mxu0 %vm14006_vm1, %v18880_v39  ;;  %12971 = vmatprep.mubr.msk.f32.mxu1 %vm14006_vm1, %v18880_v39  ;;  %v18901_v55 = vld [vmem:[#allocation12_spill] sm:$0xff]  ;;  %318 = vst.msk [vmem:[#allocation3 + $0x28] sm:$0xff] %vm279_vm4, %v18880_v39  ;;  %319 = vst.msk [vmem:[#allocation3 + $0x30] sm:$0xff] %vm279_vm4, %v18880_v39 }
 0x219   : > { %v12537_v59 = vpop.f32.mrf.mxu0  ;;  %v12632_v37 = vpop.f32.mrf.mxu1  ;;  %v18903_v6 = vld [vmem:[#allocation32_spill] sm:$0xff]  ;;  %320 = vst.msk [vmem:[#allocation3 + $0x38] sm:$0xff] %vm279_vm4, %v18880_v39  ;;  %321 = vst.msk [vmem:[#allocation3 + $0x40] sm:$0xff] %vm279_vm4, %v18880_v39 }
 0x21a   : > { %18898 = vst [vmem:[#allocation30_spill] sm:$0xff] %v15776_v9  ;;  %18900 = vst [vmem:[#allocation11_spill] sm:$0xff] %v15779_v57  ;;  %v15803_v59 = vld [vmem:[%s14077_s10 + $0x75] ss:$2 sm:$0xff] }
 0x21b   : > { %v1923_v2 = vpop.f32.mrf.mxu0  ;;  %v2267_v32 = vpop.f32.mrf.mxu1  ;;  %12877 = vmatmul.mubr.msk.f32.gmra.mxu0 %vm525_vm2, %v15296_v21  ;;  %12972 = vmatmul.mubr.msk.f32.gmra.mxu1 %vm525_vm2, %v15786_v48  ;;  %322 = vst.msk [vmem:[#allocation3 + $0x48] sm:$0xff] %vm279_vm4, %v18880_v39  ;;  %323 = vst.msk [vmem:[#allocation3 + $0x50] sm:$0xff] %vm279_vm4, %v18880_v39 }
 0x21c   : > { %v15793_v63 = vadd.f32 %v1923_v2, %v18901_v55  ;;  %v15796_v7 = vadd.f32 %v2267_v32, %v18903_v6  ;;  %12879 = vmatprep.mubr.msk.f32.mxu0 %vm14006_vm1, %v18880_v39  ;;  %12974 = vmatprep.mubr.msk.f32.mxu1 %vm14006_vm1, %v18880_v39  ;;  %v18905_v32 = vld [vmem:[#allocation13_spill] sm:$0xff]  ;;  %324 = vst.msk [vmem:[#allocation3 + $0x58] sm:$0xff] %vm279_vm4, %v18880_v39  ;;  %325 = vst.msk [vmem:[#allocation3 + $0x60] sm:$0xff] %vm279_vm4, %v18880_v39 }
 0x21d   : > { %v12540_v37 = vpop.f32.mrf.mxu0  ;;  %v12635_v21 = vpop.f32.mrf.mxu1  ;;  %v18907_v55 = vld [vmem:[#allocation33_spill] sm:$0xff]  ;;  %326 = vst.msk [vmem:[#allocation3 + $0x68] sm:$0xff] %vm279_vm4, %v18880_v39  ;;  %327 = vst.msk [vmem:[#allocation3 + $0x70] sm:$0xff] %vm279_vm4, %v18880_v39 }
 0x21e   : > { %18902 = vst [vmem:[#allocation31_spill] sm:$0xff] %v15793_v63  ;;  %18904 = vst [vmem:[#allocation12_spill] sm:$0xff] %v15796_v7  ;;  %v15820_v37 = vld [vmem:[%s14077_s10 + $0x85] ss:$2 sm:$0xff] }
 0x21f   : > { %v1928_v57 = vpop.f32.mrf.mxu0  ;;  %v2272_v9 = vpop.f32.mrf.mxu1  ;;  %12880 = vmatmul.mubr.msk.f32.gmra.mxu0 %vm525_vm2, %v15309_v33  ;;  %12975 = vmatmul.mubr.msk.f32.gmra.mxu1 %vm525_vm2, %v15803_v59  ;;  %328 = vst.msk [vmem:[#allocation3 + $0x78] sm:$0xff] %vm279_vm4, %v18880_v39  ;;  %329 = vst.msk [vmem:[#allocation3 + $0x80] sm:$0xff] %vm279_vm4, %v18880_v39 }
 0x220   : > { %v15810_v2 = vadd.f32 %v1928_v57, %v18905_v32  ;;  %v15813_v6 = vadd.f32 %v2272_v9, %v18907_v55  ;;  %12882 = vmatprep.mubr.msk.f32.mxu0 %vm14006_vm1, %v18880_v39  ;;  %12977 = vmatprep.mubr.msk.f32.mxu1 %vm14006_vm1, %v18880_v39  ;;  %v18909_v9 = vld [vmem:[#allocation14_spill] sm:$0xff] }
 0x221   : > { %v12543_v21 = vpop.f32.mrf.mxu0  ;;  %v12638_v33 = vpop.f32.mrf.mxu1  ;;  %v18911_v32 = vld [vmem:[#allocation34_spill] sm:$0xff] }
 0x222   : > { %18906 = vst [vmem:[#allocation32_spill] sm:$0xff] %v15810_v2  ;;  %18908 = vst [vmem:[#allocation13_spill] sm:$0xff] %v15813_v6  ;;  %v15837_v21 = vld [vmem:[%s14077_s10 + $0x95] ss:$2 sm:$0xff] }
 0x223   : > { %v1933_v7 = vpop.f32.mrf.mxu0  ;;  %v2277_v63 = vpop.f32.mrf.mxu1  ;;  %12883 = vmatmul.mubr.msk.f32.gmra.mxu0 %vm525_vm2, %v15322_v46  ;;  %12978 = vmatmul.mubr.msk.f32.gmra.mxu1 %vm525_vm2, %v15820_v37 }
 0x224   : > { %v15827_v57 = vadd.f32 %v1933_v7, %v18909_v9  ;;  %v15830_v55 = vadd.f32 %v2277_v63, %v18911_v32  ;;  %12885 = vmatprep.mubr.msk.f32.mxu0 %vm14006_vm1, %v18880_v39  ;;  %12980 = vmatprep.mubr.msk.f32.mxu1 %vm14006_vm1, %v18880_v39  ;;  %v18913_v63 = vld [vmem:[#allocation15_spill] sm:$0xff] }
 0x225   : > { %v12546_v33 = vpop.f32.mrf.mxu0  ;;  %v12641_v46 = vpop.f32.mrf.mxu1  ;;  %v18915_v9 = vld [vmem:[#allocation35_spill] sm:$0xff] }
 0x226   : > { %18910 = vst [vmem:[#allocation33_spill] sm:$0xff] %v15827_v57  ;;  %18912 = vst [vmem:[#allocation14_spill] sm:$0xff] %v15830_v55  ;;  %v15854_v33 = vld [vmem:[%s14077_s10 + $0xa5] ss:$2 sm:$0xff] }
 0x227   : > { %v1938_v6 = vpop.f32.mrf.mxu0  ;;  %v2282_v2 = vpop.f32.mrf.mxu1  ;;  %12886 = vmatmul.mubr.msk.f32.gmra.mxu0 %vm525_vm2, %v15335_v4  ;;  %12981 = vmatmul.mubr.msk.f32.gmra.mxu1 %vm525_vm2, %v15837_v21 }
 0x228   : > { %v15844_v7 = vadd.f32 %v1938_v6, %v18913_v63  ;;  %v15847_v32 = vadd.f32 %v2282_v2, %v18915_v9  ;;  %12888 = vmatprep.mubr.msk.f32.mxu0 %vm14006_vm1, %v18880_v39  ;;  %12983 = vmatprep.mubr.msk.f32.mxu1 %vm14006_vm1, %v18880_v39  ;;  %v18917_v2 = vld [vmem:[#allocation16_spill] sm:$0xff] }
 0x229   : > { %v12549_v46 = vpop.f32.mrf.mxu0  ;;  %v12644_v4 = vpop.f32.mrf.mxu1  ;;  %v18919_v63 = vld [vmem:[#allocation36_spill] sm:$0xff] }
 0x22a   : > { %18914 = vst [vmem:[#allocation34_spill] sm:$0xff] %v15844_v7  ;;  %18916 = vst [vmem:[#allocation15_spill] sm:$0xff] %v15847_v32  ;;  %v15871_v46 = vld [vmem:[%s14077_s10 + $0xb5] ss:$2 sm:$0xff] }
 0x22b   : > { %v1943_v55 = vpop.f32.mrf.mxu0  ;;  %v2287_v57 = vpop.f32.mrf.mxu1  ;;  %12889 = vmatmul.mubr.msk.f32.gmra.mxu0 %vm525_vm2, %v15348_v34  ;;  %12984 = vmatmul.mubr.msk.f32.gmra.mxu1 %vm525_vm2, %v15854_v33 }
 0x22c   : > { %v15861_v6 = vadd.f32 %v1943_v55, %v18917_v2  ;;  %v15864_v9 = vadd.f32 %v2287_v57, %v18919_v63  ;;  %12891 = vmatprep.mubr.msk.f32.mxu0 %vm14006_vm1, %v18880_v39  ;;  %12986 = vmatprep.mubr.msk.f32.mxu1 %vm14006_vm1, %v18880_v39  ;;  %v18921_v57 = vld [vmem:[#allocation17_spill] sm:$0xff] }
 0x22d   : > { %v12552_v4 = vpop.f32.mrf.mxu0  ;;  %v12647_v34 = vpop.f32.mrf.mxu1  ;;  %v18923_v2 = vld [vmem:[#allocation37_spill] sm:$0xff] }
 0x22e   : > { %18918 = vst [vmem:[#allocation35_spill] sm:$0xff] %v15861_v6  ;;  %18920 = vst [vmem:[#allocation16_spill] sm:$0xff] %v15864_v9  ;;  %v15888_v4 = vld [vmem:[%s14077_s10 + $0xc5] ss:$2 sm:$0xff] }
 0x22f   : > { %v1948_v32 = vpop.f32.mrf.mxu0  ;;  %v2292_v7 = vpop.f32.mrf.mxu1  ;;  %12892 = vmatmul.mubr.msk.f32.gmra.mxu0 %vm525_vm2, %v15361_v56  ;;  %12987 = vmatmul.mubr.msk.f32.gmra.mxu1 %vm525_vm2, %v15871_v46 }
 0x230   : > { %v15878_v55 = vadd.f32 %v1948_v32, %v18921_v57  ;;  %v15881_v63 = vadd.f32 %v2292_v7, %v18923_v2  ;;  %12894 = vmatprep.mubr.msk.f32.mxu0 %vm14006_vm1, %v18880_v39  ;;  %12989 = vmatprep.mubr.msk.f32.mxu1 %vm14006_vm1, %v18880_v39  ;;  %v18925_v7 = vld [vmem:[#allocation18_spill] sm:$0xff] }
 0x231   : > { %v12555_v34 = vpop.f32.mrf.mxu0  ;;  %v12650_v56 = vpop.f32.mrf.mxu1  ;;  %v18927_v57 = vld [vmem:[#allocation38_spill] sm:$0xff] }
 0x232   : > { %18922 = vst [vmem:[#allocation36_spill] sm:$0xff] %v15878_v55  ;;  %18924 = vst [vmem:[#allocation17_spill] sm:$0xff] %v15881_v63  ;;  %v15905_v34 = vld [vmem:[%s14077_s10 + $0xd5] ss:$2 sm:$0xff] }
 0x233   : > { %v1953_v9 = vpop.f32.mrf.mxu0  ;;  %v2297_v6 = vpop.f32.mrf.mxu1  ;;  %12895 = vmatmul.mubr.msk.f32.gmra.mxu0 %vm525_vm2, %v15374_v1  ;;  %12990 = vmatmul.mubr.msk.f32.gmra.mxu1 %vm525_vm2, %v15888_v4 }
 0x234   : > { %v15895_v32 = vadd.f32 %v1953_v9, %v18925_v7  ;;  %v15898_v2 = vadd.f32 %v2297_v6, %v18927_v57  ;;  %12897 = vmatprep.mubr.msk.f32.mxu0 %vm14006_vm1, %v18880_v39  ;;  %12992 = vmatprep.mubr.msk.f32.mxu1 %vm14006_vm1, %v18880_v39  ;;  %v18929_v6 = vld [vmem:[#allocation19_spill] sm:$0xff] }
 0x235   : > { %v12558_v56 = vpop.f32.mrf.mxu0  ;;  %v12653_v1 = vpop.f32.mrf.mxu1  ;;  %v18931_v7 = vld [vmem:[#allocation39_spill] sm:$0xff] }
 0x236   : > { %18926 = vst [vmem:[#allocation37_spill] sm:$0xff] %v15895_v32  ;;  %18928 = vst [vmem:[#allocation18_spill] sm:$0xff] %v15898_v2  ;;  %v15922_v56 = vld [vmem:[%s14077_s10 + $0xe5] ss:$2 sm:$0xff] }
 0x237   : > { %v1958_v63 = vpop.f32.mrf.mxu0  ;;  %v2302_v55 = vpop.f32.mrf.mxu1  ;;  %12898 = vmatmul.mubr.msk.f32.gmra.mxu0 %vm525_vm2, %v15387_v54  ;;  %12993 = vmatmul.mubr.msk.f32.gmra.mxu1 %vm525_vm2, %v15905_v34 }
 0x238   : > { %v15912_v9 = vadd.f32 %v1958_v63, %v18929_v6  ;;  %v15915_v57 = vadd.f32 %v2302_v55, %v18931_v7  ;;  %12900 = vmatprep.mubr.msk.f32.mxu0 %vm14006_vm1, %v18880_v39  ;;  %12995 = vmatprep.mubr.msk.f32.mxu1 %vm14006_vm1, %v18880_v39  ;;  %v18933_v55 = vld [vmem:[#allocation20_spill] sm:$0xff] }
 0x239   : > { %v12561_v1 = vpop.f32.mrf.mxu0  ;;  %v12656_v54 = vpop.f32.mrf.mxu1  ;;  %v18935_v6 = vld [vmem:[#allocation40_spill] sm:$0xff] }
 0x23a   : > { %18930 = vst [vmem:[#allocation38_spill] sm:$0xff] %v15912_v9  ;;  %18932 = vst [vmem:[#allocation19_spill] sm:$0xff] %v15915_v57  ;;  %v15939_v1 = vld [vmem:[%s14077_s10 + $0xf5] ss:$2 sm:$0xff] }
 0x23b   : > { %v1963_v2 = vpop.f32.mrf.mxu0  ;;  %v2307_v32 = vpop.f32.mrf.mxu1  ;;  %12901 = vmatmul.mubr.msk.f32.gmra.mxu0 %vm525_vm2, %v15400_v28  ;;  %12996 = vmatmul.mubr.msk.f32.gmra.mxu1 %vm525_vm2, %v15922_v56 }
 0x23c   : > { %v15929_v63 = vadd.f32 %v1963_v2, %v18933_v55  ;;  %v15932_v7 = vadd.f32 %v2307_v32, %v18935_v6  ;;  %12903 = vmatprep.mubr.msk.f32.mxu0 %vm14006_vm1, %v18880_v39  ;;  %12998 = vmatprep.mubr.msk.f32.mxu1 %vm14006_vm1, %v18880_v39  ;;  %v18937_v32 = vld [vmem:[#allocation21_spill] sm:$0xff] }
 0x23d   : > { %v12564_v54 = vpop.f32.mrf.mxu0  ;;  %v12659_v28 = vpop.f32.mrf.mxu1  ;;  %v18939_v55 = vld [vmem:[#allocation41_spill] sm:$0xff] }
 0x23e   : > { %18934 = vst [vmem:[#allocation39_spill] sm:$0xff] %v15929_v63  ;;  %18936 = vst [vmem:[#allocation20_spill] sm:$0xff] %v15932_v7  ;;  %v15956_v54 = vld [vmem:[%s14077_s10 + $0x105] ss:$2 sm:$0xff] }
 0x23f   : > { %v1968_v57 = vpop.f32.mrf.mxu0  ;;  %v2312_v9 = vpop.f32.mrf.mxu1  ;;  %12904 = vmatmul.mubr.msk.f32.gmra.mxu0 %vm525_vm2, %v15413_v60  ;;  %12999 = vmatmul.mubr.msk.f32.gmra.mxu1 %vm525_vm2, %v15939_v1 }
 0x240   : > { %v15946_v2 = vadd.f32 %v1968_v57, %v18937_v32  ;;  %v15949_v6 = vadd.f32 %v2312_v9, %v18939_v55  ;;  %12906 = vmatprep.mubr.msk.f32.mxu0 %vm14006_vm1, %v18880_v39  ;;  %13001 = vmatprep.mubr.msk.f32.mxu1 %vm14006_vm1, %v18880_v39  ;;  %v18941_v9 = vld [vmem:[#allocation22_spill] sm:$0xff] }
 0x241   : > { %v12567_v28 = vpop.f32.mrf.mxu0  ;;  %v12662_v60 = vpop.f32.mrf.mxu1  ;;  %v18942_v32 = vld [vmem:[#allocation42_spill] sm:$0xff] }
 0x242   : > { %18938 = vst [vmem:[#allocation40_spill] sm:$0xff] %v15946_v2  ;;  %18940 = vst [vmem:[#allocation21_spill] sm:$0xff] %v15949_v6  ;;  %v15973_v28 = vld [vmem:[%s14077_s10 + $0x115] ss:$2 sm:$0xff] }
 0x243   : > { %v1973_v7 = vpop.f32.mrf.mxu0  ;;  %v2317_v63 = vpop.f32.mrf.mxu1  ;;  %12907 = vmatmul.mubr.msk.f32.gmra.mxu0 %vm525_vm2, %v15426_v44  ;;  %13002 = vmatmul.mubr.msk.f32.gmra.mxu1 %vm525_vm2, %v15956_v54 }
 0x244   : > { %v15963_v57 = vadd.f32 %v1973_v7, %v18941_v9  ;;  %v15966_v55 = vadd.f32 %v2317_v63, %v18942_v32  ;;  %12909 = vmatprep.mubr.msk.f32.mxu0 %vm14006_vm1, %v18880_v39  ;;  %13004 = vmatprep.mubr.msk.f32.mxu1 %vm14006_vm1, %v18880_v39  ;;  %v15990_v9 = vld [vmem:[%s14077_s10 + $0x125] ss:$2 sm:$0xff] }
 0x245   : > { %v12570_v60 = vpop.f32.mrf.mxu0  ;;  %v12665_v44 = vpop.f32.mrf.mxu1 }
 0x247   : > { %v2483_v6 = vpop.f32.mrf.mxu0  ;;  %v2827_v2 = vpop.f32.mrf.mxu1  ;;  %12910 = vmatmul.mubr.msk.f32.gmra.mxu0 %vm525_vm2, %v15439_v38  ;;  %13005 = vmatmul.mubr.msk.f32.gmra.mxu1 %vm525_vm2, %v15973_v28 }
 0x248   : > { %v15980_v63 = vadd.f32 %v2483_v6, %v15446_v14  ;;  %v15983_v7 = vadd.f32 %v2827_v2, %v15449_v11  ;;  %12912 = vmatprep.mubr.msk.f32.mxu0 %vm14006_vm1, %v18880_v39  ;;  %13007 = vmatprep.mubr.msk.f32.mxu1 %vm14006_vm1, %v18880_v39  ;;  %v16007_v2 = vld [vmem:[%s14077_s10 + $0x135] ss:$2 sm:$0xff] }
 0x249   : > { %v12670_v32 = vpop.f32.mrf.mxu0  ;;  %v12765_v38 = vpop.f32.mrf.mxu1 }
 0x24b   : > { %v2488_v60 = vpop.f32.mrf.mxu0  ;;  %v2832_v44 = vpop.f32.mrf.mxu1  ;;  %12913 = vmatmul.mubr.msk.f32.gmra.mxu0 %vm525_vm2, %v15456_v58  ;;  %13008 = vmatmul.mubr.msk.f32.gmra.mxu1 %vm525_vm2, %v15990_v9 }
 0x24c   : > { %v15997_v14 = vadd.f32 %v2488_v60, %v15463_v23  ;;  %v16000_v11 = vadd.f32 %v2832_v44, %v15466_v19  ;;  %12915 = vmatprep.mubr.msk.f32.mxu0 %vm14006_vm1, %v18880_v39  ;;  %13010 = vmatprep.mubr.msk.f32.mxu1 %vm14006_vm1, %v18880_v39  ;;  %v16024_v60 = vld [vmem:[%s14077_s10 + $0x145] ss:$2 sm:$0xff] }
 0x24d   : > { %v12673_v6 = vpop.f32.mrf.mxu0  ;;  %v12768_v58 = vpop.f32.mrf.mxu1 }
 0x24f   : > { %v2493_v32 = vpop.f32.mrf.mxu0  ;;  %v2837_v38 = vpop.f32.mrf.mxu1  ;;  %12916 = vmatmul.mubr.msk.f32.gmra.mxu0 %vm525_vm2, %v15473_v12  ;;  %13011 = vmatmul.mubr.msk.f32.gmra.mxu1 %vm525_vm2, %v16007_v2 }
 0x250   : > { %v16014_v23 = vadd.f32 %v2493_v32, %v15480_v29  ;;  %v16017_v19 = vadd.f32 %v2837_v38, %v15483_v20  ;;  %12918 = vmatprep.mubr.msk.f32.mxu0 %vm14006_vm1, %v18880_v39  ;;  %13013 = vmatprep.mubr.msk.f32.mxu1 %vm14006_vm1, %v18880_v39  ;;  %v16041_v32 = vld [vmem:[%s14077_s10 + $0x155] ss:$2 sm:$0xff] }
 0x251   : > { %v12676_v44 = vpop.f32.mrf.mxu0  ;;  %v12771_v12 = vpop.f32.mrf.mxu1 }
 0x253   : > { %v2498_v6 = vpop.f32.mrf.mxu0  ;;  %v2842_v58 = vpop.f32.mrf.mxu1  ;;  %12919 = vmatmul.mubr.msk.f32.gmra.mxu0 %vm525_vm2, %v15490_v13  ;;  %13014 = vmatmul.mubr.msk.f32.gmra.mxu1 %vm525_vm2, %v16024_v60 }
 0x254   : > { %v16031_v29 = vadd.f32 %v2498_v6, %v15497_v35  ;;  %v16034_v20 = vadd.f32 %v2842_v58, %v15500_v24  ;;  %12921 = vmatprep.mubr.msk.f32.mxu0 %vm14006_vm1, %v18880_v39  ;;  %13016 = vmatprep.mubr.msk.f32.mxu1 %vm14006_vm1, %v18880_v39  ;;  %v16058_v6 = vld [vmem:[%s14077_s10 + $0x165] ss:$2 sm:$0xff] }
 0x255   : > { %v12679_v38 = vpop.f32.mrf.mxu0  ;;  %v12774_v13 = vpop.f32.mrf.mxu1 }
 0x257   : > { %v2503_v44 = vpop.f32.mrf.mxu0  ;;  %v2847_v12 = vpop.f32.mrf.mxu1  ;;  %12922 = vmatmul.mubr.msk.f32.gmra.mxu0 %vm525_vm2, %v15507_v22  ;;  %13017 = vmatmul.mubr.msk.f32.gmra.mxu1 %vm525_vm2, %v16041_v32 }
 0x258   : > { %v16048_v35 = vadd.f32 %v2503_v44, %v15514_v41  ;;  %v16051_v24 = vadd.f32 %v2847_v12, %v15517_v30  ;;  %12924 = vmatprep.mubr.msk.f32.mxu0 %vm14006_vm1, %v18880_v39  ;;  %13019 = vmatprep.mubr.msk.f32.mxu1 %vm14006_vm1, %v18880_v39  ;;  %v16075_v44 = vld [vmem:[%s14077_s10 + $0x175] ss:$2 sm:$0xff] }
 0x259   : > { %v12682_v58 = vpop.f32.mrf.mxu0  ;;  %v12777_v22 = vpop.f32.mrf.mxu1 }
 0x25b   : > { %v2508_v38 = vpop.f32.mrf.mxu0  ;;  %v2852_v13 = vpop.f32.mrf.mxu1  ;;  %12925 = vmatmul.mubr.msk.f32.gmra.mxu0 %vm525_vm2, %v15524_v0  ;;  %13020 = vmatmul.mubr.msk.f32.gmra.mxu1 %vm525_vm2, %v16058_v6 }
 0x25c   : > { %v16065_v41 = vadd.f32 %v2508_v38, %v15531_v43  ;;  %v16068_v30 = vadd.f32 %v2852_v13, %v15534_v36  ;;  %12927 = vmatprep.mubr.msk.f32.mxu0 %vm14006_vm1, %v18880_v39  ;;  %13022 = vmatprep.mubr.msk.f32.mxu1 %vm14006_vm1, %v18880_v39  ;;  %v16092_v38 = vld [vmem:[%s14077_s10 + $0x185] ss:$2 sm:$0xff] }
 0x25d   : > { %v12685_v12 = vpop.f32.mrf.mxu0  ;;  %v12780_v0 = vpop.f32.mrf.mxu1 }
 0x25f   : > { %v2513_v58 = vpop.f32.mrf.mxu0  ;;  %v2857_v22 = vpop.f32.mrf.mxu1  ;;  %12928 = vmatmul.mubr.msk.f32.gmra.mxu0 %vm525_vm2, %v15541_v50  ;;  %13023 = vmatmul.mubr.msk.f32.gmra.mxu1 %vm525_vm2, %v16075_v44 }
 0x260   : > { %v16082_v43 = vadd.f32 %v2513_v58, %v15548_v45  ;;  %v16085_v36 = vadd.f32 %v2857_v22, %v15551_v42  ;;  %12930 = vmatprep.mubr.msk.f32.mxu0 %vm14006_vm1, %v18880_v39  ;;  %13025 = vmatprep.mubr.msk.f32.mxu1 %vm14006_vm1, %v18880_v39  ;;  %v16109_v58 = vld [vmem:[%s14077_s10 + $0x195] ss:$2 sm:$0xff] }
 0x261   : > { %v12688_v13 = vpop.f32.mrf.mxu0  ;;  %v12783_v50 = vpop.f32.mrf.mxu1 }
 0x263   : > { %v2518_v12 = vpop.f32.mrf.mxu0  ;;  %v2862_v0 = vpop.f32.mrf.mxu1  ;;  %12931 = vmatmul.mubr.msk.f32.gmra.mxu0 %vm525_vm2, %v15558_v15  ;;  %13026 = vmatmul.mubr.msk.f32.gmra.mxu1 %vm525_vm2, %v16092_v38 }
 0x264   : > { %v16099_v45 = vadd.f32 %v2518_v12, %v15565_v47  ;;  %v16102_v42 = vadd.f32 %v2862_v0, %v15568_v52  ;;  %12933 = vmatprep.mubr.msk.f32.mxu0 %vm14006_vm1, %v18880_v39  ;;  %13028 = vmatprep.mubr.msk.f32.mxu1 %vm14006_vm1, %v18880_v39  ;;  %v16126_v12 = vld [vmem:[%s14077_s10 + $0x1a5] ss:$2 sm:$0xff] }
 0x265   : > { %v12691_v22 = vpop.f32.mrf.mxu0  ;;  %v12786_v15 = vpop.f32.mrf.mxu1 }
 0x267   : > { %v2523_v13 = vpop.f32.mrf.mxu0  ;;  %v2867_v50 = vpop.f32.mrf.mxu1  ;;  %12934 = vmatmul.mubr.msk.f32.gmra.mxu0 %vm525_vm2, %v15575_v16  ;;  %13029 = vmatmul.mubr.msk.f32.gmra.mxu1 %vm525_vm2, %v16109_v58 }
 0x268   : > { %v16116_v47 = vadd.f32 %v2523_v13, %v15582_v49  ;;  %v16119_v52 = vadd.f32 %v2867_v50, %v15585_v62  ;;  %12936 = vmatprep.mubr.msk.f32.mxu0 %vm14006_vm1, %v18880_v39  ;;  %13031 = vmatprep.mubr.msk.f32.mxu1 %vm14006_vm1, %v18880_v39  ;;  %v16143_v13 = vld [vmem:[%s14077_s10 + $0x1b5] ss:$2 sm:$0xff] }
 0x269   : > { %v12694_v0 = vpop.f32.mrf.mxu0  ;;  %v12789_v16 = vpop.f32.mrf.mxu1 }
 0x26b   : > { %v2528_v22 = vpop.f32.mrf.mxu0  ;;  %v2872_v15 = vpop.f32.mrf.mxu1  ;;  %12937 = vmatmul.mubr.msk.f32.gmra.mxu0 %vm525_vm2, %v15592_v17  ;;  %13032 = vmatmul.mubr.msk.f32.gmra.mxu1 %vm525_vm2, %v16126_v12 }
 0x26c   : > { %v16133_v49 = vadd.f32 %v2528_v22, %v15599_v51  ;;  %v16136_v62 = vadd.f32 %v2872_v15, %v15602_v25  ;;  %12939 = vmatprep.mubr.msk.f32.mxu0 %vm14006_vm1, %v18880_v39  ;;  %13034 = vmatprep.mubr.msk.f32.mxu1 %vm14006_vm1, %v18880_v39  ;;  %v18945_v25 = vld [vmem:[#allocation43_spill] sm:$0xff]  ;;  %v16160_v15 = vld [vmem:[%s14077_s10 + $0x1c5] ss:$2 sm:$0xff] }
 0x26d   : > { %v12697_v50 = vpop.f32.mrf.mxu0  ;;  %v12792_v17 = vpop.f32.mrf.mxu1 }
 0x26e   : > { %18943 = vst [vmem:[#allocation41_spill] sm:$0xff] %v16136_v62 }
 0x26f   : > { %v2533_v0 = vpop.f32.mrf.mxu0  ;;  %v2877_v16 = vpop.f32.mrf.mxu1  ;;  %12940 = vmatmul.mubr.msk.f32.gmra.mxu0 %vm525_vm2, %v15609_v18  ;;  %13035 = vmatmul.mubr.msk.f32.gmra.mxu1 %vm525_vm2, %v16143_v13 }
 0x270   : > { %v16150_v51 = vadd.f32 %v2533_v0, %v15616_v53  ;;  %v16153_v22 = vadd.f32 %v2877_v16, %v18945_v25  ;;  %12942 = vmatprep.mubr.msk.f32.mxu0 %vm14006_vm1, %v18880_v39  ;;  %13037 = vmatprep.mubr.msk.f32.mxu1 %vm14006_vm1, %v18880_v39  ;;  %v18947_v53 = vld [vmem:[#allocation44_spill] sm:$0xff]  ;;  %v18948_v16 = vld [vmem:[#allocation23_spill] sm:$0xff] }
 0x271   : > { %v12700_v50 = vpop.f32.mrf.mxu0  ;;  %v12795_v18 = vpop.f32.mrf.mxu1 }
 0x272   : > { %18944 = vst [vmem:[#allocation22_spill] sm:$0xff] %v16150_v51  ;;  %18946 = vst [vmem:[#allocation42_spill] sm:$0xff] %v16153_v22  ;;  %v16177_v50 = vld [vmem:[%s14077_s10 + $0x1d5] ss:$2 sm:$0xff] }
 0x273   : > { %v2538_v17 = vpop.f32.mrf.mxu0  ;;  %v2882_v62 = vpop.f32.mrf.mxu1  ;;  %12943 = vmatmul.mubr.msk.f32.gmra.mxu0 %vm525_vm2, %v15626_v10  ;;  %13038 = vmatmul.mubr.msk.f32.gmra.mxu1 %vm525_vm2, %v16160_v15  ;;  %18950 = vst [vmem:[#allocation44_spill] sm:$0xff] %v16177_v50 }
 0x274   : > { %v16167_v0 = vadd.f32 %v2538_v17, %v18947_v53  ;;  %v16170_v25 = vadd.f32 %v2882_v62, %v18948_v16  ;;  %12945 = vmatprep.mubr.msk.f32.mxu0 %vm14006_vm1, %v18880_v39  ;;  %13040 = vmatprep.mubr.msk.f32.mxu1 %vm14006_vm1, %v18880_v39  ;;  %v18951_v17 = vld [vmem:[#allocation4_spill] sm:$0xff] }
 0x275   : > { %v12703_v18 = vpop.f32.mrf.mxu0  ;;  %v12798_v10 = vpop.f32.mrf.mxu1  ;;  %v16194_v16 = vld [vmem:[%s14077_s10 + $0x1e5] ss:$2 sm:$0xff] }
 0x276   : > { %18949 = vst [vmem:[#allocation43_spill] sm:$0xff] %v16170_v25  ;;  %18953 = vst [vmem:[#allocation4_spill] sm:$0xff] %v16194_v16 }
 0x277   : > { %v2543_v22 = vpop.f32.mrf.mxu0  ;;  %v2887_v51 = vpop.f32.mrf.mxu1  ;;  %12946 = vmatmul.mubr.msk.f32.gmra.mxu0 %vm525_vm2, %v15643_v5  ;;  %13041 = vmatmul.mubr.msk.f32.gmra.mxu1 %vm525_vm2, %v16177_v50  ;;  %v18954_v50 = vld [vmem:[#allocation24_spill] sm:$0xff] }
 0x278   : > { %v16184_v62 = vadd.f32 %v2543_v22, %v15650_v8  ;;  %v16187_v53 = vadd.f32 %v2887_v51, %v18951_v17  ;;  %12948 = vmatprep.mubr.msk.f32.mxu0 %vm14006_vm1, %v18880_v39  ;;  %13043 = vmatprep.mubr.msk.f32.mxu1 %vm14006_vm1, %v18880_v39  ;;  %v18955_v8 = vld [vmem:[#allocation5_spill] sm:$0xff] }
 0x279   : > { %v12706_v18 = vpop.f32.mrf.mxu0  ;;  %v12801_v5 = vpop.f32.mrf.mxu1  ;;  %v18957_v22 = vld [vmem:[#allocation45_spill] sm:$0xff] }
 0x27a   : > { %18952 = vst [vmem:[#allocation23_spill] sm:$0xff] %v16187_v53  ;;  %v16211_v18 = vld [vmem:[%s14077_s10 + $0x6] ss:$2 sm:$0xff] }
 0x27b   : > { %v2548_v10 = vpop.f32.mrf.mxu0  ;;  %v2892_v25 = vpop.f32.mrf.mxu1  ;;  %12949 = vmatmul.mubr.msk.f32.gmra.mxu0 %vm525_vm2, %v18954_v50  ;;  %13044 = vmatmul.mubr.msk.f32.gmra.mxu1 %vm525_vm2, %v16194_v16  ;;  %v339_v16 = vld [vmem:[%s18806_s1 + $0x18] sm:$0x7] }
 0x27c   : > { %v16201_v51 = vadd.f32 %v2548_v10, %v18955_v8  ;;  %v16204_v17 = vadd.f32 %v2892_v25, %v18957_v22  ;;  %13048 = vmatprep.mubr.msk.f32.mxu0 %vm14006_vm1, %v18880_v39  ;;  %13143 = vmatprep.mubr.msk.f32.mxu1 %vm14006_vm1, %v18880_v39  ;;  %v18959_v25 = vld [vmem:[#allocation25_spill] sm:$0xff] }
 0x27d   : > { %v12709_v5 = vpop.f32.mrf.mxu0  ;;  %v12804_v50 = vpop.f32.mrf.mxu1 }
 0x27e   : > { %18956 = vst [vmem:[#allocation24_spill] sm:$0xff] %v16201_v51  ;;  %18958 = vst [vmem:[#allocation5_spill] sm:$0xff] %v16204_v17  ;;  %v18961_v17 = vld [vmem:[#allocation6_spill] sm:$0xff] }
 0x27f   : > { %v2553_v10 = vpop.f32.mrf.mxu0  ;;  %v2897_v8 = vpop.f32.mrf.mxu1  ;;  %13049 = vmatmul.mubr.msk.f32.vlgmr.msra.gmra.mxu0 %vm525_vm2, %v15677_v3  ;;  %13144 = vmatmul.mubr.msk.f32.vlgmr.msra.gmra.mxu1 %vm525_vm2, %v16211_v18  ;;  %v16229_v5 = vld [vmem:[%s14077_s10 + $0x16] ss:$2 sm:$0xff] }
 0x280   : > { %v16221_v22 = vadd.f32 %v2553_v10, %v18959_v25  ;;  %v16224_v51 = vadd.f32 %v2897_v8, %v18961_v17  ;;  %13237 = vmatpush3.msk.msra.mxu0 %vm619_vm0, %v339_v16  ;;  %13332 = vmatpush3.msk.msra.mxu1 %vm619_vm0, %v339_v16  ;;  %v18963_v17 = vld [vmem:[#allocation26_spill] sm:$0xff]  ;;  %v18965_v8 = vld [vmem:[#allocation7_spill] sm:$0xff] }
 0x281   : > { %v12712_v50 = vpop.f32.mrf.mxu0  ;;  %v12807_v53 = vpop.f32.mrf.mxu1  ;;  %13051 = vmatprep.mubr.msk.f32.mxu0 %vm14006_vm1, %v18880_v39  ;;  %13146 = vmatprep.mubr.msk.f32.mxu1 %vm14006_vm1, %v18880_v39  ;;  %v16250_v25 = vld [vmem:[%s14077_s10 + $0x26] ss:$2 sm:$0xff] }
 0x282   : > { %18960 = vst [vmem:[#allocation45_spill] sm:$0xff] %v16221_v22  ;;  %18962 = vst [vmem:[#allocation25_spill] sm:$0xff] %v16224_v51 }
 0x283   : > { %v2558_v3 = vpop.f32.mrf.mxu0  ;;  %v2902_v10 = vpop.f32.mrf.mxu1  ;;  %13052 = vmatmul.mubr.msk.f32.gmra.mxu0 %vm525_vm2, %v15695_v31  ;;  %13147 = vmatmul.mubr.msk.f32.gmra.mxu1 %vm525_vm2, %v16229_v5 }
 0x284   : > { %v16240_v16 = vadd.f32 %v2558_v3, %v18963_v17  ;;  %v16243_v53 = vadd.f32 %v2902_v10, %v18965_v8  ;;  %13054 = vmatprep.mubr.msk.f32.mxu0 %vm14006_vm1, %v18880_v39  ;;  %13149 = vmatprep.mubr.msk.f32.mxu1 %vm14006_vm1, %v18880_v39  ;;  %v18967_v3 = vld [vmem:[#allocation27_spill] sm:$0xff]  ;;  %v18969_v17 = vld [vmem:[#allocation8_spill] sm:$0xff] }
 0x285   : > { %v12715_v50 = vpop.f32.mrf.mxu0  ;;  %v12810_v31 = vpop.f32.mrf.mxu1 }
 0x286   : > { %18964 = vst [vmem:[#allocation6_spill] sm:$0xff] %v16240_v16  ;;  %18966 = vst [vmem:[#allocation26_spill] sm:$0xff] %v16243_v53  ;;  %v16267_v50 = vld [vmem:[%s14077_s10 + $0x36] ss:$2 sm:$0xff] }
 0x287   : > { %v2563_v51 = vpop.f32.mrf.mxu0  ;;  %v2907_v22 = vpop.f32.mrf.mxu1  ;;  %13055 = vmatmul.mubr.msk.f32.gmra.mxu0 %vm525_vm2, %v15718_v27  ;;  %13150 = vmatmul.mubr.msk.f32.gmra.mxu1 %vm525_vm2, %v16250_v25 }
 0x288   : > { %v16257_v10 = vadd.f32 %v2563_v51, %v18967_v3  ;;  %v16260_v8 = vadd.f32 %v2907_v22, %v18969_v17  ;;  %13057 = vmatprep.mubr.msk.f32.mxu0 %vm14006_vm1, %v18880_v39  ;;  %13152 = vmatprep.mubr.msk.f32.mxu1 %vm14006_vm1, %v18880_v39  ;;  %v18971_v51 = vld [vmem:[#allocation28_spill] sm:$0xff]  ;;  %v18973_v3 = vld [vmem:[#allocation9_spill] sm:$0xff] }
 0x289   : > { %v12718_v31 = vpop.f32.mrf.mxu0  ;;  %v12813_v27 = vpop.f32.mrf.mxu1 }
 0x28a   : > { %18968 = vst [vmem:[#allocation7_spill] sm:$0xff] %v16257_v10  ;;  %18970 = vst [vmem:[#allocation27_spill] sm:$0xff] %v16260_v8  ;;  %v16284_v31 = vld [vmem:[%s14077_s10 + $0x46] ss:$2 sm:$0xff] }
 0x28b   : > { %v2568_v53 = vpop.f32.mrf.mxu0  ;;  %v2912_v16 = vpop.f32.mrf.mxu1  ;;  %13058 = vmatmul.mubr.msk.f32.gmra.mxu0 %vm525_vm2, %v15735_v61  ;;  %13153 = vmatmul.mubr.msk.f32.gmra.mxu1 %vm525_vm2, %v16267_v50 }
 0x28c   : > { %v16274_v22 = vadd.f32 %v2568_v53, %v18971_v51  ;;  %v16277_v17 = vadd.f32 %v2912_v16, %v18973_v3  ;;  %13060 = vmatprep.mubr.msk.f32.mxu0 %vm14006_vm1, %v18880_v39  ;;  %13155 = vmatprep.mubr.msk.f32.mxu1 %vm14006_vm1, %v18880_v39  ;;  %v18975_v16 = vld [vmem:[#allocation29_spill] sm:$0xff]  ;;  %v18977_v51 = vld [vmem:[#allocation10_spill] sm:$0xff] }
 0x28d   : > { %v12721_v27 = vpop.f32.mrf.mxu0  ;;  %v12816_v61 = vpop.f32.mrf.mxu1 }
 0x28e   : > { %18972 = vst [vmem:[#allocation8_spill] sm:$0xff] %v16274_v22  ;;  %18974 = vst [vmem:[#allocation28_spill] sm:$0xff] %v16277_v17  ;;  %v16301_v27 = vld [vmem:[%s14077_s10 + $0x56] ss:$2 sm:$0xff] }
 0x28f   : > { %v2573_v8 = vpop.f32.mrf.mxu0  ;;  %v2917_v10 = vpop.f32.mrf.mxu1  ;;  %13061 = vmatmul.mubr.msk.f32.gmra.mxu0 %vm525_vm2, %v15752_v40  ;;  %13156 = vmatmul.mubr.msk.f32.gmra.mxu1 %vm525_vm2, %v16284_v31 }
 0x290   : > { %v16291_v53 = vadd.f32 %v2573_v8, %v18975_v16  ;;  %v16294_v3 = vadd.f32 %v2917_v10, %v18977_v51  ;;  %13063 = vmatprep.mubr.msk.f32.mxu0 %vm14006_vm1, %v18880_v39  ;;  %13158 = vmatprep.mubr.msk.f32.mxu1 %vm14006_vm1, %v18880_v39  ;;  %v18979_v10 = vld [vmem:[#allocation30_spill] sm:$0xff]  ;;  %v18981_v16 = vld [vmem:[#allocation11_spill] sm:$0xff] }
 0x291   : > { %v12724_v61 = vpop.f32.mrf.mxu0  ;;  %v12819_v40 = vpop.f32.mrf.mxu1 }
 0x292   : > { %18976 = vst [vmem:[#allocation9_spill] sm:$0xff] %v16291_v53  ;;  %18978 = vst [vmem:[#allocation29_spill] sm:$0xff] %v16294_v3  ;;  %v16318_v61 = vld [vmem:[%s14077_s10 + $0x66] ss:$2 sm:$0xff] }
 0x293   : > { %v2578_v17 = vpop.f32.mrf.mxu0  ;;  %v2922_v22 = vpop.f32.mrf.mxu1  ;;  %13064 = vmatmul.mubr.msk.f32.gmra.mxu0 %vm525_vm2, %v15769_v26  ;;  %13159 = vmatmul.mubr.msk.f32.gmra.mxu1 %vm525_vm2, %v16301_v27 }
 0x294   : > { %v16308_v8 = vadd.f32 %v2578_v17, %v18979_v10  ;;  %v16311_v51 = vadd.f32 %v2922_v22, %v18981_v16  ;;  %13066 = vmatprep.mubr.msk.f32.mxu0 %vm14006_vm1, %v18880_v39  ;;  %13161 = vmatprep.mubr.msk.f32.mxu1 %vm14006_vm1, %v18880_v39  ;;  %v18983_v22 = vld [vmem:[#allocation31_spill] sm:$0xff]  ;;  %v18985_v10 = vld [vmem:[#allocation12_spill] sm:$0xff] }
 0x295   : > { %v12727_v40 = vpop.f32.mrf.mxu0  ;;  %v12822_v26 = vpop.f32.mrf.mxu1 }
 0x296   : > { %18980 = vst [vmem:[#allocation10_spill] sm:$0xff] %v16308_v8  ;;  %18982 = vst [vmem:[#allocation30_spill] sm:$0xff] %v16311_v51  ;;  %v16335_v40 = vld [vmem:[%s14077_s10 + $0x76] ss:$2 sm:$0xff] }
 0x297   : > { %v2583_v3 = vpop.f32.mrf.mxu0  ;;  %v2927_v53 = vpop.f32.mrf.mxu1  ;;  %13067 = vmatmul.mubr.msk.f32.gmra.mxu0 %vm525_vm2, %v15786_v48  ;;  %13162 = vmatmul.mubr.msk.f32.gmra.mxu1 %vm525_vm2, %v16318_v61 }
 0x298   : > { %v16325_v17 = vadd.f32 %v2583_v3, %v18983_v22  ;;  %v16328_v16 = vadd.f32 %v2927_v53, %v18985_v10  ;;  %13069 = vmatprep.mubr.msk.f32.mxu0 %vm14006_vm1, %v18880_v39  ;;  %13164 = vmatprep.mubr.msk.f32.mxu1 %vm14006_vm1, %v18880_v39  ;;  %v18987_v53 = vld [vmem:[#allocation32_spill] sm:$0xff]  ;;  %v18989_v22 = vld [vmem:[#allocation13_spill] sm:$0xff] }
 0x299   : > { %v12730_v26 = vpop.f32.mrf.mxu0  ;;  %v12825_v48 = vpop.f32.mrf.mxu1 }
 0x29a   : > { %18984 = vst [vmem:[#allocation11_spill] sm:$0xff] %v16325_v17  ;;  %18986 = vst [vmem:[#allocation31_spill] sm:$0xff] %v16328_v16  ;;  %v16352_v26 = vld [vmem:[%s14077_s10 + $0x86] ss:$2 sm:$0xff] }
 0x29b   : > { %v2588_v51 = vpop.f32.mrf.mxu0  ;;  %v2932_v8 = vpop.f32.mrf.mxu1  ;;  %13070 = vmatmul.mubr.msk.f32.gmra.mxu0 %vm525_vm2, %v15803_v59  ;;  %13165 = vmatmul.mubr.msk.f32.gmra.mxu1 %vm525_vm2, %v16335_v40 }
 0x29c   : > { %v16342_v3 = vadd.f32 %v2588_v51, %v18987_v53  ;;  %v16345_v10 = vadd.f32 %v2932_v8, %v18989_v22  ;;  %13072 = vmatprep.mubr.msk.f32.mxu0 %vm14006_vm1, %v18880_v39  ;;  %13167 = vmatprep.mubr.msk.f32.mxu1 %vm14006_vm1, %v18880_v39  ;;  %v18991_v8 = vld [vmem:[#allocation33_spill] sm:$0xff]  ;;  %v18993_v53 = vld [vmem:[#allocation14_spill] sm:$0xff] }
 0x29d   : > { %v12733_v48 = vpop.f32.mrf.mxu0  ;;  %v12828_v59 = vpop.f32.mrf.mxu1 }
 0x29e   : > { %18988 = vst [vmem:[#allocation12_spill] sm:$0xff] %v16342_v3  ;;  %18990 = vst [vmem:[#allocation32_spill] sm:$0xff] %v16345_v10  ;;  %v16369_v48 = vld [vmem:[%s14077_s10 + $0x96] ss:$2 sm:$0xff] }
 0x29f   : > { %v2593_v16 = vpop.f32.mrf.mxu0  ;;  %v2937_v17 = vpop.f32.mrf.mxu1  ;;  %13073 = vmatmul.mubr.msk.f32.gmra.mxu0 %vm525_vm2, %v15820_v37  ;;  %13168 = vmatmul.mubr.msk.f32.gmra.mxu1 %vm525_vm2, %v16352_v26 }
 0x2a0   : > { %v16359_v51 = vadd.f32 %v2593_v16, %v18991_v8  ;;  %v16362_v22 = vadd.f32 %v2937_v17, %v18993_v53  ;;  %13075 = vmatprep.mubr.msk.f32.mxu0 %vm14006_vm1, %v18880_v39  ;;  %13170 = vmatprep.mubr.msk.f32.mxu1 %vm14006_vm1, %v18880_v39  ;;  %v18995_v17 = vld [vmem:[#allocation34_spill] sm:$0xff]  ;;  %v18997_v8 = vld [vmem:[#allocation15_spill] sm:$0xff] }
 0x2a1   : > { %v12736_v59 = vpop.f32.mrf.mxu0  ;;  %v12831_v37 = vpop.f32.mrf.mxu1 }
 0x2a2   : > { %18992 = vst [vmem:[#allocation13_spill] sm:$0xff] %v16359_v51  ;;  %18994 = vst [vmem:[#allocation33_spill] sm:$0xff] %v16362_v22  ;;  %v16386_v59 = vld [vmem:[%s14077_s10 + $0xa6] ss:$2 sm:$0xff] }
 0x2a3   : > { %v2598_v10 = vpop.f32.mrf.mxu0  ;;  %v2942_v3 = vpop.f32.mrf.mxu1  ;;  %13076 = vmatmul.mubr.msk.f32.gmra.mxu0 %vm525_vm2, %v15837_v21  ;;  %13171 = vmatmul.mubr.msk.f32.gmra.mxu1 %vm525_vm2, %v16369_v48 }
 0x2a4   : > { %v16376_v16 = vadd.f32 %v2598_v10, %v18995_v17  ;;  %v16379_v53 = vadd.f32 %v2942_v3, %v18997_v8  ;;  %13078 = vmatprep.mubr.msk.f32.mxu0 %vm14006_vm1, %v18880_v39  ;;  %13173 = vmatprep.mubr.msk.f32.mxu1 %vm14006_vm1, %v18880_v39  ;;  %v18999_v3 = vld [vmem:[#allocation35_spill] sm:$0xff]  ;;  %v19001_v17 = vld [vmem:[#allocation16_spill] sm:$0xff] }
 0x2a5   : > { %v12739_v37 = vpop.f32.mrf.mxu0  ;;  %v12834_v21 = vpop.f32.mrf.mxu1 }
 0x2a6   : > { %18996 = vst [vmem:[#allocation14_spill] sm:$0xff] %v16376_v16  ;;  %18998 = vst [vmem:[#allocation34_spill] sm:$0xff] %v16379_v53  ;;  %v16403_v37 = vld [vmem:[%s14077_s10 + $0xb6] ss:$2 sm:$0xff] }
 0x2a7   : > { %v2603_v22 = vpop.f32.mrf.mxu0  ;;  %v2947_v51 = vpop.f32.mrf.mxu1  ;;  %13079 = vmatmul.mubr.msk.f32.gmra.mxu0 %vm525_vm2, %v15854_v33  ;;  %13174 = vmatmul.mubr.msk.f32.gmra.mxu1 %vm525_vm2, %v16386_v59 }
 0x2a8   : > { %v16393_v10 = vadd.f32 %v2603_v22, %v18999_v3  ;;  %v16396_v8 = vadd.f32 %v2947_v51, %v19001_v17  ;;  %13081 = vmatprep.mubr.msk.f32.mxu0 %vm14006_vm1, %v18880_v39  ;;  %13176 = vmatprep.mubr.msk.f32.mxu1 %vm14006_vm1, %v18880_v39  ;;  %v19003_v51 = vld [vmem:[#allocation36_spill] sm:$0xff]  ;;  %v19005_v3 = vld [vmem:[#allocation17_spill] sm:$0xff] }
 0x2a9   : > { %v12742_v21 = vpop.f32.mrf.mxu0  ;;  %v12837_v33 = vpop.f32.mrf.mxu1 }
 0x2aa   : > { %19000 = vst [vmem:[#allocation15_spill] sm:$0xff] %v16393_v10  ;;  %19002 = vst [vmem:[#allocation35_spill] sm:$0xff] %v16396_v8  ;;  %v16420_v21 = vld [vmem:[%s14077_s10 + $0xc6] ss:$2 sm:$0xff] }
 0x2ab   : > { %v2608_v53 = vpop.f32.mrf.mxu0  ;;  %v2952_v16 = vpop.f32.mrf.mxu1  ;;  %13082 = vmatmul.mubr.msk.f32.gmra.mxu0 %vm525_vm2, %v15871_v46  ;;  %13177 = vmatmul.mubr.msk.f32.gmra.mxu1 %vm525_vm2, %v16403_v37 }
 0x2ac   : > { %v16410_v22 = vadd.f32 %v2608_v53, %v19003_v51  ;;  %v16413_v17 = vadd.f32 %v2952_v16, %v19005_v3  ;;  %13084 = vmatprep.mubr.msk.f32.mxu0 %vm14006_vm1, %v18880_v39  ;;  %13179 = vmatprep.mubr.msk.f32.mxu1 %vm14006_vm1, %v18880_v39  ;;  %v19007_v16 = vld [vmem:[#allocation37_spill] sm:$0xff]  ;;  %v19009_v51 = vld [vmem:[#allocation18_spill] sm:$0xff] }
 0x2ad   : > { %v12745_v33 = vpop.f32.mrf.mxu0  ;;  %v12840_v46 = vpop.f32.mrf.mxu1 }
 0x2ae   : > { %19004 = vst [vmem:[#allocation16_spill] sm:$0xff] %v16410_v22  ;;  %19006 = vst [vmem:[#allocation36_spill] sm:$0xff] %v16413_v17  ;;  %v16437_v33 = vld [vmem:[%s14077_s10 + $0xd6] ss:$2 sm:$0xff] }
 0x2af   : > { %v2613_v8 = vpop.f32.mrf.mxu0  ;;  %v2957_v10 = vpop.f32.mrf.mxu1  ;;  %13085 = vmatmul.mubr.msk.f32.gmra.mxu0 %vm525_vm2, %v15888_v4  ;;  %13180 = vmatmul.mubr.msk.f32.gmra.mxu1 %vm525_vm2, %v16420_v21 }
 0x2b0   : > { %v16427_v53 = vadd.f32 %v2613_v8, %v19007_v16  ;;  %v16430_v3 = vadd.f32 %v2957_v10, %v19009_v51  ;;  %13087 = vmatprep.mubr.msk.f32.mxu0 %vm14006_vm1, %v18880_v39  ;;  %13182 = vmatprep.mubr.msk.f32.mxu1 %vm14006_vm1, %v18880_v39  ;;  %v19011_v10 = vld [vmem:[#allocation38_spill] sm:$0xff]  ;;  %v19013_v16 = vld [vmem:[#allocation19_spill] sm:$0xff] }
 0x2b1   : > { %v12748_v46 = vpop.f32.mrf.mxu0  ;;  %v12843_v4 = vpop.f32.mrf.mxu1 }
 0x2b2   : > { %19008 = vst [vmem:[#allocation17_spill] sm:$0xff] %v16427_v53  ;;  %19010 = vst [vmem:[#allocation37_spill] sm:$0xff] %v16430_v3  ;;  %v16454_v46 = vld [vmem:[%s14077_s10 + $0xe6] ss:$2 sm:$0xff] }
 0x2b3   : > { %v2618_v17 = vpop.f32.mrf.mxu0  ;;  %v2962_v22 = vpop.f32.mrf.mxu1  ;;  %13088 = vmatmul.mubr.msk.f32.gmra.mxu0 %vm525_vm2, %v15905_v34  ;;  %13183 = vmatmul.mubr.msk.f32.gmra.mxu1 %vm525_vm2, %v16437_v33 }
 0x2b4   : > { %v16444_v8 = vadd.f32 %v2618_v17, %v19011_v10  ;;  %v16447_v51 = vadd.f32 %v2962_v22, %v19013_v16  ;;  %13090 = vmatprep.mubr.msk.f32.mxu0 %vm14006_vm1, %v18880_v39  ;;  %13185 = vmatprep.mubr.msk.f32.mxu1 %vm14006_vm1, %v18880_v39  ;;  %v19015_v22 = vld [vmem:[#allocation39_spill] sm:$0xff]  ;;  %v19017_v10 = vld [vmem:[#allocation20_spill] sm:$0xff] }
 0x2b5   : > { %v12751_v4 = vpop.f32.mrf.mxu0  ;;  %v12846_v34 = vpop.f32.mrf.mxu1 }
 0x2b6   : > { %19012 = vst [vmem:[#allocation18_spill] sm:$0xff] %v16444_v8  ;;  %19014 = vst [vmem:[#allocation38_spill] sm:$0xff] %v16447_v51  ;;  %v16471_v4 = vld [vmem:[%s14077_s10 + $0xf6] ss:$2 sm:$0xff] }
 0x2b7   : > { %v2623_v3 = vpop.f32.mrf.mxu0  ;;  %v2967_v53 = vpop.f32.mrf.mxu1  ;;  %13091 = vmatmul.mubr.msk.f32.gmra.mxu0 %vm525_vm2, %v15922_v56  ;;  %13186 = vmatmul.mubr.msk.f32.gmra.mxu1 %vm525_vm2, %v16454_v46 }
 0x2b8   : > { %v16461_v17 = vadd.f32 %v2623_v3, %v19015_v22  ;;  %v16464_v16 = vadd.f32 %v2967_v53, %v19017_v10  ;;  %13093 = vmatprep.mubr.msk.f32.mxu0 %vm14006_vm1, %v18880_v39  ;;  %13188 = vmatprep.mubr.msk.f32.mxu1 %vm14006_vm1, %v18880_v39  ;;  %v19019_v53 = vld [vmem:[#allocation40_spill] sm:$0xff]  ;;  %v19020_v22 = vld [vmem:[#allocation21_spill] sm:$0xff] }
 0x2b9   : > { %v12754_v34 = vpop.f32.mrf.mxu0  ;;  %v12849_v56 = vpop.f32.mrf.mxu1 }
 0x2ba   : > { %19016 = vst [vmem:[#allocation19_spill] sm:$0xff] %v16461_v17  ;;  %19018 = vst [vmem:[#allocation39_spill] sm:$0xff] %v16464_v16  ;;  %v16488_v34 = vld [vmem:[%s14077_s10 + $0x106] ss:$2 sm:$0xff] }
 0x2bb   : > { %v2628_v51 = vpop.f32.mrf.mxu0  ;;  %v2972_v8 = vpop.f32.mrf.mxu1  ;;  %13094 = vmatmul.mubr.msk.f32.gmra.mxu0 %vm525_vm2, %v15939_v1  ;;  %13189 = vmatmul.mubr.msk.f32.gmra.mxu1 %vm525_vm2, %v16471_v4 }
 0x2bc   : > { %v16478_v3 = vadd.f32 %v2628_v51, %v19019_v53  ;;  %v16481_v10 = vadd.f32 %v2972_v8, %v19020_v22  ;;  %13096 = vmatprep.mubr.msk.f32.mxu0 %vm14006_vm1, %v18880_v39  ;;  %13191 = vmatprep.mubr.msk.f32.mxu1 %vm14006_vm1, %v18880_v39  ;;  %v16505_v53 = vld [vmem:[%s14077_s10 + $0x116] ss:$2 sm:$0xff] }
 0x2bd   : > { %v12757_v56 = vpop.f32.mrf.mxu0  ;;  %v12852_v1 = vpop.f32.mrf.mxu1 }
 0x2bf   : > { %v2633_v16 = vpop.f32.mrf.mxu0  ;;  %v2977_v17 = vpop.f32.mrf.mxu1  ;;  %13097 = vmatmul.mubr.msk.f32.gmra.mxu0 %vm525_vm2, %v15956_v54  ;;  %13192 = vmatmul.mubr.msk.f32.gmra.mxu1 %vm525_vm2, %v16488_v34 }
 0x2c0   : > { %v16495_v8 = vadd.f32 %v2633_v16, %v15963_v57  ;;  %v16498_v51 = vadd.f32 %v2977_v17, %v15966_v55  ;;  %13099 = vmatprep.mubr.msk.f32.mxu0 %vm14006_vm1, %v18880_v39  ;;  %13194 = vmatprep.mubr.msk.f32.mxu1 %vm14006_vm1, %v18880_v39  ;;  %v16522_v17 = vld [vmem:[%s14077_s10 + $0x126] ss:$2 sm:$0xff] }
 0x2c1   : > { %v12760_v22 = vpop.f32.mrf.mxu0  ;;  %v12855_v54 = vpop.f32.mrf.mxu1 }
 0x2c3   : > { %v3143_v56 = vpop.f32.mrf.mxu0  ;;  %v3487_v1 = vpop.f32.mrf.mxu1  ;;  %13100 = vmatmul.mubr.msk.f32.gmra.mxu0 %vm525_vm2, %v15973_v28  ;;  %13195 = vmatmul.mubr.msk.f32.gmra.mxu1 %vm525_vm2, %v16505_v53 }
 0x2c4   : > { %v16512_v57 = vadd.f32 %v3143_v56, %v15980_v63  ;;  %v16515_v55 = vadd.f32 %v3487_v1, %v15983_v7  ;;  %13102 = vmatprep.mubr.msk.f32.mxu0 %vm14006_vm1, %v18880_v39  ;;  %13197 = vmatprep.mubr.msk.f32.mxu1 %vm14006_vm1, %v18880_v39  ;;  %v16539_v56 = vld [vmem:[%s14077_s10 + $0x136] ss:$2 sm:$0xff] }
 0x2c5   : > { %v12860_v16 = vpop.f32.mrf.mxu0  ;;  %v12955_v28 = vpop.f32.mrf.mxu1 }
 0x2c7   : > { %v3148_v22 = vpop.f32.mrf.mxu0  ;;  %v3492_v54 = vpop.f32.mrf.mxu1  ;;  %13103 = vmatmul.mubr.msk.f32.gmra.mxu0 %vm525_vm2, %v15990_v9  ;;  %13198 = vmatmul.mubr.msk.f32.gmra.mxu1 %vm525_vm2, %v16522_v17 }
 0x2c8   : > { %v16529_v63 = vadd.f32 %v3148_v22, %v15997_v14  ;;  %v16532_v7 = vadd.f32 %v3492_v54, %v16000_v11  ;;  %13105 = vmatprep.mubr.msk.f32.mxu0 %vm14006_vm1, %v18880_v39  ;;  %13200 = vmatprep.mubr.msk.f32.mxu1 %vm14006_vm1, %v18880_v39  ;;  %v16556_v22 = vld [vmem:[%s14077_s10 + $0x146] ss:$2 sm:$0xff] }
 0x2c9   : > { %v12863_v1 = vpop.f32.mrf.mxu0  ;;  %v12958_v9 = vpop.f32.mrf.mxu1 }
 0x2cb   : > { %v3153_v16 = vpop.f32.mrf.mxu0  ;;  %v3497_v28 = vpop.f32.mrf.mxu1  ;;  %13106 = vmatmul.mubr.msk.f32.gmra.mxu0 %vm525_vm2, %v16007_v2  ;;  %13201 = vmatmul.mubr.msk.f32.gmra.mxu1 %vm525_vm2, %v16539_v56 }
 0x2cc   : > { %v16546_v14 = vadd.f32 %v3153_v16, %v16014_v23  ;;  %v16549_v11 = vadd.f32 %v3497_v28, %v16017_v19  ;;  %13108 = vmatprep.mubr.msk.f32.mxu0 %vm14006_vm1, %v18880_v39  ;;  %13203 = vmatprep.mubr.msk.f32.mxu1 %vm14006_vm1, %v18880_v39  ;;  %v16573_v16 = vld [vmem:[%s14077_s10 + $0x156] ss:$2 sm:$0xff] }
 0x2cd   : > { %v12866_v54 = vpop.f32.mrf.mxu0  ;;  %v12961_v2 = vpop.f32.mrf.mxu1 }
 0x2cf   : > { %v3158_v1 = vpop.f32.mrf.mxu0  ;;  %v3502_v9 = vpop.f32.mrf.mxu1  ;;  %13109 = vmatmul.mubr.msk.f32.gmra.mxu0 %vm525_vm2, %v16024_v60  ;;  %13204 = vmatmul.mubr.msk.f32.gmra.mxu1 %vm525_vm2, %v16556_v22 }
 0x2d0   : > { %v16563_v23 = vadd.f32 %v3158_v1, %v16031_v29  ;;  %v16566_v19 = vadd.f32 %v3502_v9, %v16034_v20  ;;  %13111 = vmatprep.mubr.msk.f32.mxu0 %vm14006_vm1, %v18880_v39  ;;  %13206 = vmatprep.mubr.msk.f32.mxu1 %vm14006_vm1, %v18880_v39  ;;  %v16590_v1 = vld [vmem:[%s14077_s10 + $0x166] ss:$2 sm:$0xff] }
 0x2d1   : > { %v12869_v28 = vpop.f32.mrf.mxu0  ;;  %v12964_v60 = vpop.f32.mrf.mxu1 }
 0x2d3   : > { %v3163_v54 = vpop.f32.mrf.mxu0  ;;  %v3507_v2 = vpop.f32.mrf.mxu1  ;;  %13112 = vmatmul.mubr.msk.f32.gmra.mxu0 %vm525_vm2, %v16041_v32  ;;  %13207 = vmatmul.mubr.msk.f32.gmra.mxu1 %vm525_vm2, %v16573_v16 }
 0x2d4   : > { %v16580_v29 = vadd.f32 %v3163_v54, %v16048_v35  ;;  %v16583_v20 = vadd.f32 %v3507_v2, %v16051_v24  ;;  %13114 = vmatprep.mubr.msk.f32.mxu0 %vm14006_vm1, %v18880_v39  ;;  %13209 = vmatprep.mubr.msk.f32.mxu1 %vm14006_vm1, %v18880_v39  ;;  %v16607_v54 = vld [vmem:[%s14077_s10 + $0x176] ss:$2 sm:$0xff] }
 0x2d5   : > { %v12872_v9 = vpop.f32.mrf.mxu0  ;;  %v12967_v32 = vpop.f32.mrf.mxu1 }
 0x2d7   : > { %v3168_v28 = vpop.f32.mrf.mxu0  ;;  %v3512_v60 = vpop.f32.mrf.mxu1  ;;  %13115 = vmatmul.mubr.msk.f32.gmra.mxu0 %vm525_vm2, %v16058_v6  ;;  %13210 = vmatmul.mubr.msk.f32.gmra.mxu1 %vm525_vm2, %v16590_v1 }
 0x2d8   : > { %v16597_v35 = vadd.f32 %v3168_v28, %v16065_v41  ;;  %v16600_v24 = vadd.f32 %v3512_v60, %v16068_v30  ;;  %13117 = vmatprep.mubr.msk.f32.mxu0 %vm14006_vm1, %v18880_v39  ;;  %13212 = vmatprep.mubr.msk.f32.mxu1 %vm14006_vm1, %v18880_v39  ;;  %v16624_v28 = vld [vmem:[%s14077_s10 + $0x186] ss:$2 sm:$0xff] }
 0x2d9   : > { %v12875_v2 = vpop.f32.mrf.mxu0  ;;  %v12970_v6 = vpop.f32.mrf.mxu1 }
 0x2db   : > { %v3173_v9 = vpop.f32.mrf.mxu0  ;;  %v3517_v32 = vpop.f32.mrf.mxu1  ;;  %13118 = vmatmul.mubr.msk.f32.gmra.mxu0 %vm525_vm2, %v16075_v44  ;;  %13213 = vmatmul.mubr.msk.f32.gmra.mxu1 %vm525_vm2, %v16607_v54 }
 0x2dc   : > { %v16614_v41 = vadd.f32 %v3173_v9, %v16082_v43  ;;  %v16617_v30 = vadd.f32 %v3517_v32, %v16085_v36  ;;  %13120 = vmatprep.mubr.msk.f32.mxu0 %vm14006_vm1, %v18880_v39  ;;  %13215 = vmatprep.mubr.msk.f32.mxu1 %vm14006_vm1, %v18880_v39  ;;  %v16641_v9 = vld [vmem:[%s14077_s10 + $0x196] ss:$2 sm:$0xff] }
 0x2dd   : > { %v12878_v60 = vpop.f32.mrf.mxu0  ;;  %v12973_v44 = vpop.f32.mrf.mxu1 }
 0x2df   : > { %v3178_v2 = vpop.f32.mrf.mxu0  ;;  %v3522_v6 = vpop.f32.mrf.mxu1  ;;  %13121 = vmatmul.mubr.msk.f32.gmra.mxu0 %vm525_vm2, %v16092_v38  ;;  %13216 = vmatmul.mubr.msk.f32.gmra.mxu1 %vm525_vm2, %v16624_v28 }
 0x2e0   : > { %v16631_v43 = vadd.f32 %v3178_v2, %v16099_v45  ;;  %v16634_v36 = vadd.f32 %v3522_v6, %v16102_v42  ;;  %13123 = vmatprep.mubr.msk.f32.mxu0 %vm14006_vm1, %v18880_v39  ;;  %13218 = vmatprep.mubr.msk.f32.mxu1 %vm14006_vm1, %v18880_v39  ;;  %v16658_v2 = vld [vmem:[%s14077_s10 + $0x1a6] ss:$2 sm:$0xff] }
 0x2e1   : > { %v12881_v32 = vpop.f32.mrf.mxu0  ;;  %v12976_v38 = vpop.f32.mrf.mxu1 }
 0x2e3   : > { %v3183_v60 = vpop.f32.mrf.mxu0  ;;  %v3527_v44 = vpop.f32.mrf.mxu1  ;;  %13124 = vmatmul.mubr.msk.f32.gmra.mxu0 %vm525_vm2, %v16109_v58  ;;  %13219 = vmatmul.mubr.msk.f32.gmra.mxu1 %vm525_vm2, %v16641_v9 }
 0x2e4   : > { %v16648_v45 = vadd.f32 %v3183_v60, %v16116_v47  ;;  %v16651_v42 = vadd.f32 %v3527_v44, %v16119_v52  ;;  %13126 = vmatprep.mubr.msk.f32.mxu0 %vm14006_vm1, %v18880_v39  ;;  %13221 = vmatprep.mubr.msk.f32.mxu1 %vm14006_vm1, %v18880_v39  ;;  %v19023_v52 = vld [vmem:[#allocation41_spill] sm:$0xff]  ;;  %v16675_v44 = vld [vmem:[%s14077_s10 + $0x1b6] ss:$2 sm:$0xff] }
 0x2e5   : > { %v12884_v6 = vpop.f32.mrf.mxu0  ;;  %v12979_v58 = vpop.f32.mrf.mxu1 }
 0x2e6   : > { %19021 = vst [vmem:[#allocation20_spill] sm:$0xff] %v16651_v42 }
 0x2e7   : > { %v3188_v32 = vpop.f32.mrf.mxu0  ;;  %v3532_v38 = vpop.f32.mrf.mxu1  ;;  %13127 = vmatmul.mubr.msk.f32.gmra.mxu0 %vm525_vm2, %v16126_v12  ;;  %13222 = vmatmul.mubr.msk.f32.gmra.mxu1 %vm525_vm2, %v16658_v2 }
 0x2e8   : > { %v16665_v47 = vadd.f32 %v3188_v32, %v16133_v49  ;;  %v16668_v60 = vadd.f32 %v3532_v38, %v19023_v52  ;;  %13129 = vmatprep.mubr.msk.f32.mxu0 %vm14006_vm1, %v18880_v39  ;;  %13224 = vmatprep.mubr.msk.f32.mxu1 %vm14006_vm1, %v18880_v39  ;;  %v19025_v49 = vld [vmem:[#allocation22_spill] sm:$0xff] }
 0x2e9   : > { %v12887_v6 = vpop.f32.mrf.mxu0  ;;  %v12982_v12 = vpop.f32.mrf.mxu1  ;;  %v19026_v38 = vld [vmem:[#allocation42_spill] sm:$0xff] }
 0x2ea   : > { %19022 = vst [vmem:[#allocation40_spill] sm:$0xff] %v16665_v47  ;;  %19024 = vst [vmem:[#allocation21_spill] sm:$0xff] %v16668_v60  ;;  %v16692_v6 = vld [vmem:[%s14077_s10 + $0x1c6] ss:$2 sm:$0xff] }
 0x2eb   : > { %v3193_v58 = vpop.f32.mrf.mxu0  ;;  %v3537_v42 = vpop.f32.mrf.mxu1  ;;  %13130 = vmatmul.mubr.msk.f32.gmra.mxu0 %vm525_vm2, %v16143_v13  ;;  %13225 = vmatmul.mubr.msk.f32.gmra.mxu1 %vm525_vm2, %v16675_v44  ;;  %19028 = vst [vmem:[#allocation22_spill] sm:$0xff] %v16692_v6 }
 0x2ec   : > { %v16682_v32 = vadd.f32 %v3193_v58, %v19025_v49  ;;  %v16685_v52 = vadd.f32 %v3537_v42, %v19026_v38  ;;  %13132 = vmatprep.mubr.msk.f32.mxu0 %vm14006_vm1, %v18880_v39  ;;  %13227 = vmatprep.mubr.msk.f32.mxu1 %vm14006_vm1, %v18880_v39  ;;  %v19029_v58 = vld [vmem:[#allocation43_spill] sm:$0xff] }
 0x2ed   : > { %v12890_v12 = vpop.f32.mrf.mxu0  ;;  %v12985_v13 = vpop.f32.mrf.mxu1  ;;  %v16709_v38 = vld [vmem:[%s14077_s10 + $0x1d6] ss:$2 sm:$0xff] }
 0x2ee   : > { %19027 = vst [vmem:[#allocation41_spill] sm:$0xff] %v16685_v52  ;;  %19031 = vst [vmem:[#allocation43_spill] sm:$0xff] %v16709_v38 }
 0x2ef   : > { %v3198_v60 = vpop.f32.mrf.mxu0  ;;  %v3542_v47 = vpop.f32.mrf.mxu1  ;;  %13133 = vmatmul.mubr.msk.f32.gmra.mxu0 %vm525_vm2, %v16160_v15  ;;  %13228 = vmatmul.mubr.msk.f32.gmra.mxu1 %vm525_vm2, %v16692_v6  ;;  %v19032_v6 = vld [vmem:[#allocation44_spill] sm:$0xff] }
 0x2f0   : > { %v16699_v42 = vadd.f32 %v3198_v60, %v16167_v0  ;;  %v16702_v49 = vadd.f32 %v3542_v47, %v19029_v58  ;;  %13135 = vmatprep.mubr.msk.f32.mxu0 %vm14006_vm1, %v18880_v39  ;;  %13230 = vmatprep.mubr.msk.f32.mxu1 %vm14006_vm1, %v18880_v39  ;;  %v19034_v47 = vld [vmem:[#allocation23_spill] sm:$0xff]  ;;  %v16726_v58 = vld [vmem:[%s14077_s10 + $0x1e6] ss:$2 sm:$0xff] }
 0x2f1   : > { %v12893_v12 = vpop.f32.mrf.mxu0  ;;  %v12988_v15 = vpop.f32.mrf.mxu1 }
 0x2f2   : > { %19030 = vst [vmem:[#allocation42_spill] sm:$0xff] %v16702_v49 }
 0x2f3   : > { %v3203_v13 = vpop.f32.mrf.mxu0  ;;  %v3547_v52 = vpop.f32.mrf.mxu1  ;;  %13136 = vmatmul.mubr.msk.f32.gmra.mxu0 %vm525_vm2, %v19032_v6  ;;  %13231 = vmatmul.mubr.msk.f32.gmra.mxu1 %vm525_vm2, %v16709_v38  ;;  %v19036_v38 = vld [vmem:[#allocation4_spill] sm:$0xff] }
 0x2f4   : > { %v16716_v0 = vadd.f32 %v3203_v13, %v16184_v62  ;;  %v16719_v60 = vadd.f32 %v3547_v52, %v19034_v47  ;;  %13138 = vmatprep.mubr.msk.f32.mxu0 %vm14006_vm1, %v18880_v39  ;;  %13233 = vmatprep.mubr.msk.f32.mxu1 %vm14006_vm1, %v18880_v39  ;;  %v19037_v62 = vld [vmem:[#allocation24_spill] sm:$0xff]  ;;  %v19039_v13 = vld [vmem:[#allocation5_spill] sm:$0xff] }
 0x2f5   : > { %v12896_v12 = vpop.f32.mrf.mxu0  ;;  %v12991_v6 = vpop.f32.mrf.mxu1 }
 0x2f6   : > { %19033 = vst [vmem:[#allocation44_spill] sm:$0xff] %v16716_v0  ;;  %19035 = vst [vmem:[#allocation23_spill] sm:$0xff] %v16719_v60  ;;  %v10819_v12 = vld [vmem:[%s14077_s10 + $0x7] ss:$2 sm:$0xff] }
 0x2f7   : > { %v3208_v15 = vpop.f32.mrf.mxu0  ;;  %v3552_v49 = vpop.f32.mrf.mxu1  ;;  %13139 = vmatmul.mubr.msk.f32.gmra.mxu0 %vm525_vm2, %v19036_v38  ;;  %13234 = vmatmul.mubr.msk.f32.gmra.mxu1 %vm525_vm2, %v16726_v58 }
 0x2f8   : > { %v16733_v52 = vadd.f32 %v3208_v15, %v19037_v62  ;;  %v16736_v47 = vadd.f32 %v3552_v49, %v19039_v13  ;;  %13238 = vmatprep.mubr.msk.f32.mxu0 %vm14006_vm1, %v18880_v39  ;;  %13333 = vmatprep.mubr.msk.f32.mxu1 %vm14006_vm1, %v18880_v39  ;;  %v19041_v15 = vld [vmem:[#allocation45_spill] sm:$0xff] }
 0x2f9   : > { %v12899_v6 = vpop.f32.mrf.mxu0  ;;  %v12994_v60 = vpop.f32.mrf.mxu1  ;;  %v19042_v62 = vld [vmem:[#allocation25_spill] sm:$0xff] }
 0x2fa   : > { %19038 = vst [vmem:[#allocation4_spill] sm:$0xff] %v16733_v52  ;;  %19040 = vst [vmem:[#allocation24_spill] sm:$0xff] %v16736_v47  ;;  %v10820_v60 = vld [vmem:[%s14077_s10 + $0x17] ss:$2 sm:$0xff] }
 0x2fb   : > { %v3213_v38 = vpop.f32.mrf.mxu0  ;;  %v3557_v0 = vpop.f32.mrf.mxu1  ;;  %13239 = vmatmul.mubr.msk.f32.vlgmr.msra.gmra.mxu0 %vm525_vm2, %v16211_v18  ;;  %13334 = vmatmul.mubr.msk.f32.vlgmr.msra.gmra.mxu1 %vm525_vm2, %v10819_v12  ;;  %v19044_v12 = vld [vmem:[#allocation6_spill] sm:$0xff] }
 0x2fc   : > { %v16747_v49 = vadd.f32 %v3213_v38, %v19041_v15  ;;  %v16750_v13 = vadd.f32 %v3557_v0, %v19042_v62  ;;  %13241 = vmatprep.mubr.msk.f32.mxu0 %vm14006_vm1, %v18880_v39  ;;  %13336 = vmatprep.mubr.msk.f32.mxu1 %vm14006_vm1, %v18880_v39  ;;  %v19045_v38 = vld [vmem:[#allocation26_spill] sm:$0xff] }
 0x2fd   : > { %v12902_v6 = vpop.f32.mrf.mxu0  ;;  %v12997_v47 = vpop.f32.mrf.mxu1 }
 0x2fe   : > { %19043 = vst [vmem:[#allocation5_spill] sm:$0xff] %v16750_v13  ;;  %v10821_v47 = vld [vmem:[%s14077_s10 + $0x27] ss:$2 sm:$0xff] }
 0x2ff   : > { %v3218_v52 = vpop.f32.mrf.mxu0  ;;  %v3562_v18 = vpop.f32.mrf.mxu1  ;;  %13242 = vmatmul.mubr.msk.f32.gmra.mxu0 %vm525_vm2, %v16229_v5  ;;  %13337 = vmatmul.mubr.msk.f32.gmra.mxu1 %vm525_vm2, %v10820_v60 }
 0x300   : > { %v16761_v0 = vadd.f32 %v3218_v52, %v19044_v12  ;;  %v16764_v15 = vadd.f32 %v3562_v18, %v19045_v38  ;;  %13244 = vmatprep.mubr.msk.f32.mxu0 %vm14006_vm1, %v18880_v39  ;;  %13339 = vmatprep.mubr.msk.f32.mxu1 %vm14006_vm1, %v18880_v39  ;;  %v19047_v52 = vld [vmem:[#allocation7_spill] sm:$0xff] }
 0x301   : > { %v12905_v62 = vpop.f32.mrf.mxu0  ;;  %v13000_v6 = vpop.f32.mrf.mxu1  ;;  %v19048_v18 = vld [vmem:[#allocation27_spill] sm:$0xff] }
 0x302   : > { %19046 = vst [vmem:[#allocation45_spill] sm:$0xff] %v16764_v15  ;;  %v10822_v38 = vld [vmem:[%s14077_s10 + $0x37] ss:$2 sm:$0xff] }
 0x303   : > { %v3223_v13 = vpop.f32.mrf.mxu0  ;;  %v3567_v5 = vpop.f32.mrf.mxu1  ;;  %13245 = vmatmul.mubr.msk.f32.gmra.mxu0 %vm525_vm2, %v16250_v25  ;;  %13340 = vmatmul.mubr.msk.f32.gmra.mxu1 %vm525_vm2, %v10821_v47 }
 0x304   : > { %v16775_v60 = vadd.f32 %v3223_v13, %v19047_v52  ;;  %v16778_v12 = vadd.f32 %v3567_v5, %v19048_v18  ;;  %13247 = vmatprep.mubr.msk.f32.mxu0 %vm14006_vm1, %v18880_v39  ;;  %13342 = vmatprep.mubr.msk.f32.mxu1 %vm14006_vm1, %v18880_v39  ;;  %v19050_v13 = vld [vmem:[#allocation8_spill] sm:$0xff] }
 0x305   : > { %v12908_v62 = vpop.f32.mrf.mxu0  ;;  %v13003_v6 = vpop.f32.mrf.mxu1  ;;  %v19051_v5 = vld [vmem:[#allocation28_spill] sm:$0xff] }
 0x306   : > { %19049 = vst [vmem:[#allocation25_spill] sm:$0xff] %v16778_v12  ;;  %v10823_v18 = vld [vmem:[%s14077_s10 + $0x47] ss:$2 sm:$0xff] }
 0x307   : > { %v3228_v15 = vpop.f32.mrf.mxu0  ;;  %v3572_v25 = vpop.f32.mrf.mxu1  ;;  %13248 = vmatmul.mubr.msk.f32.gmra.mxu0 %vm525_vm2, %v16267_v50  ;;  %13343 = vmatmul.mubr.msk.f32.gmra.mxu1 %vm525_vm2, %v10822_v38 }
 0x308   : > { %v16789_v47 = vadd.f32 %v3228_v15, %v19050_v13  ;;  %v16792_v52 = vadd.f32 %v3572_v25, %v19051_v5  ;;  %13250 = vmatprep.mubr.msk.f32.mxu0 %vm14006_vm1, %v18880_v39  ;;  %13345 = vmatprep.mubr.msk.f32.mxu1 %vm14006_vm1, %v18880_v39  ;;  %v19053_v15 = vld [vmem:[#allocation9_spill] sm:$0xff]  ;;  %v10824_v5 = vld [vmem:[%s14077_s10 + $0x57] ss:$2 sm:$0xff] }
 0x309   : > { %v12911_v62 = vpop.f32.mrf.mxu0  ;;  %v13006_v6 = vpop.f32.mrf.mxu1  ;;  %v19054_v25 = vld [vmem:[#allocation29_spill] sm:$0xff] }
 0x30a   : > { %19052 = vst [vmem:[#allocation6_spill] sm:$0xff] %v16792_v52 }
 0x30b   : > { %v3233_v12 = vpop.f32.mrf.mxu0  ;;  %v3577_v50 = vpop.f32.mrf.mxu1  ;;  %13251 = vmatmul.mubr.msk.f32.gmra.mxu0 %vm525_vm2, %v16284_v31  ;;  %13346 = vmatmul.mubr.msk.f32.gmra.mxu1 %vm525_vm2, %v10823_v18 }
 0x30c   : > { %v16803_v38 = vadd.f32 %v3233_v12, %v19053_v15  ;;  %v16806_v13 = vadd.f32 %v3577_v50, %v19054_v25  ;;  %13253 = vmatprep.mubr.msk.f32.mxu0 %vm14006_vm1, %v18880_v39  ;;  %13348 = vmatprep.mubr.msk.f32.mxu1 %vm14006_vm1, %v18880_v39  ;;  %v19056_v12 = vld [vmem:[#allocation10_spill] sm:$0xff] }
 0x30d   : > { %v12914_v62 = vpop.f32.mrf.mxu0  ;;  %v13009_v6 = vpop.f32.mrf.mxu1  ;;  %v19057_v50 = vld [vmem:[#allocation30_spill] sm:$0xff] }
 0x30e   : > { %19055 = vst [vmem:[#allocation26_spill] sm:$0xff] %v16806_v13  ;;  %v10825_v25 = vld [vmem:[%s14077_s10 + $0x67] ss:$2 sm:$0xff] }
 0x30f   : > { %v3238_v52 = vpop.f32.mrf.mxu0  ;;  %v3582_v31 = vpop.f32.mrf.mxu1  ;;  %13254 = vmatmul.mubr.msk.f32.gmra.mxu0 %vm525_vm2, %v16301_v27  ;;  %13349 = vmatmul.mubr.msk.f32.gmra.mxu1 %vm525_vm2, %v10824_v5 }
 0x310   : > { %v16817_v18 = vadd.f32 %v3238_v52, %v19056_v12  ;;  %v16820_v15 = vadd.f32 %v3582_v31, %v19057_v50  ;;  %13256 = vmatprep.mubr.msk.f32.mxu0 %vm14006_vm1, %v18880_v39  ;;  %13351 = vmatprep.mubr.msk.f32.mxu1 %vm14006_vm1, %v18880_v39  ;;  %v19059_v52 = vld [vmem:[#allocation11_spill] sm:$0xff] }
 0x311   : > { %v12917_v62 = vpop.f32.mrf.mxu0  ;;  %v13012_v6 = vpop.f32.mrf.mxu1  ;;  %v19060_v31 = vld [vmem:[#allocation31_spill] sm:$0xff] }
 0x312   : > { %19058 = vst [vmem:[#allocation7_spill] sm:$0xff] %v16820_v15  ;;  %v10826_v50 = vld [vmem:[%s14077_s10 + $0x77] ss:$2 sm:$0xff] }
 0x313   : > { %v3243_v13 = vpop.f32.mrf.mxu0  ;;  %v3587_v27 = vpop.f32.mrf.mxu1  ;;  %13257 = vmatmul.mubr.msk.f32.gmra.mxu0 %vm525_vm2, %v16318_v61  ;;  %13352 = vmatmul.mubr.msk.f32.gmra.mxu1 %vm525_vm2, %v10825_v25 }
 0x314   : > { %v16831_v5 = vadd.f32 %v3243_v13, %v19059_v52  ;;  %v16834_v12 = vadd.f32 %v3587_v27, %v19060_v31  ;;  %13259 = vmatprep.mubr.msk.f32.mxu0 %vm14006_vm1, %v18880_v39  ;;  %13354 = vmatprep.mubr.msk.f32.mxu1 %vm14006_vm1, %v18880_v39  ;;  %v19062_v13 = vld [vmem:[#allocation12_spill] sm:$0xff] }
 0x315   : > { %v12920_v62 = vpop.f32.mrf.mxu0  ;;  %v13015_v6 = vpop.f32.mrf.mxu1  ;;  %v19063_v27 = vld [vmem:[#allocation32_spill] sm:$0xff] }
 0x316   : > { %19061 = vst [vmem:[#allocation27_spill] sm:$0xff] %v16834_v12  ;;  %v10827_v31 = vld [vmem:[%s14077_s10 + $0x87] ss:$2 sm:$0xff] }
 0x317   : > { %v3248_v15 = vpop.f32.mrf.mxu0  ;;  %v3592_v61 = vpop.f32.mrf.mxu1  ;;  %13260 = vmatmul.mubr.msk.f32.gmra.mxu0 %vm525_vm2, %v16335_v40  ;;  %13355 = vmatmul.mubr.msk.f32.gmra.mxu1 %vm525_vm2, %v10826_v50 }
 0x318   : > { %v16845_v25 = vadd.f32 %v3248_v15, %v19062_v13  ;;  %v16848_v52 = vadd.f32 %v3592_v61, %v19063_v27  ;;  %13262 = vmatprep.mubr.msk.f32.mxu0 %vm14006_vm1, %v18880_v39  ;;  %13357 = vmatprep.mubr.msk.f32.mxu1 %vm14006_vm1, %v18880_v39  ;;  %v19065_v15 = vld [vmem:[#allocation13_spill] sm:$0xff]  ;;  %v10828_v27 = vld [vmem:[%s14077_s10 + $0x97] ss:$2 sm:$0xff] }
 0x319   : > { %v12923_v62 = vpop.f32.mrf.mxu0  ;;  %v13018_v6 = vpop.f32.mrf.mxu1  ;;  %v19066_v61 = vld [vmem:[#allocation33_spill] sm:$0xff] }
 0x31a   : > { %19064 = vst [vmem:[#allocation8_spill] sm:$0xff] %v16848_v52 }
 0x31b   : > { %v3253_v12 = vpop.f32.mrf.mxu0  ;;  %v3597_v40 = vpop.f32.mrf.mxu1  ;;  %13263 = vmatmul.mubr.msk.f32.gmra.mxu0 %vm525_vm2, %v16352_v26  ;;  %13358 = vmatmul.mubr.msk.f32.gmra.mxu1 %vm525_vm2, %v10827_v31 }
 0x31c   : > { %v16859_v50 = vadd.f32 %v3253_v12, %v19065_v15  ;;  %v16862_v13 = vadd.f32 %v3597_v40, %v19066_v61  ;;  %13265 = vmatprep.mubr.msk.f32.mxu0 %vm14006_vm1, %v18880_v39  ;;  %13360 = vmatprep.mubr.msk.f32.mxu1 %vm14006_vm1, %v18880_v39  ;;  %v19068_v12 = vld [vmem:[#allocation14_spill] sm:$0xff] }
 0x31d   : > { %v12926_v62 = vpop.f32.mrf.mxu0  ;;  %v13021_v6 = vpop.f32.mrf.mxu1  ;;  %v19069_v40 = vld [vmem:[#allocation34_spill] sm:$0xff] }
 0x31e   : > { %19067 = vst [vmem:[#allocation28_spill] sm:$0xff] %v16862_v13  ;;  %v10829_v61 = vld [vmem:[%s14077_s10 + $0xa7] ss:$2 sm:$0xff] }
 0x31f   : > { %v3258_v52 = vpop.f32.mrf.mxu0  ;;  %v3602_v26 = vpop.f32.mrf.mxu1  ;;  %13266 = vmatmul.mubr.msk.f32.gmra.mxu0 %vm525_vm2, %v16369_v48  ;;  %13361 = vmatmul.mubr.msk.f32.gmra.mxu1 %vm525_vm2, %v10828_v27 }
 0x320   : > { %v16873_v31 = vadd.f32 %v3258_v52, %v19068_v12  ;;  %v16876_v15 = vadd.f32 %v3602_v26, %v19069_v40  ;;  %13268 = vmatprep.mubr.msk.f32.mxu0 %vm14006_vm1, %v18880_v39  ;;  %13363 = vmatprep.mubr.msk.f32.mxu1 %vm14006_vm1, %v18880_v39  ;;  %v19071_v52 = vld [vmem:[#allocation15_spill] sm:$0xff] }
 0x321   : > { %v12929_v62 = vpop.f32.mrf.mxu0  ;;  %v13024_v6 = vpop.f32.mrf.mxu1  ;;  %v19072_v26 = vld [vmem:[#allocation35_spill] sm:$0xff] }
 0x322   : > { %19070 = vst [vmem:[#allocation9_spill] sm:$0xff] %v16876_v15  ;;  %v10830_v40 = vld [vmem:[%s14077_s10 + $0xb7] ss:$2 sm:$0xff] }
 0x323   : > { %v3263_v13 = vpop.f32.mrf.mxu0  ;;  %v3607_v48 = vpop.f32.mrf.mxu1  ;;  %13269 = vmatmul.mubr.msk.f32.gmra.mxu0 %vm525_vm2, %v16386_v59  ;;  %13364 = vmatmul.mubr.msk.f32.gmra.mxu1 %vm525_vm2, %v10829_v61 }
 0x324   : > { %v16887_v27 = vadd.f32 %v3263_v13, %v19071_v52  ;;  %v16890_v12 = vadd.f32 %v3607_v48, %v19072_v26  ;;  %13271 = vmatprep.mubr.msk.f32.mxu0 %vm14006_vm1, %v18880_v39  ;;  %13366 = vmatprep.mubr.msk.f32.mxu1 %vm14006_vm1, %v18880_v39  ;;  %v19074_v13 = vld [vmem:[#allocation16_spill] sm:$0xff] }
 0x325   : > { %v12932_v62 = vpop.f32.mrf.mxu0  ;;  %v13027_v6 = vpop.f32.mrf.mxu1  ;;  %v19075_v48 = vld [vmem:[#allocation36_spill] sm:$0xff] }
 0x326   : > { %19073 = vst [vmem:[#allocation29_spill] sm:$0xff] %v16890_v12  ;;  %v10831_v26 = vld [vmem:[%s14077_s10 + $0xc7] ss:$2 sm:$0xff] }
 0x327   : > { %v3268_v15 = vpop.f32.mrf.mxu0  ;;  %v3612_v59 = vpop.f32.mrf.mxu1  ;;  %13272 = vmatmul.mubr.msk.f32.gmra.mxu0 %vm525_vm2, %v16403_v37  ;;  %13367 = vmatmul.mubr.msk.f32.gmra.mxu1 %vm525_vm2, %v10830_v40 }
 0x328   : > { %v16901_v61 = vadd.f32 %v3268_v15, %v19074_v13  ;;  %v16904_v52 = vadd.f32 %v3612_v59, %v19075_v48  ;;  %13274 = vmatprep.mubr.msk.f32.mxu0 %vm14006_vm1, %v18880_v39  ;;  %13369 = vmatprep.mubr.msk.f32.mxu1 %vm14006_vm1, %v18880_v39  ;;  %v19077_v15 = vld [vmem:[#allocation17_spill] sm:$0xff]  ;;  %v10832_v48 = vld [vmem:[%s14077_s10 + $0xd7] ss:$2 sm:$0xff] }
 0x329   : > { %v12935_v62 = vpop.f32.mrf.mxu0  ;;  %v13030_v6 = vpop.f32.mrf.mxu1  ;;  %v19079_v59 = vld [vmem:[#allocation37_spill] sm:$0xff] }
 0x32a   : > { %19076 = vst [vmem:[#allocation10_spill] sm:$0xff] %v16904_v52 }
 0x32b   : > { %v3273_v12 = vpop.f32.mrf.mxu0  ;;  %v3617_v37 = vpop.f32.mrf.mxu1  ;;  %13275 = vmatmul.mubr.msk.f32.gmra.mxu0 %vm525_vm2, %v16420_v21  ;;  %13370 = vmatmul.mubr.msk.f32.gmra.mxu1 %vm525_vm2, %v10831_v26  ;;  %v16928_v21 = vld [vmem:[%s18808_s3 + $0x8] sm:$0x3f] }
 0x32c   : > { %v16915_v40 = vadd.f32 %v3273_v12, %v19077_v15  ;;  %v16918_v13 = vadd.f32 %v3617_v37, %v19079_v59  ;;  %13277 = vmatprep.mubr.msk.f32.mxu0 %vm14006_vm1, %v18880_v39  ;;  %13372 = vmatprep.mubr.msk.f32.mxu1 %vm14006_vm1, %v18880_v39  ;;  %19081 = vst [vmem:[#allocation31_spill] sm:$0xff] %v16928_v21  ;;  %v16933_v12 = vld [vmem:[%s18808_s3] sm:$0x3f]  ;;  %v19083_v15 = vld [vmem:[#allocation18_spill] sm:$0xff] }
 0x32d   : > { %v12938_v62 = vpop.f32.mrf.mxu0  ;;  %v13033_v6 = vpop.f32.mrf.mxu1  ;;  %19082 = vst [vmem:[#allocation12_spill] sm:$0xff] %v16933_v12  ;;  %13426 = vmatprep.subr.msk.mxu0 %vm5367_vm3, %v16928_v21  ;;  %13452 = vmatprep.subr.msk.mxu1 %vm5367_vm3, %v16933_v12 }
 0x32e   : > { %19078 = vst [vmem:[#allocation30_spill] sm:$0xff] %v16915_v40  ;;  %19080 = vst [vmem:[#allocation11_spill] sm:$0xff] %v16918_v13  ;;  %v19084_v62 = vld [vmem:[#allocation38_spill] sm:$0xff]  ;;  %13427 = vmatpush3.msk.msra.mxu0 %vm5367_vm3, %v16928_v21  ;;  %13453 = vmatpush3.msk.msra.mxu1 %vm5367_vm3, %v16933_v12 }
 0x32f   : > { %v3278_v26 = vpop.f32.mrf.mxu0  ;;  %v3622_v37 = vpop.f32.mrf.mxu1  ;;  %13278 = vmatmul.mubr.msk.f32.gmra.mxu0 %vm525_vm2, %v16437_v33  ;;  %13373 = vmatmul.mubr.msk.f32.gmra.mxu1 %vm525_vm2, %v10832_v48  ;;  %v10833_v13 = vld [vmem:[%s14077_s10 + $0xe7] ss:$2 sm:$0xff] }
 0x330   : > { %v16943_v59 = vadd.f32 %v3278_v26, %v19083_v15  ;;  %v16946_v6 = vadd.f32 %v3622_v37, %v19084_v62  ;;  %13280 = vmatprep.mubr.msk.f32.mxu0 %vm14006_vm1, %v18880_v39  ;;  %13375 = vmatprep.mubr.msk.f32.mxu1 %vm14006_vm1, %v18880_v39  ;;  %v19086_v26 = vld [vmem:[#allocation39_spill] sm:$0xff] }
 0x331   : > { %v12941_v40 = vpop.f32.mrf.mxu0  ;;  %v13036_v52 = vpop.f32.mrf.mxu1  ;;  %13478 = vmatprep.subr.msk.mxu0 %vm5367_vm3, %v16928_v21  ;;  %13504 = vmatprep.subr.msk.mxu1 %vm5367_vm3, %v16933_v12  ;;  %v10834_v15 = vld [vmem:[%s14077_s10 + $0xf7] ss:$2 sm:$0xff] }
 0x332   : > { %v19085_v52 = vld [vmem:[#allocation19_spill] sm:$0xff] }
 0x333   : > { %v3283_v33 = vpop.f32.mrf.mxu0  ;;  %v3627_v48 = vpop.f32.mrf.mxu1  ;;  %13281 = vmatmul.mubr.msk.f32.gmra.mxu0 %vm525_vm2, %v16454_v46  ;;  %13376 = vmatmul.mubr.msk.f32.gmra.mxu1 %vm525_vm2, %v10833_v13 }
 0x334   : > { %v16965_v40 = vadd.f32 %v3283_v33, %v19085_v52  ;;  %v16968_v37 = vadd.f32 %v3627_v48, %v19086_v26  ;;  %13283 = vmatprep.mubr.msk.f32.mxu0 %vm14006_vm1, %v18880_v39  ;;  %13378 = vmatprep.mubr.msk.f32.mxu1 %vm14006_vm1, %v18880_v39 }
 0x335   : > { %v12944_v62 = vpop.f32.mrf.mxu0  ;;  %v13039_v12 = vpop.f32.mrf.mxu1 }
 0x336   : > { %v10835_v12 = vld [vmem:[%s14077_s10 + $0x107] ss:$2 sm:$0xff] }
 0x337   : > { %v3288_v21 = vpop.f32.mrf.mxu0  ;;  %v3632_v46 = vpop.f32.mrf.mxu1  ;;  %13284 = vmatmul.mubr.msk.f32.gmra.mxu0 %vm525_vm2, %v16471_v4  ;;  %13379 = vmatmul.mubr.msk.f32.gmra.mxu1 %vm525_vm2, %v10834_v15 }
 0x338   : > { %v16979_v13 = vadd.f32 %v3288_v21, %v16478_v3  ;;  %v16982_v33 = vadd.f32 %v3632_v46, %v16481_v10  ;;  %13286 = vmatprep.mubr.msk.f32.mxu0 %vm14006_vm1, %v18880_v39  ;;  %13381 = vmatprep.mubr.msk.f32.mxu1 %vm14006_vm1, %v18880_v39  ;;  %v10836_v21 = vld [vmem:[%s14077_s10 + $0x117] ss:$2 sm:$0xff] }
 0x339   : > { %v12947_v48 = vpop.f32.mrf.mxu0  ;;  %v13042_v52 = vpop.f32.mrf.mxu1 }
 0x33b   : > { %v3293_v26 = vpop.f32.mrf.mxu0  ;;  %v3637_v4 = vpop.f32.mrf.mxu1  ;;  %13287 = vmatmul.mubr.msk.f32.gmra.mxu0 %vm525_vm2, %v16488_v34  ;;  %13382 = vmatmul.mubr.msk.f32.gmra.mxu1 %vm525_vm2, %v10835_v12  ;;  %v10837_v12 = vld [vmem:[%s14077_s10 + $0x127] ss:$2 sm:$0xff] }
 0x33c   : > { %v16993_v3 = vadd.f32 %v3293_v26, %v16495_v8  ;;  %v16996_v10 = vadd.f32 %v3637_v4, %v16498_v51  ;;  %13289 = vmatprep.mubr.msk.f32.mxu0 %vm14006_vm1, %v18880_v39  ;;  %13384 = vmatprep.mubr.msk.f32.mxu1 %vm14006_vm1, %v18880_v39  ;;  %v10838_v4 = vld [vmem:[%s14077_s10 + $0x137] ss:$2 sm:$0xff] }
 0x33d   : > { %v12950_v15 = vpop.f32.mrf.mxu0  ;;  %v13045_v62 = vpop.f32.mrf.mxu1 }
 0x33f   : > { %v3803_v46 = vpop.f32.mrf.mxu0  ;;  %v4147_v34 = vpop.f32.mrf.mxu1  ;;  %13290 = vmatmul.mubr.msk.f32.gmra.mxu0 %vm525_vm2, %v16505_v53  ;;  %13385 = vmatmul.mubr.msk.f32.gmra.mxu1 %vm525_vm2, %v10836_v21 }
 0x340   : > { %v17007_v8 = vadd.f32 %v3803_v46, %v16512_v57  ;;  %v17010_v51 = vadd.f32 %v4147_v34, %v16515_v55  ;;  %13292 = vmatprep.mubr.msk.f32.mxu0 %vm14006_vm1, %v18880_v39  ;;  %13387 = vmatprep.mubr.msk.f32.mxu1 %vm14006_vm1, %v18880_v39  ;;  %v10839_v46 = vld [vmem:[%s14077_s10 + $0x147] ss:$2 sm:$0xff] }
 0x341   : > { %v13050_v48 = vpop.f32.mrf.mxu0  ;;  %v13145_v52 = vpop.f32.mrf.mxu1 }
 0x342   : > { %v10840_v52 = vld [vmem:[%s14077_s10 + $0x157] ss:$2 sm:$0xff] }
 0x343   : > { %v3808_v53 = vpop.f32.mrf.mxu0  ;;  %v4152_v57 = vpop.f32.mrf.mxu1  ;;  %13293 = vmatmul.mubr.msk.f32.gmra.mxu0 %vm525_vm2, %v16522_v17  ;;  %13388 = vmatmul.mubr.msk.f32.gmra.mxu1 %vm525_vm2, %v10837_v12 }
 0x344   : > { %v17121_v55 = vadd.f32 %v3808_v53, %v16529_v63  ;;  %v17124_v26 = vadd.f32 %v4152_v57, %v16532_v7  ;;  %13295 = vmatprep.mubr.msk.f32.mxu0 %vm14006_vm1, %v18880_v39  ;;  %13390 = vmatprep.mubr.msk.f32.mxu1 %vm14006_vm1, %v18880_v39 }
 0x345   : > { %v13053_v21 = vpop.f32.mrf.mxu0  ;;  %v13148_v15 = vpop.f32.mrf.mxu1 }
 0x346   : > { %v10841_v21 = vld [vmem:[%s14077_s10 + $0x167] ss:$2 sm:$0xff] }
 0x347   : > { %v3813_v62 = vpop.f32.mrf.mxu0  ;;  %v4157_v17 = vpop.f32.mrf.mxu1  ;;  %13296 = vmatmul.mubr.msk.f32.gmra.mxu0 %vm525_vm2, %v16539_v56  ;;  %13391 = vmatmul.mubr.msk.f32.gmra.mxu1 %vm525_vm2, %v10838_v4 }
 0x348   : > { %v17135_v63 = vadd.f32 %v3813_v62, %v16546_v14  ;;  %v17138_v7 = vadd.f32 %v4157_v17, %v16549_v11  ;;  %13298 = vmatprep.mubr.msk.f32.mxu0 %vm14006_vm1, %v18880_v39  ;;  %13393 = vmatprep.mubr.msk.f32.mxu1 %vm14006_vm1, %v18880_v39 }
 0x349   : > { %v13056_v34 = vpop.f32.mrf.mxu0  ;;  %v13151_v12 = vpop.f32.mrf.mxu1 }
 0x34b   : > { %v3818_v48 = vpop.f32.mrf.mxu0  ;;  %v4162_v56 = vpop.f32.mrf.mxu1  ;;  %13299 = vmatmul.mubr.msk.f32.gmra.mxu0 %vm525_vm2, %v16556_v22  ;;  %13394 = vmatmul.mubr.msk.f32.gmra.mxu1 %vm525_vm2, %v10839_v46  ;;  %v10842_v46 = vld [vmem:[%s14077_s10 + $0x177] ss:$2 sm:$0xff] }
 0x34c   : > { %v17149_v14 = vadd.f32 %v3818_v48, %v16563_v23  ;;  %v17152_v11 = vadd.f32 %v4162_v56, %v16566_v19  ;;  %13301 = vmatprep.mubr.msk.f32.mxu0 %vm14006_vm1, %v18880_v39  ;;  %13396 = vmatprep.mubr.msk.f32.mxu1 %vm14006_vm1, %v18880_v39  ;;  %v10843_v56 = vld [vmem:[%s14077_s10 + $0x187] ss:$2 sm:$0xff] }
 0x34d   : > { %v13059_v53 = vpop.f32.mrf.mxu0  ;;  %v13154_v57 = vpop.f32.mrf.mxu1 }
 0x34f   : > { %v3823_v4 = vpop.f32.mrf.mxu0  ;;  %v4167_v22 = vpop.f32.mrf.mxu1  ;;  %13302 = vmatmul.mubr.msk.f32.gmra.mxu0 %vm525_vm2, %v16573_v16  ;;  %13397 = vmatmul.mubr.msk.f32.gmra.mxu1 %vm525_vm2, %v10840_v52 }
 0x350   : > { %v17163_v23 = vadd.f32 %v3823_v4, %v16580_v29  ;;  %v17166_v19 = vadd.f32 %v4167_v22, %v16583_v20  ;;  %13304 = vmatprep.mubr.msk.f32.mxu0 %vm14006_vm1, %v18880_v39  ;;  %13399 = vmatprep.mubr.msk.f32.mxu1 %vm14006_vm1, %v18880_v39  ;;  %v10844_v4 = vld [vmem:[%s14077_s10 + $0x197] ss:$2 sm:$0xff] }
 0x351   : > { %v13062_v15 = vpop.f32.mrf.mxu0  ;;  %v13157_v62 = vpop.f32.mrf.mxu1 }
 0x353   : > { %v3828_v17 = vpop.f32.mrf.mxu0  ;;  %v4172_v16 = vpop.f32.mrf.mxu1  ;;  %13305 = vmatmul.mubr.msk.f32.gmra.mxu0 %vm525_vm2, %v16590_v1  ;;  %13400 = vmatmul.mubr.msk.f32.gmra.mxu1 %vm525_vm2, %v10841_v21 }
 0x354   : > { %v17177_v29 = vadd.f32 %v3828_v17, %v16597_v35  ;;  %v17180_v20 = vadd.f32 %v4172_v16, %v16600_v24  ;;  %13307 = vmatprep.mubr.msk.f32.mxu0 %vm14006_vm1, %v18880_v39  ;;  %13402 = vmatprep.mubr.msk.f32.mxu1 %vm14006_vm1, %v18880_v39  ;;  %v10845_v17 = vld [vmem:[%s14077_s10 + $0x1a7] ss:$2 sm:$0xff] }
 0x355   : > { %v13065_v34 = vpop.f32.mrf.mxu0  ;;  %v13160_v12 = vpop.f32.mrf.mxu1 }
 0x357   : > { %v3833_v48 = vpop.f32.mrf.mxu0  ;;  %v4177_v1 = vpop.f32.mrf.mxu1  ;;  %13308 = vmatmul.mubr.msk.f32.gmra.mxu0 %vm525_vm2, %v16607_v54  ;;  %13403 = vmatmul.mubr.msk.f32.gmra.mxu1 %vm525_vm2, %v10842_v46 }
 0x358   : > { %v17191_v35 = vadd.f32 %v3833_v48, %v16614_v41  ;;  %v17194_v24 = vadd.f32 %v4177_v1, %v16617_v30  ;;  %13310 = vmatprep.mubr.msk.f32.mxu0 %vm14006_vm1, %v18880_v39  ;;  %13405 = vmatprep.mubr.msk.f32.mxu1 %vm14006_vm1, %v18880_v39  ;;  %v19089_v48 = vld [vmem:[#allocation21_spill] sm:$0xff] }
 0x359   : > { %v13068_v52 = vpop.f32.mrf.mxu0  ;;  %v13163_v53 = vpop.f32.mrf.mxu1 }
 0x35b   : > { %v3838_v57 = vpop.f32.mrf.mxu0  ;;  %v4182_v54 = vpop.f32.mrf.mxu1  ;;  %13311 = vmatmul.mubr.msk.f32.gmra.mxu0 %vm525_vm2, %v16624_v28  ;;  %13406 = vmatmul.mubr.msk.f32.gmra.mxu1 %vm525_vm2, %v10843_v56  ;;  %v10846_v56 = vld [vmem:[%s14077_s10 + $0x1b7] ss:$2 sm:$0xff] }
 0x35c   : > { %v17205_v41 = vadd.f32 %v3838_v57, %v16631_v43  ;;  %v17208_v30 = vadd.f32 %v4182_v54, %v16634_v36  ;;  %13313 = vmatprep.mubr.msk.f32.mxu0 %vm14006_vm1, %v18880_v39  ;;  %13408 = vmatprep.mubr.msk.f32.mxu1 %vm14006_vm1, %v18880_v39  ;;  %v19087_v36 = vld [vmem:[#allocation20_spill] sm:$0xff] }
 0x35d   : > { %v13071_v22 = vpop.f32.mrf.mxu0  ;;  %v13166_v21 = vpop.f32.mrf.mxu1 }
 0x35e   : > { %v10847_v21 = vld [vmem:[%s14077_s10 + $0x1c7] ss:$2 sm:$0xff] }
 0x35f   : > { %v3843_v15 = vpop.f32.mrf.mxu0  ;;  %v4187_v28 = vpop.f32.mrf.mxu1  ;;  %13314 = vmatmul.mubr.msk.f32.gmra.mxu0 %vm525_vm2, %v16641_v9  ;;  %13409 = vmatmul.mubr.msk.f32.gmra.mxu1 %vm525_vm2, %v10844_v4  ;;  %v19090_v4 = vld [vmem:[#allocation41_spill] sm:$0xff] }
 0x360   : > { %v17219_v43 = vadd.f32 %v3843_v15, %v16648_v45  ;;  %v17222_v62 = vadd.f32 %v4187_v28, %v19087_v36  ;;  %13316 = vmatprep.mubr.msk.f32.mxu0 %vm14006_vm1, %v18880_v39  ;;  %13411 = vmatprep.mubr.msk.f32.mxu1 %vm14006_vm1, %v18880_v39  ;;  %v19088_v45 = vld [vmem:[#allocation40_spill] sm:$0xff] }
 0x361   : > { %v13074_v16 = vpop.f32.mrf.mxu0  ;;  %v13169_v46 = vpop.f32.mrf.mxu1 }
 0x362   : > { %v19092_v16 = vld [vmem:[#allocation42_spill] sm:$0xff] }
 0x363   : > { %v3848_v34 = vpop.f32.mrf.mxu0  ;;  %v4192_v9 = vpop.f32.mrf.mxu1  ;;  %13317 = vmatmul.mubr.msk.f32.gmra.mxu0 %vm525_vm2, %v16658_v2  ;;  %13412 = vmatmul.mubr.msk.f32.gmra.mxu1 %vm525_vm2, %v10845_v17  ;;  %v19091_v17 = vld [vmem:[#allocation22_spill] sm:$0xff] }
 0x364   : > { %v17233_v12 = vadd.f32 %v3848_v34, %v19088_v45  ;;  %v17236_v1 = vadd.f32 %v4192_v9, %v19089_v48  ;;  %13319 = vmatprep.mubr.msk.f32.mxu0 %vm14006_vm1, %v18880_v39  ;;  %13414 = vmatprep.mubr.msk.f32.mxu1 %vm14006_vm1, %v18880_v39  ;;  %v10848_v34 = vld [vmem:[%s14077_s10 + $0x1d7] ss:$2 sm:$0xff] }
 0x365   : > { %v13077_v52 = vpop.f32.mrf.mxu0  ;;  %v13172_v53 = vpop.f32.mrf.mxu1 }
 0x366   : > { %v19093_v52 = vld [vmem:[#allocation43_spill] sm:$0xff] }
 0x367   : > { %v3853_v57 = vpop.f32.mrf.mxu0  ;;  %v4197_v2 = vpop.f32.mrf.mxu1  ;;  %13320 = vmatmul.mubr.msk.f32.gmra.mxu0 %vm525_vm2, %v16675_v44  ;;  %13415 = vmatmul.mubr.msk.f32.gmra.mxu1 %vm525_vm2, %v10846_v56 }
 0x368   : > { %v17247_v54 = vadd.f32 %v3853_v57, %v16682_v32  ;;  %v17250_v22 = vadd.f32 %v4197_v2, %v19090_v4  ;;  %13322 = vmatprep.mubr.msk.f32.mxu0 %vm14006_vm1, %v18880_v39  ;;  %13417 = vmatprep.mubr.msk.f32.mxu1 %vm14006_vm1, %v18880_v39  ;;  %v19095_v57 = vld [vmem:[#allocation23_spill] sm:$0xff]  ;;  %v10849_v4 = vld [vmem:[%s14077_s10 + $0x1e7] ss:$2 sm:$0xff] }
 0x369   : > { %v13080_v15 = vpop.f32.mrf.mxu0  ;;  %v13175_v28 = vpop.f32.mrf.mxu1 }
 0x36b   : > { %v3858_v36 = vpop.f32.mrf.mxu0  ;;  %v4202_v44 = vpop.f32.mrf.mxu1  ;;  %13323 = vmatmul.mubr.msk.f32.gmra.mxu0 %vm525_vm2, %v19091_v17  ;;  %13418 = vmatmul.mubr.msk.f32.gmra.mxu1 %vm525_vm2, %v10847_v21 }
 0x36c   : > { %v17261_v32 = vadd.f32 %v3858_v36, %v16699_v42  ;;  %v17264_v46 = vadd.f32 %v4202_v44, %v19092_v16  ;;  %13325 = vmatprep.mubr.msk.f32.mxu0 %vm14006_vm1, %v18880_v39  ;;  %13420 = vmatprep.mubr.msk.f32.mxu1 %vm14006_vm1, %v18880_v39  ;;  %v19094_v42 = vld [vmem:[#allocation44_spill] sm:$0xff] }
 0x36d   : > { %v13083_v9 = vpop.f32.mrf.mxu0  ;;  %v13178_v45 = vpop.f32.mrf.mxu1  ;;  %v19096_v44 = vld [vmem:[#allocation4_spill] sm:$0xff] }
 0x36e   : > { %v19097_v16 = vld [vmem:[#allocation24_spill] sm:$0xff] }
 0x36f   : > { %v3863_v48 = vpop.f32.mrf.mxu0  ;;  %v4207_v56 = vpop.f32.mrf.mxu1  ;;  %13326 = vmatmul.mubr.msk.f32.gmra.mxu0 %vm525_vm2, %v19093_v52  ;;  %13421 = vmatmul.mubr.msk.f32.gmra.mxu1 %vm525_vm2, %v10848_v34  ;;  %v19098_v52 = vld [vmem:[#allocation5_spill] sm:$0xff] }
 0x370   : > { %v17275_v53 = vadd.f32 %v3863_v48, %v19094_v42  ;;  %v17278_v2 = vadd.f32 %v4207_v56, %v19095_v57  ;;  %13328 = vmatprep.mubr.msk.f32.mxu0 %vm14006_vm1, %v18880_v39  ;;  %13423 = vmatprep.mubr.msk.f32.mxu1 %vm14006_vm1, %v18880_v39 }
 0x371   : > { %v13086_v21 = vpop.f32.mrf.mxu0  ;;  %v13181_v15 = vpop.f32.mrf.mxu1 }
 0x373   : > { %v3868_v28 = vpop.f32.mrf.mxu0  ;;  %v4212_v36 = vpop.f32.mrf.mxu1  ;;  %13329 = vmatmul.mubr.msk.f32.gmra.mxu0 %vm525_vm2, %v16726_v58  ;;  %13424 = vmatmul.mubr.msk.f32.gmra.mxu1 %vm525_vm2, %v10849_v4 }
 0x374   : > { %v17289_v17 = vadd.f32 %v3868_v28, %v19096_v44  ;;  %v17292_v34 = vadd.f32 %v4212_v36, %v19097_v16  ;;  %v19100_v28 = vld [vmem:[#allocation45_spill] sm:$0xff] }
 0x375   : > { %v13089_v9 = vpop.f32.mrf.mxu0  ;;  %v13184_v45 = vpop.f32.mrf.mxu1 }
 0x377   : > { %v3873_v48 = vpop.f32.mrf.mxu0  ;;  %v4217_v39 = vpop.f32.mrf.mxu1 }
 0x378   : > { %v17295_v56 = vadd.f32 %v3873_v48, %v16747_v49  ;;  %v17298_v42 = vadd.f32 %v4217_v39, %v19098_v52  ;;  %v19102_v48 = vld [vmem:[#allocation25_spill] sm:$0xff] }
 0x379   : > { %v13092_v57 = vpop.f32.mrf.mxu0  ;;  %v13187_v58 = vpop.f32.mrf.mxu1 }
 0x37a   : > { %19099 = vst [vmem:[#allocation32_spill] sm:$0xff] %v17298_v42 }
 0x37b   : > { %v3878_v21 = vpop.f32.mrf.mxu0  ;;  %v4222_v4 = vpop.f32.mrf.mxu1 }
 0x37c   : > { %v17301_v15 = vadd.f32 %v3878_v21, %v16761_v0  ;;  %v17304_v36 = vadd.f32 %v4222_v4, %v19100_v28  ;;  %v19104_v21 = vld [vmem:[#allocation6_spill] sm:$0xff] }
 0x37d   : > { %v13095_v44 = vpop.f32.mrf.mxu0  ;;  %v13190_v16 = vpop.f32.mrf.mxu1 }
 0x37e   : > { %19101 = vst [vmem:[#allocation13_spill] sm:$0xff] %v17304_v36 }
 0x37f   : > { %v3883_v9 = vpop.f32.mrf.mxu0  ;;  %v4227_v45 = vpop.f32.mrf.mxu1 }
 0x380   : > { %v17307_v49 = vadd.f32 %v3883_v9, %v16775_v60  ;;  %v17310_v39 = vadd.f32 %v4227_v45, %v19102_v48  ;;  %v19106_v9 = vld [vmem:[#allocation26_spill] sm:$0xff] }
 0x381   : > { %v13098_v52 = vpop.f32.mrf.mxu0  ;;  %v13193_v57 = vpop.f32.mrf.mxu1 }
 0x382   : > { %19103 = vst [vmem:[#allocation33_spill] sm:$0xff] %v17310_v39 }
 0x383   : > { %v3888_v58 = vpop.f32.mrf.mxu0  ;;  %v4232_v42 = vpop.f32.mrf.mxu1 }
 0x384   : > { %v17313_v0 = vadd.f32 %v3888_v58, %v16789_v47  ;;  %v17316_v4 = vadd.f32 %v4232_v42, %v19104_v21  ;;  %v19108_v58 = vld [vmem:[#allocation7_spill] sm:$0xff] }
 0x385   : > { %v13101_v28 = vpop.f32.mrf.mxu0  ;;  %v13196_v44 = vpop.f32.mrf.mxu1 }
 0x386   : > { %19105 = vst [vmem:[#allocation14_spill] sm:$0xff] %v17316_v4 }
 0x387   : > { %v3893_v16 = vpop.f32.mrf.mxu0  ;;  %v4237_v36 = vpop.f32.mrf.mxu1 }
 0x388   : > { %v17319_v60 = vadd.f32 %v3893_v16, %v16803_v38  ;;  %v17322_v45 = vadd.f32 %v4237_v36, %v19106_v9  ;;  %v19110_v16 = vld [vmem:[#allocation27_spill] sm:$0xff] }
 0x389   : > { %v13104_v48 = vpop.f32.mrf.mxu0  ;;  %v13199_v52 = vpop.f32.mrf.mxu1 }
 0x38a   : > { %19107 = vst [vmem:[#allocation34_spill] sm:$0xff] %v17322_v45 }
 0x38b   : > { %v3898_v57 = vpop.f32.mrf.mxu0  ;;  %v4242_v39 = vpop.f32.mrf.mxu1 }
 0x38c   : > { %v17325_v47 = vadd.f32 %v3898_v57, %v16817_v18  ;;  %v17328_v42 = vadd.f32 %v4242_v39, %v19108_v58  ;;  %v19112_v57 = vld [vmem:[#allocation8_spill] sm:$0xff] }
 0x38d   : > { %v13107_v21 = vpop.f32.mrf.mxu0  ;;  %v13202_v28 = vpop.f32.mrf.mxu1 }
 0x38e   : > { %19109 = vst [vmem:[#allocation15_spill] sm:$0xff] %v17328_v42 }
 0x38f   : > { %v3903_v44 = vpop.f32.mrf.mxu0  ;;  %v4247_v4 = vpop.f32.mrf.mxu1 }
 0x390   : > { %v17331_v38 = vadd.f32 %v3903_v44, %v16831_v5  ;;  %v17334_v36 = vadd.f32 %v4247_v4, %v19110_v16  ;;  %v19114_v44 = vld [vmem:[#allocation28_spill] sm:$0xff] }
 0x391   : > { %v13110_v9 = vpop.f32.mrf.mxu0  ;;  %v13205_v48 = vpop.f32.mrf.mxu1 }
 0x392   : > { %19111 = vst [vmem:[#allocation35_spill] sm:$0xff] %v17334_v36 }
 0x393   : > { %v3908_v52 = vpop.f32.mrf.mxu0  ;;  %v4252_v45 = vpop.f32.mrf.mxu1 }
 0x394   : > { %v17337_v18 = vadd.f32 %v3908_v52, %v16845_v25  ;;  %v17340_v39 = vadd.f32 %v4252_v45, %v19112_v57  ;;  %v19117_v52 = vld [vmem:[#allocation9_spill] sm:$0xff] }
 0x395   : > { %v13113_v58 = vpop.f32.mrf.mxu0  ;;  %v13208_v21 = vpop.f32.mrf.mxu1 }
 0x396   : > { %19113 = vst [vmem:[#allocation16_spill] sm:$0xff] %v17340_v39 }
 0x397   : > { %v3913_v28 = vpop.f32.mrf.mxu0  ;;  %v4257_v42 = vpop.f32.mrf.mxu1 }
 0x398   : > { %v17343_v5 = vadd.f32 %v3913_v28, %v16859_v50  ;;  %v17346_v4 = vadd.f32 %v4257_v42, %v19114_v44  ;;  %v19119_v28 = vld [vmem:[#allocation29_spill] sm:$0xff] }
 0x399   : > { %v13116_v16 = vpop.f32.mrf.mxu0  ;;  %v13211_v9 = vpop.f32.mrf.mxu1 }
 0x39a   : > { %19115 = vst [vmem:[#allocation36_spill] sm:$0xff] %v17346_v4 }
 0x39b   : > { %v3918_v48 = vpop.f32.mrf.mxu0  ;;  %v4262_v36 = vpop.f32.mrf.mxu1 }
 0x39c   : > { %v17349_v25 = vadd.f32 %v3918_v48, %v16873_v31  ;;  %v17352_v45 = vadd.f32 %v4262_v36, %v19117_v52  ;;  %v19121_v48 = vld [vmem:[#allocation10_spill] sm:$0xff] }
 0x39d   : > { %v13119_v57 = vpop.f32.mrf.mxu0  ;;  %v13214_v58 = vpop.f32.mrf.mxu1 }
 0x39e   : > { %19116 = vst [vmem:[#allocation17_spill] sm:$0xff] %v17349_v25  ;;  %19118 = vst [vmem:[#allocation37_spill] sm:$0xff] %v17352_v45  ;;  %v19122_v25 = vld [vmem:[#allocation30_spill] sm:$0xff] }
 0x39f   : > { %v3923_v21 = vpop.f32.mrf.mxu0  ;;  %v4267_v39 = vpop.f32.mrf.mxu1 }
 0x3a0   : > { %v17355_v50 = vadd.f32 %v3923_v21, %v16887_v27  ;;  %v17358_v42 = vadd.f32 %v4267_v39, %v19119_v28  ;;  %v19123_v21 = vld [vmem:[#allocation11_spill] sm:$0xff] }
 0x3a1   : > { %v13122_v44 = vpop.f32.mrf.mxu0  ;;  %v13217_v16 = vpop.f32.mrf.mxu1 }
 0x3a2   : > { %19120 = vst [vmem:[#allocation18_spill] sm:$0xff] %v17358_v42 }
 0x3a3   : > { %v3928_v9 = vpop.f32.mrf.mxu0  ;;  %v4272_v4 = vpop.f32.mrf.mxu1 }
 0x3a4   : > { %v17361_v31 = vadd.f32 %v3928_v9, %v16901_v61  ;;  %v17364_v36 = vadd.f32 %v4272_v4, %v19121_v48 }
 0x3a5   : > { %v13125_v52 = vpop.f32.mrf.mxu0  ;;  %v13220_v57 = vpop.f32.mrf.mxu1 }
 0x3a7   : > { %v3933_v58 = vpop.f32.mrf.mxu0  ;;  %v4277_v45 = vpop.f32.mrf.mxu1 }
 0x3a8   : > { %v17367_v27 = vadd.f32 %v3933_v58, %v19122_v25  ;;  %v17370_v39 = vadd.f32 %v4277_v45, %v19123_v21 }
 0x3a9   : > { %v13128_v28 = vpop.f32.mrf.mxu0  ;;  %v13223_v44 = vpop.f32.mrf.mxu1 }
 0x3ab   : > { %v3938_v16 = vpop.f32.mrf.mxu0  ;;  %v4282_v42 = vpop.f32.mrf.mxu1 }
 0x3ac   : > { %v17373_v61 = vadd.f32 %v3938_v16, %v16943_v59  ;;  %v17376_v4 = vadd.f32 %v4282_v42, %v16946_v6 }
 0x3ad   : > { %v13131_v9 = vpop.f32.mrf.mxu0  ;;  %v13226_v48 = vpop.f32.mrf.mxu1 }
 0x3af   : > { %v3943_v52 = vpop.f32.mrf.mxu0  ;;  %v4287_v57 = vpop.f32.mrf.mxu1 }
 0x3b0   : > { %v17379_v25 = vadd.f32 %v3943_v52, %v16965_v40  ;;  %v17382_v45 = vadd.f32 %v4287_v57, %v16968_v37 }
 0x3b1   : > { %v13134_v58 = vpop.f32.mrf.mxu0  ;;  %v13229_v21 = vpop.f32.mrf.mxu1 }
 0x3b3   : > { %v3948_v28 = vpop.f32.mrf.mxu0  ;;  %v4292_v44 = vpop.f32.mrf.mxu1 }
 0x3b4   : > { %v17385_v59 = vadd.f32 %v3948_v28, %v16979_v13  ;;  %v17388_v6 = vadd.f32 %v4292_v44, %v16982_v33  ;;  %v17399_v13 = vld [vmem:[%s18807_s2] ss:$0 sm:$0xff] }
 0x3b5   : > { %v13137_v42 = vpop.f32.mrf.mxu0  ;;  %v13232_v16 = vpop.f32.mrf.mxu1 }
 0x3b6   : > { %19124 = vst [vmem:[#allocation38_spill] sm:$0xff] %v17385_v59  ;;  %19125 = vst [vmem:[#allocation19_spill] sm:$0xff] %v17388_v6 }
 0x3b7   : > { %v3953_v9 = vpop.f32.mrf.mxu0  ;;  %v4297_v48 = vpop.f32.mrf.mxu1 }
 0x3b8   : > { %v17391_v40 = vadd.f32 %v3953_v9, %v16993_v3  ;;  %v17394_v37 = vadd.f32 %v4297_v48, %v16996_v10 }
 0x3b9   : > { %v13140_v52 = vpop.f32.mrf.mxu0  ;;  %v13235_v57 = vpop.f32.mrf.mxu1 }
 0x3ba   : > { %19126 = vst [vmem:[#allocation39_spill] sm:$0xff] %v17391_v40  ;;  %19127 = vst [vmem:[#allocation20_spill] sm:$0xff] %v17394_v37 }
 0x3bb   : > { %v4463_v58 = vpop.f32.mrf.mxu0  ;;  %v4807_v33 = vpop.f32.mrf.mxu1 }
 0x3bc   : > { %v4617_v21 = vadd.f32 %v4463_v58, %v17007_v8  ;;  %v4961_v28 = vadd.f32 %v4807_v33, %v17010_v51 }
 0x3bd   : > { %v13240_v44 = vpop.f32.mrf.mxu0  ;;  %v13335_v42 = vpop.f32.mrf.mxu1 }
 0x3be   : > { %v4999_v3 = vadd.f32 %v17399_v13, %v4617_v21  ;;  %v5061_v10 = vadd.f32 %v17399_v13, %v4961_v28 }
 0x3bf   : > { %v4468_v16 = vpop.f32.mrf.mxu0  ;;  %v4812_v9 = vpop.f32.mrf.mxu1 }
 0x3c0   : > { %v5030_v48 = vmax.f32 %v4999_v3, 0.0  ;;  %v5092_v52 = vmax.f32 %v5061_v10, 0.0  ;;  %v4618_v57 = vadd.f32 %v4468_v16, %v17121_v55  ;;  %v4962_v37 = vadd.f32 %v4812_v9, %v17124_v26 }
 0x3c1   : > { %v13243_v40 = vpop.f32.mrf.mxu0  ;;  %v13338_v6 = vpop.f32.mrf.mxu1 }
 0x3c2   : > { %v5123_v59 = vadd.f32 %v5092_v52, %v5030_v48  ;;  %v5000_v8 = vadd.f32 %v17399_v13, %v4618_v57  ;;  %v5062_v51 = vadd.f32 %v17399_v13, %v4962_v37 }
 0x3c3   : > { %v4473_v58 = vpop.f32.mrf.mxu0  ;;  %v4817_v33 = vpop.f32.mrf.mxu1 }
 0x3c4   : > { %v5154_v21 = vmul.f32 0.5, %v5123_v59  ;;  %v5031_v44 = vmax.f32 %v5000_v8, 0.0  ;;  %v5093_v28 = vmax.f32 %v5062_v51, 0.0  ;;  %v4619_v42 = vadd.f32 %v4473_v58, %v17135_v63 }
 0x3c5   : > { %v4963_v3 = vadd.f32 %v4817_v33, %v17138_v7  ;;  %v13246_v10 = vpop.f32.mrf.mxu0  ;;  %v13341_v55 = vpop.f32.mrf.mxu1 }
 0x3c6   : > { %5185 = vst.msk [vmem:[#allocation2 + $0x8] sm:$0xff] %vm279_vm4, %v5154_v21  ;;  %v5124_v26 = vadd.f32 %v5093_v28, %v5031_v44  ;;  %v5001_v6 = vadd.f32 %v17399_v13, %v4619_v42 }
 0x3c7   : > { %v5063_v40 = vadd.f32 %v17399_v13, %v4963_v3  ;;  %v4478_v16 = vpop.f32.mrf.mxu0  ;;  %v4822_v37 = vpop.f32.mrf.mxu1 }
 0x3c8   : > { %v5155_v9 = vmul.f32 0.5, %v5124_v26  ;;  %v5032_v48 = vmax.f32 %v5001_v6, 0.0  ;;  %v4620_v59 = vadd.f32 %v4478_v16, %v17149_v14  ;;  %v4964_v52 = vadd.f32 %v4822_v37, %v17152_v11 }
 0x3c9   : > { %v5094_v63 = vmax.f32 %v5063_v40, 0.0  ;;  %v13249_v57 = vpop.f32.mrf.mxu0  ;;  %v13344_v7 = vpop.f32.mrf.mxu1 }
 0x3ca   : > { %5186 = vst.msk [vmem:[#allocation2 + $0x10] sm:$0xff] %vm279_vm4, %v5155_v9  ;;  %v5002_v8 = vadd.f32 %v17399_v13, %v4620_v59  ;;  %v5064_v51 = vadd.f32 %v17399_v13, %v4964_v52 }
 0x3cb   : > { %v5125_v58 = vadd.f32 %v5094_v63, %v5032_v48  ;;  %v4483_v33 = vpop.f32.mrf.mxu0  ;;  %v4827_v21 = vpop.f32.mrf.mxu1 }
 0x3cc   : > { %v5033_v44 = vmax.f32 %v5002_v8, 0.0  ;;  %v5095_v28 = vmax.f32 %v5064_v51, 0.0  ;;  %v4621_v42 = vadd.f32 %v4483_v33, %v17163_v23  ;;  %v4965_v14 = vadd.f32 %v4827_v21, %v17166_v19 }
 0x3cd   : > { %v5156_v3 = vmul.f32 0.5, %v5125_v58  ;;  %v13252_v11 = vpop.f32.mrf.mxu0  ;;  %v13347_v10 = vpop.f32.mrf.mxu1 }
 0x3ce   : > { %v5126_v55 = vadd.f32 %v5095_v28, %v5033_v44  ;;  %v5003_v26 = vadd.f32 %v17399_v13, %v4621_v42  ;;  %v5065_v6 = vadd.f32 %v17399_v13, %v4965_v14 }
 0x3cf   : > { %5187 = vst.msk [vmem:[#allocation2 + $0x18] sm:$0xff] %vm279_vm4, %v5156_v3  ;;  %v4488_v40 = vpop.f32.mrf.mxu0  ;;  %v4832_v16 = vpop.f32.mrf.mxu1 }
 0x3d0   : > { %v5157_v37 = vmul.f32 0.5, %v5126_v55  ;;  %v5034_v9 = vmax.f32 %v5003_v26, 0.0  ;;  %v5096_v48 = vmax.f32 %v5065_v6, 0.0  ;;  %v4622_v59 = vadd.f32 %v4488_v40, %v17177_v29 }
 0x3d1   : > { %v4966_v23 = vadd.f32 %v4832_v16, %v17180_v20  ;;  %v13255_v19 = vpop.f32.mrf.mxu0  ;;  %v13350_v52 = vpop.f32.mrf.mxu1  ;;  %v17426_v63 = vld [vmem:[#allocation2 + $0x6] ss:$2 sm:$0xff]  ;;  %v5224_v57 = vld [vmem:[#allocation2 + $0x5] ss:$2 sm:$0xff] }
 0x3d2   : > { %5188 = vst.msk [vmem:[#allocation2 + $0x20] sm:$0xff] %vm279_vm4, %v5157_v37  ;;  %v5127_v7 = vadd.f32 %v5096_v48, %v5034_v9  ;;  %v5004_v8 = vadd.f32 %v17399_v13, %v4622_v59  ;;  %13428 = vmatprep.mubr.msk.f32.mxu0 %vm279_vm4, %v17426_v63  ;;  %13454 = vmatprep.mubr.msk.f32.mxu1 %vm279_vm4, %v5224_v57 }
 0x3d3   : > { %v5066_v51 = vadd.f32 %v17399_v13, %v4966_v23  ;;  %v4493_v29 = vpop.f32.mrf.mxu0  ;;  %v4837_v58 = vpop.f32.mrf.mxu1 }
 0x3d4   : > { %v5158_v20 = vmul.f32 0.5, %v5127_v7  ;;  %v5035_v33 = vmax.f32 %v5004_v8, 0.0  ;;  %v4623_v21 = vadd.f32 %v4493_v29, %v17191_v35  ;;  %v4967_v44 = vadd.f32 %v4837_v58, %v17194_v24  ;;  %v17444_v24 = vld [vmem:[%s18808_s3 + $0x10] sm:$0x3f]  ;;  %v19128_v7 = vld [vmem:[#allocation31_spill] sm:$0xff]  ;;  %v19129_v8 = vld [vmem:[#allocation12_spill] sm:$0xff] }
 0x3d5   : > { %v5097_v28 = vmax.f32 %v5066_v51, 0.0  ;;  %v13258_v42 = vpop.f32.mrf.mxu0  ;;  %v13353_v14 = vpop.f32.mrf.mxu1 }
 0x3d6   : > { %5189 = vst.msk [vmem:[#allocation2 + $0x28] sm:$0xff] %vm279_vm4, %v5158_v20  ;;  %v5005_v3 = vadd.f32 %v17399_v13, %v4623_v21  ;;  %v5067_v11 = vadd.f32 %v17399_v13, %v4967_v44 }
 0x3d7   : > { %v5128_v10 = vadd.f32 %v5097_v28, %v5035_v33  ;;  %v4498_v55 = vpop.f32.mrf.mxu0  ;;  %v4842_v26 = vpop.f32.mrf.mxu1 }
 0x3d8   : > { %v5036_v6 = vmax.f32 %v5005_v3, 0.0  ;;  %v5098_v40 = vmax.f32 %v5067_v11, 0.0  ;;  %v4624_v16 = vadd.f32 %v4498_v55, %v17205_v41  ;;  %v4968_v35 = vadd.f32 %v4842_v26, %v17208_v30 }
 0x3d9   : > { %v5159_v37 = vmul.f32 0.5, %v5128_v10  ;;  %v13261_v9 = vpop.f32.mrf.mxu0  ;;  %v13356_v48 = vpop.f32.mrf.mxu1  ;;  %v17446_v59 = vld [vmem:[#allocation2 + $0x16] ss:$2 sm:$0xff]  ;;  %v5226_v23 = vld [vmem:[#allocation2 + $0x15] ss:$2 sm:$0xff] }
 0x3da   : > { %v5129_v19 = vadd.f32 %v5098_v40, %v5036_v6  ;;  %v5006_v52 = vadd.f32 %v17399_v13, %v4624_v16  ;;  %v5068_v57 = vadd.f32 %v17399_v13, %v4968_v35  ;;  %13429 = vmatmul.mubr.msk.f32.vlgmr.msra.gmra.mxu0 %vm279_vm4, %v17446_v59  ;;  %13455 = vmatmul.mubr.msk.f32.vlgmr.msra.gmra.mxu1 %vm279_vm4, %v5226_v23 }
 0x3db   : > { %5190 = vst.msk [vmem:[#allocation2 + $0x30] sm:$0xff] %vm279_vm4, %v5159_v37  ;;  %v4503_v41 = vpop.f32.mrf.mxu0  ;;  %v4847_v30 = vpop.f32.mrf.mxu1  ;;  %13479 = vmatpush3.msk.msra.mxu0 %vm5367_vm3, %v19128_v7  ;;  %13505 = vmatpush3.msk.msra.mxu1 %vm5367_vm3, %v19129_v8 }
 0x3dc   : > { %v5160_v51 = vmul.f32 0.5, %v5129_v19  ;;  %v5037_v29 = vmax.f32 %v5006_v52, 0.0  ;;  %v5099_v58 = vmax.f32 %v5068_v57, 0.0  ;;  %v4625_v20 = vadd.f32 %v4503_v41, %v17219_v43  ;;  %13530 = vmatprep.subr.msk.mxu0 %vm5367_vm3, %v17444_v24  ;;  %13556 = vmatprep.subr.msk.mxu1 %vm5367_vm3, %v17444_v24 }
 0x3dd   : > { %v4969_v33 = vadd.f32 %v4847_v30, %v17222_v62  ;;  %v13264_v21 = vpop.f32.mrf.mxu0  ;;  %v13359_v44 = vpop.f32.mrf.mxu1 }
 0x3de   : > { %5191 = vst.msk [vmem:[#allocation2 + $0x38] sm:$0xff] %vm279_vm4, %v5160_v51  ;;  %v5130_v28 = vadd.f32 %v5099_v58, %v5037_v29  ;;  %v5007_v42 = vadd.f32 %v17399_v13, %v4625_v20 }
 0x3df   : > { %v5069_v14 = vadd.f32 %v17399_v13, %v4969_v33  ;;  %v4508_v3 = vpop.f32.mrf.mxu0  ;;  %v4852_v11 = vpop.f32.mrf.mxu1 }
 0x3e0   : > { %v5161_v43 = vmul.f32 0.5, %v5130_v28  ;;  %v5038_v10 = vmax.f32 %v5007_v42, 0.0  ;;  %v4626_v55 = vadd.f32 %v4508_v3, %v17233_v12  ;;  %v4970_v26 = vadd.f32 %v4852_v11, %v17236_v1 }
 0x3e1   : > { %v5100_v6 = vmax.f32 %v5069_v14, 0.0  ;;  %v13267_v40 = vpop.f32.mrf.mxu0  ;;  %v13362_v62 = vpop.f32.mrf.mxu1 }
 0x3e2   : > { %5192 = vst.msk [vmem:[#allocation2 + $0x40] sm:$0xff] %vm279_vm4, %v5161_v43  ;;  %v5008_v16 = vadd.f32 %v17399_v13, %v4626_v55  ;;  %v5070_v35 = vadd.f32 %v17399_v13, %v4970_v26  ;;  %v17472_v37 = vld [vmem:[#allocation2 + $0x26] ss:$2 sm:$0xff]  ;;  %v5228_v9 = vld [vmem:[#allocation2 + $0x25] ss:$2 sm:$0xff] }
 0x3e3   : > { %v5131_v48 = vadd.f32 %v5100_v6, %v5038_v10  ;;  %13431 = vmatprep.mubr.msk.f32.mxu0 %vm279_vm4, %v17472_v37  ;;  %13457 = vmatprep.mubr.msk.f32.mxu1 %vm279_vm4, %v5228_v9  ;;  %v4513_v12 = vpop.f32.mrf.mxu0  ;;  %v4857_v1 = vpop.f32.mrf.mxu1 }
 0x3e4   : > { %v5039_v23 = vmax.f32 %v5008_v16, 0.0  ;;  %v5101_v19 = vmax.f32 %v5070_v35, 0.0  ;;  %v4627_v52 = vadd.f32 %v4513_v12, %v17247_v54  ;;  %v4971_v57 = vadd.f32 %v4857_v1, %v17250_v22 }
 0x3e5   : > { %v5162_v41 = vmul.f32 0.5, %v5131_v48  ;;  %v13270_v30 = vpop.f32.mrf.mxu0  ;;  %v13365_v7 = vpop.f32.mrf.mxu1 }
 0x3e6   : > { %v5132_v8 = vadd.f32 %v5101_v19, %v5039_v23  ;;  %v5009_v51 = vadd.f32 %v17399_v13, %v4627_v52  ;;  %v5071_v29 = vadd.f32 %v17399_v13, %v4971_v57 }
 0x3e7   : > { %5193 = vst.msk [vmem:[#allocation2 + $0x48] sm:$0xff] %vm279_vm4, %v5162_v41  ;;  %v4518_v58 = vpop.f32.mrf.mxu0  ;;  %v4862_v20 = vpop.f32.mrf.mxu1 }
 0x3e8   : > { %v5163_v33 = vmul.f32 0.5, %v5132_v8  ;;  %v5040_v21 = vmax.f32 %v5009_v51, 0.0  ;;  %v5102_v44 = vmax.f32 %v5071_v29, 0.0  ;;  %v4628_v28 = vadd.f32 %v4518_v58, %v17261_v32 }
 0x3e9   : > { %v4972_v54 = vadd.f32 %v4862_v20, %v17264_v46  ;;  %v13273_v22 = vpop.f32.mrf.mxu0  ;;  %v13368_v42 = vpop.f32.mrf.mxu1  ;;  %v17484_v14 = vld [vmem:[#allocation2 + $0x36] ss:$2 sm:$0xff]  ;;  %v5230_v3 = vld [vmem:[#allocation2 + $0x35] ss:$2 sm:$0xff] }
 0x3ea   : > { %5194 = vst.msk [vmem:[#allocation2 + $0x50] sm:$0xff] %vm279_vm4, %v5163_v33  ;;  %v5133_v11 = vadd.f32 %v5102_v44, %v5040_v21  ;;  %v5010_v43 = vadd.f32 %v17399_v13, %v4628_v28  ;;  %13432 = vmatmul.mubr.msk.f32.gmra.mxu0 %vm279_vm4, %v17484_v14  ;;  %13458 = vmatmul.mubr.msk.f32.gmra.mxu1 %vm279_vm4, %v5230_v3  ;;  %v19130_v28 = vld [vmem:[#allocation32_spill] sm:$0xff] }
 0x3eb   : > { %v5072_v10 = vadd.f32 %v17399_v13, %v4972_v54  ;;  %v4523_v32 = vpop.f32.mrf.mxu0  ;;  %v4867_v55 = vpop.f32.mrf.mxu1 }
 0x3ec   : > { %v5164_v46 = vmul.f32 0.5, %v5133_v11  ;;  %v5041_v26 = vmax.f32 %v5010_v43, 0.0  ;;  %v4629_v6 = vadd.f32 %v4523_v32, %v17275_v53  ;;  %v4973_v40 = vadd.f32 %v4867_v55, %v17278_v2 }
 0x3ed   : > { %v5103_v62 = vmax.f32 %v5072_v10, 0.0  ;;  %v13276_v16 = vpop.f32.mrf.mxu0  ;;  %v13371_v35 = vpop.f32.mrf.mxu1 }
 0x3ee   : > { %5195 = vst.msk [vmem:[#allocation2 + $0x58] sm:$0xff] %vm279_vm4, %v5164_v46  ;;  %v5011_v9 = vadd.f32 %v17399_v13, %v4629_v6  ;;  %v5073_v48 = vadd.f32 %v17399_v13, %v4973_v40  ;;  %v19131_v6 = vld [vmem:[#allocation13_spill] sm:$0xff] }
 0x3ef   : > { %v5134_v12 = vadd.f32 %v5103_v62, %v5041_v26  ;;  %v4528_v1 = vpop.f32.mrf.mxu0  ;;  %v4872_v23 = vpop.f32.mrf.mxu1 }
 0x3f0   : > { %v5042_v19 = vmax.f32 %v5011_v9, 0.0  ;;  %v5104_v52 = vmax.f32 %v5073_v48, 0.0  ;;  %v4630_v57 = vadd.f32 %v4528_v1, %v17289_v17  ;;  %v4974_v53 = vadd.f32 %v4872_v23, %v17292_v34 }
 0x3f1   : > { %v5165_v41 = vmul.f32 0.5, %v5134_v12  ;;  %v13279_v2 = vpop.f32.mrf.mxu0  ;;  %v13374_v30 = vpop.f32.mrf.mxu1  ;;  %v17499_v7 = vld [vmem:[#allocation2 + $0x46] ss:$2 sm:$0xff]  ;;  %v5232_v8 = vld [vmem:[#allocation2 + $0x45] ss:$2 sm:$0xff] }
 0x3f2   : > { %v5135_v51 = vadd.f32 %v5104_v52, %v5042_v19  ;;  %v5012_v29 = vadd.f32 %v17399_v13, %v4630_v57  ;;  %v5074_v58 = vadd.f32 %v17399_v13, %v4974_v53  ;;  %13434 = vmatprep.mubr.msk.f32.mxu0 %vm279_vm4, %v17499_v7  ;;  %13460 = vmatprep.mubr.msk.f32.mxu1 %vm279_vm4, %v5232_v8  ;;  %v19132_v53 = vld [vmem:[#allocation33_spill] sm:$0xff] }
 0x3f3   : > { %5196 = vst.msk [vmem:[#allocation2 + $0x60] sm:$0xff] %vm279_vm4, %v5165_v41  ;;  %v4533_v17 = vpop.f32.mrf.mxu0  ;;  %v4877_v34 = vpop.f32.mrf.mxu1 }
 0x3f4   : > { %v5166_v20 = vmul.f32 0.5, %v5135_v51  ;;  %v5043_v33 = vmax.f32 %v5012_v29, 0.0  ;;  %v5105_v21 = vmax.f32 %v5074_v58, 0.0  ;;  %v4631_v44 = vadd.f32 %v4533_v17, %v17295_v56 }
 0x3f5   : > { %v4975_v54 = vadd.f32 %v4877_v34, %v19130_v28  ;;  %v13282_v22 = vpop.f32.mrf.mxu0  ;;  %v13377_v42 = vpop.f32.mrf.mxu1 }
 0x3f6   : > { %5197 = vst.msk [vmem:[#allocation2 + $0x68] sm:$0xff] %vm279_vm4, %v5166_v20  ;;  %v5136_v3 = vadd.f32 %v5105_v21, %v5043_v33  ;;  %v5013_v11 = vadd.f32 %v17399_v13, %v4631_v44 }
 0x3f7   : > { %v5075_v43 = vadd.f32 %v17399_v13, %v4975_v54  ;;  %v4538_v10 = vpop.f32.mrf.mxu0  ;;  %v4882_v32 = vpop.f32.mrf.mxu1 }
 0x3f8   : > { %v5167_v55 = vmul.f32 0.5, %v5136_v3  ;;  %v5044_v46 = vmax.f32 %v5013_v11, 0.0  ;;  %v4632_v26 = vadd.f32 %v4538_v10, %v17301_v15  ;;  %v4976_v40 = vadd.f32 %v4882_v32, %v19131_v6  ;;  %v19134_v6 = vld [vmem:[#allocation34_spill] sm:$0xff] }
 0x3f9   : > { %v5106_v56 = vmax.f32 %v5075_v43, 0.0  ;;  %v13285_v62 = vpop.f32.mrf.mxu0  ;;  %v13380_v16 = vpop.f32.mrf.mxu1 }
 0x3fa   : > { %5198 = vst.msk [vmem:[#allocation2 + $0x70] sm:$0xff] %vm279_vm4, %v5167_v55  ;;  %v5014_v35 = vadd.f32 %v17399_v13, %v4632_v26  ;;  %v5076_v9 = vadd.f32 %v17399_v13, %v4976_v40  ;;  %v17517_v48 = vld [vmem:[#allocation2 + $0x56] ss:$2 sm:$0xff]  ;;  %v5234_v12 = vld [vmem:[#allocation2 + $0x55] ss:$2 sm:$0xff] }
 0x3fb   : > { %v5137_v1 = vadd.f32 %v5106_v56, %v5044_v46  ;;  %13435 = vmatmul.mubr.msk.f32.gmra.mxu0 %vm279_vm4, %v17517_v48  ;;  %13461 = vmatmul.mubr.msk.f32.gmra.mxu1 %vm279_vm4, %v5234_v12  ;;  %v4543_v15 = vpop.f32.mrf.mxu0  ;;  %v4887_v23 = vpop.f32.mrf.mxu1 }
 0x3fc   : > { %v5045_v19 = vmax.f32 %v5014_v35, 0.0  ;;  %v5107_v52 = vmax.f32 %v5076_v9, 0.0  ;;  %v4633_v57 = vadd.f32 %v4543_v15, %v17307_v49  ;;  %v4977_v41 = vadd.f32 %v4887_v23, %v19132_v53  ;;  %v19133_v49 = vld [vmem:[#allocation14_spill] sm:$0xff] }
 0x3fd   : > { %v5168_v2 = vmul.f32 0.5, %v5137_v1  ;;  %v13288_v30 = vpop.f32.mrf.mxu0  ;;  %v13383_v8 = vpop.f32.mrf.mxu1 }
 0x3fe   : > { %v5138_v51 = vadd.f32 %v5107_v52, %v5045_v19  ;;  %v5015_v29 = vadd.f32 %v17399_v13, %v4633_v57  ;;  %v5077_v58 = vadd.f32 %v17399_v13, %v4977_v41  ;;  %v19135_v57 = vld [vmem:[#allocation15_spill] sm:$0xff] }
 0x3ff   : > { %5199 = vst.msk [vmem:[#allocation2 + $0x78] sm:$0xff] %vm279_vm4, %v5168_v2  ;;  %v4548_v17 = vpop.f32.mrf.mxu0  ;;  %v4892_v34 = vpop.f32.mrf.mxu1 }
 0x400   : > { %v5169_v20 = vmul.f32 0.5, %v5138_v51  ;;  %v5046_v33 = vmax.f32 %v5015_v29, 0.0  ;;  %v5108_v21 = vmax.f32 %v5077_v58, 0.0  ;;  %v4634_v44 = vadd.f32 %v4548_v17, %v17313_v0 }
 0x401   : > { %v4978_v28 = vadd.f32 %v4892_v34, %v19133_v49  ;;  %v13291_v54 = vpop.f32.mrf.mxu0  ;;  %v13386_v22 = vpop.f32.mrf.mxu1  ;;  %v17529_v42 = vld [vmem:[#allocation2 + $0x66] ss:$2 sm:$0xff]  ;;  %v5236_v3 = vld [vmem:[#allocation2 + $0x65] ss:$2 sm:$0xff] }
 0x402   : > { %5200 = vst.msk [vmem:[#allocation2 + $0x80] sm:$0xff] %vm279_vm4, %v5169_v20  ;;  %v5139_v11 = vadd.f32 %v5108_v21, %v5046_v33  ;;  %v5016_v43 = vadd.f32 %v17399_v13, %v4634_v44  ;;  %13437 = vmatprep.mubr.msk.f32.mxu0 %vm279_vm4, %v17529_v42  ;;  %13463 = vmatprep.mubr.msk.f32.mxu1 %vm279_vm4, %v5236_v3  ;;  %v19136_v44 = vld [vmem:[#allocation35_spill] sm:$0xff] }
 0x403   : > { %v5078_v10 = vadd.f32 %v17399_v13, %v4978_v28  ;;  %v4553_v0 = vpop.f32.mrf.mxu0  ;;  %v4897_v32 = vpop.f32.mrf.mxu1 }
 0x404   : > { %v5170_v55 = vmul.f32 0.5, %v5139_v11  ;;  %v5047_v46 = vmax.f32 %v5016_v43, 0.0  ;;  %v4635_v26 = vadd.f32 %v4553_v0, %v17319_v60  ;;  %v4979_v40 = vadd.f32 %v4897_v32, %v19134_v6 }
 0x405   : > { %v5109_v56 = vmax.f32 %v5078_v10, 0.0  ;;  %v13294_v62 = vpop.f32.mrf.mxu0  ;;  %v13389_v16 = vpop.f32.mrf.mxu1 }
 0x406   : > { %5201 = vst.msk [vmem:[#allocation2 + $0x88] sm:$0xff] %vm279_vm4, %v5170_v55  ;;  %v5017_v35 = vadd.f32 %v17399_v13, %v4635_v26  ;;  %v5079_v9 = vadd.f32 %v17399_v13, %v4979_v40 }
 0x407   : > { %v5140_v12 = vadd.f32 %v5109_v56, %v5047_v46  ;;  %v4558_v1 = vpop.f32.mrf.mxu0  ;;  %v4902_v15 = vpop.f32.mrf.mxu1  ;;  %v19137_v46 = vld [vmem:[#allocation16_spill] sm:$0xff] }
 0x408   : > { %v5048_v23 = vmax.f32 %v5017_v35, 0.0  ;;  %v5110_v19 = vmax.f32 %v5079_v9, 0.0  ;;  %v4636_v52 = vadd.f32 %v4558_v1, %v17325_v47  ;;  %v4980_v60 = vadd.f32 %v4902_v15, %v19135_v57 }
 0x409   : > { %v5171_v53 = vmul.f32 0.5, %v5140_v12  ;;  %v13297_v41 = vpop.f32.mrf.mxu0  ;;  %v13392_v2 = vpop.f32.mrf.mxu1  ;;  %v17544_v30 = vld [vmem:[#allocation2 + $0x76] ss:$2 sm:$0xff]  ;;  %v5238_v8 = vld [vmem:[#allocation2 + $0x75] ss:$2 sm:$0xff] }
 0x40a   : > { %v5141_v51 = vadd.f32 %v5110_v19, %v5048_v23  ;;  %v5018_v29 = vadd.f32 %v17399_v13, %v4636_v52  ;;  %v5080_v58 = vadd.f32 %v17399_v13, %v4980_v60  ;;  %13438 = vmatmul.mubr.msk.f32.gmra.mxu0 %vm279_vm4, %v17544_v30  ;;  %13464 = vmatmul.mubr.msk.f32.gmra.mxu1 %vm279_vm4, %v5238_v8  ;;  %v19138_v19 = vld [vmem:[#allocation36_spill] sm:$0xff] }
 0x40b   : > { %5202 = vst.msk [vmem:[#allocation2 + $0x90] sm:$0xff] %vm279_vm4, %v5171_v53  ;;  %v4563_v47 = vpop.f32.mrf.mxu0  ;;  %v4907_v17 = vpop.f32.mrf.mxu1 }
 0x40c   : > { %v5172_v34 = vmul.f32 0.5, %v5141_v51  ;;  %v5049_v20 = vmax.f32 %v5018_v29, 0.0  ;;  %v5111_v33 = vmax.f32 %v5080_v58, 0.0  ;;  %v4637_v21 = vadd.f32 %v4563_v47, %v17331_v38 }
 0x40d   : > { %v4981_v49 = vadd.f32 %v4907_v17, %v19136_v44  ;;  %v13300_v28 = vpop.f32.mrf.mxu0  ;;  %v13395_v54 = vpop.f32.mrf.mxu1 }
 0x40e   : > { %5203 = vst.msk [vmem:[#allocation2 + $0x98] sm:$0xff] %vm279_vm4, %v5172_v34  ;;  %v5142_v22 = vadd.f32 %v5111_v33, %v5049_v20  ;;  %v5019_v3 = vadd.f32 %v17399_v13, %v4637_v21  ;;  %v19139_v34 = vld [vmem:[#allocation17_spill] sm:$0xff] }
 0x40f   : > { %v5081_v11 = vadd.f32 %v17399_v13, %v4981_v49  ;;  %v4568_v43 = vpop.f32.mrf.mxu0  ;;  %v4912_v10 = vpop.f32.mrf.mxu1 }
 0x410   : > { %v5173_v0 = vmul.f32 0.5, %v5142_v22  ;;  %v5050_v32 = vmax.f32 %v5019_v3, 0.0  ;;  %v4638_v55 = vadd.f32 %v4568_v43, %v17337_v18  ;;  %v4982_v26 = vadd.f32 %v4912_v10, %v19137_v46 }
 0x411   : > { %v5112_v38 = vmax.f32 %v5081_v11, 0.0  ;;  %v13303_v6 = vpop.f32.mrf.mxu0  ;;  %v13398_v40 = vpop.f32.mrf.mxu1 }
 0x412   : > { %5204 = vst.msk [vmem:[#allocation2 + $0xa0] sm:$0xff] %vm279_vm4, %v5173_v0  ;;  %v5020_v56 = vadd.f32 %v17399_v13, %v4638_v55  ;;  %v5082_v62 = vadd.f32 %v17399_v13, %v4982_v26  ;;  %v17562_v16 = vld [vmem:[#allocation2 + $0x86] ss:$2 sm:$0xff]  ;;  %v5240_v35 = vld [vmem:[#allocation2 + $0x85] ss:$2 sm:$0xff] }
 0x413   : > { %v5143_v9 = vadd.f32 %v5112_v38, %v5050_v32  ;;  %13440 = vmatprep.mubr.msk.f32.mxu0 %vm279_vm4, %v17562_v16  ;;  %13466 = vmatprep.mubr.msk.f32.mxu1 %vm279_vm4, %v5240_v35  ;;  %v4573_v18 = vpop.f32.mrf.mxu0  ;;  %v4917_v12 = vpop.f32.mrf.mxu1  ;;  %v19141_v55 = vld [vmem:[#allocation18_spill] sm:$0xff] }
 0x414   : > { %v5051_v1 = vmax.f32 %v5020_v56, 0.0  ;;  %v5113_v15 = vmax.f32 %v5082_v62, 0.0  ;;  %v4639_v23 = vadd.f32 %v4573_v18, %v17343_v5  ;;  %v4983_v52 = vadd.f32 %v4917_v12, %v19138_v19  ;;  %v19140_v5 = vld [vmem:[#allocation37_spill] sm:$0xff] }
 0x415   : > { %v5174_v57 = vmul.f32 0.5, %v5143_v9  ;;  %v13306_v60 = vpop.f32.mrf.mxu0  ;;  %v13401_v53 = vpop.f32.mrf.mxu1 }
 0x416   : > { %v5144_v41 = vadd.f32 %v5113_v15, %v5051_v1  ;;  %v5021_v2 = vadd.f32 %v17399_v13, %v4639_v23  ;;  %v5083_v8 = vadd.f32 %v17399_v13, %v4983_v52 }
 0x417   : > { %5205 = vst.msk [vmem:[#allocation2 + $0xa8] sm:$0xff] %vm279_vm4, %v5174_v57  ;;  %v4578_v51 = vpop.f32.mrf.mxu0  ;;  %v4922_v29 = vpop.f32.mrf.mxu1 }
 0x418   : > { %v5175_v58 = vmul.f32 0.5, %v5144_v41  ;;  %v5052_v47 = vmax.f32 %v5021_v2, 0.0  ;;  %v5114_v17 = vmax.f32 %v5083_v8, 0.0  ;;  %v4640_v20 = vadd.f32 %v4578_v51, %v19139_v34 }
 0x419   : > { %v4984_v33 = vadd.f32 %v4922_v29, %v19140_v5  ;;  %v13309_v21 = vpop.f32.mrf.mxu0  ;;  %v13404_v44 = vpop.f32.mrf.mxu1  ;;  %v17574_v49 = vld [vmem:[#allocation2 + $0x96] ss:$2 sm:$0xff]  ;;  %v5242_v28 = vld [vmem:[#allocation2 + $0x95] ss:$2 sm:$0xff] }
 0x41a   : > { %5206 = vst.msk [vmem:[#allocation2 + $0xb0] sm:$0xff] %vm279_vm4, %v5175_v58  ;;  %v5145_v54 = vadd.f32 %v5114_v17, %v5052_v47  ;;  %v5022_v22 = vadd.f32 %v17399_v13, %v4640_v20  ;;  %13441 = vmatmul.mubr.msk.f32.gmra.mxu0 %vm279_vm4, %v17574_v49  ;;  %13467 = vmatmul.mubr.msk.f32.gmra.mxu1 %vm279_vm4, %v5242_v28 }
 0x41b   : > { %v5084_v3 = vadd.f32 %v17399_v13, %v4984_v33  ;;  %v4583_v11 = vpop.f32.mrf.mxu0  ;;  %v4927_v43 = vpop.f32.mrf.mxu1 }
 0x41c   : > { %v5176_v10 = vmul.f32 0.5, %v5145_v54  ;;  %v5053_v0 = vmax.f32 %v5022_v22, 0.0  ;;  %v4641_v32 = vadd.f32 %v4583_v11, %v17355_v50  ;;  %v4985_v46 = vadd.f32 %v4927_v43, %v19141_v55 }
 0x41d   : > { %v5115_v26 = vmax.f32 %v5084_v3, 0.0  ;;  %v13312_v38 = vpop.f32.mrf.mxu0  ;;  %v13407_v6 = vpop.f32.mrf.mxu1 }
 0x41e   : > { %5207 = vst.msk [vmem:[#allocation2 + $0xb8] sm:$0xff] %vm279_vm4, %v5176_v10  ;;  %v5023_v40 = vadd.f32 %v17399_v13, %v4641_v32  ;;  %v5085_v56 = vadd.f32 %v17399_v13, %v4985_v46 }
 0x41f   : > { %v5146_v62 = vadd.f32 %v5115_v26, %v5053_v0  ;;  %v4588_v35 = vpop.f32.mrf.mxu0  ;;  %v4932_v9 = vpop.f32.mrf.mxu1 }
 0x420   : > { %v5054_v18 = vmax.f32 %v5023_v40, 0.0  ;;  %v5116_v12 = vmax.f32 %v5085_v56, 0.0  ;;  %v4642_v1 = vadd.f32 %v4588_v35, %v17361_v31  ;;  %v4986_v50 = vadd.f32 %v4932_v9, %v17364_v36 }
 0x421   : > { %v5177_v15 = vmul.f32 0.5, %v5146_v62  ;;  %v13315_v23 = vpop.f32.mrf.mxu0  ;;  %v13410_v19 = vpop.f32.mrf.mxu1  ;;  %v17589_v52 = vld [vmem:[#allocation2 + $0xa6] ss:$2 sm:$0xff]  ;;  %v5244_v57 = vld [vmem:[#allocation2 + $0xa5] ss:$2 sm:$0xff] }
 0x422   : > { %v5147_v60 = vadd.f32 %v5116_v12, %v5054_v18  ;;  %v5024_v53 = vadd.f32 %v17399_v13, %v4642_v1  ;;  %v5086_v41 = vadd.f32 %v17399_v13, %v4986_v50  ;;  %13443 = vmatprep.mubr.msk.f32.mxu0 %vm279_vm4, %v17589_v52  ;;  %13469 = vmatprep.mubr.msk.f32.mxu1 %vm279_vm4, %v5244_v57  ;;  %v19142_v23 = vld [vmem:[#allocation38_spill] sm:$0xff] }
 0x423   : > { %5208 = vst.msk [vmem:[#allocation2 + $0xc0] sm:$0xff] %vm279_vm4, %v5177_v15  ;;  %v4593_v31 = vpop.f32.mrf.mxu0  ;;  %v4937_v36 = vpop.f32.mrf.mxu1 }
 0x424   : > { %v5178_v2 = vmul.f32 0.5, %v5147_v60  ;;  %v5055_v8 = vmax.f32 %v5024_v53, 0.0  ;;  %v5117_v51 = vmax.f32 %v5086_v41, 0.0  ;;  %v4643_v29 = vadd.f32 %v4593_v31, %v17367_v27 }
 0x425   : > { %v4987_v58 = vadd.f32 %v4937_v36, %v17370_v39  ;;  %v13318_v47 = vpop.f32.mrf.mxu0  ;;  %v13413_v17 = vpop.f32.mrf.mxu1 }
 0x426   : > { %5209 = vst.msk [vmem:[#allocation2 + $0xc8] sm:$0xff] %vm279_vm4, %v5178_v2  ;;  %v5148_v34 = vadd.f32 %v5117_v51, %v5055_v8  ;;  %v5025_v20 = vadd.f32 %v17399_v13, %v4643_v29  ;;  %v19144_v47 = vld [vmem:[#allocation39_spill] sm:$0xff] }
 0x427   : > { %v5087_v5 = vadd.f32 %v17399_v13, %v4987_v58  ;;  %v4598_v33 = vpop.f32.mrf.mxu0  ;;  %v4942_v21 = vpop.f32.mrf.mxu1 }
 0x428   : > { %v5179_v44 = vmul.f32 0.5, %v5148_v34  ;;  %v5056_v28 = vmax.f32 %v5025_v20, 0.0  ;;  %v4644_v54 = vadd.f32 %v4598_v33, %v17373_v61  ;;  %v4988_v22 = vadd.f32 %v4942_v21, %v17376_v4  ;;  %v19145_v34 = vld [vmem:[#allocation20_spill] sm:$0xff] }
 0x429   : > { %v5118_v27 = vmax.f32 %v5087_v5, 0.0  ;;  %v13321_v3 = vpop.f32.mrf.mxu0  ;;  %v13416_v39 = vpop.f32.mrf.mxu1 }
 0x42a   : > { %5210 = vst.msk [vmem:[#allocation2 + $0xd0] sm:$0xff] %vm279_vm4, %v5179_v44  ;;  %v5026_v11 = vadd.f32 %v17399_v13, %v4644_v54  ;;  %v5088_v43 = vadd.f32 %v17399_v13, %v4988_v22  ;;  %v17607_v10 = vld [vmem:[#allocation2 + $0xb6] ss:$2 sm:$0xff]  ;;  %v5246_v0 = vld [vmem:[#allocation2 + $0xb5] ss:$2 sm:$0xff] }
 0x42b   : > { %v5149_v32 = vadd.f32 %v5118_v27, %v5056_v28  ;;  %13444 = vmatmul.mubr.msk.f32.gmra.mxu0 %vm279_vm4, %v17607_v10  ;;  %13470 = vmatmul.mubr.msk.f32.gmra.mxu1 %vm279_vm4, %v5246_v0  ;;  %v4603_v61 = vpop.f32.mrf.mxu0  ;;  %v4947_v4 = vpop.f32.mrf.mxu1 }
 0x42c   : > { %v5057_v55 = vmax.f32 %v5026_v11, 0.0  ;;  %v5119_v46 = vmax.f32 %v5088_v43, 0.0  ;;  %v4645_v26 = vadd.f32 %v4603_v61, %v17379_v25  ;;  %v4989_v38 = vadd.f32 %v4947_v4, %v17382_v45  ;;  %v19143_v25 = vld [vmem:[#allocation19_spill] sm:$0xff] }
 0x42d   : > { %v5180_v6 = vmul.f32 0.5, %v5149_v32  ;;  %v13324_v40 = vpop.f32.mrf.mxu0  ;;  %v13419_v56 = vpop.f32.mrf.mxu1 }
 0x42e   : > { %v5150_v62 = vadd.f32 %v5119_v46, %v5057_v55  ;;  %v5027_v35 = vadd.f32 %v17399_v13, %v4645_v26  ;;  %v5089_v9 = vadd.f32 %v17399_v13, %v4989_v38  ;;  %v5288_v55 = vld [vmem:[#allocation2 + $0x7] ss:$2 sm:$0xff]  ;;  %v5290_v46 = vld [vmem:[#allocation2 + $0x17] ss:$2 sm:$0xff]  ;;  %v6053_v40 = vld [vmem:[#allocation2 + $0x18] ss:$2 sm:$0xff] }
 0x42f   : > { %5211 = vst.msk [vmem:[#allocation2 + $0xd8] sm:$0xff] %vm279_vm4, %v5180_v6  ;;  %v4608_v18 = vpop.f32.mrf.mxu0  ;;  %v4952_v12 = vpop.f32.mrf.mxu1  ;;  %v5219_v26 = vld [vmem:[%s18808_s3 + $0x18] sm:$0x3f]  ;;  %v5292_v38 = vld [vmem:[#allocation2 + $0x27] ss:$2 sm:$0xff] }
 0x430   : > { %v5181_v1 = vmul.f32 0.5, %v5150_v62  ;;  %v5058_v50 = vmax.f32 %v5027_v35, 0.0  ;;  %v5120_v15 = vmax.f32 %v5089_v9, 0.0  ;;  %v4646_v19 = vadd.f32 %v4608_v18, %v19142_v23  ;;  %v5302_v6 = vld [vmem:[#allocation2 + $0x77] ss:$2 sm:$0xff] }
 0x431   : > { %v4990_v57 = vadd.f32 %v4952_v12, %v19143_v25  ;;  %v13327_v45 = vpop.f32.mrf.mxu0  ;;  %v13422_v60 = vpop.f32.mrf.mxu1  ;;  %v17619_v53 = vld [vmem:[#allocation2 + $0xc6] ss:$2 sm:$0xff]  ;;  %v5248_v41 = vld [vmem:[#allocation2 + $0xc5] ss:$2 sm:$0xff] }
 0x432   : > { %5212 = vst.msk [vmem:[#allocation2 + $0xe0] sm:$0xff] %vm279_vm4, %v5181_v1  ;;  %v5151_v31 = vadd.f32 %v5120_v15, %v5058_v50  ;;  %v5028_v36 = vadd.f32 %v17399_v13, %v4646_v19  ;;  %13446 = vmatprep.mubr.msk.f32.mxu0 %vm279_vm4, %v17619_v53  ;;  %13472 = vmatprep.mubr.msk.f32.mxu1 %vm279_vm4, %v5248_v41  ;;  %v5220_v56 = vld [vmem:[%s18808_s3 + $0x20] sm:$0x3f]  ;;  %v6055_v62 = vld [vmem:[#allocation2 + $0x28] ss:$2 sm:$0xff] }
 0x433   : > { %v5090_v2 = vadd.f32 %v17399_v13, %v4990_v57  ;;  %v4613_v8 = vpop.f32.mrf.mxu0  ;;  %v4957_v51 = vpop.f32.mrf.mxu1  ;;  %v6057_v35 = vld [vmem:[#allocation2 + $0x38] ss:$2 sm:$0xff]  ;;  %v6059_v9 = vld [vmem:[#allocation2 + $0x48] ss:$2 sm:$0xff]  ;;  %v6458_v41 = vld [vmem:[#allocation2 + $0x19] ss:$2 sm:$0xff] }
 0x434   : > { %v5182_v29 = vmul.f32 0.5, %v5151_v31  ;;  %v5059_v58 = vmax.f32 %v5028_v36, 0.0  ;;  %v4647_v17 = vadd.f32 %v4613_v8, %v19144_v47  ;;  %v4991_v20 = vadd.f32 %v4957_v51, %v19145_v34  ;;  %v6061_v18 = vld [vmem:[#allocation2 + $0x58] ss:$2 sm:$0xff]  ;;  %v6063_v12 = vld [vmem:[#allocation2 + $0x68] ss:$2 sm:$0xff] }
 0x435   : > { %v5121_v5 = vmax.f32 %v5090_v2, 0.0  ;;  %v13330_v33 = vpop.f32.mrf.mxu0  ;;  %v13425_v21 = vpop.f32.mrf.mxu1  ;;  %v6065_v1 = vld [vmem:[#allocation2 + $0x78] ss:$2 sm:$0xff]  ;;  %v6067_v50 = vld [vmem:[#allocation2 + $0x88] ss:$2 sm:$0xff] }
 0x436   : > { %5213 = vst.msk [vmem:[#allocation2 + $0xe8] sm:$0xff] %vm279_vm4, %v5182_v29  ;;  %v5029_v44 = vadd.f32 %v17399_v13, %v4647_v17  ;;  %v5091_v28 = vadd.f32 %v17399_v13, %v4991_v20  ;;  %v6069_v15 = vld [vmem:[#allocation2 + $0x98] ss:$2 sm:$0xff]  ;;  %v6071_v23 = vld [vmem:[#allocation2 + $0xa8] ss:$2 sm:$0xff] }
 0x437   : > { %v5152_v54 = vadd.f32 %v5121_v5, %v5059_v58  ;;  %v6073_v19 = vld [vmem:[#allocation2 + $0xb8] ss:$2 sm:$0xff]  ;;  %v6075_v25 = vld [vmem:[#allocation2 + $0xc8] ss:$2 sm:$0xff]  ;;  %v6460_v36 = vld [vmem:[#allocation2 + $0x29] ss:$2 sm:$0xff] }
 0x438   : > { %v5060_v22 = vmax.f32 %v5029_v44, 0.0  ;;  %v5122_v27 = vmax.f32 %v5091_v28, 0.0  ;;  %v17740_v31 = vld [vmem:[%s18808_s3 + $0x28] sm:$0x3f]  ;;  %v17746_v2 = vld [vmem:[#allocation2 + $0x39] ss:$2 sm:$0xff] }
 0x439   : > { %v5183_v3 = vmul.f32 0.5, %v5152_v54  ;;  %v5282_v39 = vld [vmem:[#allocation2 + $0xd6] ss:$2 sm:$0xff]  ;;  %v5250_v11 = vld [vmem:[#allocation2 + $0xd5] ss:$2 sm:$0xff] }
 0x43a   : > { %v5153_v43 = vadd.f32 %v5122_v27, %v5060_v22  ;;  %13447 = vmatmul.mubr.msk.f32.gmra.mxu0 %vm279_vm4, %v5282_v39  ;;  %13473 = vmatmul.mubr.msk.f32.gmra.mxu1 %vm279_vm4, %v5250_v11  ;;  %v6077_v57 = vld [vmem:[#allocation2 + $0xd8] ss:$2 sm:$0xff]  ;;  %v6464_v8 = vld [vmem:[#allocation2 + $0x49] ss:$2 sm:$0xff]  ;;  %v6466_v51 = vld [vmem:[#allocation2 + $0x59] ss:$2 sm:$0xff] }
 0x43b   : > { %5214 = vst.msk [vmem:[#allocation2 + $0xf0] sm:$0xff] %vm279_vm4, %v5183_v3  ;;  %v6468_v29 = vld [vmem:[#allocation2 + $0x69] ss:$2 sm:$0xff]  ;;  %v6470_v58 = vld [vmem:[#allocation2 + $0x79] ss:$2 sm:$0xff] }
 0x43c   : > { %v5184_v0 = vmul.f32 0.5, %v5153_v43  ;;  %v6472_v47 = vld [vmem:[#allocation2 + $0x89] ss:$2 sm:$0xff]  ;;  %v17765_v17 = vld [vmem:[#allocation2 + $0x99] ss:$2 sm:$0xff] }
 0x43d   : > { %v17770_v5 = vld [vmem:[#allocation2 + $0xa9] ss:$2 sm:$0xff]  ;;  %v17777_v21 = vld [vmem:[#allocation2 + $0xb9] ss:$2 sm:$0xff]  ;;  %v17802_v27 = vld [vmem:[#allocation2 + $0xa] ss:$2 sm:$0xff] }
 0x43e   : > { %5215 = vst.msk [vmem:[#allocation2 + $0xf8] sm:$0xff] %vm279_vm4, %v5184_v0  ;;  %v17782_v44 = vld [vmem:[#allocation2 + $0xc9] ss:$2 sm:$0xff]  ;;  %v17787_v28 = vld [vmem:[#allocation2 + $0xd9] ss:$2 sm:$0xff] }
 0x43f   : > { %v17811_v11 = vld [vmem:[#allocation2 + $0x1a] ss:$2 sm:$0xff] }
 0x442   : > { %v5284_v32 = vld [vmem:[#allocation2 + $0xe6] ss:$2 sm:$0xff]  ;;  %v5252_v61 = vld [vmem:[#allocation2 + $0xe5] ss:$2 sm:$0xff] }
 0x443   : > { %13449 = vmatprep.mubr.msk.f32.mxu0 %vm279_vm4, %v5284_v32  ;;  %13475 = vmatprep.mubr.msk.f32.mxu1 %vm279_vm4, %v5252_v61  ;;  %v6079_v45 = vld [vmem:[#allocation2 + $0xe8] ss:$2 sm:$0xff]  ;;  %v17792_v54 = vld [vmem:[#allocation2 + $0xe9] ss:$2 sm:$0xff] }
 0x445   : > { %v5286_v13 = vld [vmem:[#allocation2 + $0xf6] ss:$2 sm:$0xf]  ;;  %v5254_v4 = vld [vmem:[#allocation2 + $0xf5] ss:$2 sm:$0xf] }
 0x446   : > { %13450 = vmatmul.mubr.msk.f32.gmra.mxu0 %vm279_vm4, %v5286_v13  ;;  %13476 = vmatmul.mubr.msk.f32.gmra.mxu1 %vm279_vm4, %v5254_v4  ;;  %v6081_v60 = vld [vmem:[#allocation2 + $0xf8] ss:$2 sm:$0xf]  ;;  %v17797_v22 = vld [vmem:[#allocation2 + $0xf9] ss:$2 sm:$0xf] }
 0x447   : > { %13480 = vmatprep.mubr.msk.f32.mxu0 %vm279_vm4, %v5288_v55  ;;  %13506 = vmatprep.mubr.msk.f32.mxu1 %vm279_vm4, %v17426_v63  ;;  %v5294_v63 = vld [vmem:[#allocation2 + $0x37] ss:$2 sm:$0xff]  ;;  %v17832_v4 = vld [vmem:[#allocation2 + $0x3a] ss:$2 sm:$0xff] }
 0x44a   : > { %13481 = vmatmul.mubr.msk.f32.vlgmr.msra.gmra.mxu0 %vm279_vm4, %v5290_v46  ;;  %13507 = vmatmul.mubr.msk.f32.vlgmr.msra.gmra.mxu1 %vm279_vm4, %v17446_v59  ;;  %v5296_v59 = vld [vmem:[#allocation2 + $0x47] ss:$2 sm:$0xff] }
 0x44b   : > { %13531 = vmatpush3.msk.msra.mxu0 %vm5367_vm3, %v17444_v24  ;;  %13557 = vmatpush3.msk.msra.mxu1 %vm5367_vm3, %v17444_v24  ;;  %v5298_v24 = vld [vmem:[#allocation2 + $0x57] ss:$2 sm:$0xff] }
 0x44c   : > { %13483 = vmatprep.mubr.msk.f32.mxu0 %vm279_vm4, %v5292_v38  ;;  %13509 = vmatprep.mubr.msk.f32.mxu1 %vm279_vm4, %v17472_v37  ;;  %v5300_v37 = vld [vmem:[#allocation2 + $0x67] ss:$2 sm:$0xff] }
 0x44d   : > { %13582 = vmatprep.subr.msk.mxu0 %vm5367_vm3, %v5219_v26  ;;  %13608 = vmatprep.subr.msk.mxu1 %vm5367_vm3, %v5219_v26 }
 0x44e   : > { %13484 = vmatmul.mubr.msk.f32.gmra.mxu0 %vm279_vm4, %v5294_v63  ;;  %13510 = vmatmul.mubr.msk.f32.gmra.mxu1 %vm279_vm4, %v17484_v14  ;;  %v5304_v14 = vld [vmem:[#allocation2 + $0x87] ss:$2 sm:$0xff] }
 0x44f   : > { %13486 = vmatprep.mubr.msk.f32.mxu0 %vm279_vm4, %v5296_v59  ;;  %13512 = vmatprep.mubr.msk.f32.mxu1 %vm279_vm4, %v17499_v7  ;;  %v5306_v7 = vld [vmem:[#allocation2 + $0x97] ss:$2 sm:$0xff] }
 0x452   : > { %13487 = vmatmul.mubr.msk.f32.gmra.mxu0 %vm279_vm4, %v5298_v24  ;;  %13513 = vmatmul.mubr.msk.f32.gmra.mxu1 %vm279_vm4, %v17517_v48  ;;  %v5308_v48 = vld [vmem:[#allocation2 + $0xa7] ss:$2 sm:$0xff] }
 0x453   : > { %13489 = vmatprep.mubr.msk.f32.mxu0 %vm279_vm4, %v5300_v37  ;;  %13515 = vmatprep.mubr.msk.f32.mxu1 %vm279_vm4, %v17529_v42  ;;  %v5310_v42 = vld [vmem:[#allocation2 + $0xb7] ss:$2 sm:$0xff] }
 0x456   : > { %13490 = vmatmul.mubr.msk.f32.gmra.mxu0 %vm279_vm4, %v5302_v6  ;;  %13516 = vmatmul.mubr.msk.f32.gmra.mxu1 %vm279_vm4, %v17544_v30  ;;  %v5312_v30 = vld [vmem:[#allocation2 + $0xc7] ss:$2 sm:$0xff] }
 0x457   : > { %13492 = vmatprep.mubr.msk.f32.mxu0 %vm279_vm4, %v5304_v14  ;;  %13518 = vmatprep.mubr.msk.f32.mxu1 %vm279_vm4, %v17562_v16  ;;  %v5314_v16 = vld [vmem:[#allocation2 + $0xd7] ss:$2 sm:$0xff] }
 0x45a   : > { %13493 = vmatmul.mubr.msk.f32.gmra.mxu0 %vm279_vm4, %v5306_v7  ;;  %13519 = vmatmul.mubr.msk.f32.gmra.mxu1 %vm279_vm4, %v17574_v49  ;;  %v5316_v49 = vld [vmem:[#allocation2 + $0xe7] ss:$2 sm:$0xff] }
 0x45b   : > { %13495 = vmatprep.mubr.msk.f32.mxu0 %vm279_vm4, %v5308_v48  ;;  %13521 = vmatprep.mubr.msk.f32.mxu1 %vm279_vm4, %v17589_v52  ;;  %v5318_v52 = vld [vmem:[#allocation2 + $0xf7] ss:$2 sm:$0xf] }
 0x45e   : > { %13496 = vmatmul.mubr.msk.f32.gmra.mxu0 %vm279_vm4, %v5310_v42  ;;  %13522 = vmatmul.mubr.msk.f32.gmra.mxu1 %vm279_vm4, %v17607_v10  ;;  %v6051_v10 = vld [vmem:[#allocation2 + $0x8] ss:$2 sm:$0xff] }
 0x45f   : > { %13498 = vmatprep.mubr.msk.f32.mxu0 %vm279_vm4, %v5312_v30  ;;  %13524 = vmatprep.mubr.msk.f32.mxu1 %vm279_vm4, %v17619_v53  ;;  %v6456_v53 = vld [vmem:[#allocation2 + $0x9] ss:$2 sm:$0xff] }
 0x462   : > { %13499 = vmatmul.mubr.msk.f32.gmra.mxu0 %vm279_vm4, %v5314_v16  ;;  %13525 = vmatmul.mubr.msk.f32.gmra.mxu1 %vm279_vm4, %v5282_v39 }
 0x463   : > { %13501 = vmatprep.mubr.msk.f32.mxu0 %vm279_vm4, %v5316_v49  ;;  %13527 = vmatprep.mubr.msk.f32.mxu1 %vm279_vm4, %v5284_v32  ;;  %v17819_v32 = vld [vmem:[%s18808_s3 + $0x30] sm:$0x3f] }
 0x466   : > { %13502 = vmatmul.mubr.msk.f32.gmra.mxu0 %vm279_vm4, %v5318_v52  ;;  %13528 = vmatmul.mubr.msk.f32.gmra.mxu1 %vm279_vm4, %v5286_v13  ;;  %v17827_v13 = vld [vmem:[#allocation2 + $0x2a] ss:$2 sm:$0xff] }
 0x467   : > { %13532 = vmatprep.mubr.msk.f32.mxu0 %vm279_vm4, %v5288_v55  ;;  %13558 = vmatprep.mubr.msk.f32.mxu1 %vm279_vm4, %v6051_v10  ;;  %v6869_v55 = vld [vmem:[#allocation2 + $0x4a] ss:$2 sm:$0xff] }
 0x46a   : > { %13533 = vmatmul.mubr.msk.f32.vlgmr.msra.gmra.mxu0 %vm279_vm4, %v5290_v46  ;;  %13559 = vmatmul.mubr.msk.f32.vlgmr.msra.gmra.mxu1 %vm279_vm4, %v6053_v40  ;;  %v6871_v46 = vld [vmem:[#allocation2 + $0x5a] ss:$2 sm:$0xff] }
 0x46b   : > { %13583 = vmatpush3.msk.msra.mxu0 %vm5367_vm3, %v5219_v26  ;;  %13609 = vmatpush3.msk.msra.mxu1 %vm5367_vm3, %v5219_v26  ;;  %v6873_v26 = vld [vmem:[#allocation2 + $0x6a] ss:$2 sm:$0xff] }
 0x46c   : > { %13535 = vmatprep.mubr.msk.f32.mxu0 %vm279_vm4, %v5292_v38  ;;  %13561 = vmatprep.mubr.msk.f32.mxu1 %vm279_vm4, %v6055_v62  ;;  %v6875_v38 = vld [vmem:[#allocation2 + $0x7a] ss:$2 sm:$0xff] }
 0x46d   : > { %13634 = vmatprep.subr.msk.mxu0 %vm5367_vm3, %v5220_v56  ;;  %13660 = vmatprep.subr.msk.mxu1 %vm5367_vm3, %v5220_v56 }
 0x46e   : > { %13536 = vmatmul.mubr.msk.f32.gmra.mxu0 %vm279_vm4, %v5294_v63  ;;  %13562 = vmatmul.mubr.msk.f32.gmra.mxu1 %vm279_vm4, %v6057_v35  ;;  %v6877_v63 = vld [vmem:[#allocation2 + $0x8a] ss:$2 sm:$0xff] }
 0x46f   : > { %13538 = vmatprep.mubr.msk.f32.mxu0 %vm279_vm4, %v5296_v59  ;;  %13564 = vmatprep.mubr.msk.f32.mxu1 %vm279_vm4, %v6059_v9 }
 0x472   : > { %13539 = vmatmul.mubr.msk.f32.gmra.mxu0 %vm279_vm4, %v5298_v24  ;;  %13565 = vmatmul.mubr.msk.f32.gmra.mxu1 %vm279_vm4, %v6061_v18 }
 0x473   : > { %13541 = vmatprep.mubr.msk.f32.mxu0 %vm279_vm4, %v5300_v37  ;;  %13567 = vmatprep.mubr.msk.f32.mxu1 %vm279_vm4, %v6063_v12  ;;  %v17856_v37 = vld [vmem:[#allocation2 + $0x9a] ss:$2 sm:$0xff] }
 0x476   : > { %13542 = vmatmul.mubr.msk.f32.gmra.mxu0 %vm279_vm4, %v5302_v6  ;;  %13568 = vmatmul.mubr.msk.f32.gmra.mxu1 %vm279_vm4, %v6065_v1  ;;  %v17862_v6 = vld [vmem:[#allocation2 + $0xaa] ss:$2 sm:$0xff] }
 0x477   : > { %13544 = vmatprep.mubr.msk.f32.mxu0 %vm279_vm4, %v5304_v14  ;;  %13570 = vmatprep.mubr.msk.f32.mxu1 %vm279_vm4, %v6067_v50 }
 0x47a   : > { %13545 = vmatmul.mubr.msk.f32.gmra.mxu0 %vm279_vm4, %v5306_v7  ;;  %13571 = vmatmul.mubr.msk.f32.gmra.mxu1 %vm279_vm4, %v6069_v15 }
 0x47b   : > { %13547 = vmatprep.mubr.msk.f32.mxu0 %vm279_vm4, %v5308_v48  ;;  %13573 = vmatprep.mubr.msk.f32.mxu1 %vm279_vm4, %v6071_v23 }
 0x47e   : > { %13548 = vmatmul.mubr.msk.f32.gmra.mxu0 %vm279_vm4, %v5310_v42  ;;  %13574 = vmatmul.mubr.msk.f32.gmra.mxu1 %vm279_vm4, %v6073_v19  ;;  %v6883_v42 = vld [vmem:[#allocation2 + $0xba] ss:$2 sm:$0xff] }
 0x47f   : > { %13550 = vmatprep.mubr.msk.f32.mxu0 %vm279_vm4, %v5312_v30  ;;  %13576 = vmatprep.mubr.msk.f32.mxu1 %vm279_vm4, %v6075_v25  ;;  %v6885_v30 = vld [vmem:[#allocation2 + $0xca] ss:$2 sm:$0xff] }
 0x482   : > { %13551 = vmatmul.mubr.msk.f32.gmra.mxu0 %vm279_vm4, %v5314_v16  ;;  %13577 = vmatmul.mubr.msk.f32.gmra.mxu1 %vm279_vm4, %v6077_v57  ;;  %v6887_v16 = vld [vmem:[#allocation2 + $0xda] ss:$2 sm:$0xff] }
 0x483   : > { %13553 = vmatprep.mubr.msk.f32.mxu0 %vm279_vm4, %v5316_v49  ;;  %13579 = vmatprep.mubr.msk.f32.mxu1 %vm279_vm4, %v6079_v45  ;;  %v6889_v49 = vld [vmem:[#allocation2 + $0xea] ss:$2 sm:$0xff] }
 0x486   : > { %13554 = vmatmul.mubr.msk.f32.gmra.mxu0 %vm279_vm4, %v5318_v52  ;;  %13580 = vmatmul.mubr.msk.f32.gmra.mxu1 %vm279_vm4, %v6081_v60  ;;  %v6891_v52 = vld [vmem:[#allocation2 + $0xfa] ss:$2 sm:$0xf] }
 0x487   : > { %13584 = vmatprep.mubr.msk.f32.mxu0 %vm279_vm4, %v6051_v10  ;;  %13610 = vmatprep.mubr.msk.f32.mxu1 %vm279_vm4, %v6456_v53  ;;  %v7266_v10 = vld [vmem:[#allocation2 + $0xb] ss:$2 sm:$0xff] }
 0x48a   : > { %13585 = vmatmul.mubr.msk.f32.vlgmr.msra.gmra.mxu0 %vm279_vm4, %v6053_v40  ;;  %13611 = vmatmul.mubr.msk.f32.vlgmr.msra.gmra.mxu1 %vm279_vm4, %v6458_v41 }
 0x48b   : > { %13635 = vmatpush3.msk.msra.mxu0 %vm5367_vm3, %v5220_v56  ;;  %13661 = vmatpush3.msk.msra.mxu1 %vm5367_vm3, %v5220_v56 }
 0x48c   : > { %13587 = vmatprep.mubr.msk.f32.mxu0 %vm279_vm4, %v6055_v62  ;;  %13613 = vmatprep.mubr.msk.f32.mxu1 %vm279_vm4, %v6460_v36  ;;  %v7268_v62 = vld [vmem:[#allocation2 + $0x1b] ss:$2 sm:$0xff] }
 0x48d   : > { %13686 = vmatprep.subr.msk.mxu0 %vm5367_vm3, %v17740_v31  ;;  %13712 = vmatprep.subr.msk.mxu1 %vm5367_vm3, %v17740_v31 }
 0x48e   : > { %13588 = vmatmul.mubr.msk.f32.gmra.mxu0 %vm279_vm4, %v6057_v35  ;;  %13614 = vmatmul.mubr.msk.f32.gmra.mxu1 %vm279_vm4, %v17746_v2 }
 0x48f   : > { %13590 = vmatprep.mubr.msk.f32.mxu0 %vm279_vm4, %v6059_v9  ;;  %13616 = vmatprep.mubr.msk.f32.mxu1 %vm279_vm4, %v6464_v8 }
 0x492   : > { %13591 = vmatmul.mubr.msk.f32.gmra.mxu0 %vm279_vm4, %v6061_v18  ;;  %13617 = vmatmul.mubr.msk.f32.gmra.mxu1 %vm279_vm4, %v6466_v51 }
 0x493   : > { %13593 = vmatprep.mubr.msk.f32.mxu0 %vm279_vm4, %v6063_v12  ;;  %13619 = vmatprep.mubr.msk.f32.mxu1 %vm279_vm4, %v6468_v29  ;;  %v7270_v12 = vld [vmem:[#allocation2 + $0x2b] ss:$2 sm:$0xff] }
 0x496   : > { %13594 = vmatmul.mubr.msk.f32.gmra.mxu0 %vm279_vm4, %v6065_v1  ;;  %13620 = vmatmul.mubr.msk.f32.gmra.mxu1 %vm279_vm4, %v6470_v58  ;;  %v7272_v1 = vld [vmem:[#allocation2 + $0x3b] ss:$2 sm:$0xff] }
 0x497   : > { %13596 = vmatprep.mubr.msk.f32.mxu0 %vm279_vm4, %v6067_v50  ;;  %13622 = vmatprep.mubr.msk.f32.mxu1 %vm279_vm4, %v6472_v47  ;;  %v7274_v50 = vld [vmem:[#allocation2 + $0x4b] ss:$2 sm:$0xff] }
 0x49a   : > { %v13430_v34 = vpop.f32.mrf.mxu0  ;;  %v13456_v20 = vpop.f32.mrf.mxu1  ;;  %13597 = vmatmul.mubr.msk.f32.gmra.mxu0 %vm279_vm4, %v6069_v15  ;;  %13623 = vmatmul.mubr.msk.f32.gmra.mxu1 %vm279_vm4, %v17765_v17  ;;  %v7276_v15 = vld [vmem:[#allocation2 + $0x5b] ss:$2 sm:$0xff] }
 0x49b   : > { %v17772_v33 = vadd.f32 %v13456_v20, %v13430_v34  ;;  %13599 = vmatprep.mubr.msk.f32.mxu0 %vm279_vm4, %v6071_v23  ;;  %13625 = vmatprep.mubr.msk.f32.mxu1 %vm279_vm4, %v17770_v5  ;;  %v7278_v23 = vld [vmem:[#allocation2 + $0x6b] ss:$2 sm:$0xff]  ;;  %v7673_v20 = vld [vmem:[#allocation2 + $0x1c] ss:$2 sm:$0xff] }
 0x49c   : > { %v17807_v3 = vpop.f32.mrf.mxu0  ;;  %v17809_v39 = vpop.f32.mrf.mxu1 }
 0x49e   : > { %13600 = vmatmul.mubr.msk.f32.gmra.mxu0 %vm279_vm4, %v6073_v19  ;;  %13626 = vmatmul.mubr.msk.f32.gmra.mxu1 %vm279_vm4, %v17777_v21  ;;  %v7280_v19 = vld [vmem:[#allocation2 + $0x7b] ss:$2 sm:$0xff] }
 0x49f   : > { %13602 = vmatprep.mubr.msk.f32.mxu0 %vm279_vm4, %v6075_v25  ;;  %13628 = vmatprep.mubr.msk.f32.mxu1 %vm279_vm4, %v17782_v44  ;;  %v7282_v25 = vld [vmem:[#allocation2 + $0x8b] ss:$2 sm:$0xff] }
 0x4a2   : > { %13603 = vmatmul.mubr.msk.f32.gmra.mxu0 %vm279_vm4, %v6077_v57  ;;  %13629 = vmatmul.mubr.msk.f32.gmra.mxu1 %vm279_vm4, %v17787_v28 }
 0x4a3   : > { %13605 = vmatprep.mubr.msk.f32.mxu0 %vm279_vm4, %v6079_v45  ;;  %13631 = vmatprep.mubr.msk.f32.mxu1 %vm279_vm4, %v17792_v54 }
 0x4a6   : > { %13606 = vmatmul.mubr.msk.f32.gmra.mxu0 %vm279_vm4, %v6081_v60  ;;  %13632 = vmatmul.mubr.msk.f32.gmra.mxu1 %vm279_vm4, %v17797_v22  ;;  %v7284_v60 = vld [vmem:[#allocation2 + $0x9b] ss:$2 sm:$0xff] }
 0x4a7   : > { %13636 = vmatprep.mubr.msk.f32.mxu0 %vm279_vm4, %v6456_v53  ;;  %13662 = vmatprep.mubr.msk.f32.mxu1 %vm279_vm4, %v17802_v27 }
 0x4aa   : > { %v13433_v43 = vpop.f32.mrf.mxu0  ;;  %v13459_v0 = vpop.f32.mrf.mxu1  ;;  %13637 = vmatmul.mubr.msk.f32.vlgmr.msra.gmra.mxu0 %vm279_vm4, %v6458_v41  ;;  %13663 = vmatmul.mubr.msk.f32.vlgmr.msra.gmra.mxu1 %vm279_vm4, %v17811_v11 }
 0x4ab   : > { %v17821_v61 = vadd.f32 %v13459_v0, %v13433_v43  ;;  %13687 = vmatpush3.msk.msra.mxu0 %vm5367_vm3, %v17740_v31  ;;  %13713 = vmatpush3.msk.msra.mxu1 %vm5367_vm3, %v17740_v31  ;;  %v7286_v31 = vld [vmem:[#allocation2 + $0xab] ss:$2 sm:$0xff]  ;;  %v7685_v43 = vld [vmem:[#allocation2 + $0x7c] ss:$2 sm:$0xff]  ;;  %v7687_v0 = vld [vmem:[#allocation2 + $0x8c] ss:$2 sm:$0xff] }
 0x4ac   : > { %13639 = vmatprep.mubr.msk.f32.mxu0 %vm279_vm4, %v6460_v36  ;;  %13665 = vmatprep.mubr.msk.f32.mxu1 %vm279_vm4, %v17827_v13  ;;  %v17852_v59 = vpop.f32.mrf.mxu0  ;;  %v17854_v24 = vpop.f32.mrf.mxu1 }
 0x4ad   : > { %13738 = vmatprep.subr.msk.mxu0 %vm5367_vm3, %v17819_v32  ;;  %13764 = vmatprep.subr.msk.mxu1 %vm5367_vm3, %v17819_v32 }
 0x4ae   : > { %13640 = vmatmul.mubr.msk.f32.gmra.mxu0 %vm279_vm4, %v17746_v2  ;;  %13666 = vmatmul.mubr.msk.f32.gmra.mxu1 %vm279_vm4, %v17832_v4  ;;  %v7288_v2 = vld [vmem:[#allocation2 + $0xbb] ss:$2 sm:$0xff] }
 0x4af   : > { %13642 = vmatprep.mubr.msk.f32.mxu0 %vm279_vm4, %v6464_v8  ;;  %13668 = vmatprep.mubr.msk.f32.mxu1 %vm279_vm4, %v6869_v55  ;;  %v7290_v8 = vld [vmem:[#allocation2 + $0xcb] ss:$2 sm:$0xff] }
 0x4b2   : > { %13643 = vmatmul.mubr.msk.f32.gmra.mxu0 %vm279_vm4, %v6466_v51  ;;  %13669 = vmatmul.mubr.msk.f32.gmra.mxu1 %vm279_vm4, %v6871_v46  ;;  %v7292_v51 = vld [vmem:[#allocation2 + $0xdb] ss:$2 sm:$0xff] }
 0x4b3   : > { %13645 = vmatprep.mubr.msk.f32.mxu0 %vm279_vm4, %v6468_v29  ;;  %13671 = vmatprep.mubr.msk.f32.mxu1 %vm279_vm4, %v6873_v26  ;;  %v7294_v29 = vld [vmem:[#allocation2 + $0xeb] ss:$2 sm:$0xff] }
 0x4b6   : > { %13646 = vmatmul.mubr.msk.f32.gmra.mxu0 %vm279_vm4, %v6470_v58  ;;  %13672 = vmatmul.mubr.msk.f32.gmra.mxu1 %vm279_vm4, %v6875_v38  ;;  %v17937_v58 = vld [vmem:[#allocation2 + $0xfb] ss:$2 sm:$0xf] }
 0x4b7   : > { %13648 = vmatprep.mubr.msk.f32.mxu0 %vm279_vm4, %v6472_v47  ;;  %13674 = vmatprep.mubr.msk.f32.mxu1 %vm279_vm4, %v6877_v63  ;;  %v7671_v47 = vld [vmem:[#allocation2 + $0xc] ss:$2 sm:$0xff] }
 0x4ba   : > { %13649 = vmatmul.mubr.msk.f32.gmra.mxu0 %vm279_vm4, %v17765_v17  ;;  %13675 = vmatmul.mubr.msk.f32.gmra.mxu1 %vm279_vm4, %v17856_v37 }
 0x4bb   : > { %v13436_v14 = vpop.f32.mrf.mxu0  ;;  %v13462_v7 = vpop.f32.mrf.mxu1  ;;  %13651 = vmatprep.mubr.msk.f32.mxu0 %vm279_vm4, %v17770_v5  ;;  %13677 = vmatprep.mubr.msk.f32.mxu1 %vm279_vm4, %v17862_v6  ;;  %v7675_v5 = vld [vmem:[#allocation2 + $0x2c] ss:$2 sm:$0xff] }
 0x4bc   : > { %v17868_v48 = vadd.f32 %v13462_v7, %v13436_v14  ;;  %v7699_v14 = vld [vmem:[#allocation2 + $0xec] ss:$2 sm:$0xff] }
 0x4bd   : > { %v17888_v40 = vpop.f32.mrf.mxu0  ;;  %v17890_v56 = vpop.f32.mrf.mxu1 }
 0x4be   : > { %13652 = vmatmul.mubr.msk.f32.gmra.mxu0 %vm279_vm4, %v17777_v21  ;;  %13678 = vmatmul.mubr.msk.f32.gmra.mxu1 %vm279_vm4, %v6883_v42 }
 0x4bf   : > { %13654 = vmatprep.mubr.msk.f32.mxu0 %vm279_vm4, %v17782_v44  ;;  %13680 = vmatprep.mubr.msk.f32.mxu1 %vm279_vm4, %v6885_v30 }
 0x4c2   : > { %13655 = vmatmul.mubr.msk.f32.gmra.mxu0 %vm279_vm4, %v17787_v28  ;;  %13681 = vmatmul.mubr.msk.f32.gmra.mxu1 %vm279_vm4, %v6887_v16 }
 0x4c3   : > { %13657 = vmatprep.mubr.msk.f32.mxu0 %vm279_vm4, %v17792_v54  ;;  %13683 = vmatprep.mubr.msk.f32.mxu1 %vm279_vm4, %v6889_v49  ;;  %v7677_v54 = vld [vmem:[#allocation2 + $0x3c] ss:$2 sm:$0xff] }
 0x4c6   : > { %13658 = vmatmul.mubr.msk.f32.gmra.mxu0 %vm279_vm4, %v17797_v22  ;;  %13684 = vmatmul.mubr.msk.f32.gmra.mxu1 %vm279_vm4, %v6891_v52  ;;  %v7679_v22 = vld [vmem:[#allocation2 + $0x4c] ss:$2 sm:$0xff] }
 0x4c7   : > { %13688 = vmatprep.mubr.msk.f32.mxu0 %vm279_vm4, %v17802_v27  ;;  %13714 = vmatprep.mubr.msk.f32.mxu1 %vm279_vm4, %v7266_v10  ;;  %v7681_v27 = vld [vmem:[#allocation2 + $0x5c] ss:$2 sm:$0xff] }
 0x4ca   : > { %v13439_v35 = vpop.f32.mrf.mxu0  ;;  %v13465_v9 = vpop.f32.mrf.mxu1  ;;  %13689 = vmatmul.mubr.msk.f32.vlgmr.msra.gmra.mxu0 %vm279_vm4, %v17811_v11  ;;  %13715 = vmatmul.mubr.msk.f32.vlgmr.msra.gmra.mxu1 %vm279_vm4, %v7268_v62  ;;  %v7683_v11 = vld [vmem:[#allocation2 + $0x6c] ss:$2 sm:$0xff] }
 0x4cb   : > { %v17895_v18 = vadd.f32 %v13465_v9, %v13439_v35  ;;  %13739 = vmatpush3.msk.msra.mxu0 %vm5367_vm3, %v17819_v32  ;;  %13765 = vmatpush3.msk.msra.mxu1 %vm5367_vm3, %v17819_v32 }
 0x4cc   : > { %13691 = vmatprep.mubr.msk.f32.mxu0 %vm279_vm4, %v17827_v13  ;;  %13717 = vmatprep.mubr.msk.f32.mxu1 %vm279_vm4, %v7270_v12  ;;  %v17917_v57 = vpop.f32.mrf.mxu0  ;;  %v17919_v45 = vpop.f32.mrf.mxu1 }
 0x4ce   : > { %13692 = vmatmul.mubr.msk.f32.gmra.mxu0 %vm279_vm4, %v17832_v4  ;;  %13718 = vmatmul.mubr.msk.f32.gmra.mxu1 %vm279_vm4, %v7272_v1  ;;  %v7689_v4 = vld [vmem:[#allocation2 + $0x9c] ss:$2 sm:$0xff] }
 0x4cf   : > { %13694 = vmatprep.mubr.msk.f32.mxu0 %vm279_vm4, %v6869_v55  ;;  %13720 = vmatprep.mubr.msk.f32.mxu1 %vm279_vm4, %v7274_v50 }
 0x4d2   : > { %13695 = vmatmul.mubr.msk.f32.gmra.mxu0 %vm279_vm4, %v6871_v46  ;;  %13721 = vmatmul.mubr.msk.f32.gmra.mxu1 %vm279_vm4, %v7276_v15 }
 0x4d3   : > { %13697 = vmatprep.mubr.msk.f32.mxu0 %vm279_vm4, %v6873_v26  ;;  %13723 = vmatprep.mubr.msk.f32.mxu1 %vm279_vm4, %v7278_v23  ;;  %v7691_v26 = vld [vmem:[#allocation2 + $0xac] ss:$2 sm:$0xff] }
 0x4d6   : > { %13698 = vmatmul.mubr.msk.f32.gmra.mxu0 %vm279_vm4, %v6875_v38  ;;  %13724 = vmatmul.mubr.msk.f32.gmra.mxu1 %vm279_vm4, %v7280_v19 }
 0x4d7   : > { %13700 = vmatprep.mubr.msk.f32.mxu0 %vm279_vm4, %v6877_v63  ;;  %13726 = vmatprep.mubr.msk.f32.mxu1 %vm279_vm4, %v7282_v25  ;;  %v7693_v63 = vld [vmem:[#allocation2 + $0xbc] ss:$2 sm:$0xff] }
 0x4da   : > { %v13442_v53 = vpop.f32.mrf.mxu0  ;;  %v13468_v41 = vpop.f32.mrf.mxu1  ;;  %13701 = vmatmul.mubr.msk.f32.gmra.mxu0 %vm279_vm4, %v17856_v37  ;;  %13727 = vmatmul.mubr.msk.f32.gmra.mxu1 %vm279_vm4, %v7284_v60  ;;  %v7695_v37 = vld [vmem:[#allocation2 + $0xcc] ss:$2 sm:$0xff] }
 0x4db   : > { %v17924_v36 = vadd.f32 %v13468_v41, %v13442_v53  ;;  %13703 = vmatprep.mubr.msk.f32.mxu0 %vm279_vm4, %v17862_v6  ;;  %13729 = vmatprep.mubr.msk.f32.mxu1 %vm279_vm4, %v7286_v31  ;;  %v7697_v6 = vld [vmem:[#allocation2 + $0xdc] ss:$2 sm:$0xff] }
 0x4dc   : > { %v17944_v17 = vpop.f32.mrf.mxu0  ;;  %v17946_v34 = vpop.f32.mrf.mxu1 }
 0x4de   : > { %13704 = vmatmul.mubr.msk.f32.gmra.mxu0 %vm279_vm4, %v6883_v42  ;;  %13730 = vmatmul.mubr.msk.f32.gmra.mxu1 %vm279_vm4, %v7288_v2 }
 0x4df   : > { %13706 = vmatprep.mubr.msk.f32.mxu0 %vm279_vm4, %v6885_v30  ;;  %13732 = vmatprep.mubr.msk.f32.mxu1 %vm279_vm4, %v7290_v8  ;;  %v7701_v30 = vld [vmem:[#allocation2 + $0xfc] ss:$2 sm:$0xf] }
 0x4e2   : > { %13707 = vmatmul.mubr.msk.f32.gmra.mxu0 %vm279_vm4, %v6887_v16  ;;  %13733 = vmatmul.mubr.msk.f32.gmra.mxu1 %vm279_vm4, %v7292_v51 }
 0x4e3   : > { %13709 = vmatprep.mubr.msk.f32.mxu0 %vm279_vm4, %v6889_v49  ;;  %13735 = vmatprep.mubr.msk.f32.mxu1 %vm279_vm4, %v7294_v29 }
 0x4e6   : > { %13710 = vmatmul.mubr.msk.f32.gmra.mxu0 %vm279_vm4, %v6891_v52  ;;  %13736 = vmatmul.mubr.msk.f32.gmra.mxu1 %vm279_vm4, %v17937_v58 }
 0x4e7   : > { %13740 = vmatprep.mubr.msk.f32.mxu0 %vm279_vm4, %v7266_v10  ;;  %13766 = vmatprep.mubr.msk.f32.mxu1 %vm279_vm4, %v7671_v47 }
 0x4ea   : > { %13741 = vmatmul.mubr.msk.f32.vlgmr.msra.gmra.mxu0 %vm279_vm4, %v7268_v62  ;;  %13767 = vmatmul.mubr.msk.f32.vlgmr.msra.gmra.mxu1 %vm279_vm4, %v7673_v20 }
 0x4eb   : > { %v13445_v21 = vpop.f32.mrf.mxu0  ;;  %v13471_v44 = vpop.f32.mrf.mxu1  ;;  %13743 = vmatprep.mubr.msk.f32.mxu0 %vm279_vm4, %v7270_v12  ;;  %13769 = vmatprep.mubr.msk.f32.mxu1 %vm279_vm4, %v7675_v5 }
 0x4ec   : > { %v17952_v28 = vadd.f32 %v13471_v44, %v13445_v21 }
 0x4ed   : > { %v17966_v32 = vpop.f32.mrf.mxu0  ;;  %v17968_v13 = vpop.f32.mrf.mxu1 }
 0x4ee   : > { %13744 = vmatmul.mubr.msk.f32.gmra.mxu0 %vm279_vm4, %v7272_v1  ;;  %13770 = vmatmul.mubr.msk.f32.gmra.mxu1 %vm279_vm4, %v7677_v54 }
 0x4ef   : > { %13746 = vmatprep.mubr.msk.f32.mxu0 %vm279_vm4, %v7274_v50  ;;  %13772 = vmatprep.mubr.msk.f32.mxu1 %vm279_vm4, %v7679_v22 }
 0x4f2   : > { %13747 = vmatmul.mubr.msk.f32.gmra.mxu0 %vm279_vm4, %v7276_v15  ;;  %13773 = vmatmul.mubr.msk.f32.gmra.mxu1 %vm279_vm4, %v7681_v27 }
 0x4f3   : > { %13749 = vmatprep.mubr.msk.f32.mxu0 %vm279_vm4, %v7278_v23  ;;  %13775 = vmatprep.mubr.msk.f32.mxu1 %vm279_vm4, %v7683_v11 }
 0x4f6   : > { %13750 = vmatmul.mubr.msk.f32.gmra.mxu0 %vm279_vm4, %v7280_v19  ;;  %13776 = vmatmul.mubr.msk.f32.gmra.mxu1 %vm279_vm4, %v7685_v43 }
 0x4f7   : > { %13752 = vmatprep.mubr.msk.f32.mxu0 %vm279_vm4, %v7282_v25  ;;  %13778 = vmatprep.mubr.msk.f32.mxu1 %vm279_vm4, %v7687_v0 }
 0x4fa   : > { %v13448_v55 = vpop.f32.mrf.mxu0  ;;  %v13474_v46 = vpop.f32.mrf.mxu1  ;;  %13753 = vmatmul.mubr.msk.f32.gmra.mxu0 %vm279_vm4, %v7284_v60  ;;  %13779 = vmatmul.mubr.msk.f32.gmra.mxu1 %vm279_vm4, %v7689_v4 }
 0x4fb   : > { %v17972_v38 = vadd.f32 %v13474_v46, %v13448_v55  ;;  %13755 = vmatprep.mubr.msk.f32.mxu0 %vm279_vm4, %v7286_v31  ;;  %13781 = vmatprep.mubr.msk.f32.mxu1 %vm279_vm4, %v7691_v26 }
 0x4fc   : > { %v17984_v7 = vpop.f32.mrf.mxu0  ;;  %v17986_v42 = vpop.f32.mrf.mxu1 }
 0x4fe   : > { %13756 = vmatmul.mubr.msk.f32.gmra.mxu0 %vm279_vm4, %v7288_v2  ;;  %13782 = vmatmul.mubr.msk.f32.gmra.mxu1 %vm279_vm4, %v7693_v63 }
 0x4ff   : > { %13758 = vmatprep.mubr.msk.f32.mxu0 %vm279_vm4, %v7290_v8  ;;  %13784 = vmatprep.mubr.msk.f32.mxu1 %vm279_vm4, %v7695_v37 }
 0x502   : > { %13759 = vmatmul.mubr.msk.f32.gmra.mxu0 %vm279_vm4, %v7292_v51  ;;  %13785 = vmatmul.mubr.msk.f32.gmra.mxu1 %vm279_vm4, %v7697_v6 }
 0x503   : > { %13761 = vmatprep.mubr.msk.f32.mxu0 %vm279_vm4, %v7294_v29  ;;  %13787 = vmatprep.mubr.msk.f32.mxu1 %vm279_vm4, %v7699_v14 }
 0x506   : > { %v13451_v16 = vpop.f32.mrf.mxu0  ;;  %v13477_v49 = vpop.f32.mrf.mxu1  ;;  %13762 = vmatmul.mubr.msk.f32.gmra.mxu0 %vm279_vm4, %v17937_v58  ;;  %13788 = vmatmul.mubr.msk.f32.gmra.mxu1 %vm279_vm4, %v7701_v30 }
 0x507   : > { %v17991_v52 = vadd.f32 %v13477_v49, %v13451_v16 }
 0x508   : > { %v17993_v10 = vpop.f32.mrf.mxu0  ;;  %v17995_v62 = vpop.f32.mrf.mxu1 }
 0x50a   : > { %v13482_v35 = vpop.f32.mrf.mxu0  ;;  %v13508_v9 = vpop.f32.mrf.mxu1 }
 0x50b   : > { %v5977_v12 = vadd.f32 %v13508_v9, %v13482_v35 }
 0x50c   : > { %v17997_v1 = vpop.f32.mrf.mxu0  ;;  %v17999_v50 = vpop.f32.mrf.mxu1 }
 0x50e   : > { %v13485_v15 = vpop.f32.mrf.mxu0  ;;  %v13511_v23 = vpop.f32.mrf.mxu1 }
 0x50f   : > { %v5987_v19 = vadd.f32 %v13511_v23, %v13485_v15 }
 0x510   : > { %v18001_v25 = vpop.f32.mrf.mxu0  ;;  %v18003_v60 = vpop.f32.mrf.mxu1 }
 0x512   : > { %v13488_v53 = vpop.f32.mrf.mxu0  ;;  %v13514_v41 = vpop.f32.mrf.mxu1 }
 0x513   : > { %v5997_v31 = vadd.f32 %v13514_v41, %v13488_v53 }
 0x514   : > { %v18005_v2 = vpop.f32.mrf.mxu0  ;;  %v18007_v8 = vpop.f32.mrf.mxu1 }
 0x516   : > { %v13491_v51 = vpop.f32.mrf.mxu0  ;;  %v13517_v29 = vpop.f32.mrf.mxu1 }
 0x517   : > { %v6007_v58 = vadd.f32 %v13517_v29, %v13491_v51 }
 0x518   : > { %v18009_v47 = vpop.f32.mrf.mxu0  ;;  %v18011_v20 = vpop.f32.mrf.mxu1 }
 0x51a   : > { %v13494_v5 = vpop.f32.mrf.mxu0  ;;  %v13520_v21 = vpop.f32.mrf.mxu1 }
 0x51b   : > { %v6017_v44 = vadd.f32 %v13520_v21, %v13494_v5 }
 0x51c   : > { %v18013_v54 = vpop.f32.mrf.mxu0  ;;  %v18015_v22 = vpop.f32.mrf.mxu1 }
 0x51e   : > { %v13497_v27 = vpop.f32.mrf.mxu0  ;;  %v13523_v11 = vpop.f32.mrf.mxu1 }
 0x51f   : > { %v6027_v43 = vadd.f32 %v13523_v11, %v13497_v27 }
 0x520   : > { %v18017_v0 = vpop.f32.mrf.mxu0  ;;  %v18019_v4 = vpop.f32.mrf.mxu1 }
 0x522   : > { %v13500_v55 = vpop.f32.mrf.mxu0  ;;  %v13526_v46 = vpop.f32.mrf.mxu1 }
 0x523   : > { %v6037_v26 = vadd.f32 %v13526_v46, %v13500_v55 }
 0x524   : > { %v18021_v63 = vpop.f32.mrf.mxu0  ;;  %v18023_v37 = vpop.f32.mrf.mxu1 }
 0x526   : > { %v13503_v6 = vpop.f32.mrf.mxu0  ;;  %v13529_v14 = vpop.f32.mrf.mxu1 }
 0x527   : > { %v6047_v30 = vadd.f32 %v13529_v14, %v13503_v6 }
 0x528   : > { %v18025_v16 = vpop.f32.mrf.mxu0  ;;  %v18027_v49 = vpop.f32.mrf.mxu1 }
 0x52a   : > { %v13534_v35 = vpop.f32.mrf.mxu0  ;;  %v13560_v9 = vpop.f32.mrf.mxu1 }
 0x52b   : > { %v6231_v15 = vadd.f32 %v13534_v35, %v17772_v33  ;;  %v6440_v23 = vadd.f32 %v13560_v9, %v5977_v12 }
 0x52c   : > { %v18030_v53 = vpop.f32.mrf.mxu0  ;;  %v18032_v41 = vpop.f32.mrf.mxu1 }
 0x52d   : > { %19146 = vst [vmem:[#allocation40_spill] sm:$0xff] %v18030_v53  ;;  %19147 = vst [vmem:[#allocation21_spill] sm:$0xff] %v18032_v41 }
 0x52e   : > { %v13537_v51 = vpop.f32.mrf.mxu0  ;;  %v13563_v29 = vpop.f32.mrf.mxu1 }
 0x52f   : > { %v6233_v5 = vadd.f32 %v13537_v51, %v17821_v61  ;;  %v6442_v21 = vadd.f32 %v13563_v29, %v5987_v19 }
 0x530   : > { %v18035_v27 = vpop.f32.mrf.mxu0  ;;  %v18037_v11 = vpop.f32.mrf.mxu1 }
 0x531   : > { %19148 = vst [vmem:[#allocation41_spill] sm:$0xff] %v18035_v27  ;;  %19149 = vst [vmem:[#allocation22_spill] sm:$0xff] %v18037_v11 }
 0x532   : > { %v13540_v55 = vpop.f32.mrf.mxu0  ;;  %v13566_v46 = vpop.f32.mrf.mxu1 }
 0x533   : > { %v6235_v6 = vadd.f32 %v13540_v55, %v17868_v48  ;;  %v6444_v14 = vadd.f32 %v13566_v46, %v5997_v31  ;;  %v18052_v48 = vld [vmem:[%s18810_s5 + $0x8] sm:$0x3f]  ;;  %v18057_v31 = vld [vmem:[%s18810_s5] sm:$0x3f] }
 0x534   : > { %v18040_v33 = vpop.f32.mrf.mxu0  ;;  %v18042_v12 = vpop.f32.mrf.mxu1  ;;  %19154 = vst [vmem:[#allocation4_spill] sm:$0xff] %v18052_v48  ;;  %19155 = vst [vmem:[#allocation24_spill] sm:$0xff] %v18057_v31  ;;  %13790 = vmatprep.subr.msk.mxu0 %vm5367_vm3, %v18052_v48  ;;  %13804 = vmatprep.subr.msk.mxu1 %vm5367_vm3, %v18057_v31 }
 0x535   : > { %19150 = vst [vmem:[#allocation42_spill] sm:$0xff] %v18040_v33  ;;  %19151 = vst [vmem:[#allocation43_spill] sm:$0xff] %v18042_v12  ;;  %13791 = vmatpush3.msk.msra.mxu0 %vm5367_vm3, %v18052_v48  ;;  %13805 = vmatpush3.msk.msra.mxu1 %vm5367_vm3, %v18057_v31 }
 0x536   : > { %v13543_v35 = vpop.f32.mrf.mxu0  ;;  %v13569_v9 = vpop.f32.mrf.mxu1  ;;  %13818 = vmatprep.subr.msk.mxu0 %vm5367_vm3, %v18052_v48  ;;  %13832 = vmatprep.subr.msk.mxu1 %vm5367_vm3, %v18057_v31 }
 0x537   : > { %v6237_v41 = vadd.f32 %v13543_v35, %v17895_v18  ;;  %v6446_v53 = vadd.f32 %v13569_v9, %v6007_v58 }
 0x538   : > { %v18045_v61 = vpop.f32.mrf.mxu0  ;;  %v18047_v19 = vpop.f32.mrf.mxu1 }
 0x539   : > { %19152 = vst [vmem:[#allocation44_spill] sm:$0xff] %v18045_v61  ;;  %19153 = vst [vmem:[#allocation23_spill] sm:$0xff] %v18047_v19 }
 0x53a   : > { %v13546_v51 = vpop.f32.mrf.mxu0  ;;  %v13572_v29 = vpop.f32.mrf.mxu1 }
 0x53b   : > { %v6239_v55 = vadd.f32 %v13546_v51, %v17924_v36  ;;  %v6448_v18 = vadd.f32 %v13572_v29, %v6017_v44 }
 0x53c   : > { %v18064_v58 = vpop.f32.mrf.mxu0  ;;  %v18066_v46 = vpop.f32.mrf.mxu1 }
 0x53d   : > { %19156 = vst [vmem:[#allocation5_spill] sm:$0xff] %v18064_v58  ;;  %19157 = vst [vmem:[#allocation45_spill] sm:$0xff] %v18066_v46 }
 0x53e   : > { %v13549_v36 = vpop.f32.mrf.mxu0  ;;  %v13575_v44 = vpop.f32.mrf.mxu1 }
 0x53f   : > { %v6241_v35 = vadd.f32 %v13549_v36, %v17952_v28  ;;  %v6450_v9 = vadd.f32 %v13575_v44, %v6027_v43 }
 0x540   : > { %v18077_v51 = vpop.f32.mrf.mxu0  ;;  %v18079_v29 = vpop.f32.mrf.mxu1 }
 0x541   : > { %19158 = vst [vmem:[#allocation25_spill] sm:$0xff] %v18077_v51  ;;  %19159 = vst [vmem:[#allocation6_spill] sm:$0xff] %v18079_v29 }
 0x542   : > { %v13552_v46 = vpop.f32.mrf.mxu0  ;;  %v13578_v58 = vpop.f32.mrf.mxu1 }
 0x543   : > { %v6243_v19 = vadd.f32 %v13552_v46, %v17972_v38  ;;  %v6452_v61 = vadd.f32 %v13578_v58, %v6037_v26 }
 0x544   : > { %v18082_v12 = vpop.f32.mrf.mxu0  ;;  %v18084_v48 = vpop.f32.mrf.mxu1 }
 0x545   : > { %19160 = vst [vmem:[#allocation26_spill] sm:$0xff] %v18084_v48 }
 0x546   : > { %v13555_v33 = vpop.f32.mrf.mxu0  ;;  %v13581_v31 = vpop.f32.mrf.mxu1 }
 0x547   : > { %v6245_v11 = vadd.f32 %v13555_v33, %v17991_v52  ;;  %v6454_v27 = vadd.f32 %v13581_v31, %v6047_v30 }
 0x548   : > { %v18087_v28 = vpop.f32.mrf.mxu0  ;;  %v18089_v43 = vpop.f32.mrf.mxu1 }
 0x54a   : > { %v13586_v36 = vpop.f32.mrf.mxu0  ;;  %v13612_v44 = vpop.f32.mrf.mxu1 }
 0x54b   : > { %v18091_v29 = vadd.f32 %v13586_v36, %v6231_v15  ;;  %v18093_v51 = vadd.f32 %v13612_v44, %v6440_v23 }
 0x54c   : > { %v18095_v38 = vpop.f32.mrf.mxu0  ;;  %v18097_v26 = vpop.f32.mrf.mxu1 }
 0x54d   : > { %19161 = vst [vmem:[#allocation7_spill] sm:$0xff] %v18091_v29  ;;  %19162 = vst [vmem:[#allocation27_spill] sm:$0xff] %v18093_v51 }
 0x54e   : > { %v13589_v58 = vpop.f32.mrf.mxu0  ;;  %v13615_v46 = vpop.f32.mrf.mxu1 }
 0x54f   : > { %v18099_v48 = vadd.f32 %v13589_v58, %v6233_v5  ;;  %v18101_v52 = vadd.f32 %v13615_v46, %v6442_v21 }
 0x550   : > { %v18103_v30 = vpop.f32.mrf.mxu0  ;;  %v18105_v33 = vpop.f32.mrf.mxu1 }
 0x551   : > { %19163 = vst [vmem:[#allocation8_spill] sm:$0xff] %v18099_v48  ;;  %19164 = vst [vmem:[#allocation28_spill] sm:$0xff] %v18101_v52 }
 0x552   : > { %19165 = vst [vmem:[#allocation9_spill] sm:$0xff] %v18105_v33  ;;  %v13592_v31 = vpop.f32.mrf.mxu0  ;;  %v13618_v15 = vpop.f32.mrf.mxu1 }
 0x553   : > { %v18107_v36 = vadd.f32 %v13592_v31, %v6235_v6  ;;  %v18109_v23 = vadd.f32 %v13618_v15, %v6444_v14 }
 0x554   : > { %v18111_v44 = vpop.f32.mrf.mxu0  ;;  %v18113_v51 = vpop.f32.mrf.mxu1 }
 0x555   : > { %19166 = vst [vmem:[#allocation29_spill] sm:$0xff] %v18107_v36  ;;  %19167 = vst [vmem:[#allocation10_spill] sm:$0xff] %v18109_v23 }
 0x556   : > { %v13595_v29 = vpop.f32.mrf.mxu0  ;;  %v13621_v5 = vpop.f32.mrf.mxu1 }
 0x557   : > { %v18115_v58 = vadd.f32 %v13595_v29, %v6237_v41  ;;  %v18117_v21 = vadd.f32 %v13621_v5, %v6446_v53 }
 0x558   : > { %v18119_v46 = vpop.f32.mrf.mxu0  ;;  %v18121_v52 = vpop.f32.mrf.mxu1 }
 0x559   : > { %19168 = vst [vmem:[#allocation30_spill] sm:$0xff] %v18115_v58  ;;  %19169 = vst [vmem:[#allocation11_spill] sm:$0xff] %v18117_v21 }
 0x55a   : > { %v13598_v48 = vpop.f32.mrf.mxu0  ;;  %v13624_v33 = vpop.f32.mrf.mxu1 }
 0x55b   : > { %v18123_v6 = vadd.f32 %v13598_v48, %v6239_v55  ;;  %v18125_v14 = vadd.f32 %v13624_v33, %v6448_v18 }
 0x55c   : > { %v18127_v31 = vpop.f32.mrf.mxu0  ;;  %v18129_v15 = vpop.f32.mrf.mxu1 }
 0x55d   : > { %19170 = vst [vmem:[#allocation31_spill] sm:$0xff] %v18123_v6  ;;  %19171 = vst [vmem:[#allocation12_spill] sm:$0xff] %v18125_v14 }
 0x55e   : > { %v13601_v23 = vpop.f32.mrf.mxu0  ;;  %v13627_v36 = vpop.f32.mrf.mxu1 }
 0x55f   : > { %v18131_v41 = vadd.f32 %v13601_v23, %v6241_v35  ;;  %v18133_v53 = vadd.f32 %v13627_v36, %v6450_v9 }
 0x560   : > { %v18135_v29 = vpop.f32.mrf.mxu0  ;;  %v18137_v5 = vpop.f32.mrf.mxu1 }
 0x561   : > { %19172 = vst [vmem:[#allocation32_spill] sm:$0xff] %v18131_v41  ;;  %19173 = vst [vmem:[#allocation13_spill] sm:$0xff] %v18133_v53 }
 0x562   : > { %v13604_v21 = vpop.f32.mrf.mxu0  ;;  %v13630_v58 = vpop.f32.mrf.mxu1 }
 0x563   : > { %v18139_v48 = vadd.f32 %v13604_v21, %v6243_v19  ;;  %v18141_v55 = vadd.f32 %v13630_v58, %v6452_v61 }
 0x564   : > { %v18143_v18 = vpop.f32.mrf.mxu0  ;;  %v18145_v33 = vpop.f32.mrf.mxu1 }
 0x565   : > { %19174 = vst [vmem:[#allocation33_spill] sm:$0xff] %v18139_v48  ;;  %19175 = vst [vmem:[#allocation14_spill] sm:$0xff] %v18141_v55 }
 0x566   : > { %v13607_v14 = vpop.f32.mrf.mxu0  ;;  %v13633_v6 = vpop.f32.mrf.mxu1 }
 0x567   : > { %v18147_v35 = vadd.f32 %v13607_v14, %v6245_v11  ;;  %v18149_v9 = vadd.f32 %v13633_v6, %v6454_v27 }
 0x568   : > { %v18151_v36 = vpop.f32.mrf.mxu0  ;;  %v18153_v23 = vpop.f32.mrf.mxu1 }
 0x569   : > { %19176 = vst [vmem:[#allocation34_spill] sm:$0xff] %v18147_v35  ;;  %19177 = vst [vmem:[#allocation15_spill] sm:$0xff] %v18149_v9 }
 0x56a   : > { %v18155_v53 = vpop.f32.mrf.mxu0  ;;  %v18157_v19 = vpop.f32.mrf.mxu1 }
 0x56c   : > { %v18159_v61 = vpop.f32.mrf.mxu0  ;;  %v18161_v58 = vpop.f32.mrf.mxu1 }
 0x56d   : > { %19178 = vst [vmem:[#allocation35_spill] sm:$0xff] %v18161_v58 }
 0x56e   : > { %v18163_v21 = vpop.f32.mrf.mxu0  ;;  %v18165_v55 = vpop.f32.mrf.mxu1 }
 0x56f   : > { %19179 = vst [vmem:[#allocation16_spill] sm:$0xff] %v18163_v21  ;;  %19180 = vst [vmem:[#allocation36_spill] sm:$0xff] %v18165_v55 }
 0x570   : > { %v18167_v11 = vpop.f32.mrf.mxu0  ;;  %v18169_v27 = vpop.f32.mrf.mxu1 }
 0x571   : > { %19181 = vst [vmem:[#allocation17_spill] sm:$0xff] %v18167_v11  ;;  %19182 = vst [vmem:[#allocation37_spill] sm:$0xff] %v18169_v27 }
 0x572   : > { %v18171_v6 = vpop.f32.mrf.mxu0  ;;  %v18173_v14 = vpop.f32.mrf.mxu1 }
 0x573   : > { %19183 = vst [vmem:[#allocation18_spill] sm:$0xff] %v18171_v6  ;;  %19184 = vst [vmem:[#allocation38_spill] sm:$0xff] %v18173_v14 }
 0x574   : > { %v18175_v9 = vpop.f32.mrf.mxu0  ;;  %v18177_v35 = vpop.f32.mrf.mxu1 }
 0x575   : > { %19185 = vst [vmem:[#allocation19_spill] sm:$0xff] %v18175_v9  ;;  %19186 = vst [vmem:[#allocation39_spill] sm:$0xff] %v18177_v35 }
 0x576   : > { %v18179_v48 = vpop.f32.mrf.mxu0  ;;  %v18181_v41 = vpop.f32.mrf.mxu1 }
 0x577   : > { %19187 = vst [vmem:[#allocation20_spill] sm:$0xff] %v18179_v48  ;;  %19188 = vst [vmem:[#allocation46_spill] sm:$0xff] %v18181_v41 }
 0x578   : > { %v18183_v58 = vpop.f32.mrf.mxu0  ;;  %v18185_v21 = vpop.f32.mrf.mxu1 }
 0x579   : > { %19189 = vst [vmem:[#allocation47_spill] sm:$0xff] %v18183_v58  ;;  %19190 = vst [vmem:[#allocation48_spill] sm:$0xff] %v18185_v21 }
 0x57a   : > { %v18187_v55 = vpop.f32.mrf.mxu0  ;;  %v18189_v11 = vpop.f32.mrf.mxu1 }
 0x57b   : > { %19191 = vst [vmem:[#allocation49_spill] sm:$0xff] %v18187_v55  ;;  %19192 = vst [vmem:[#allocation50_spill] sm:$0xff] %v18189_v11 }
 0x57c   : > { %v18191_v27 = vpop.f32.mrf.mxu0  ;;  %v18193_v6 = vpop.f32.mrf.mxu1 }
 0x57d   : > { %19193 = vst [vmem:[#allocation51_spill] sm:$0xff] %v18191_v27  ;;  %19194 = vst [vmem:[#allocation52_spill] sm:$0xff] %v18193_v6 }
 0x57e   : > { %v18195_v14 = vpop.f32.mrf.mxu0  ;;  %v18197_v9 = vpop.f32.mrf.mxu1 }
 0x57f   : > { %19195 = vst [vmem:[#allocation53_spill] sm:$0xff] %v18195_v14  ;;  %19196 = vst [vmem:[#allocation54_spill] sm:$0xff] %v18197_v9 }
 0x580   : > { %v18199_v35 = vpop.f32.mrf.mxu0  ;;  %v18201_v48 = vpop.f32.mrf.mxu1 }
 0x581   : > { %19197 = vst [vmem:[#allocation55_spill] sm:$0xff] %v18199_v35  ;;  %19198 = vst [vmem:[#allocation56_spill] sm:$0xff] %v18201_v48 }
 0x582   : > { %v18203_v41 = vpop.f32.mrf.mxu0  ;;  %v18205_v58 = vpop.f32.mrf.mxu1 }
 0x583   : > { %19199 = vst [vmem:[#allocation57_spill] sm:$0xff] %v18203_v41  ;;  %19200 = vst [vmem:[#allocation58_spill] sm:$0xff] %v18205_v58 }
 0x584   : > { %v18207_v21 = vpop.f32.mrf.mxu0  ;;  %v18209_v55 = vpop.f32.mrf.mxu1 }
 0x585   : > { %19201 = vst [vmem:[#allocation59_spill] sm:$0xff] %v18207_v21  ;;  %19202 = vst [vmem:[#allocation60_spill] sm:$0xff] %v18209_v55 }
 0x586   : > { %v18211_v11 = vpop.f32.mrf.mxu0  ;;  %v18213_v27 = vpop.f32.mrf.mxu1 }
 0x587   : > { %19203 = vst [vmem:[#allocation61_spill] sm:$0xff] %v18211_v11 }
 0x588   : > { %v18215_v6 = vpop.f32.mrf.mxu0  ;;  %v18217_v14 = vpop.f32.mrf.mxu1 }
 0x589   : > { %19204 = vst [vmem:[#allocation62_spill] sm:$0xff] %v18215_v6  ;;  %v5634_v6 = vadd.f32 %v17809_v39, %v17807_v3  ;;  %v5694_v3 = vadd.f32 %v17986_v42, %v17984_v7  ;;  %v5704_v39 = vadd.f32 %v17995_v62, %v17993_v10  ;;  %v19212_v7 = vld [vmem:[#allocation40_spill] sm:$0xff]  ;;  %v19213_v10 = vld [vmem:[#allocation21_spill] sm:$0xff] }
 0x58a   : > { %v18219_v9 = vpop.f32.mrf.mxu0  ;;  %v18221_v35 = vpop.f32.mrf.mxu1 }
 0x58b   : > { %19205 = vst [vmem:[#allocation63_spill] sm:$0xff] %v18219_v9  ;;  %19206 = vst [vmem:[#allocation64_spill] sm:$0xff] %v18221_v35  ;;  %v5644_v9 = vadd.f32 %v17854_v24, %v17852_v59  ;;  %v5654_v35 = vadd.f32 %v17890_v56, %v17888_v40  ;;  %v5972_v59 = vadd.f32 %v17999_v50, %v17997_v1  ;;  %v19214_v1 = vld [vmem:[#allocation41_spill] sm:$0xff] }
 0x58c   : > { %v18223_v48 = vpop.f32.mrf.mxu0  ;;  %v18225_v41 = vpop.f32.mrf.mxu1  ;;  %v5982_v24 = vadd.f32 %v18003_v60, %v18001_v25  ;;  %v5992_v40 = vadd.f32 %v18007_v8, %v18005_v2  ;;  %v6230_v42 = vadd.f32 %v19212_v7, %v5634_v6  ;;  %v19216_v2 = vld [vmem:[#allocation22_spill] sm:$0xff]  ;;  %v19222_v6 = vld [vmem:[#allocation45_spill] sm:$0xff] }
 0x58d   : > { %19207 = vst [vmem:[#allocation65_spill] sm:$0xff] %v18223_v48  ;;  %19208 = vst [vmem:[#allocation66_spill] sm:$0xff] %v18225_v41  ;;  %v6439_v62 = vadd.f32 %v19213_v10, %v5972_v59  ;;  %v6232_v50 = vadd.f32 %v19214_v1, %v5644_v9  ;;  %v19223_v7 = vld [vmem:[#allocation25_spill] sm:$0xff] }
 0x58e   : > { %v18227_v58 = vpop.f32.mrf.mxu0  ;;  %v18229_v21 = vpop.f32.mrf.mxu1  ;;  %v6441_v8 = vadd.f32 %v19216_v2, %v5982_v24  ;;  %v19227_v2 = vld [vmem:[#allocation26_spill] sm:$0xff] }
 0x58f   : > { %19209 = vst [vmem:[#allocation67_spill] sm:$0xff] %v18229_v21  ;;  %v5664_v21 = vadd.f32 %v17919_v45, %v17917_v57  ;;  %v6002_v45 = vadd.f32 %v18011_v20, %v18009_v47  ;;  %v19217_v47 = vld [vmem:[#allocation42_spill] sm:$0xff] }
 0x590   : > { %v18231_v55 = vpop.f32.mrf.mxu0  ;;  %v18233_v11 = vpop.f32.mrf.mxu1  ;;  %v6234_v20 = vadd.f32 %v19217_v47, %v5654_v35  ;;  %v6242_v35 = vadd.f32 %v18082_v12, %v5694_v3 }
 0x591   : > { %19210 = vst [vmem:[#allocation68_spill] sm:$0xff] %v18231_v55  ;;  %19211 = vst [vmem:[#allocation69_spill] sm:$0xff] %v18233_v11  ;;  %v5674_v55 = vadd.f32 %v17946_v34, %v17944_v17  ;;  %v5684_v11 = vadd.f32 %v17968_v13, %v17966_v32  ;;  %v6012_v17 = vadd.f32 %v18015_v22, %v18013_v54  ;;  %v19218_v54 = vld [vmem:[#allocation43_spill] sm:$0xff] }
 0x592   : > { %v18241_v48 = vpop.f32.mrf.mxu0  ;;  %v18243_v41 = vpop.f32.mrf.mxu1  ;;  %v6022_v34 = vadd.f32 %v18019_v4, %v18017_v0  ;;  %v6032_v32 = vadd.f32 %v18023_v37, %v18021_v63  ;;  %v6042_v13 = vadd.f32 %v18027_v49, %v18025_v16  ;;  %v6443_v22 = vadd.f32 %v19218_v54, %v5992_v40  ;;  %v19219_v0 = vld [vmem:[#allocation44_spill] sm:$0xff]  ;;  %v19220_v63 = vld [vmem:[#allocation23_spill] sm:$0xff]  ;;  %v19221_v16 = vld [vmem:[#allocation5_spill] sm:$0xff] }
 0x593   : > { %v6236_v4 = vadd.f32 %v19219_v0, %v5664_v21  ;;  %v6445_v37 = vadd.f32 %v19220_v63, %v6002_v45  ;;  %v6238_v49 = vadd.f32 %v19221_v16, %v5674_v55  ;;  %v6447_v59 = vadd.f32 %v19222_v6, %v6012_v17  ;;  %v19230_v0 = vld [vmem:[#allocation9_spill] sm:$0xff]  ;;  %v19247_v6 = vld [vmem:[#allocation38_spill] sm:$0xff] }
 0x594   : > { %v18261_v56 = vpop.f32.mrf.mxu0  ;;  %v18263_v57 = vpop.f32.mrf.mxu1  ;;  %v6240_v9 = vadd.f32 %v19223_v7, %v5684_v11  ;;  %v6451_v40 = vadd.f32 %v19227_v2, %v6032_v32  ;;  %v6244_v21 = vadd.f32 %v18087_v28, %v5704_v39  ;;  %v6453_v45 = vadd.f32 %v18089_v43, %v6042_v13  ;;  %v19244_v16 = vld [vmem:[#allocation29_spill] sm:$0xff]  ;;  %v19248_v7 = vld [vmem:[#allocation19_spill] sm:$0xff] }
 0x595   : > { %v6635_v55 = vadd.f32 %v18095_v38, %v6230_v42  ;;  %v6844_v17 = vadd.f32 %v18097_v26, %v6439_v62  ;;  %v6637_v11 = vadd.f32 %v18103_v30, %v6232_v50  ;;  %v6639_v12 = vadd.f32 %v18111_v44, %v6234_v20  ;;  %v19233_v42 = vld [vmem:[#allocation7_spill] sm:$0xff] }
 0x596   : > { %v18278_v25 = vpop.f32.mrf.mxu0  ;;  %v18280_v60 = vpop.f32.mrf.mxu1  ;;  %v6848_v3 = vadd.f32 %v18113_v51, %v6443_v22  ;;  %v6641_v28 = vadd.f32 %v18119_v46, %v6236_v4  ;;  %v6850_v43 = vadd.f32 %v18121_v52, %v6445_v37  ;;  %v6643_v38 = vadd.f32 %v18127_v31, %v6238_v49  ;;  %v19241_v22 = vld [vmem:[#allocation36_spill] sm:$0xff]  ;;  %v19242_v4 = vld [vmem:[#allocation17_spill] sm:$0xff]  ;;  %v19249_v2 = vld [vmem:[#allocation39_spill] sm:$0xff] }
 0x597   : > { %19215 = vst [vmem:[#allocation40_spill] sm:$0xff] %v18280_v60  ;;  %v19226_v60 = vld [vmem:[#allocation6_spill] sm:$0xff]  ;;  %v6852_v26 = vadd.f32 %v18129_v15, %v6447_v59  ;;  %v6645_v30 = vadd.f32 %v18135_v29, %v6240_v9  ;;  %v6647_v44 = vadd.f32 %v18143_v18, %v6242_v35  ;;  %v6856_v51 = vadd.f32 %v18145_v33, %v6451_v40  ;;  %v19234_v15 = vld [vmem:[#allocation27_spill] sm:$0xff]  ;;  %v19239_v33 = vld [vmem:[#allocation16_spill] sm:$0xff] }
 0x598   : > { %v18290_v10 = vpop.f32.mrf.mxu0  ;;  %v18292_v1 = vpop.f32.mrf.mxu1  ;;  %v6449_v24 = vadd.f32 %v19226_v60, %v6022_v34  ;;  %v6846_v34 = vadd.f32 %v19230_v0, %v6441_v8  ;;  %v6649_v46 = vadd.f32 %v18151_v36, %v6244_v21  ;;  %v6858_v52 = vadd.f32 %v18153_v23, %v6453_v45  ;;  %v19238_v8 = vld [vmem:[#allocation8_spill] sm:$0xff]  ;;  %v19250_v21 = vld [vmem:[#allocation30_spill] sm:$0xff] }
 0x599   : > { %19224 = vst [vmem:[#allocation21_spill] sm:$0xff] %v18290_v10  ;;  %19225 = vst [vmem:[#allocation41_spill] sm:$0xff] %v18292_v1  ;;  %v7041_v31 = vadd.f32 %v18155_v53, %v19233_v42  ;;  %v7250_v29 = vadd.f32 %v18157_v19, %v19234_v15  ;;  %v7040_v62 = vadd.f32 %v18159_v61, %v6635_v55  ;;  %v19240_v36 = vld [vmem:[#allocation28_spill] sm:$0xff]  ;;  %v19243_v53 = vld [vmem:[#allocation37_spill] sm:$0xff] }
 0x59a   : > { %v18302_v47 = vpop.f32.mrf.mxu0  ;;  %v18304_v54 = vpop.f32.mrf.mxu1  ;;  %v6854_v13 = vadd.f32 %v18137_v5, %v6449_v24  ;;  %v19237_v5 = vld [vmem:[#allocation35_spill] sm:$0xff]  ;;  %v7043_v20 = vadd.f32 %v19239_v33, %v19238_v8  ;;  %v7252_v23 = vadd.f32 %v19241_v22, %v19240_v36  ;;  %v7042_v63 = vadd.f32 %v19242_v4, %v6637_v11  ;;  %v19245_v19 = vld [vmem:[#allocation18_spill] sm:$0xff]  ;;  %v19251_v45 = vld [vmem:[#allocation20_spill] sm:$0xff] }
 0x59b   : > { %19228 = vst [vmem:[#allocation22_spill] sm:$0xff] %v18302_v47  ;;  %19229 = vst [vmem:[#allocation42_spill] sm:$0xff] %v18304_v54  ;;  %v7249_v18 = vadd.f32 %v19237_v5, %v6844_v17  ;;  %v7251_v37 = vadd.f32 %v19243_v53, %v6846_v34  ;;  %v7045_v49 = vadd.f32 %v19245_v19, %v19244_v16  ;;  %v19246_v61 = vld [vmem:[#allocation10_spill] sm:$0xff]  ;;  %v19252_v17 = vld [vmem:[#allocation11_spill] sm:$0xff] }
 0x59c   : > { %v18314_v39 = vpop.f32.mrf.mxu0  ;;  %v18316_v32 = vpop.f32.mrf.mxu1  ;;  %v7254_v59 = vadd.f32 %v19247_v6, %v19246_v61  ;;  %v7044_v9 = vadd.f32 %v19248_v7, %v6639_v12  ;;  %v7253_v40 = vadd.f32 %v19249_v2, %v6848_v3  ;;  %v7047_v55 = vadd.f32 %v19251_v45, %v19250_v21  ;;  %v19253_v0 = vld [vmem:[#allocation46_spill] sm:$0xff]  ;;  %v19254_v42 = vld [vmem:[#allocation47_spill] sm:$0xff]  ;;  %v19255_v15 = vld [vmem:[#allocation48_spill] sm:$0xff] }
 0x59d   : > { %19231 = vst [vmem:[#allocation43_spill] sm:$0xff] %v18314_v39  ;;  %19232 = vst [vmem:[#allocation44_spill] sm:$0xff] %v18316_v32  ;;  %v7256_v11 = vadd.f32 %v19253_v0, %v19252_v17  ;;  %v7046_v34 = vadd.f32 %v19254_v42, %v6641_v28  ;;  %v7255_v5 = vadd.f32 %v19255_v15, %v6850_v43  ;;  %v19256_v8 = vld [vmem:[#allocation31_spill] sm:$0xff]  ;;  %v19257_v33 = vld [vmem:[#allocation49_spill] sm:$0xff] }
 0x59e   : > { %v18328_v50 = vpop.f32.mrf.mxu0  ;;  %v18330_v60 = vpop.f32.mrf.mxu1  ;;  %v7049_v36 = vadd.f32 %v19257_v33, %v19256_v8  ;;  %v19258_v22 = vld [vmem:[#allocation12_spill] sm:$0xff]  ;;  %v19259_v4 = vld [vmem:[#allocation50_spill] sm:$0xff]  ;;  %v19260_v53 = vld [vmem:[#allocation51_spill] sm:$0xff] }
 0x59f   : > { %19235 = vst [vmem:[#allocation23_spill] sm:$0xff] %v18328_v50  ;;  %19236 = vst [vmem:[#allocation5_spill] sm:$0xff] %v18330_v60  ;;  %v7258_v12 = vadd.f32 %v19259_v4, %v19258_v22  ;;  %v7048_v16 = vadd.f32 %v19260_v53, %v6643_v38  ;;  %v19261_v61 = vld [vmem:[#allocation52_spill] sm:$0xff]  ;;  %v19263_v2 = vld [vmem:[#allocation53_spill] sm:$0xff] }
 0x5a0   : > { %v7416_v24 = vpop.f32.mrf.mxu0  ;;  %v7625_v35 = vpop.f32.mrf.mxu1  ;;  %v7257_v6 = vadd.f32 %v19261_v61, %v6852_v26  ;;  %v19262_v7 = vld [vmem:[#allocation32_spill] sm:$0xff]  ;;  %v19264_v45 = vld [vmem:[#allocation13_spill] sm:$0xff]  ;;  %v19265_v17 = vld [vmem:[#allocation54_spill] sm:$0xff] }
 0x5a1   : > { %v7051_v21 = vadd.f32 %v19263_v2, %v19262_v7  ;;  %v7260_v28 = vadd.f32 %v19265_v17, %v19264_v45  ;;  %v19266_v0 = vld [vmem:[#allocation55_spill] sm:$0xff]  ;;  %v19267_v42 = vld [vmem:[#allocation56_spill] sm:$0xff]  ;;  %v19268_v8 = vld [vmem:[#allocation33_spill] sm:$0xff] }
 0x5a2   : > { %v13708_v19 = vpop.f32.mrf.mxu0  ;;  %v13734_v3 = vpop.f32.mrf.mxu1  ;;  %v7050_v43 = vadd.f32 %v19266_v0, %v6645_v30  ;;  %v7259_v15 = vadd.f32 %v19267_v42, %v6854_v13  ;;  %v19269_v33 = vld [vmem:[#allocation57_spill] sm:$0xff]  ;;  %v19270_v22 = vld [vmem:[#allocation14_spill] sm:$0xff]  ;;  %v19272_v53 = vld [vmem:[#allocation59_spill] sm:$0xff]  ;;  %v7263_v0 = vadd.f32 %v18217_v14, %v6858_v52  ;;  %v7450_v14 = vadd.f32 %v18241_v48, %v7045_v49 }
 0x5a3   : > { %v7053_v60 = vadd.f32 %v19269_v33, %v19268_v8  ;;  %v19271_v4 = vld [vmem:[#allocation58_spill] sm:$0xff]  ;;  %v7052_v50 = vadd.f32 %v19272_v53, %v6647_v44  ;;  %v19273_v61 = vld [vmem:[#allocation60_spill] sm:$0xff]  ;;  %v19275_v2 = vld [vmem:[#allocation61_spill] sm:$0xff]  ;;  %v7659_v52 = vadd.f32 %v18243_v41, %v7254_v59 }
 0x5a4   : > { %v7262_v38 = vadd.f32 %v19271_v4, %v19270_v22  ;;  %v7426_v32 = vpop.f32.mrf.mxu0  ;;  %v7635_v26 = vpop.f32.mrf.mxu1  ;;  %v7261_v39 = vadd.f32 %v19273_v61, %v6856_v51  ;;  %v19274_v7 = vld [vmem:[#allocation34_spill] sm:$0xff]  ;;  %v19276_v45 = vld [vmem:[#allocation15_spill] sm:$0xff]  ;;  %v19279_v33 = vld [vmem:[#allocation64_spill] sm:$0xff]  ;;  %v7448_v61 = vadd.f32 %v18227_v58, %v7043_v20  ;;  %v18392_v58 = vadd.f32 %v18278_v25, %v7047_v55 }
 0x5a5   : > { %v7055_v54 = vadd.f32 %v19275_v2, %v19274_v7  ;;  %v7264_v30 = vadd.f32 %v18213_v27, %v19276_v45  ;;  %v19277_v17 = vld [vmem:[#allocation62_spill] sm:$0xff]  ;;  %v19278_v42 = vld [vmem:[#allocation63_spill] sm:$0xff]  ;;  %v7655_v22 = vadd.f32 %v19279_v33, %v7250_v29  ;;  %v19280_v4 = vld [vmem:[#allocation65_spill] sm:$0xff]  ;;  %v18428_v33 = vadd.f32 %v7625_v35, %v7259_v15 }
 0x5a6   : > { %v7054_v13 = vadd.f32 %v19277_v17, %v6649_v46  ;;  %v7446_v8 = vadd.f32 %v19278_v42, %v7041_v31  ;;  %v7445_v44 = vadd.f32 %v19280_v4, %v7040_v62  ;;  %v13711_v53 = vpop.f32.mrf.mxu0  ;;  %v13737_v47 = vpop.f32.mrf.mxu1  ;;  %v19281_v1 = vld [vmem:[#allocation66_spill] sm:$0xff]  ;;  %v19282_v7 = vld [vmem:[#allocation67_spill] sm:$0xff]  ;;  %v19283_v10 = vld [vmem:[#allocation68_spill] sm:$0xff]  ;;  %v18386_v31 = vadd.f32 %v18261_v56, %v7044_v9 }
 0x5a7   : > { %v7654_v51 = vadd.f32 %v19281_v1, %v7249_v18  ;;  %v7657_v2 = vadd.f32 %v19282_v7, %v7252_v23  ;;  %v7447_v27 = vadd.f32 %v19283_v10, %v7042_v63  ;;  %v19284_v45 = vld [vmem:[#allocation69_spill] sm:$0xff]  ;;  %v18389_v17 = vadd.f32 %v18263_v57, %v7253_v40  ;;  %v19285_v1 = vld [vmem:[#allocation40_spill] sm:$0xff]  ;;  %v19288_v41 = vld [vmem:[#allocation22_spill] sm:$0xff] }
 0x5a8   : > { %v7656_v46 = vadd.f32 %v19284_v45, %v7251_v37  ;;  %v7436_v29 = vpop.f32.mrf.mxu0  ;;  %v7645_v62 = vpop.f32.mrf.mxu1  ;;  %v18395_v18 = vadd.f32 %v19285_v1, %v7256_v11  ;;  %v19286_v10 = vld [vmem:[#allocation21_spill] sm:$0xff]  ;;  %v18404_v56 = vadd.f32 %v19288_v41, %v7049_v36  ;;  %v19289_v63 = vld [vmem:[#allocation42_spill] sm:$0xff]  ;;  %v19290_v57 = vld [vmem:[#allocation43_spill] sm:$0xff]  ;;  %v18430_v4 = vadd.f32 %v13708_v19, %v7053_v60 }
 0x5a9   : > { %v18398_v20 = vadd.f32 %v19286_v10, %v7046_v34  ;;  %v19287_v48 = vld [vmem:[#allocation41_spill] sm:$0xff]  ;;  %v18407_v37 = vadd.f32 %v19289_v63, %v7258_v12  ;;  %v18410_v49 = vadd.f32 %v19290_v57, %v7048_v16  ;;  %v18415_v59 = vld [vmem:[%s18809_s4] ss:$0 sm:$0xff]  ;;  %v19292_v11 = vld [vmem:[#allocation23_spill] sm:$0xff]  ;;  %v18426_v16 = vadd.f32 %v7416_v24, %v7050_v43 }
 0x5aa   : > { %v18401_v23 = vadd.f32 %v19287_v48, %v7255_v5  ;;  %v13742_v25 = vpop.f32.mrf.mxu0  ;;  %v13768_v9 = vpop.f32.mrf.mxu1  ;;  %v19291_v40 = vld [vmem:[#allocation44_spill] sm:$0xff]  ;;  %v18421_v34 = vadd.f32 %v19292_v11, %v7051_v21  ;;  %v19293_v12 = vld [vmem:[#allocation5_spill] sm:$0xff]  ;;  %v18434_v48 = vadd.f32 %v13734_v3, %v7262_v38  ;;  %v18440_v24 = vadd.f32 %v13711_v53, %v7055_v54 }
 0x5ab   : > { %v18418_v55 = vadd.f32 %v19291_v40, %v7257_v6  ;;  %v7851_v5 = vadd.f32 %v13742_v25, %v7446_v8  ;;  %v8060_v36 = vadd.f32 %v13768_v9, %v7655_v22  ;;  %v18424_v42 = vadd.f32 %v19293_v12, %v7260_v28 }
 0x5ac   : > { %v7771_v7 = vpop.f32.mrf.mxu0  ;;  %v7980_v45 = vpop.f32.mrf.mxu1  ;;  %v18436_v8 = vadd.f32 %v7426_v32, %v7052_v50  ;;  %v18438_v28 = vadd.f32 %v7635_v26, %v7261_v39  ;;  %v18444_v41 = vadd.f32 %v13737_v47, %v7264_v30 }
 0x5ad   : > { %v8083_v1 = vadd.f32 %v18415_v59, %v7851_v5  ;;  %v8115_v6 = vadd.f32 %v18415_v59, %v8060_v36  ;;  %v7850_v10 = vadd.f32 %v7771_v7, %v7445_v44  ;;  %v8059_v21 = vadd.f32 %v7980_v45, %v7654_v51 }
 0x5ae   : > { %v13745_v35 = vpop.f32.mrf.mxu0  ;;  %v13771_v43 = vpop.f32.mrf.mxu1  ;;  %v18446_v44 = vadd.f32 %v7436_v29, %v7054_v13  ;;  %v18448_v51 = vadd.f32 %v7645_v62, %v7263_v0 }
 0x5af   : > { %v8099_v60 = vmax.f32 %v8083_v1, 0.0  ;;  %v8131_v19 = vmax.f32 %v8115_v6, 0.0  ;;  %v8082_v15 = vadd.f32 %v18415_v59, %v7850_v10  ;;  %v8114_v22 = vadd.f32 %v18415_v59, %v8059_v21 }
 0x5b0   : > { %v7853_v3 = vadd.f32 %v13745_v35, %v7448_v61  ;;  %v8062_v38 = vadd.f32 %v13771_v43, %v7657_v2  ;;  %v7781_v32 = vpop.f32.mrf.mxu0  ;;  %v7990_v50 = vpop.f32.mrf.mxu1 }
 0x5b1   : > { %v8147_v39 = vadd.f32 %v8131_v19, %v8099_v60  ;;  %v8098_v26 = vmax.f32 %v8082_v15, 0.0  ;;  %v8130_v54 = vmax.f32 %v8114_v22, 0.0  ;;  %v7852_v53 = vadd.f32 %v7781_v32, %v7447_v27 }
 0x5b2   : > { %v8085_v63 = vadd.f32 %v18415_v59, %v7853_v3  ;;  %v8117_v57 = vadd.f32 %v18415_v59, %v8062_v38  ;;  %v8061_v25 = vadd.f32 %v7990_v50, %v7656_v46  ;;  %v13748_v9 = vpop.f32.mrf.mxu0  ;;  %v13774_v47 = vpop.f32.mrf.mxu1 }
 0x5b3   : > { %v8163_v30 = vmul.f32 0.5, %v8147_v39  ;;  %v8146_v13 = vadd.f32 %v8130_v54, %v8098_v26  ;;  %v8084_v61 = vadd.f32 %v18415_v59, %v7852_v53  ;;  %v7855_v2 = vadd.f32 %v13748_v9, %v7450_v14 }
 0x5b4   : > { %v8101_v29 = vmax.f32 %v8085_v63, 0.0  ;;  %v8133_v40 = vmax.f32 %v8117_v57, 0.0  ;;  %v8116_v11 = vadd.f32 %v18415_v59, %v8061_v25  ;;  %v8064_v5 = vadd.f32 %v13774_v47, %v7659_v52  ;;  %v7791_v27 = vpop.f32.mrf.mxu0  ;;  %v8000_v0 = vpop.f32.mrf.mxu1 }
 0x5b5   : > { %8179 = vst.msk [vmem:[#allocation3 + $0x10] sm:$0xff] %vm279_vm4, %v8163_v30  ;;  %v8162_v62 = vmul.f32 0.5, %v8146_v13  ;;  %v8100_v36 = vmax.f32 %v8084_v61, 0.0  ;;  %v8087_v46 = vadd.f32 %v18415_v59, %v7855_v2  ;;  %v7854_v12 = vadd.f32 %v7791_v27, %v18386_v31 }
 0x5b6   : > { %v8149_v7 = vadd.f32 %v8133_v40, %v8101_v29  ;;  %v8132_v45 = vmax.f32 %v8116_v11, 0.0  ;;  %v8119_v1 = vadd.f32 %v18415_v59, %v8064_v5  ;;  %v8063_v14 = vadd.f32 %v8000_v0, %v18389_v17  ;;  %v13751_v6 = vpop.f32.mrf.mxu0  ;;  %v13777_v10 = vpop.f32.mrf.mxu1 }
 0x5b7   : > { %8178 = vst.msk [vmem:[#allocation3 + $0x8] sm:$0xff] %vm279_vm4, %v8162_v62  ;;  %v8103_v52 = vmax.f32 %v8087_v46, 0.0  ;;  %v8086_v21 = vadd.f32 %v18415_v59, %v7854_v12  ;;  %v7857_v35 = vadd.f32 %v13751_v6, %v18392_v58  ;;  %v8066_v43 = vadd.f32 %v13777_v10, %v18395_v18 }
 0x5b8   : > { %v8165_v60 = vmul.f32 0.5, %v8149_v7  ;;  %v8148_v19 = vadd.f32 %v8132_v45, %v8100_v36  ;;  %v8135_v31 = vmax.f32 %v8119_v1, 0.0  ;;  %v8118_v15 = vadd.f32 %v18415_v59, %v8063_v14  ;;  %v7801_v22 = vpop.f32.mrf.mxu0  ;;  %v8010_v3 = vpop.f32.mrf.mxu1 }
 0x5b9   : > { %v8102_v38 = vmax.f32 %v8086_v21, 0.0  ;;  %v8089_v17 = vadd.f32 %v18415_v59, %v7857_v35  ;;  %v8121_v32 = vadd.f32 %v18415_v59, %v8066_v43  ;;  %v7856_v50 = vadd.f32 %v7801_v22, %v18398_v20 }
 0x5ba   : > { %8181 = vst.msk [vmem:[#allocation3 + $0x20] sm:$0xff] %vm279_vm4, %v8165_v60  ;;  %v8164_v39 = vmul.f32 0.5, %v8148_v19  ;;  %v8151_v58 = vadd.f32 %v8135_v31, %v8103_v52  ;;  %v8134_v26 = vmax.f32 %v8118_v15, 0.0  ;;  %v8065_v18 = vadd.f32 %v8010_v3, %v18401_v23  ;;  %v13754_v54 = vpop.f32.mrf.mxu0  ;;  %v13780_v53 = vpop.f32.mrf.mxu1 }
 0x5bb   : > { %v8105_v63 = vmax.f32 %v8089_v17, 0.0  ;;  %v8137_v57 = vmax.f32 %v8121_v32, 0.0  ;;  %v8088_v25 = vadd.f32 %v18415_v59, %v7856_v50  ;;  %v7859_v9 = vadd.f32 %v13754_v54, %v18404_v56 }
 0x5bc   : > { %8180 = vst.msk [vmem:[#allocation3 + $0x18] sm:$0xff] %vm279_vm4, %v8164_v39  ;;  %v8167_v47 = vmul.f32 0.5, %v8151_v58  ;;  %v8150_v30 = vadd.f32 %v8134_v26, %v8102_v38  ;;  %v8120_v20 = vadd.f32 %v18415_v59, %v8065_v18  ;;  %v8068_v13 = vadd.f32 %v13780_v53, %v18407_v37  ;;  %v7811_v61 = vpop.f32.mrf.mxu0  ;;  %v8020_v2 = vpop.f32.mrf.mxu1 }
 0x5bd   : > { %v8153_v29 = vadd.f32 %v8137_v57, %v8105_v63  ;;  %v8104_v23 = vmax.f32 %v8088_v25, 0.0  ;;  %v8091_v40 = vadd.f32 %v18415_v59, %v7859_v9  ;;  %v7858_v11 = vadd.f32 %v7811_v61, %v18410_v49  ;;  %v19294_v9 = vld [vmem:[#allocation4_spill] sm:$0xff] }
 0x5be   : > { %8183 = vst.msk [vmem:[#allocation3 + $0x30] sm:$0xff] %vm279_vm4, %v8167_v47  ;;  %v8166_v5 = vmul.f32 0.5, %v8150_v30  ;;  %v8136_v56 = vmax.f32 %v8120_v20, 0.0  ;;  %v8123_v27 = vadd.f32 %v18415_v59, %v8068_v13  ;;  %v8067_v0 = vadd.f32 %v8020_v2, %v18418_v55  ;;  %v13757_v62 = vpop.f32.mrf.mxu0  ;;  %v13783_v36 = vpop.f32.mrf.mxu1  ;;  %v18479_v46 = vld [vmem:[#allocation3 + $0x6] ss:$2 sm:$0xff]  ;;  %v19295_v47 = vld [vmem:[#allocation24_spill] sm:$0xff] }
 0x5bf   : > { %v8202_v37 = vld [vmem:[#allocation3 + $0x5] ss:$2 sm:$0xff]  ;;  %v8169_v12 = vmul.f32 0.5, %v8153_v29  ;;  %v8107_v7 = vmax.f32 %v8091_v40, 0.0  ;;  %v8090_v45 = vadd.f32 %v18415_v59, %v7858_v11  ;;  %v7861_v1 = vadd.f32 %v13757_v62, %v18421_v34  ;;  %13792 = vmatprep.mubr.msk.f32.mxu0 %vm279_vm4, %v18479_v46 }
 0x5c0   : > { %13806 = vmatprep.mubr.msk.f32.mxu1 %vm279_vm4, %v8202_v37  ;;  %8182 = vst.msk [vmem:[#allocation3 + $0x28] sm:$0xff] %vm279_vm4, %v8166_v5  ;;  %v8152_v49 = vadd.f32 %v8136_v56, %v8104_v23  ;;  %v8139_v55 = vmax.f32 %v8123_v27, 0.0  ;;  %v8122_v14 = vadd.f32 %v18415_v59, %v8067_v0  ;;  %v8070_v6 = vadd.f32 %v13783_v36, %v18424_v42  ;;  %v7821_v10 = vpop.f32.mrf.mxu0  ;;  %v8030_v52 = vpop.f32.mrf.mxu1  ;;  %v18497_v42 = vld [vmem:[%s18810_s5 + $0x10] sm:$0x3f] }
 0x5c1   : > { %8185 = vst.msk [vmem:[#allocation3 + $0x40] sm:$0xff] %vm279_vm4, %v8169_v12  ;;  %v8106_v21 = vmax.f32 %v8090_v45, 0.0  ;;  %v8093_v34 = vadd.f32 %v18415_v59, %v7861_v1  ;;  %v7860_v35 = vadd.f32 %v7821_v10, %v18426_v16  ;;  %v8069_v43 = vadd.f32 %v8030_v52, %v18428_v33 }
 0x5c2   : > { %v8168_v60 = vmul.f32 0.5, %v8152_v49  ;;  %v8155_v19 = vadd.f32 %v8139_v55, %v8107_v7  ;;  %v8138_v31 = vmax.f32 %v8122_v14, 0.0  ;;  %v8125_v15 = vadd.f32 %v18415_v59, %v8070_v6  ;;  %v13760_v22 = vpop.f32.mrf.mxu0  ;;  %v13786_v3 = vpop.f32.mrf.mxu1 }
 0x5c3   : > { %v8109_v38 = vmax.f32 %v8093_v34, 0.0  ;;  %v8092_v17 = vadd.f32 %v18415_v59, %v7860_v35  ;;  %v8124_v32 = vadd.f32 %v18415_v59, %v8069_v43  ;;  %v7863_v16 = vadd.f32 %v13760_v22, %v18430_v4  ;;  %v18502_v33 = vld [vmem:[#allocation3 + $0x16] ss:$2 sm:$0xff]  ;;  %v8204_v50 = vld [vmem:[#allocation3 + $0x15] ss:$2 sm:$0xff] }
 0x5c4   : > { %8184 = vst.msk [vmem:[#allocation3 + $0x38] sm:$0xff] %vm279_vm4, %v8168_v60  ;;  %v8171_v39 = vmul.f32 0.5, %v8155_v19  ;;  %v8154_v58 = vadd.f32 %v8138_v31, %v8106_v21  ;;  %v8141_v26 = vmax.f32 %v8125_v15, 0.0  ;;  %v8072_v18 = vadd.f32 %v13786_v3, %v18434_v48  ;;  %13793 = vmatmul.mubr.msk.f32.vlgmr.msra.gmra.mxu0 %vm279_vm4, %v18502_v33  ;;  %13807 = vmatmul.mubr.msk.f32.vlgmr.msra.gmra.mxu1 %vm279_vm4, %v8204_v50  ;;  %v7831_v54 = vpop.f32.mrf.mxu0  ;;  %v8040_v53 = vpop.f32.mrf.mxu1 }
 0x5c5   : > { %v8108_v63 = vmax.f32 %v8092_v17, 0.0  ;;  %v8140_v57 = vmax.f32 %v8124_v32, 0.0  ;;  %v8095_v4 = vadd.f32 %v18415_v59, %v7863_v16  ;;  %v7862_v25 = vadd.f32 %v7831_v54, %v18436_v8  ;;  %13819 = vmatpush3.msk.msra.mxu0 %vm5367_vm3, %v19294_v9  ;;  %13833 = vmatpush3.msk.msra.mxu1 %vm5367_vm3, %v19295_v47 }
 0x5c6   : > { %8187 = vst.msk [vmem:[#allocation3 + $0x50] sm:$0xff] %vm279_vm4, %v8171_v39  ;;  %v8170_v48 = vmul.f32 0.5, %v8154_v58  ;;  %v8157_v30 = vadd.f32 %v8141_v26, %v8109_v38  ;;  %v8127_v20 = vadd.f32 %v18415_v59, %v8072_v18  ;;  %v8071_v13 = vadd.f32 %v8040_v53, %v18438_v28  ;;  %v13763_v61 = vpop.f32.mrf.mxu0  ;;  %v13789_v2 = vpop.f32.mrf.mxu1  ;;  %13846 = vmatprep.subr.msk.mxu0 %vm5367_vm3, %v18497_v42  ;;  %v8234_v39 = vld [vmem:[#allocation3 + $0x7] ss:$2 sm:$0xff]  ;;  %v8236_v58 = vld [vmem:[#allocation3 + $0x17] ss:$2 sm:$0xff] }
 0x5c7   : > { %13860 = vmatprep.subr.msk.mxu1 %vm5367_vm3, %v18497_v42  ;;  %v8156_v8 = vadd.f32 %v8140_v57, %v8108_v63  ;;  %v8111_v29 = vmax.f32 %v8095_v4, 0.0  ;;  %v8094_v23 = vadd.f32 %v18415_v59, %v7862_v25  ;;  %v7865_v40 = vadd.f32 %v13763_v61, %v18440_v24  ;;  %v18524_v11 = vld [vmem:[#allocation3 + $0x26] ss:$2 sm:$0xff]  ;;  %v8206_v5 = vld [vmem:[#allocation3 + $0x25] ss:$2 sm:$0xff] }
 0x5c8   : > { %8186 = vst.msk [vmem:[#allocation3 + $0x48] sm:$0xff] %vm279_vm4, %v8170_v48  ;;  %v8173_v28 = vmul.f32 0.5, %v8157_v30  ;;  %v8143_v56 = vmax.f32 %v8127_v20, 0.0  ;;  %v8126_v27 = vadd.f32 %v18415_v59, %v8071_v13  ;;  %v8074_v0 = vadd.f32 %v13789_v2, %v18444_v41  ;;  %13795 = vmatprep.mubr.msk.f32.mxu0 %vm279_vm4, %v18524_v11  ;;  %13809 = vmatprep.mubr.msk.f32.mxu1 %vm279_vm4, %v8206_v5  ;;  %v7841_v62 = vpop.f32.mrf.mxu0  ;;  %v8050_v36 = vpop.f32.mrf.mxu1  ;;  %v8197_v26 = vld [vmem:[%s18810_s5 + $0x18] sm:$0x3f] }
 0x5c9   : > { %v8172_v37 = vmul.f32 0.5, %v8156_v8  ;;  %v8110_v24 = vmax.f32 %v8094_v23, 0.0  ;;  %v8097_v12 = vadd.f32 %v18415_v59, %v7865_v40  ;;  %v7864_v7 = vadd.f32 %v7841_v62, %v18446_v44  ;;  %v8238_v18 = vld [vmem:[#allocation3 + $0x27] ss:$2 sm:$0xff]  ;;  %v8748_v63 = vld [vmem:[#allocation3 + $0x8] ss:$2 sm:$0xff] }
 0x5ca   : > { %8189 = vst.msk [vmem:[#allocation3 + $0x60] sm:$0xff] %vm279_vm4, %v8173_v28  ;;  %v8159_v45 = vadd.f32 %v8143_v56, %v8111_v29  ;;  %v8142_v1 = vmax.f32 %v8126_v27, 0.0  ;;  %v8129_v49 = vadd.f32 %v18415_v59, %v8074_v0  ;;  %v8073_v41 = vadd.f32 %v8050_v36, %v18448_v51  ;;  %v8750_v57 = vld [vmem:[#allocation3 + $0x18] ss:$2 sm:$0xff]  ;;  %v8752_v25 = vld [vmem:[#allocation3 + $0x28] ss:$2 sm:$0xff] }
 0x5cb   : > { %8188 = vst.msk [vmem:[#allocation3 + $0x58] sm:$0xff] %vm279_vm4, %v8172_v37  ;;  %v8113_v55 = vmax.f32 %v8097_v12, 0.0  ;;  %v8096_v14 = vadd.f32 %v18415_v59, %v7864_v7  ;;  %v8224_v6 = vld [vmem:[#allocation3 + $0x36] ss:$2 sm:$0xff]  ;;  %v8208_v10 = vld [vmem:[#allocation3 + $0x35] ss:$2 sm:$0xff] }
 0x5cc   : > { %v8175_v52 = vmul.f32 0.5, %v8159_v45  ;;  %v8158_v21 = vadd.f32 %v8142_v1, %v8110_v24  ;;  %v8145_v34 = vmax.f32 %v8129_v49, 0.0  ;;  %v8128_v44 = vadd.f32 %v18415_v59, %v8073_v41  ;;  %13796 = vmatmul.mubr.msk.f32.gmra.mxu0 %vm279_vm4, %v8224_v6  ;;  %13810 = vmatmul.mubr.msk.f32.gmra.mxu1 %vm279_vm4, %v8208_v10  ;;  %v8198_v4 = vld [vmem:[%s18810_s5 + $0x20] sm:$0x3f]  ;;  %v9017_v13 = vld [vmem:[#allocation3 + $0x9] ss:$2 sm:$0xff] }
 0x5cd   : > { %v8112_v35 = vmax.f32 %v8096_v14, 0.0  ;;  %v8754_v9 = vld [vmem:[#allocation3 + $0x38] ss:$2 sm:$0xff]  ;;  %v9019_v61 = vld [vmem:[#allocation3 + $0x19] ss:$2 sm:$0xff] }
 0x5ce   : > { %8191 = vst.msk [vmem:[#allocation3 + $0x70] sm:$0xff] %vm279_vm4, %v8175_v52  ;;  %v8174_v51 = vmul.f32 0.5, %v8158_v21  ;;  %v8161_v43 = vadd.f32 %v8145_v34, %v8113_v55  ;;  %v8144_v60 = vmax.f32 %v8128_v44, 0.0  ;;  %v8199_v2 = vld [vmem:[%s18810_s5 + $0x28] sm:$0x3f] }
 0x5cf   : > { %v8226_v19 = vld [vmem:[#allocation3 + $0x46] ss:$2 sm:$0xff]  ;;  %v8210_v31 = vld [vmem:[#allocation3 + $0x45] ss:$2 sm:$0xff] }
 0x5d0   : > { %8190 = vst.msk [vmem:[#allocation3 + $0x68] sm:$0xff] %vm279_vm4, %v8174_v51  ;;  %v8177_v15 = vmul.f32 0.5, %v8161_v43  ;;  %v8160_v22 = vadd.f32 %v8144_v60, %v8112_v35  ;;  %13798 = vmatprep.mubr.msk.f32.mxu0 %vm279_vm4, %v8226_v19  ;;  %13812 = vmatprep.mubr.msk.f32.mxu1 %vm279_vm4, %v8210_v31  ;;  %v8756_v47 = vld [vmem:[#allocation3 + $0x48] ss:$2 sm:$0xff]  ;;  %v9021_v8 = vld [vmem:[#allocation3 + $0x29] ss:$2 sm:$0xff] }
 0x5d1   : > { %v9023_v29 = vld [vmem:[#allocation3 + $0x39] ss:$2 sm:$0xff]  ;;  %v9025_v23 = vld [vmem:[#allocation3 + $0x49] ss:$2 sm:$0xff]  ;;  %v9286_v28 = vld [vmem:[#allocation3 + $0xa] ss:$2 sm:$0xff] }
 0x5d2   : > { %8193 = vst.msk [vmem:[#allocation3 + $0x80] sm:$0xf] %vm331_vm5, %v8177_v15  ;;  %v8176_v59 = vmul.f32 0.5, %v8160_v22  ;;  %v8228_v3 = vld [vmem:[#allocation3 + $0x56] ss:$2 sm:$0xff] }
 0x5d3   : > { %v8212_v38 = vld [vmem:[#allocation3 + $0x55] ss:$2 sm:$0xff]  ;;  %13799 = vmatmul.mubr.msk.f32.gmra.mxu0 %vm279_vm4, %v8228_v3  ;;  %v8758_v48 = vld [vmem:[#allocation3 + $0x58] ss:$2 sm:$0xff]  ;;  %v8200_v27 = vld [vmem:[%s18810_s5 + $0x30] sm:$0x3f] }
 0x5d4   : > { %13813 = vmatmul.mubr.msk.f32.gmra.mxu1 %vm279_vm4, %v8212_v38  ;;  %8192 = vst.msk [vmem:[#allocation3 + $0x78] sm:$0xff] %vm279_vm4, %v8176_v59  ;;  %v9027_v40 = vld [vmem:[#allocation3 + $0x59] ss:$2 sm:$0xff]  ;;  %v9288_v56 = vld [vmem:[#allocation3 + $0x1a] ss:$2 sm:$0xff] }
 0x5d5   : > { %v9290_v0 = vld [vmem:[#allocation3 + $0x2a] ss:$2 sm:$0xff]  ;;  %v9292_v62 = vld [vmem:[#allocation3 + $0x3a] ss:$2 sm:$0xff]  ;;  %v9555_v7 = vld [vmem:[#allocation3 + $0xb] ss:$2 sm:$0xff] }
 0x5d6   : > { %v9294_v36 = vld [vmem:[#allocation3 + $0x4a] ss:$2 sm:$0xff]  ;;  %v9557_v45 = vld [vmem:[#allocation3 + $0x1b] ss:$2 sm:$0xff]  ;;  %v9559_v1 = vld [vmem:[#allocation3 + $0x2b] ss:$2 sm:$0xff] }
 0x5d7   : > { %v8230_v17 = vld [vmem:[#allocation3 + $0x66] ss:$2 sm:$0xff]  ;;  %v8214_v32 = vld [vmem:[#allocation3 + $0x65] ss:$2 sm:$0xff] }
 0x5d8   : > { %13801 = vmatprep.mubr.msk.f32.mxu0 %vm279_vm4, %v8230_v17  ;;  %13815 = vmatprep.mubr.msk.f32.mxu1 %vm279_vm4, %v8214_v32  ;;  %v8246_v54 = vld [vmem:[#allocation3 + $0x67] ss:$2 sm:$0xff]  ;;  %v8760_v30 = vld [vmem:[#allocation3 + $0x68] ss:$2 sm:$0xff] }
 0x5d9   : > { %v9296_v37 = vld [vmem:[#allocation3 + $0x5a] ss:$2 sm:$0xff]  ;;  %v9561_v49 = vld [vmem:[#allocation3 + $0x3b] ss:$2 sm:$0xff]  ;;  %v9563_v41 = vld [vmem:[#allocation3 + $0x4b] ss:$2 sm:$0xff] }
 0x5da   : > { %v9565_v55 = vld [vmem:[#allocation3 + $0x5b] ss:$2 sm:$0xff]  ;;  %v9824_v10 = vld [vmem:[#allocation3 + $0xc] ss:$2 sm:$0xff]  ;;  %v9826_v52 = vld [vmem:[#allocation3 + $0x1c] ss:$2 sm:$0xff] }
 0x5db   : > { %v8232_v16 = vld [vmem:[#allocation3 + $0x76] ss:$2 sm:$0x3f]  ;;  %v8216_v50 = vld [vmem:[#allocation3 + $0x75] ss:$2 sm:$0x3f] }
 0x5dc   : > { %13802 = vmatmul.mubr.msk.f32.gmra.mxu0 %vm279_vm4, %v8232_v16  ;;  %13816 = vmatmul.mubr.msk.f32.gmra.mxu1 %vm279_vm4, %v8216_v50  ;;  %v8248_v53 = vld [vmem:[#allocation3 + $0x77] ss:$2 sm:$0x3f]  ;;  %v8762_v20 = vld [vmem:[#allocation3 + $0x78] ss:$2 sm:$0x3f] }
 0x5dd   : > { %13820 = vmatprep.mubr.msk.f32.mxu0 %vm279_vm4, %v8234_v39  ;;  %13834 = vmatprep.mubr.msk.f32.mxu1 %vm279_vm4, %v18479_v46  ;;  %v8240_v46 = vld [vmem:[#allocation3 + $0x37] ss:$2 sm:$0xff]  ;;  %v9298_v24 = vld [vmem:[#allocation3 + $0x6a] ss:$2 sm:$0xff] }
 0x5de   : > { %v9031_v5 = vld [vmem:[#allocation3 + $0x79] ss:$2 sm:$0x3f]  ;;  %v9300_v12 = vld [vmem:[#allocation3 + $0x7a] ss:$2 sm:$0x3f] }
 0x5df   : > { %v9567_v14 = vld [vmem:[#allocation3 + $0x6b] ss:$2 sm:$0xff]  ;;  %v9828_v21 = vld [vmem:[#allocation3 + $0x2c] ss:$2 sm:$0xff]  ;;  %v9830_v34 = vld [vmem:[#allocation3 + $0x3c] ss:$2 sm:$0xff] }
 0x5e0   : > { %13821 = vmatmul.mubr.msk.f32.vlgmr.msra.gmra.mxu0 %vm279_vm4, %v8236_v58  ;;  %13835 = vmatmul.mubr.msk.f32.vlgmr.msra.gmra.mxu1 %vm279_vm4, %v18502_v33  ;;  %v8242_v33 = vld [vmem:[#allocation3 + $0x47] ss:$2 sm:$0xff]  ;;  %v9832_v44 = vld [vmem:[#allocation3 + $0x4c] ss:$2 sm:$0xff]  ;;  %v9834_v35 = vld [vmem:[#allocation3 + $0x5c] ss:$2 sm:$0xff] }
 0x5e1   : > { %13847 = vmatpush3.msk.msra.mxu0 %vm5367_vm3, %v18497_v42  ;;  %13861 = vmatpush3.msk.msra.mxu1 %vm5367_vm3, %v18497_v42  ;;  %v8244_v42 = vld [vmem:[#allocation3 + $0x57] ss:$2 sm:$0xff]  ;;  %v9836_v51 = vld [vmem:[#allocation3 + $0x6c] ss:$2 sm:$0xff] }
 0x5e2   : > { %13823 = vmatprep.mubr.msk.f32.mxu0 %vm279_vm4, %v8238_v18  ;;  %13837 = vmatprep.mubr.msk.f32.mxu1 %vm279_vm4, %v18524_v11  ;;  %v9029_v11 = vld [vmem:[#allocation3 + $0x69] ss:$2 sm:$0xff]  ;;  %v9838_v43 = vld [vmem:[#allocation3 + $0x7c] ss:$2 sm:$0x3f] }
 0x5e3   : > { %13874 = vmatprep.subr.msk.mxu0 %vm5367_vm3, %v8197_v26  ;;  %13888 = vmatprep.subr.msk.mxu1 %vm5367_vm3, %v8197_v26 }
 0x5e4   : > { %13824 = vmatmul.mubr.msk.f32.gmra.mxu0 %vm279_vm4, %v8240_v46  ;;  %13838 = vmatmul.mubr.msk.f32.gmra.mxu1 %vm279_vm4, %v8224_v6  ;;  %v9569_v6 = vld [vmem:[#allocation3 + $0x7b] ss:$2 sm:$0x3f] }
 0x5e5   : > { %13826 = vmatprep.mubr.msk.f32.mxu0 %vm279_vm4, %v8242_v33  ;;  %13840 = vmatprep.mubr.msk.f32.mxu1 %vm279_vm4, %v8226_v19 }
 0x5e8   : > { %13827 = vmatmul.mubr.msk.f32.gmra.mxu0 %vm279_vm4, %v8244_v42  ;;  %13841 = vmatmul.mubr.msk.f32.gmra.mxu1 %vm279_vm4, %v8228_v3 }
 0x5e9   : > { %13829 = vmatprep.mubr.msk.f32.mxu0 %vm279_vm4, %v8246_v54  ;;  %13843 = vmatprep.mubr.msk.f32.mxu1 %vm279_vm4, %v8230_v17 }
 0x5ec   : > { %13830 = vmatmul.mubr.msk.f32.gmra.mxu0 %vm279_vm4, %v8248_v53  ;;  %13844 = vmatmul.mubr.msk.f32.gmra.mxu1 %vm279_vm4, %v8232_v16 }
 0x5ed   : > { %13848 = vmatprep.mubr.msk.f32.mxu0 %vm279_vm4, %v8234_v39  ;;  %13862 = vmatprep.mubr.msk.f32.mxu1 %vm279_vm4, %v8748_v63 }
 0x5f0   : > { %13849 = vmatmul.mubr.msk.f32.vlgmr.msra.gmra.mxu0 %vm279_vm4, %v8236_v58  ;;  %13863 = vmatmul.mubr.msk.f32.vlgmr.msra.gmra.mxu1 %vm279_vm4, %v8750_v57 }
 0x5f1   : > { %13875 = vmatpush3.msk.msra.mxu0 %vm5367_vm3, %v8197_v26  ;;  %13889 = vmatpush3.msk.msra.mxu1 %vm5367_vm3, %v8197_v26 }
 0x5f2   : > { %13851 = vmatprep.mubr.msk.f32.mxu0 %vm279_vm4, %v8238_v18  ;;  %13865 = vmatprep.mubr.msk.f32.mxu1 %vm279_vm4, %v8752_v25 }
 0x5f3   : > { %13902 = vmatprep.subr.msk.mxu0 %vm5367_vm3, %v8198_v4  ;;  %13916 = vmatprep.subr.msk.mxu1 %vm5367_vm3, %v8198_v4 }
 0x5f4   : > { %13852 = vmatmul.mubr.msk.f32.gmra.mxu0 %vm279_vm4, %v8240_v46  ;;  %13866 = vmatmul.mubr.msk.f32.gmra.mxu1 %vm279_vm4, %v8754_v9 }
 0x5f5   : > { %13854 = vmatprep.mubr.msk.f32.mxu0 %vm279_vm4, %v8242_v33  ;;  %13868 = vmatprep.mubr.msk.f32.mxu1 %vm279_vm4, %v8756_v47 }
 0x5f8   : > { %13855 = vmatmul.mubr.msk.f32.gmra.mxu0 %vm279_vm4, %v8244_v42  ;;  %13869 = vmatmul.mubr.msk.f32.gmra.mxu1 %vm279_vm4, %v8758_v48 }
 0x5f9   : > { %13857 = vmatprep.mubr.msk.f32.mxu0 %vm279_vm4, %v8246_v54  ;;  %13871 = vmatprep.mubr.msk.f32.mxu1 %vm279_vm4, %v8760_v30 }
 0x5fc   : > { %13858 = vmatmul.mubr.msk.f32.gmra.mxu0 %vm279_vm4, %v8248_v53  ;;  %13872 = vmatmul.mubr.msk.f32.gmra.mxu1 %vm279_vm4, %v8762_v20 }
 0x5fd   : > { %13876 = vmatprep.mubr.msk.f32.mxu0 %vm279_vm4, %v8748_v63  ;;  %13890 = vmatprep.mubr.msk.f32.mxu1 %vm279_vm4, %v9017_v13 }
 0x600   : > { %13877 = vmatmul.mubr.msk.f32.vlgmr.msra.gmra.mxu0 %vm279_vm4, %v8750_v57  ;;  %13891 = vmatmul.mubr.msk.f32.vlgmr.msra.gmra.mxu1 %vm279_vm4, %v9019_v61 }
 0x601   : > { %13903 = vmatpush3.msk.msra.mxu0 %vm5367_vm3, %v8198_v4  ;;  %13917 = vmatpush3.msk.msra.mxu1 %vm5367_vm3, %v8198_v4 }
 0x602   : > { %13879 = vmatprep.mubr.msk.f32.mxu0 %vm279_vm4, %v8752_v25  ;;  %13893 = vmatprep.mubr.msk.f32.mxu1 %vm279_vm4, %v9021_v8 }
 0x603   : > { %13930 = vmatprep.subr.msk.mxu0 %vm5367_vm3, %v8199_v2  ;;  %13944 = vmatprep.subr.msk.mxu1 %vm5367_vm3, %v8199_v2 }
 0x604   : > { %13880 = vmatmul.mubr.msk.f32.gmra.mxu0 %vm279_vm4, %v8754_v9  ;;  %13894 = vmatmul.mubr.msk.f32.gmra.mxu1 %vm279_vm4, %v9023_v29 }
 0x605   : > { %13882 = vmatprep.mubr.msk.f32.mxu0 %vm279_vm4, %v8756_v47  ;;  %13896 = vmatprep.mubr.msk.f32.mxu1 %vm279_vm4, %v9025_v23 }
 0x608   : > { %13883 = vmatmul.mubr.msk.f32.gmra.mxu0 %vm279_vm4, %v8758_v48  ;;  %13897 = vmatmul.mubr.msk.f32.gmra.mxu1 %vm279_vm4, %v9027_v40 }
 0x609   : > { %13885 = vmatprep.mubr.msk.f32.mxu0 %vm279_vm4, %v8760_v30  ;;  %13899 = vmatprep.mubr.msk.f32.mxu1 %vm279_vm4, %v9029_v11 }
 0x60c   : > { %13886 = vmatmul.mubr.msk.f32.gmra.mxu0 %vm279_vm4, %v8762_v20  ;;  %13900 = vmatmul.mubr.msk.f32.gmra.mxu1 %vm279_vm4, %v9031_v5 }
 0x60d   : > { %13904 = vmatprep.mubr.msk.f32.mxu0 %vm279_vm4, %v9017_v13  ;;  %13918 = vmatprep.mubr.msk.f32.mxu1 %vm279_vm4, %v9286_v28 }
 0x610   : > { %13905 = vmatmul.mubr.msk.f32.vlgmr.msra.gmra.mxu0 %vm279_vm4, %v9019_v61  ;;  %13919 = vmatmul.mubr.msk.f32.vlgmr.msra.gmra.mxu1 %vm279_vm4, %v9288_v56 }
 0x611   : > { %13931 = vmatpush3.msk.msra.mxu0 %vm5367_vm3, %v8199_v2  ;;  %13945 = vmatpush3.msk.msra.mxu1 %vm5367_vm3, %v8199_v2 }
 0x612   : > { %13907 = vmatprep.mubr.msk.f32.mxu0 %vm279_vm4, %v9021_v8  ;;  %13921 = vmatprep.mubr.msk.f32.mxu1 %vm279_vm4, %v9290_v0 }
 0x613   : > { %13958 = vmatprep.subr.msk.mxu0 %vm5367_vm3, %v8200_v27  ;;  %13972 = vmatprep.subr.msk.mxu1 %vm5367_vm3, %v8200_v27 }
 0x614   : > { %13908 = vmatmul.mubr.msk.f32.gmra.mxu0 %vm279_vm4, %v9023_v29  ;;  %13922 = vmatmul.mubr.msk.f32.gmra.mxu1 %vm279_vm4, %v9292_v62 }
 0x615   : > { %13910 = vmatprep.mubr.msk.f32.mxu0 %vm279_vm4, %v9025_v23  ;;  %13924 = vmatprep.mubr.msk.f32.mxu1 %vm279_vm4, %v9294_v36 }
 0x618   : > { %13911 = vmatmul.mubr.msk.f32.gmra.mxu0 %vm279_vm4, %v9027_v40  ;;  %13925 = vmatmul.mubr.msk.f32.gmra.mxu1 %vm279_vm4, %v9296_v37 }
 0x619   : > { %13913 = vmatprep.mubr.msk.f32.mxu0 %vm279_vm4, %v9029_v11  ;;  %13927 = vmatprep.mubr.msk.f32.mxu1 %vm279_vm4, %v9298_v24 }
 0x61c   : > { %13914 = vmatmul.mubr.msk.f32.gmra.mxu0 %vm279_vm4, %v9031_v5  ;;  %13928 = vmatmul.mubr.msk.f32.gmra.mxu1 %vm279_vm4, %v9300_v12 }
 0x61d   : > { %13932 = vmatprep.mubr.msk.f32.mxu0 %vm279_vm4, %v9286_v28  ;;  %13946 = vmatprep.mubr.msk.f32.mxu1 %vm279_vm4, %v9555_v7 }
 0x620   : > { %13933 = vmatmul.mubr.msk.f32.vlgmr.msra.gmra.mxu0 %vm279_vm4, %v9288_v56  ;;  %13947 = vmatmul.mubr.msk.f32.vlgmr.msra.gmra.mxu1 %vm279_vm4, %v9557_v45 }
 0x621   : > { %13959 = vmatpush3.msk.msra.mxu0 %vm5367_vm3, %v8200_v27  ;;  %13973 = vmatpush3.msk.msra.mxu1 %vm5367_vm3, %v8200_v27 }
 0x622   : > { %13935 = vmatprep.mubr.msk.f32.mxu0 %vm279_vm4, %v9290_v0  ;;  %13949 = vmatprep.mubr.msk.f32.mxu1 %vm279_vm4, %v9559_v1 }
 0x624   : > { %13936 = vmatmul.mubr.msk.f32.gmra.mxu0 %vm279_vm4, %v9292_v62  ;;  %13950 = vmatmul.mubr.msk.f32.gmra.mxu1 %vm279_vm4, %v9561_v49 }
 0x625   : > { %13938 = vmatprep.mubr.msk.f32.mxu0 %vm279_vm4, %v9294_v36  ;;  %13952 = vmatprep.mubr.msk.f32.mxu1 %vm279_vm4, %v9563_v41 }
 0x628   : > { %13939 = vmatmul.mubr.msk.f32.gmra.mxu0 %vm279_vm4, %v9296_v37  ;;  %13953 = vmatmul.mubr.msk.f32.gmra.mxu1 %vm279_vm4, %v9565_v55 }
 0x629   : > { %13941 = vmatprep.mubr.msk.f32.mxu0 %vm279_vm4, %v9298_v24  ;;  %13955 = vmatprep.mubr.msk.f32.mxu1 %vm279_vm4, %v9567_v14 }
 0x62c   : > { %13942 = vmatmul.mubr.msk.f32.gmra.mxu0 %vm279_vm4, %v9300_v12  ;;  %13956 = vmatmul.mubr.msk.f32.gmra.mxu1 %vm279_vm4, %v9569_v6 }
 0x62d   : > { %13960 = vmatprep.mubr.msk.f32.mxu0 %vm279_vm4, %v9555_v7  ;;  %13974 = vmatprep.mubr.msk.f32.mxu1 %vm279_vm4, %v9824_v10 }
 0x630   : > { %13961 = vmatmul.mubr.msk.f32.vlgmr.msra.gmra.mxu0 %vm279_vm4, %v9557_v45  ;;  %13975 = vmatmul.mubr.msk.f32.vlgmr.msra.gmra.mxu1 %vm279_vm4, %v9826_v52 }
 0x631   : > { %13963 = vmatprep.mubr.msk.f32.mxu0 %vm279_vm4, %v9559_v1  ;;  %13977 = vmatprep.mubr.msk.f32.mxu1 %vm279_vm4, %v9828_v21 }
 0x634   : > { %13964 = vmatmul.mubr.msk.f32.gmra.mxu0 %vm279_vm4, %v9561_v49  ;;  %13978 = vmatmul.mubr.msk.f32.gmra.mxu1 %vm279_vm4, %v9830_v34 }
 0x635   : > { %13966 = vmatprep.mubr.msk.f32.mxu0 %vm279_vm4, %v9563_v41  ;;  %13980 = vmatprep.mubr.msk.f32.mxu1 %vm279_vm4, %v9832_v44 }
 0x638   : > { %13967 = vmatmul.mubr.msk.f32.gmra.mxu0 %vm279_vm4, %v9565_v55  ;;  %13981 = vmatmul.mubr.msk.f32.gmra.mxu1 %vm279_vm4, %v9834_v35 }
 0x639   : > { %13969 = vmatprep.mubr.msk.f32.mxu0 %vm279_vm4, %v9567_v14  ;;  %13983 = vmatprep.mubr.msk.f32.mxu1 %vm279_vm4, %v9836_v51 }
 0x63c   : > { %13970 = vmatmul.mubr.msk.f32.gmra.mxu0 %vm279_vm4, %v9569_v6  ;;  %13984 = vmatmul.mubr.msk.f32.gmra.mxu1 %vm279_vm4, %v9838_v43 }
 0x684   : > { %v13794_v60 = vpop.f32.mrf.mxu0  ;;  %v13808_v19 = vpop.f32.mrf.mxu1 }
 0x685   : > { %v18685_v31 = vadd.f32 %v13808_v19, %v13794_v60 }
 0x686   : > { %v8342_v15 = vpop.f32.mrf.mxu0  ;;  %v8474_v22 = vpop.f32.mrf.mxu1 }
 0x687   : > { %v18687_v59 = vadd.f32 %v8474_v22, %v8342_v15 }
 0x68c   : > { %v13797_v3 = vpop.f32.mrf.mxu0  ;;  %v13811_v38 = vpop.f32.mrf.mxu1 }
 0x68d   : > { %v18689_v17 = vadd.f32 %v13811_v38, %v13797_v3 }
 0x68e   : > { %v8352_v32 = vpop.f32.mrf.mxu0  ;;  %v8484_v16 = vpop.f32.mrf.mxu1 }
 0x68f   : > { %v18691_v50 = vadd.f32 %v8484_v16, %v8352_v32 }
 0x693   : > { %v13800_v39 = vpop.f32.mrf.mxu0 }
 0x694   : > { %v13814_v58 = vpop.f32.mrf.mxu1 }
 0x695   : > { %v18693_v26 = vadd.f32 %v13814_v58, %v13800_v39  ;;  %v8362_v18 = vpop.f32.mrf.mxu0 }
 0x696   : > { %v8494_v46 = vpop.f32.mrf.mxu1 }
 0x697   : > { %v18695_v33 = vadd.f32 %v8494_v46, %v8362_v18 }
 0x699   : > { %19296 = vst [vmem:[#allocation45_spill] sm:$0xff] %v18695_v33 }
 0x69c   : > { %v13803_v42 = vpop.f32.mrf.mxu0  ;;  %v13817_v54 = vpop.f32.mrf.mxu1 }
 0x69d   : > { %v18697_v53 = vadd.f32 %v13817_v54, %v13803_v42 }
 0x69e   : > { %v8372_v63 = vpop.f32.mrf.mxu0  ;;  %v8504_v57 = vpop.f32.mrf.mxu1 }
 0x69f   : > { %19297 = vst [vmem:[#allocation25_spill] sm:$0xff] %v18697_v53  ;;  %v18699_v4 = vadd.f32 %v8504_v57, %v8372_v63 }
 0x6a0   : > { %v13822_v25 = vpop.f32.mrf.mxu0  ;;  %v13836_v9 = vpop.f32.mrf.mxu1 }
 0x6a1   : > { %19298 = vst [vmem:[#allocation6_spill] sm:$0xff] %v18699_v4  ;;  %v18701_v47 = vadd.f32 %v13836_v9, %v13822_v25 }
 0x6a2   : > { %v8603_v48 = vpop.f32.mrf.mxu0  ;;  %v8708_v30 = vpop.f32.mrf.mxu1 }
 0x6a3   : > { %v18703_v20 = vadd.f32 %v8708_v30, %v8603_v48 }
 0x6a4   : > { %v13825_v13 = vpop.f32.mrf.mxu0  ;;  %v13839_v61 = vpop.f32.mrf.mxu1 }
 0x6a5   : > { %v18705_v2 = vadd.f32 %v13839_v61, %v13825_v13 }
 0x6a6   : > { %v8613_v8 = vpop.f32.mrf.mxu0  ;;  %v8718_v29 = vpop.f32.mrf.mxu1 }
 0x6a7   : > { %v18707_v23 = vadd.f32 %v8718_v29, %v8613_v8 }
 0x6a8   : > { %v13828_v40 = vpop.f32.mrf.mxu0  ;;  %v13842_v11 = vpop.f32.mrf.mxu1 }
 0x6a9   : > { %v18709_v5 = vadd.f32 %v13842_v11, %v13828_v40 }
 0x6aa   : > { %v8623_v28 = vpop.f32.mrf.mxu0  ;;  %v8728_v56 = vpop.f32.mrf.mxu1 }
 0x6ab   : > { %19299 = vst [vmem:[#allocation26_spill] sm:$0xff] %v18709_v5  ;;  %v18711_v27 = vadd.f32 %v8728_v56, %v8623_v28 }
 0x6ac   : > { %v13831_v0 = vpop.f32.mrf.mxu0  ;;  %v13845_v62 = vpop.f32.mrf.mxu1 }
 0x6ad   : > { %19300 = vst [vmem:[#allocation9_spill] sm:$0xff] %v18711_v27  ;;  %v18713_v36 = vadd.f32 %v13845_v62, %v13831_v0 }
 0x6ae   : > { %v8633_v37 = vpop.f32.mrf.mxu0  ;;  %v8738_v24 = vpop.f32.mrf.mxu1 }
 0x6af   : > { %19301 = vst [vmem:[#allocation7_spill] sm:$0xff] %v18713_v36  ;;  %v18715_v12 = vadd.f32 %v8738_v24, %v8633_v37 }
 0x6b0   : > { %v13850_v7 = vpop.f32.mrf.mxu0  ;;  %v13864_v45 = vpop.f32.mrf.mxu1 }
 0x6b1   : > { %19302 = vst [vmem:[#allocation27_spill] sm:$0xff] %v18715_v12  ;;  %v8872_v27 = vadd.f32 %v13850_v7, %v18685_v31  ;;  %v9009_v33 = vadd.f32 %v13864_v45, %v18701_v47  ;;  %v19313_v45 = vld [vmem:[#allocation45_spill] sm:$0xff] }
 0x6b2   : > { %v8832_v1 = vpop.f32.mrf.mxu0  ;;  %v8969_v49 = vpop.f32.mrf.mxu1  ;;  %v19312_v7 = vld [vmem:[#allocation26_spill] sm:$0xff] }
 0x6b4   : > { %v13853_v41 = vpop.f32.mrf.mxu0  ;;  %v13867_v55 = vpop.f32.mrf.mxu1 }
 0x6b6   : > { %v8842_v14 = vpop.f32.mrf.mxu0  ;;  %v8979_v6 = vpop.f32.mrf.mxu1 }
 0x6b8   : > { %v13856_v10 = vpop.f32.mrf.mxu0  ;;  %v13870_v52 = vpop.f32.mrf.mxu1 }
 0x6b9   : > { %v8876_v31 = vadd.f32 %v13856_v10, %v18693_v26  ;;  %v9013_v47 = vadd.f32 %v13870_v52, %v19312_v7 }
 0x6ba   : > { %v8852_v21 = vpop.f32.mrf.mxu0  ;;  %v8989_v34 = vpop.f32.mrf.mxu1 }
 0x6bc   : > { %v13859_v44 = vpop.f32.mrf.mxu0  ;;  %v13873_v35 = vpop.f32.mrf.mxu1 }
 0x6be   : > { %v8862_v51 = vpop.f32.mrf.mxu0  ;;  %v8999_v43 = vpop.f32.mrf.mxu1 }
 0x6c0   : > { %v13878_v60 = vpop.f32.mrf.mxu0  ;;  %v13892_v19 = vpop.f32.mrf.mxu1 }
 0x6c1   : > { %v9278_v10 = vadd.f32 %v13892_v19, %v9009_v33 }
 0x6c2   : > { %v9101_v15 = vpop.f32.mrf.mxu0  ;;  %v9238_v22 = vpop.f32.mrf.mxu1 }
 0x6c4   : > { %v13881_v3 = vpop.f32.mrf.mxu0  ;;  %v13895_v38 = vpop.f32.mrf.mxu1 }
 0x6c6   : > { %v9111_v32 = vpop.f32.mrf.mxu0  ;;  %v9248_v16 = vpop.f32.mrf.mxu1 }
 0x6c8   : > { %v13884_v39 = vpop.f32.mrf.mxu0  ;;  %v13898_v58 = vpop.f32.mrf.mxu1 }
 0x6ca   : > { %v9121_v18 = vpop.f32.mrf.mxu0  ;;  %v9258_v46 = vpop.f32.mrf.mxu1 }
 0x6cc   : > { %v13887_v42 = vpop.f32.mrf.mxu0  ;;  %v13901_v54 = vpop.f32.mrf.mxu1 }
 0x6ce   : > { %v9131_v63 = vpop.f32.mrf.mxu0  ;;  %v9268_v57 = vpop.f32.mrf.mxu1 }
 0x6d0   : > { %v13906_v25 = vpop.f32.mrf.mxu0  ;;  %v13920_v9 = vpop.f32.mrf.mxu1 }
 0x6d2   : > { %v9370_v48 = vpop.f32.mrf.mxu0  ;;  %v9507_v30 = vpop.f32.mrf.mxu1 }
 0x6d4   : > { %v13909_v13 = vpop.f32.mrf.mxu0  ;;  %v13923_v61 = vpop.f32.mrf.mxu1 }
 0x6d6   : > { %v9380_v8 = vpop.f32.mrf.mxu0  ;;  %v9517_v29 = vpop.f32.mrf.mxu1 }
 0x6d8   : > { %v13912_v40 = vpop.f32.mrf.mxu0  ;;  %v13926_v11 = vpop.f32.mrf.mxu1 }
 0x6da   : > { %v9390_v28 = vpop.f32.mrf.mxu0  ;;  %v18717_v56 = vpop.f32.mrf.mxu1 }
 0x6db   : > { %19303 = vst [vmem:[#allocation35_spill] sm:$0xff] %v18717_v56  ;;  %v8871_v56 = vadd.f32 %v8832_v1, %v18687_v59  ;;  %v8875_v59 = vadd.f32 %v8852_v21, %v19313_v45 }
 0x6dc   : > { %v18719_v0 = vpop.f32.mrf.mxu0  ;;  %v18721_v62 = vpop.f32.mrf.mxu1 }
 0x6dd   : > { %19304 = vst [vmem:[#allocation8_spill] sm:$0xff] %v18719_v0  ;;  %19305 = vst [vmem:[#allocation16_spill] sm:$0xff] %v18721_v62  ;;  %v9011_v62 = vadd.f32 %v13867_v55, %v18705_v2  ;;  %v19317_v55 = vld [vmem:[#allocation6_spill] sm:$0xff]  ;;  %v9140_v26 = vadd.f32 %v9101_v15, %v8871_v56  ;;  %v9547_v15 = vadd.f32 %v13920_v9, %v9278_v10 }
 0x6de   : > { %v18723_v37 = vpop.f32.mrf.mxu0  ;;  %v18725_v24 = vpop.f32.mrf.mxu1 }
 0x6df   : > { %19306 = vst [vmem:[#allocation28_spill] sm:$0xff] %v18723_v37  ;;  %19307 = vst [vmem:[#allocation36_spill] sm:$0xff] %v18725_v24  ;;  %v9008_v37 = vadd.f32 %v8969_v49, %v18703_v20  ;;  %v8874_v24 = vadd.f32 %v13853_v41, %v18689_v17  ;;  %v19315_v49 = vld [vmem:[#allocation25_spill] sm:$0xff]  ;;  %v19316_v41 = vld [vmem:[#allocation7_spill] sm:$0xff]  ;;  %v9409_v56 = vadd.f32 %v9370_v48, %v9140_v26 }
 0x6e0   : > { %v13934_v12 = vpop.f32.mrf.mxu0  ;;  %v13948_v4 = vpop.f32.mrf.mxu1  ;;  %v8878_v17 = vadd.f32 %v13859_v44, %v19315_v49  ;;  %v9015_v2 = vadd.f32 %v13873_v35, %v19316_v41  ;;  %v9145_v49 = vadd.f32 %v13884_v39, %v8876_v31  ;;  %v9282_v35 = vadd.f32 %v13898_v58, %v9013_v47 }
 0x6e1   : > { %v9277_v21 = vadd.f32 %v9238_v22, %v9008_v37  ;;  %v9143_v45 = vadd.f32 %v13881_v3, %v8874_v24  ;;  %v9144_v41 = vadd.f32 %v9121_v18, %v8875_v59 }
 0x6e2   : > { %v18727_v36 = vpop.f32.mrf.mxu0  ;;  %v18729_v53 = vpop.f32.mrf.mxu1 }
 0x6e3   : > { %19308 = vst [vmem:[#allocation17_spill] sm:$0xff] %v18727_v36  ;;  %19309 = vst [vmem:[#allocation37_spill] sm:$0xff] %v18729_v53  ;;  %v8873_v36 = vadd.f32 %v8842_v14, %v18691_v50  ;;  %v9010_v53 = vadd.f32 %v8979_v6, %v18707_v23  ;;  %v8877_v14 = vadd.f32 %v8862_v51, %v19317_v55  ;;  %v19318_v50 = vld [vmem:[#allocation27_spill] sm:$0xff] }
 0x6e4   : > { %v18734_v5 = vpop.f32.mrf.mxu0  ;;  %v18736_v0 = vpop.f32.mrf.mxu1  ;;  %v9014_v6 = vadd.f32 %v8999_v43, %v19318_v50  ;;  %v9141_v23 = vadd.f32 %v13878_v60, %v8872_v27  ;;  %v9147_v50 = vadd.f32 %v13887_v42, %v8878_v17  ;;  %v9284_v27 = vadd.f32 %v13901_v54, %v9015_v2  ;;  %v19320_v54 = vld [vmem:[#allocation8_spill] sm:$0xff] }
 0x6e5   : > { %19310 = vst [vmem:[#allocation29_spill] sm:$0xff] %v18734_v5  ;;  %19311 = vst [vmem:[#allocation18_spill] sm:$0xff] %v18736_v0  ;;  %v19314_v0 = vld [vmem:[#allocation9_spill] sm:$0xff]  ;;  %v9279_v44 = vadd.f32 %v9248_v16, %v9010_v53  ;;  %v9146_v60 = vadd.f32 %v9131_v63, %v8877_v14  ;;  %v9546_v3 = vadd.f32 %v9507_v30, %v9277_v21  ;;  %v19321_v9 = vld [vmem:[#allocation16_spill] sm:$0xff] }
 0x6e6   : > { %v9649_v1 = vpop.f32.mrf.mxu0  ;;  %v9786_v5 = vpop.f32.mrf.mxu1  ;;  %v9012_v20 = vadd.f32 %v8989_v34, %v19314_v0  ;;  %v9280_v0 = vadd.f32 %v13895_v38, %v9011_v62  ;;  %v9142_v34 = vadd.f32 %v9111_v32, %v8873_v36  ;;  %v9283_v19 = vadd.f32 %v9268_v57, %v9014_v6  ;;  %v19322_v62 = vld [vmem:[#allocation28_spill] sm:$0xff] }
 0x6e7   : > { %v9410_v33 = vadd.f32 %v13906_v25, %v9141_v23  ;;  %v9412_v24 = vadd.f32 %v13909_v13, %v9143_v45  ;;  %v9548_v53 = vadd.f32 %v9517_v29, %v9279_v44  ;;  %v9414_v32 = vadd.f32 %v13912_v40, %v9145_v49  ;;  %v19323_v30 = vld [vmem:[#allocation36_spill] sm:$0xff] }
 0x6e8   : > { %v13940_v7 = vpop.f32.mrf.mxu0  ;;  %v13954_v52 = vpop.f32.mrf.mxu1  ;;  %v9281_v43 = vadd.f32 %v9258_v46, %v9012_v20  ;;  %v9549_v38 = vadd.f32 %v13923_v61, %v9280_v0  ;;  %v9411_v36 = vadd.f32 %v9380_v8, %v9142_v34  ;;  %v9551_v16 = vadd.f32 %v13926_v11, %v9282_v35  ;;  %v19319_v46 = vld [vmem:[#allocation35_spill] sm:$0xff]  ;;  %v18760_v40 = vld [vmem:[%s18811_s6] ss:$0 sm:$0xff] }
 0x6e9   : > { %v9413_v39 = vadd.f32 %v9390_v28, %v9144_v41  ;;  %v9416_v63 = vadd.f32 %v19320_v54, %v9147_v50  ;;  %v9679_v57 = vadd.f32 %v13934_v12, %v9410_v33  ;;  %v9816_v25 = vadd.f32 %v13948_v4, %v9547_v15 }
 0x6ea   : > { %v9659_v51 = vpop.f32.mrf.mxu0  ;;  %v9796_v55 = vpop.f32.mrf.mxu1  ;;  %v9550_v42 = vadd.f32 %v19319_v46, %v9281_v43  ;;  %v9553_v48 = vadd.f32 %v19321_v9, %v9284_v27  ;;  %v9415_v31 = vadd.f32 %v19322_v62, %v9146_v60  ;;  %v9552_v13 = vadd.f32 %v19323_v30, %v9283_v19  ;;  %v19324_v61 = vld [vmem:[#allocation17_spill] sm:$0xff] }
 0x6eb   : > { %v9678_v8 = vadd.f32 %v19324_v61, %v9409_v56  ;;  %v19325_v28 = vld [vmem:[#allocation37_spill] sm:$0xff]  ;;  %v9680_v14 = vadd.f32 %v9649_v1, %v9411_v36  ;;  %v9817_v6 = vadd.f32 %v9786_v5, %v9548_v53  ;;  %v9683_v23 = vadd.f32 %v13940_v7, %v9414_v32 }
 0x6ec   : > { %v13943_v22 = vpop.f32.mrf.mxu0  ;;  %v13957_v37 = vpop.f32.mrf.mxu1  ;;  %v9815_v47 = vadd.f32 %v19325_v28, %v9546_v3  ;;  %v19326_v59 = vld [vmem:[#allocation29_spill] sm:$0xff]  ;;  %v19327_v17 = vld [vmem:[#allocation18_spill] sm:$0xff]  ;;  %v9820_v44 = vadd.f32 %v13954_v52, %v9551_v16  ;;  %v9682_v49 = vadd.f32 %v9659_v51, %v9413_v39  ;;  %v9819_v35 = vadd.f32 %v9796_v55, %v9550_v42 }
 0x6ed   : > { %v9681_v12 = vadd.f32 %v19326_v59, %v9412_v24  ;;  %v9818_v2 = vadd.f32 %v19327_v17, %v9549_v38  ;;  %v9685_v41 = vadd.f32 %v13943_v22, %v9416_v63  ;;  %v9822_v60 = vadd.f32 %v13957_v37, %v9553_v48 }
 0x6ee   : > { %v9669_v58 = vpop.f32.mrf.mxu0  ;;  %v9806_v18 = vpop.f32.mrf.mxu1 }
 0x6ef   : > { %v9684_v19 = vadd.f32 %v9669_v58, %v9415_v31  ;;  %v9821_v22 = vadd.f32 %v9806_v18, %v9552_v13 }
 0x6f0   : > { %v13962_v29 = vpop.f32.mrf.mxu0  ;;  %v13976_v11 = vpop.f32.mrf.mxu1 }
 0x6f1   : > { %v9948_v4 = vadd.f32 %v13962_v29, %v9679_v57  ;;  %v10085_v20 = vadd.f32 %v13976_v11, %v9816_v25 }
 0x6f2   : > { %v9908_v10 = vpop.f32.mrf.mxu0  ;;  %v10045_v26 = vpop.f32.mrf.mxu1 }
 0x6f3   : > { %v10100_v21 = vadd.f32 %v18760_v40, %v9948_v4  ;;  %v10116_v45 = vadd.f32 %v18760_v40, %v10085_v20  ;;  %v9947_v0 = vadd.f32 %v9908_v10, %v9678_v8  ;;  %v10084_v34 = vadd.f32 %v10045_v26, %v9815_v47 }
 0x6f4   : > { %v13965_v43 = vpop.f32.mrf.mxu0  ;;  %v13979_v50 = vpop.f32.mrf.mxu1 }
 0x6f5   : > { %v10108_v27 = vmax.f32 %v10100_v21, 0.0  ;;  %v10124_v1 = vmax.f32 %v10116_v45, 0.0  ;;  %v10099_v5 = vadd.f32 %v18760_v40, %v9947_v0  ;;  %v10115_v7 = vadd.f32 %v18760_v40, %v10084_v34 }
 0x6f6   : > { %v9950_v33 = vadd.f32 %v13965_v43, %v9681_v12  ;;  %v10087_v15 = vadd.f32 %v13979_v50, %v9818_v2  ;;  %v9918_v56 = vpop.f32.mrf.mxu0  ;;  %v10055_v3 = vpop.f32.mrf.mxu1 }
 0x6f7   : > { %v10132_v24 = vadd.f32 %v10124_v1, %v10108_v27  ;;  %v10107_v52 = vmax.f32 %v10099_v5, 0.0  ;;  %v10123_v51 = vmax.f32 %v10115_v7, 0.0  ;;  %v9949_v55 = vadd.f32 %v9918_v56, %v9680_v14 }
 0x6f8   : > { %v10102_v38 = vadd.f32 %v18760_v40, %v9950_v33  ;;  %v10118_v37 = vadd.f32 %v18760_v40, %v10087_v15  ;;  %v10086_v36 = vadd.f32 %v10055_v3, %v9817_v6  ;;  %v13968_v53 = vpop.f32.mrf.mxu0  ;;  %v13982_v32 = vpop.f32.mrf.mxu1 }
 0x6f9   : > { %v10140_v16 = vmul.f32 0.5, %v10132_v24  ;;  %v10131_v39 = vadd.f32 %v10123_v51, %v10107_v52  ;;  %v10101_v58 = vadd.f32 %v18760_v40, %v9949_v55  ;;  %v9952_v46 = vadd.f32 %v13968_v53, %v9683_v23 }
 0x6fa   : > { %v10110_v42 = vmax.f32 %v10102_v38, 0.0  ;;  %v10126_v18 = vmax.f32 %v10118_v37, 0.0  ;;  %v10117_v54 = vadd.f32 %v18760_v40, %v10086_v36  ;;  %v10089_v63 = vadd.f32 %v13982_v32, %v9820_v44  ;;  %v9928_v57 = vpop.f32.mrf.mxu0  ;;  %v10065_v25 = vpop.f32.mrf.mxu1 }
 0x6fb   : > { %10148 = vst.msk [vmem:[%s18773_s25 + $0x8] sm:$0xff] %vm279_vm4, %v10140_v16  ;;  %v10139_v9 = vmul.f32 0.5, %v10131_v39  ;;  %v10109_v48 = vmax.f32 %v10101_v58, 0.0  ;;  %v10104_v62 = vadd.f32 %v18760_v40, %v9952_v46  ;;  %v9951_v31 = vadd.f32 %v9928_v57, %v9682_v49 }
 0x6fc   : > { %v10134_v30 = vadd.f32 %v10126_v18, %v10110_v42  ;;  %v10125_v13 = vmax.f32 %v10117_v54, 0.0  ;;  %v10120_v61 = vadd.f32 %v18760_v40, %v10089_v63  ;;  %v10088_v8 = vadd.f32 %v10065_v25, %v9819_v35  ;;  %v13971_v29 = vpop.f32.mrf.mxu0  ;;  %v13985_v11 = vpop.f32.mrf.mxu1 }
 0x6fd   : > { %10147 = vst.msk [vmem:[%s18773_s25] sm:$0xff] %vm279_vm4, %v10139_v9  ;;  %v10112_v28 = vmax.f32 %v10104_v62, 0.0  ;;  %v10103_v47 = vadd.f32 %v18760_v40, %v9951_v31  ;;  %v9954_v59 = vadd.f32 %v13971_v29, %v9685_v41  ;;  %v10091_v12 = vadd.f32 %v13985_v11, %v9822_v60 }
 0x6fe   : > { %v10142_v4 = vmul.f32 0.5, %v10134_v30  ;;  %v10133_v20 = vadd.f32 %v10125_v13, %v10109_v48  ;;  %v10128_v17 = vmax.f32 %v10120_v61, 0.0  ;;  %v10119_v2 = vadd.f32 %v18760_v40, %v10088_v8  ;;  %v9938_v14 = vpop.f32.mrf.mxu0  ;;  %v10075_v6 = vpop.f32.mrf.mxu1 }
 0x6ff   : > { %v10111_v23 = vmax.f32 %v10103_v47, 0.0  ;;  %v10106_v10 = vadd.f32 %v18760_v40, %v9954_v59  ;;  %v10122_v26 = vadd.f32 %v18760_v40, %v10091_v12  ;;  %v9953_v21 = vadd.f32 %v9938_v14, %v9684_v19 }
 0x700   : > { %10150 = vst.msk [vmem:[%s18773_s25 + $0x18] sm:$0xff] %vm279_vm4, %v10142_v4  ;;  %v10141_v45 = vmul.f32 0.5, %v10133_v20  ;;  %v10136_v0 = vadd.f32 %v10128_v17, %v10112_v28  ;;  %v10127_v34 = vmax.f32 %v10119_v2, 0.0  ;;  %v10090_v44 = vadd.f32 %v10075_v6, %v9821_v22 }
 0x701   : > { %v10114_v49 = vmax.f32 %v10106_v10, 0.0  ;;  %v10130_v35 = vmax.f32 %v10122_v26, 0.0  ;;  %v10105_v41 = vadd.f32 %v18760_v40, %v9953_v21 }
 0x702   : > { %10149 = vst.msk [vmem:[%s18773_s25 + $0x10] sm:$0xff] %vm279_vm4, %v10141_v45  ;;  %v10144_v43 = vmul.f32 0.5, %v10136_v0  ;;  %v10135_v50 = vadd.f32 %v10127_v34, %v10111_v23  ;;  %v10121_v27 = vadd.f32 %v18760_v40, %v10090_v44 }
 0x703   : > { %v10138_v1 = vadd.f32 %v10130_v35, %v10114_v49  ;;  %v10113_v5 = vmax.f32 %v10105_v41, 0.0 }
 0x704   : > { %10152 = vst.msk [vmem:[%s18773_s25 + $0x28] sm:$0xff] %vm279_vm4, %v10144_v43  ;;  %v10143_v7 = vmul.f32 0.5, %v10135_v50  ;;  %v10129_v60 = vmax.f32 %v10121_v27, 0.0 }
 0x705   : > { %v10146_v19 = vmul.f32 0.5, %v10138_v1 }
 0x706   : > { %10151 = vst.msk [vmem:[%s18773_s25 + $0x20] sm:$0xff] %vm279_vm4, %v10143_v7  ;;  %v10137_v33 = vadd.f32 %v10129_v60, %v10113_v5 }
 0x707   : > { %10155 = vst.msk [vmem:[%s18773_s25 + $0x38] sm:$0x3f] %vm10154_vm6, %v10146_v19 }
 0x708   : > { %v10145_v15 = vmul.f32 0.5, %v10137_v33 }
 0x70a   : > { %10153 = vst.msk [vmem:[%s18773_s25 + $0x30] sm:$0xff] %vm279_vm4, %v10145_v15 }
 0x70b PF: > { %s17_s24 = sadd.s32 1, %s14003_s24  }
 0x70c   : > { %p14_p4 = scmp.ge.s32.totalorder %s17_s24, 4  }
 0x70e   :  { %16 = sbr.rel (!%p14_p4) target bundleno = 1 (0x1), region = 517 }

</bundles_post_ra>
